<compile_context>
chip_gen: v5e
topology: v5e:2x2
jax: 0.10.0
libtpu: 0.0.40
codegen_flags: <defaults>
</compile_context>

<pallas_src>
import functools

import jax
import jax.numpy as jnp
from jax import lax
from jax.experimental import pallas as pl
from jax.experimental.pallas import tpu as pltpu

EPS = 1e-3


def _conv1x1_bn_kernel(x_ref, w_ref, gb_ref, o_ref, *, p_valid):
    # x_ref:  (C_in, P_pad)      bf16  -- shared (same block) across grid steps
    # w_ref:  (C_out_blk, C_in)  bf16
    # gb_ref: (C_out_blk, 2)     f32   -- [:, 0] = gamma, [:, 1] = beta
    # o_ref:  (C_out_blk, P_pad) f32
    x = x_ref[...]
    w = w_ref[...]

    # 1x1 conv == matmul on the MXU; bf16 operands, f32 accumulator.
    y = jnp.dot(w, x, preferred_element_type=jnp.float32)   # (C_out_blk, P_pad)

    inv_p = jnp.float32(1.0 / p_valid)

    # Padded columns of x are zero -> padded columns of y are exactly zero,
    # so they contribute nothing to s1.
    s1 = jnp.sum(y, axis=1, keepdims=True)                   # (C_out_blk, 1)
    mean = s1 * inv_p

    # Mean-shifted (two-pass) variance; mask out padded columns.
    col = lax.broadcasted_iota(jnp.int32, y.shape, 1)
    diff = jnp.where(col < p_valid, y - mean, 0.0)
    var = jnp.sum(diff * diff, axis=1, keepdims=True) * inv_p

    # Fold BN affine into per-channel scale/shift -> y * scale + shift.
    gamma = gb_ref[:, 0:1]
    beta = gb_ref[:, 1:2]
    scale = gamma * lax.rsqrt(var + EPS)
    shift = beta - mean * scale
    o_ref[...] = (y * scale + shift).astype(o_ref.dtype)


def _num_tensorcores_per_chip():
    """Best-effort detection: 2 TCs/chip on v7x-class devices, else 1."""
    try:
        kind = jax.devices()[0].device_kind.lower()
    except Exception:
        return 1
    if "v7" in kind or "7x" in kind:
        return 2
    return 1


def conv1x1_bn(x_nchw, weight_oi, gamma, beta):
    """x_nchw: (N, C_in, H, W); weight_oi: (C_out, C_in); gamma/beta: (C_out,)."""
    n, c_in, h, w = x_nchw.shape
    c_out = weight_oi.shape[0]
    p = n * h * w
    p_pad = max(128, ((p + 127) // 128) * 128)   # lane-dense output width

    if n == 1:
        # (1, C_in, H, W) -> (C_in, H*W): pure reshape, no data movement.
        x2d = x_nchw.reshape(c_in, p)
    else:
        # General batch fallback: single transpose to channel-major pixels.
        x2d = jnp.transpose(x_nchw, (1, 0, 2, 3)).reshape(c_in, p)

    if p_pad != p:
        x2d = jnp.pad(x2d, ((0, 0), (0, p_pad - p)))

    # bf16 matmul operands (native MXU path, half the input HBM traffic).
    x_bf = x2d.astype(jnp.bfloat16)
    w_bf = weight_oi.astype(jnp.bfloat16)
    # gamma/beta packed into one (C_out, 2) block -> a single DMA per grid step.
    gb = jnp.stack([gamma, beta], axis=1).astype(jnp.float32)

    # Grid: one step on single-TC chips; 2-way C_out split on 2-TC (v7x-like) chips.
    c_out_block = c_out
    if _num_tensorcores_per_chip() == 2 and c_out % 2 == 0 and (c_out // 2) % 8 == 0:
        c_out_block = c_out // 2
    grid = (c_out // c_out_block,)

    bytes_accessed = (
        2 * (x_bf.size + w_bf.size)          # bf16 inputs
        + 4 * (gb.size + c_out * p_pad)      # f32 gamma/beta + output
    )
    cost = pl.CostEstimate(
        flops=2 * p * c_in * c_out,
        transcendentals=c_out,               # one rsqrt per output channel
        bytes_accessed=bytes_accessed,
    )

    kernel = functools.partial(_conv1x1_bn_kernel, p_valid=p)

    out2d = pl.pallas_call(
        kernel,
        out_shape=jax.ShapeDtypeStruct((c_out, p_pad), jnp.float32),
        grid_spec=pl.GridSpec(
            grid=grid,
            in_specs=[
                pl.BlockSpec((c_in, p_pad), lambda j: (0, 0)),
                pl.BlockSpec((c_out_block, c_in), lambda j: (j, 0)),
                pl.BlockSpec((c_out_block, 2), lambda j: (j, 0)),
            ],
            out_specs=pl.BlockSpec((c_out_block, p_pad), lambda j: (j, 0)),
        ),
        compiler_params=pltpu.CompilerParams(
            dimension_semantics=("parallel",),
        ),
        cost_estimate=cost,
    )(x_bf, w_bf, gb)

    out2d = out2d[:, :p].astype(x_nchw.dtype)
    if n == 1:
        return out2d.reshape(1, c_out, h, w)   # pure reshape back to NCHW
    return jnp.transpose(out2d.reshape(c_out, n, h, w), (1, 0, 2, 3))


if __name__ == "__main__":
    key = jax.random.PRNGKey(0)
    k_x, k_w, k_g, k_b = jax.random.split(key, 4)

    N, C_IN, H, W = 1, 192, 14, 14
    C_OUT = 768

    x = jax.random.normal(k_x, (N, C_IN, H, W), dtype=jnp.float32)
    # Conv2d(192, 768, 1, bias=False) weight: (C_out, C_in, 1, 1) squeezed to (C_out, C_in)
    conv_w = jax.random.normal(k_w, (C_OUT, C_IN), dtype=jnp.float32) * 0.05
    gamma = 1.0 + 0.1 * jax.random.normal(k_g, (C_OUT,), dtype=jnp.float32)
    beta = 0.1 * jax.random.normal(k_b, (C_OUT,), dtype=jnp.float32)

    fn = jax.jit(lambda xx: conv1x1_bn(xx, conv_w, gamma, beta))
    out = fn(x)
    jax.block_until_ready(out)
    assert out.shape == (N, C_OUT, H, W), out.shape

    # Pure-JAX reference (conv 1x1 + training-mode BN with batch statistics).
    y_ref = jnp.einsum("oc,nchw->nohw", conv_w, x, precision=lax.Precision.HIGHEST)
    mean = jnp.mean(y_ref, axis=(0, 2, 3), keepdims=True)
    var = jnp.mean((y_ref - mean) ** 2, axis=(0, 2, 3), keepdims=True)
    ref = (y_ref - mean) * lax.rsqrt(var + EPS) * gamma.reshape(1, -1, 1, 1) + beta.reshape(1, -1, 1, 1)
    max_err = jnp.max(jnp.abs(out - ref))
    jax.block_until_ready(max_err)
    assert float(max_err) < 1e-1, f"max abs error {float(max_err)}"

    print("KERNEL_OK")
</pallas_src>

<mosaic_0001>
module attributes {stable_mosaic.version = 11 : i64} {
  func.func @_conv1x1_bn_kernel(%arg0: i32, %arg1: memref<192x256xbf16, #tpu.memory_space<vmem>>, %arg2: memref<768x192xbf16, #tpu.memory_space<vmem>>, %arg3: memref<768x2xf32, #tpu.memory_space<vmem>>, %arg4: memref<768x256xf32, #tpu.memory_space<vmem>>) attributes {dimension_semantics = [#tpu.dimension_semantics<parallel>], iteration_bounds = array<i64: 1>, scalar_prefetch = 0 : i64, scratch_operands = 0 : i64, tpu.core_type = #tpu.core_type<tc>, window_params = [{pipeline_mode = #tpu.pipeline_mode<synchronous>, transform_indices = @transform_0, window_bounds = array<i64: 192, 256>}, {transform_indices = @transform_1, window_bounds = array<i64: 768, 192>}, {transform_indices = @transform_2, window_bounds = array<i64: 768, 2>}, {transform_indices = @transform_3, window_bounds = array<i64: 768, 256>}]} {
    %c0 = arith.constant 0 : index
    %c0_0 = arith.constant 0 : index
    %0 = vector.load %arg1[%c0, %c0_0] : memref<192x256xbf16, #tpu.memory_space<vmem>>, vector<192x256xbf16>
    %c0_1 = arith.constant 0 : index
    %c0_2 = arith.constant 0 : index
    %1 = vector.load %arg2[%c0_1, %c0_2] : memref<768x192xbf16, #tpu.memory_space<vmem>>, vector<768x192xbf16>
    %cst = arith.constant dense<0.000000e+00> : vector<768x256xf32>
    %2 = tpu.matmul %1, %0, %cst {dimension_numbers = #tpu.dot_dimension_numbers<[1], [0], [0], [1], [0, 0, 1, 1], [], []>} : vector<768x192xbf16>, vector<192x256xbf16>, vector<768x256xf32> -> vector<768x256xf32>
    %cst_3 = arith.constant dense<0.000000e+00> : vector<768xf32>
    %3 = vector.multi_reduction <add>, %2, %cst_3 [1] : vector<768x256xf32> to vector<768xf32>
    %4 = vector.shape_cast %3 : vector<768xf32> to vector<768x1xf32>
    %cst_4 = arith.constant 0.00510204071 : f32
    %5 = vector.broadcast %cst_4 : f32 to vector<768x1xf32>
    %6 = arith.mulf %4, %5 : vector<768x1xf32>
    %7 = tpu.iota {dimensions = array<i32: 1>} : vector<768x256xi32>
    %c196_i32 = arith.constant 196 : i32
    %8 = vector.broadcast %c196_i32 : i32 to vector<768x256xi32>
    %9 = arith.cmpi slt, %7, %8 : vector<768x256xi32>
    %10 = vector.broadcast %6 : vector<768x1xf32> to vector<768x256xf32>
    %11 = arith.subf %2, %10 : vector<768x256xf32>
    %cst_5 = arith.constant 0.000000e+00 : f32
    %12 = vector.broadcast %cst_5 : f32 to vector<768x256xf32>
    %13 = arith.select %9, %11, %12 : vector<768x256xi1>, vector<768x256xf32>
    %14 = arith.mulf %13, %13 : vector<768x256xf32>
    %cst_6 = arith.constant dense<0.000000e+00> : vector<768xf32>
    %15 = vector.multi_reduction <add>, %14, %cst_6 [1] : vector<768x256xf32> to vector<768xf32>
    %16 = vector.shape_cast %15 : vector<768xf32> to vector<768x1xf32>
    %cst_7 = arith.constant 0.00510204071 : f32
    %17 = vector.broadcast %cst_7 : f32 to vector<768x1xf32>
    %18 = arith.mulf %16, %17 : vector<768x1xf32>
    %c0_8 = arith.constant 0 : index
    %c0_9 = arith.constant 0 : index
    %19 = vector.load %arg3[%c0_8, %c0_9] : memref<768x2xf32, #tpu.memory_space<vmem>>, vector<768x1xf32>
    %c0_10 = arith.constant 0 : index
    %c1 = arith.constant 1 : index
    %20 = vector.load %arg3[%c0_10, %c1] : memref<768x2xf32, #tpu.memory_space<vmem>>, vector<768x1xf32>
    %cst_11 = arith.constant 1.000000e-03 : f32
    %21 = vector.broadcast %cst_11 : f32 to vector<768x1xf32>
    %22 = arith.addf %18, %21 : vector<768x1xf32>
    %23 = math.rsqrt %22 : vector<768x1xf32>
    %24 = arith.mulf %19, %23 : vector<768x1xf32>
    %25 = arith.mulf %6, %24 : vector<768x1xf32>
    %26 = arith.subf %20, %25 : vector<768x1xf32>
    %27 = vector.broadcast %24 : vector<768x1xf32> to vector<768x256xf32>
    %28 = arith.mulf %2, %27 : vector<768x256xf32>
    %29 = vector.broadcast %26 : vector<768x1xf32> to vector<768x256xf32>
    %30 = arith.addf %28, %29 : vector<768x256xf32>
    %c0_12 = arith.constant 0 : index
    %c0_13 = arith.constant 0 : index
    %31 = vector.load %arg4[%c0_12, %c0_13] : memref<768x256xf32, #tpu.memory_space<vmem>>, vector<768x256xf32>
    tpu.vector_store %arg4[%c0_12, %c0_13], %30 {strides = array<i32>} : memref<768x256xf32, #tpu.memory_space<vmem>>, vector<768x256xf32>,
    return
  }
  func.func @transform_0(%arg0: i32) -> (i32, i32) {
    %c0_i32 = arith.constant 0 : i32
    %c0_i32_0 = arith.constant 0 : i32
    %c0_i32_1 = arith.constant 0 : i32
    return %c0_i32, %c0_i32_0 : i32, i32
  }
  func.func @transform_1(%arg0: i32) -> (i32, i32) {
    %c0_i32 = arith.constant 0 : i32
    %c0_i32_0 = arith.constant 0 : i32
    return %arg0, %c0_i32 : i32, i32
  }
  func.func @transform_2(%arg0: i32) -> (i32, i32) {
    %c0_i32 = arith.constant 0 : i32
    %c0_i32_0 = arith.constant 0 : i32
    return %arg0, %c0_i32 : i32, i32
  }
  func.func @transform_3(%arg0: i32) -> (i32, i32) {
    %c0_i32 = arith.constant 0 : i32
    %c0_i32_0 = arith.constant 0 : i32
    return %arg0, %c0_i32 : i32, i32
  }
}

</mosaic_0001>

<bundles_post_ra>
// kernel: _lambda_.1
= control target key start
LH: loop header
LB: loop body
LE: loop exit
PB: predicated region body
PF: predicated region fallthrough
CT: control target
= control target key end

     0   :  { %vm687_vm0 = vcmask 523264   ;;  %s7591_s23 = smov 1   ;;  %s13032_s0 = inlined_call_operand.vmem [shape: bf16[192,256], index: 0, kind: input, shape index: {}]   ;;  %s13033_s1 = inlined_call_operand.vmem [shape: bf16[768,192], index: 1, kind: input, shape index: {}]   ;;  %s13034_s2 = inlined_call_operand.vmem [shape: f32[768,2], index: 2, kind: input, shape index: {}]   ;;  %s13035_s3 = inlined_call_operand.vmem [shape: f32[768,256], index: 3, kind: output, shape index: {}]  }
   0x1   :  { %v6983_v0 = vld [vmem:[%s13032_s0 + $0x70] sm:$0xf]  ;;  %v7132_v1 = vld [vmem:[%s13032_s0 + $0x74] sm:$0xf0]  ;;  %v7131_v2 = vld [vmem:[%s13032_s0 + $0x74] sm:$0xf] }
   0x2   :  { %v6984_v3 = vor.u32 %v7132_v1, %v6983_v0  ;;  %v6985_v4 = vld [vmem:[%s13032_s0 + $0x78] sm:$0xf0]  ;;  %v6975_v5 = vld [vmem:[%s13032_s0 + $0x60] sm:$0xf]  ;;  %v7130_v6 = vld [vmem:[%s13032_s0 + $0x64] sm:$0xf0] }
   0x3   :  { %v6988_v7 = vor.u32 %v7131_v2, %v6985_v4  ;;  %v7129_v8 = vld [vmem:[%s13032_s0 + $0x64] sm:$0xf]  ;;  %v6977_v9 = vld [vmem:[%s13032_s0 + $0x68] sm:$0xf0]  ;;  %v6976_v10 = vor.u32 %v7130_v6, %v6975_v5  ;;  %v6967_v11 = vld [vmem:[%s13032_s0 + $0x50] sm:$0xf] }
   0x4   :  { %832 = vmatpush.bf16.msra.mxu0 %v6984_v3  ;;  %v6980_v12 = vor.u32 %v7129_v8, %v6977_v9  ;;  %v7128_v13 = vld [vmem:[%s13032_s0 + $0x54] sm:$0xf0]  ;;  %v7139_v14 = vld [vmem:[%s13032_s0 + $0xb4] sm:$0xf]  ;;  %v7017_v15 = vld [vmem:[%s13032_s0 + $0xb8] sm:$0xf0] }
   0x5   :  { %1330 = vmatpush.bf16.msra.mxu2 %v6988_v7  ;;  %v7127_v16 = vld [vmem:[%s13032_s0 + $0x54] sm:$0xf]  ;;  %v6969_v17 = vld [vmem:[%s13032_s0 + $0x58] sm:$0xf0]  ;;  %v7020_v18 = vor.u32 %v7139_v14, %v7017_v15  ;;  %v7137_v19 = vld [vmem:[%s13032_s0 + $0xa4] sm:$0xf]  ;;  %v6968_v22 = vor.u32 %v7128_v13, %v6967_v11 }
   0x6   :  { %v7009_v20 = vld [vmem:[%s13032_s0 + $0xa8] sm:$0xf0]  ;;  %v7015_v21 = vld [vmem:[%s13032_s0 + $0xb0] sm:$0xf]  ;;  %v6959_v23 = vld [vmem:[%s13032_s0 + $0x40] sm:$0xf]  ;;  %v6972_v27 = vor.u32 %v7127_v16, %v6969_v17 }
   0x7   :  { %1583 = vmatpush.bf16.msra.mxu3 %v7020_v18  ;;  %v7126_v24 = vld [vmem:[%s13032_s0 + $0x44] sm:$0xf0]  ;;  %v7012_v25 = vor.u32 %v7137_v19, %v7009_v20  ;;  %v7140_v26 = vld [vmem:[%s13032_s0 + $0xb4] sm:$0xf0]  ;;  %v7125_v28 = vld [vmem:[%s13032_s0 + $0x44] sm:$0xf] }
   0x8   :  { %833 = vmatpush.bf16.msra.mxu0 %v6976_v10  ;;  %v6961_v29 = vld [vmem:[%s13032_s0 + $0x48] sm:$0xf0]  ;;  %v7016_v30 = vor.u32 %v7140_v26, %v7015_v21  ;;  %v7135_v31 = vld [vmem:[%s13032_s0 + $0x94] sm:$0xf]  ;;  %v7001_v32 = vld [vmem:[%s13032_s0 + $0x98] sm:$0xf0]  ;;  %v6960_v36 = vor.u32 %v7126_v24, %v6959_v23 }
   0x9   :  { %1331 = vmatpush.bf16.msra.mxu2 %v6980_v12  ;;  %v7007_v33 = vld [vmem:[%s13032_s0 + $0xa0] sm:$0xf]  ;;  %v7138_v34 = vld [vmem:[%s13032_s0 + $0xa4] sm:$0xf0]  ;;  %v6951_v37 = vld [vmem:[%s13032_s0 + $0x30] sm:$0xf]  ;;  %v7004_v39 = vor.u32 %v7135_v31, %v7001_v32  ;;  %v6964_v41 = vor.u32 %v7125_v28, %v6961_v29 }
   0xa   :  { %1085 = vmatpush.bf16.msra.mxu1 %v7016_v30  ;;  %v7008_v35 = vor.u32 %v7138_v34, %v7007_v33  ;;  %v7124_v38 = vld [vmem:[%s13032_s0 + $0x34] sm:$0xf0]  ;;  %v7133_v40 = vld [vmem:[%s13032_s0 + $0x84] sm:$0xf]  ;;  %v6993_v42 = vld [vmem:[%s13032_s0 + $0x88] sm:$0xf0] }
   0xb   :  { %1584 = vmatpush.bf16.msra.mxu3 %v7012_v25  ;;  %v6999_v43 = vld [vmem:[%s13032_s0 + $0x90] sm:$0xf]  ;;  %v7136_v44 = vld [vmem:[%s13032_s0 + $0x94] sm:$0xf0]  ;;  %v7123_v45 = vld [vmem:[%s13032_s0 + $0x34] sm:$0xf]  ;;  %v6952_v49 = vor.u32 %v7124_v38, %v6951_v37  ;;  %v6996_v50 = vor.u32 %v7133_v40, %v6993_v42 }
   0xc   :  { %834 = vmatpush.bf16.msra.mxu0 %v6968_v22  ;;  %v6953_v46 = vld [vmem:[%s13032_s0 + $0x38] sm:$0xf0]  ;;  %v7000_v47 = vor.u32 %v7136_v44, %v6999_v43  ;;  %v7141_v48 = vld [vmem:[%s13033_s1 + $0x4] sm:$0xf]  ;;  %v6545_v51 = vld [vmem:[%s13033_s1 + $0x8] sm:$0xf0] }
   0xd   :  { %1332 = vmatpush.bf16.msra.mxu2 %v6972_v27  ;;  %v6991_v52 = vld [vmem:[%s13032_s0 + $0x80] sm:$0xf]  ;;  %v7134_v53 = vld [vmem:[%s13032_s0 + $0x84] sm:$0xf0]  ;;  %v6956_v54 = vor.u32 %v7123_v45, %v6953_v46  ;;  %v7121_v57 = vld [vmem:[%s13032_s0 + $0x24] sm:$0xf]  ;;  %v6548_v59 = vor.u32 %v7141_v48, %v6545_v51 }
   0xe   :  { %1086 = vmatpush.bf16.msra.mxu1 %v7008_v35  ;;  %v6943_v55 = vld [vmem:[%s13032_s0 + $0x20] sm:$0xf]  ;;  %v7122_v56 = vld [vmem:[%s13032_s0 + $0x24] sm:$0xf0]  ;;  %v6945_v58 = vld [vmem:[%s13032_s0 + $0x28] sm:$0xf0]  ;;  %v6992_v60 = vor.u32 %v7134_v53, %v6991_v52 }
   0xf   :  { %1585 = vmatpush.bf16.msra.mxu3 %v7004_v39  ;;  %v6944_v61 = vor.u32 %v7122_v56, %v6943_v55  ;;  %v6948_v62 = vor.u32 %v7121_v57, %v6945_v58  ;;  %v6935_v63 = vld [vmem:[%s13032_s0 + $0x10] sm:$0xf]  ;;  %v7120_v0 = vld [vmem:[%s13032_s0 + $0x14] sm:$0xf0]  ;;  %v7119_v1 = vld [vmem:[%s13032_s0 + $0x14] sm:$0xf] }
  0x10   :  { %835 = vmatpush.bf16.msra.mxu0 %v6960_v36  ;;  %v6937_v2 = vld [vmem:[%s13032_s0 + $0x18] sm:$0xf0]  ;;  %v6936_v3 = vor.u32 %v7120_v0, %v6935_v63  ;;  %v6927_v5 = vld [vmem:[%s13032_s0] sm:$0xf]  ;;  %v7118_v6 = vld [vmem:[%s13032_s0 + $0x4] sm:$0xf0] }
  0x11   :  { %1333 = vmatpush.bf16.msra.mxu2 %v6964_v41  ;;  %v6940_v4 = vor.u32 %v7119_v1, %v6937_v2  ;;  %v7117_v7 = vld [vmem:[%s13032_s0 + $0x4] sm:$0xf]  ;;  %v6929_v8 = vld [vmem:[%s13032_s0 + $0x8] sm:$0xf0]  ;;  %v6928_v9 = vor.u32 %v7118_v6, %v6927_v5  ;;  %v6543_v10 = vld [vmem:[%s13033_s1] sm:$0xf] }
  0x12   :  { %1087 = vmatpush.bf16.msra.mxu1 %v7000_v47  ;;  %v7142_v11 = vld [vmem:[%s13033_s1 + $0x4] sm:$0xf0]  ;;  %v6932_v12 = vor.u32 %v7117_v7, %v6929_v8  ;;  %v7143_v14 = vld [vmem:[%s13033_s1 + $0x14] sm:$0xf]  ;;  %v6553_v15 = vld [vmem:[%s13033_s1 + $0x18] sm:$0xf0] }
  0x13   :  { %1586 = vmatpush.bf16.msra.mxu3 %v6996_v50  ;;  %v6544_v13 = vor.u32 %v7142_v11, %v6543_v10  ;;  %v6556_v16 = vor.u32 %v7143_v14, %v6553_v15  ;;  %v6551_v17 = vld [vmem:[%s13033_s1 + $0x10] sm:$0xf]  ;;  %v7144_v18 = vld [vmem:[%s13033_s1 + $0x14] sm:$0xf0]  ;;  %v7145_v20 = vld [vmem:[%s13033_s1 + $0x24] sm:$0xf] }
  0x14   :  { %836 = vmatpush.bf16.msra.mxu0 %v6952_v49  ;;  %v6552_v19 = vor.u32 %v7144_v18, %v6551_v17  ;;  %v6561_v21 = vld [vmem:[%s13033_s1 + $0x28] sm:$0xf0]  ;;  %v6559_v23 = vld [vmem:[%s13033_s1 + $0x20] sm:$0xf]  ;;  %v7146_v24 = vld [vmem:[%s13033_s1 + $0x24] sm:$0xf0] }
  0x15   :  { %1334 = vmatpush.bf16.msra.mxu2 %v6956_v54  ;;  %v6564_v22 = vor.u32 %v7145_v20, %v6561_v21  ;;  %v6560_v25 = vor.u32 %v7146_v24, %v6559_v23  ;;  %v7147_v26 = vld [vmem:[%s13033_s1 + $0x34] sm:$0xf]  ;;  %v6569_v27 = vld [vmem:[%s13033_s1 + $0x38] sm:$0xf0]  ;;  %v6567_v29 = vld [vmem:[%s13033_s1 + $0x30] sm:$0xf] }
  0x16   :  { %7069 = vmatmul.msk.bf16.vlgmr.msra.gmra.mxu3 %vm687_vm0, %v6548_v59  ;;  %1088 = vmatpush.bf16.msra.mxu1 %v6992_v60  ;;  %v6572_v28 = vor.u32 %v7147_v26, %v6569_v27  ;;  %v7148_v30 = vld [vmem:[%s13033_s1 + $0x34] sm:$0xf0]  ;;  %v7149_v32 = vld [vmem:[%s13033_s1 + $0x44] sm:$0xf]  ;;  %v6577_v33 = vld [vmem:[%s13033_s1 + $0x48] sm:$0xf0] }
  0x17   :  { %v6568_v31 = vor.u32 %v7148_v30, %v6567_v29  ;;  %v6580_v34 = vor.u32 %v7149_v32, %v6577_v33  ;;  %v6575_v35 = vld [vmem:[%s13033_s1 + $0x40] sm:$0xf]  ;;  %v7150_v36 = vld [vmem:[%s13033_s1 + $0x44] sm:$0xf0]  ;;  %v7151_v38 = vld [vmem:[%s13033_s1 + $0x54] sm:$0xf] }
  0x18   :  { %837 = vmatpush.bf16.msra.mxu0 %v6944_v61  ;;  %v6576_v37 = vor.u32 %v7150_v36, %v6575_v35  ;;  %v6585_v39 = vld [vmem:[%s13033_s1 + $0x58] sm:$0xf0]  ;;  %v6583_v41 = vld [vmem:[%s13033_s1 + $0x50] sm:$0xf]  ;;  %v7152_v42 = vld [vmem:[%s13033_s1 + $0x54] sm:$0xf0] }
  0x19   :  { %1335 = vmatpush.bf16.msra.mxu2 %v6948_v62  ;;  %7021 = vmatmul.msk.bf16.vlgmr.msra.gmra.mxu1 %vm687_vm0, %v6548_v59  ;;  %v6588_v40 = vor.u32 %v7151_v38, %v6585_v39  ;;  %v6584_v43 = vor.u32 %v7152_v42, %v6583_v41  ;;  %v7153_v44 = vld [vmem:[%s13033_s1 + $0x64] sm:$0xf]  ;;  %v6593_v45 = vld [vmem:[%s13033_s1 + $0x68] sm:$0xf0]  ;;  %v6591_v47 = vld [vmem:[%s13033_s1 + $0x60] sm:$0xf] }
  0x1a   :  { %v6596_v46 = vor.u32 %v7153_v44, %v6593_v45  ;;  %v7154_v48 = vld [vmem:[%s13033_s1 + $0x64] sm:$0xf0]  ;;  %v7155_v50 = vld [vmem:[%s13033_s1 + $0x74] sm:$0xf]  ;;  %v6601_v51 = vld [vmem:[%s13033_s1 + $0x78] sm:$0xf0] }
  0x1b   :  { %v6592_v49 = vor.u32 %v7154_v48, %v6591_v47  ;;  %v6604_v52 = vor.u32 %v7155_v50, %v6601_v51  ;;  %v6599_v53 = vld [vmem:[%s13033_s1 + $0x70] sm:$0xf]  ;;  %v7156_v54 = vld [vmem:[%s13033_s1 + $0x74] sm:$0xf0]  ;;  %v7157_v56 = vld [vmem:[%s13033_s1 + $0x84] sm:$0xf] }
  0x1c   :  { %838 = vmatpush.bf16.msra.mxu0 %v6936_v3  ;;  %v6600_v55 = vor.u32 %v7156_v54, %v6599_v53  ;;  %v6609_v57 = vld [vmem:[%s13033_s1 + $0x88] sm:$0xf0]  ;;  %v6607_v61 = vld [vmem:[%s13033_s1 + $0x80] sm:$0xf]  ;;  %v7158_v62 = vld [vmem:[%s13033_s1 + $0x84] sm:$0xf0] }
  0x1d   :  { %1336 = vmatpush.bf16.msra.mxu2 %v6940_v4  ;;  %v6612_v58 = vor.u32 %v7157_v56, %v6609_v57  ;;  %v6608_v63 = vor.u32 %v7158_v62, %v6607_v61  ;;  %v7159_v2 = vld [vmem:[%s13033_s1 + $0x94] sm:$0xf]  ;;  %v6617_v3 = vld [vmem:[%s13033_s1 + $0x98] sm:$0xf0]  ;;  %v7160_v14 = vld [vmem:[%s13033_s1 + $0x94] sm:$0xf0] }
  0x1e   :  { %v6620_v5 = vor.u32 %v7159_v2, %v6617_v3  ;;  %v7161_v21 = vld [vmem:[%s13033_s1 + $0xa4] sm:$0xf]  ;;  %v6623_v33 = vld [vmem:[%s13033_s1 + $0xa0] sm:$0xf]  ;;  %v7163_v41 = vld [vmem:[%s13033_s1 + $0xb4] sm:$0xf] }
  0x1f   :  { %v6633_v42 = vld [vmem:[%s13033_s1 + $0xb8] sm:$0xf0]  ;;  %v6631_v53 = vld [vmem:[%s13033_s1 + $0xb0] sm:$0xf]  ;;  %v7164_v54 = vld [vmem:[%s13033_s1 + $0xb4] sm:$0xf0] }
  0x20   :  { %839 = vmatpush.bf16.msra.mxu0 %v6928_v9  ;;  %v6636_v45 = vor.u32 %v7163_v41, %v6633_v42  ;;  %v6632_v56 = vor.u32 %v7164_v54, %v6631_v53  ;;  %v7165_v61 = vld [vmem:[%s13033_s1 + $0xc4] sm:$0xf]  ;;  %v6641_v62 = vld [vmem:[%s13033_s1 + $0xc8] sm:$0xf0] }
  0x21   :  { %1337 = vmatpush.bf16.msra.mxu2 %v6932_v12 }
  0x23   :  { %840 = vmatmul.bf16.vlgmr.msra.gmra.mxu0 %v6544_v13 }
  0x24   :  { %1338 = vmatmul.bf16.vlgmr.msra.gmra.mxu2 %v6544_v13  ;;  %v6615_v13 = vld [vmem:[%s13033_s1 + $0x90] sm:$0xf] }
  0x26   :  { %7070 = vmatmul.msk.bf16.gmra.mxu3 %vm687_vm0, %v6556_v16 }
  0x29   :  { %7022 = vmatmul.msk.bf16.gmra.mxu1 %vm687_vm0, %v6556_v16  ;;  %v6616_v16 = vor.u32 %v7160_v14, %v6615_v13 }
  0x33   :  { %845 = vmatmul.bf16.gmra.mxu0 %v6552_v19 }
  0x34   :  { %1343 = vmatmul.bf16.gmra.mxu2 %v6552_v19 }
  0x36   :  { %7071 = vmatmul.msk.bf16.gmra.mxu3 %vm687_vm0, %v6564_v22 }
  0x39   :  { %7023 = vmatmul.msk.bf16.gmra.mxu1 %vm687_vm0, %v6564_v22  ;;  %v6625_v22 = vld [vmem:[%s13033_s1 + $0xa8] sm:$0xf0] }
  0x43   :  { %850 = vmatmul.bf16.gmra.mxu0 %v6560_v25 }
  0x44   :  { %1348 = vmatmul.bf16.gmra.mxu2 %v6560_v25  ;;  %v6628_v25 = vor.u32 %v7161_v21, %v6625_v22  ;;  %v7167_v21 = vld [vmem:[%s13033_s1 + $0xd4] sm:$0xf]  ;;  %v6649_v22 = vld [vmem:[%s13033_s1 + $0xd8] sm:$0xf0] }
  0x46   :  { %7072 = vmatmul.msk.bf16.gmra.mxu3 %vm687_vm0, %v6572_v28 }
  0x49   :  { %7024 = vmatmul.msk.bf16.gmra.mxu1 %vm687_vm0, %v6572_v28 }
  0x53   :  { %855 = vmatmul.bf16.gmra.mxu0 %v6568_v31 }
  0x54   :  { %1353 = vmatmul.bf16.gmra.mxu2 %v6568_v31 }
  0x56   :  { %7073 = vmatmul.msk.bf16.gmra.mxu3 %vm687_vm0, %v6580_v34 }
  0x59   :  { %7025 = vmatmul.msk.bf16.gmra.mxu1 %vm687_vm0, %v6580_v34  ;;  %v7162_v34 = vld [vmem:[%s13033_s1 + $0xa4] sm:$0xf0] }
  0x5a   :  { %v6624_v36 = vor.u32 %v7162_v34, %v6623_v33 }
  0x63   :  { %860 = vmatmul.bf16.gmra.mxu0 %v6576_v37 }
  0x64   :  { %1358 = vmatmul.bf16.gmra.mxu2 %v6576_v37 }
  0x66   :  { %7074 = vmatmul.msk.bf16.gmra.mxu3 %vm687_vm0, %v6588_v40 }
  0x69   :  { %7026 = vmatmul.msk.bf16.gmra.mxu1 %vm687_vm0, %v6588_v40 }
  0x73   :  { %865 = vmatmul.bf16.gmra.mxu0 %v6584_v43 }
  0x74   :  { %1363 = vmatmul.bf16.gmra.mxu2 %v6584_v43 }
  0x76   :  { %7075 = vmatmul.msk.bf16.gmra.mxu3 %vm687_vm0, %v6596_v46 }
  0x79   :  { %7027 = vmatmul.msk.bf16.gmra.mxu1 %vm687_vm0, %v6596_v46 }
  0x83   :  { %870 = vmatmul.bf16.gmra.mxu0 %v6592_v49 }
  0x84   :  { %1368 = vmatmul.bf16.gmra.mxu2 %v6592_v49 }
  0x86   :  { %7076 = vmatmul.msk.bf16.gmra.mxu3 %vm687_vm0, %v6604_v52 }
  0x89   :  { %7028 = vmatmul.msk.bf16.gmra.mxu1 %vm687_vm0, %v6604_v52 }
  0x93   :  { %875 = vmatmul.bf16.gmra.mxu0 %v6600_v55 }
  0x94   :  { %1373 = vmatmul.bf16.gmra.mxu2 %v6600_v55 }
  0x96   :  { %7077 = vmatmul.msk.bf16.gmra.mxu3 %vm687_vm0, %v6612_v58  ;;  %v1090_v59 = vpop.f32.mrf.mxu1 }
  0x99   :  { %v1588_v60 = vpop.f32.mrf.mxu3  ;;  %7029 = vmatmul.msk.bf16.gmra.mxu1 %vm687_vm0, %v6612_v58 }
  0x9e   :  { %v1092_v0 = vpop.f32.mrf.mxu1 }
  0xa0   :  { %v841_v1 = vpop.f32.mrf.mxu0 }
  0xa1   :  { %v1590_v4 = vpop.f32.mrf.mxu3  ;;  %v7889_v6 = vadd.f32 %v1090_v59, %v841_v1  ;;  %v6644_v1 = vor.u32 %v7165_v61, %v6641_v62  ;;  %v6655_v61 = vld [vmem:[%s13033_s1 + $0xe0] sm:$0xf]  ;;  %v7170_v62 = vld [vmem:[%s13033_s1 + $0xe4] sm:$0xf0] }
  0xa3   :  { %880 = vmatmul.bf16.gmra.mxu0 %v6608_v63  ;;  %13437 = vst [vmem:[#allocation2_spill] sm:$0xff] %v7889_v6 }
  0xa4   :  { %1378 = vmatmul.bf16.gmra.mxu2 %v6608_v63 }
  0xa6   :  { %7078 = vmatmul.msk.bf16.gmra.mxu3 %vm687_vm0, %v6620_v5  ;;  %v1095_v8 = vpop.f32.mrf.mxu1 }
  0xa7   :  { %v1339_v7 = vpop.f32.mrf.mxu2 }
  0xa8   :  { %v7892_v9 = vadd.f32 %v1588_v60, %v1339_v7  ;;  %v843_v10 = vpop.f32.mrf.mxu0 }
  0xa9   :  { %v1593_v12 = vpop.f32.mrf.mxu3  ;;  %7030 = vmatmul.msk.bf16.gmra.mxu1 %vm687_vm0, %v6620_v5  ;;  %v7903_v18 = vadd.f32 %v1092_v0, %v843_v10 }
  0xaa   :  { %13438 = vst [vmem:[#allocation3_spill] sm:$0xff] %v7892_v9  ;;  %v1828_v11 = vadd.f32 %v7892_v9, %v7889_v6 }
  0xab   :  { %13439 = vst [vmem:[#allocation4_spill] sm:$0xff] %v7903_v18 }
  0xac   :  { %1829 = vadd.xlane.f32.xlu0 %v1828_v11  ;;  %v6639_v11 = vld [vmem:[%s13033_s1 + $0xc0] sm:$0xf] }
  0xae   :  { %v1097_v17 = vpop.f32.mrf.mxu1 }
  0xaf   :  { %v1341_v15 = vpop.f32.mrf.mxu2 }
  0xb0   :  { %v7905_v19 = vadd.f32 %v1590_v4, %v1341_v15  ;;  %v846_v20 = vpop.f32.mrf.mxu0 }
  0xb1   :  { %v1595_v24 = vpop.f32.mrf.mxu3  ;;  %v7915_v26 = vadd.f32 %v1095_v8, %v846_v20 }
  0xb2   :  { %13440 = vst [vmem:[#allocation5_spill] sm:$0xff] %v7905_v19  ;;  %v1831_v23 = vadd.f32 %v7905_v19, %v7903_v18 }
  0xb3   :  { %885 = vmatmul.bf16.gmra.mxu0 %v6616_v16  ;;  %13441 = vst [vmem:[#allocation6_spill] sm:$0xff] %v7915_v26 }
  0xb4   :  { %1383 = vmatmul.bf16.gmra.mxu2 %v6616_v16  ;;  %1832 = vadd.xlane.f32.xlu0 %v1831_v23 }
  0xb6   :  { %7079 = vmatmul.msk.bf16.gmra.mxu3 %vm687_vm0, %v6628_v25  ;;  %v1100_v28 = vpop.f32.mrf.mxu1 }
  0xb7   :  { %v1344_v27 = vpop.f32.mrf.mxu2 }
  0xb8   :  { %v7918_v29 = vadd.f32 %v1593_v12, %v1344_v27  ;;  %v848_v30 = vpop.f32.mrf.mxu0  ;;  %v7166_v12 = vld [vmem:[%s13033_s1 + $0xc4] sm:$0xf0] }
  0xb9   :  { %v1598_v32 = vpop.f32.mrf.mxu3  ;;  %7031 = vmatmul.msk.bf16.gmra.mxu1 %vm687_vm0, %v6628_v25  ;;  %v7929_v38 = vadd.f32 %v1097_v17, %v848_v30  ;;  %v6640_v14 = vor.u32 %v7166_v12, %v6639_v11  ;;  %v6652_v25 = vor.u32 %v7167_v21, %v6649_v22 }
  0xba   :  { %13442 = vst [vmem:[#allocation7_spill] sm:$0xff] %v7918_v29  ;;  %v1834_v31 = vadd.f32 %v7918_v29, %v7915_v26 }
  0xbb   :  { %13443 = vst [vmem:[#allocation8_spill] sm:$0xff] %v7929_v38 }
  0xbc   :  { %1835 = vadd.xlane.f32.xlu1 %v1834_v31 }
  0xbe   :  { %v1102_v37 = vpop.f32.mrf.mxu1 }
  0xbf   :  { %v1346_v35 = vpop.f32.mrf.mxu2 }
  0xc0   :  { %v7931_v39 = vadd.f32 %v1595_v24, %v1346_v35  ;;  %v851_v40 = vpop.f32.mrf.mxu0  ;;  %v6647_v35 = vld [vmem:[%s13033_s1 + $0xd0] sm:$0xf] }
  0xc1   :  { %v1600_v44 = vpop.f32.mrf.mxu3  ;;  %v7941_v46 = vadd.f32 %v1100_v28, %v851_v40 }
  0xc2   :  { %13444 = vst [vmem:[#allocation9_spill] sm:$0xff] %v7931_v39  ;;  %v1837_v43 = vadd.f32 %v7931_v39, %v7929_v38 }
  0xc3   :  { %890 = vmatmul.bf16.gmra.mxu0 %v6624_v36  ;;  %13445 = vst [vmem:[#allocation10_spill] sm:$0xff] %v7941_v46 }
  0xc4   :  { %1388 = vmatmul.bf16.gmra.mxu2 %v6624_v36  ;;  %1838 = vadd.xlane.f32.xlu1 %v1837_v43  ;;  %v7168_v36 = vld [vmem:[%s13033_s1 + $0xd4] sm:$0xf0] }
  0xc5   :  { %v6648_v40 = vor.u32 %v7168_v36, %v6647_v35 }
  0xc6   :  { %7080 = vmatmul.msk.bf16.gmra.mxu3 %vm687_vm0, %v6636_v45  ;;  %v1105_v48 = vpop.f32.mrf.mxu1 }
  0xc7   :  { %v1349_v47 = vpop.f32.mrf.mxu2 }
  0xc8   :  { %v7944_v49 = vadd.f32 %v1598_v32, %v1349_v47  ;;  %v853_v50 = vpop.f32.mrf.mxu0  ;;  %v6657_v47 = vld [vmem:[%s13033_s1 + $0xe8] sm:$0xf0] }
  0xc9   :  { %v1603_v52 = vpop.f32.mrf.mxu3  ;;  %7032 = vmatmul.msk.bf16.gmra.mxu1 %vm687_vm0, %v6636_v45  ;;  %v7955_v58 = vadd.f32 %v1102_v37, %v853_v50  ;;  %v7169_v45 = vld [vmem:[%s13033_s1 + $0xe4] sm:$0xf] }
  0xca   :  { %13446 = vst [vmem:[#allocation11_spill] sm:$0xff] %v7944_v49  ;;  %v1840_v51 = vadd.f32 %v7944_v49, %v7941_v46 }
  0xcb   :  { %13447 = vst [vmem:[#allocation12_spill] sm:$0xff] %v7955_v58 }
  0xcc   :  { %1841 = vadd.xlane.f32.xlu2 %v1840_v51  ;;  %v6660_v51 = vor.u32 %v7169_v45, %v6657_v47  ;;  %v2212_v47 = vlaneseq }
  0xce   :  { %v1107_v57 = vpop.f32.mrf.mxu1 }
  0xcf   :  { %v1351_v55 = vpop.f32.mrf.mxu2 }
  0xd0   :  { %v7957_v59 = vadd.f32 %v1600_v44, %v1351_v55  ;;  %v856_v60 = vpop.f32.mrf.mxu0 }
  0xd1   :  { %v1605_v0 = vpop.f32.mrf.mxu3  ;;  %v7967_v2 = vadd.f32 %v1105_v48, %v856_v60 }
  0xd2   :  { %13448 = vst [vmem:[#allocation13_spill] sm:$0xff] %v7957_v59  ;;  %v1843_v63 = vadd.f32 %v7957_v59, %v7955_v58 }
  0xd3   :  { %895 = vmatmul.bf16.gmra.mxu0 %v6632_v56  ;;  %13449 = vst [vmem:[#allocation14_spill] sm:$0xff] %v7967_v2 }
  0xd4   :  { %1393 = vmatmul.bf16.gmra.mxu2 %v6632_v56  ;;  %1844 = vadd.xlane.f32.xlu2 %v1843_v63 }
  0xd6   :  { %7081 = vmatmul.msk.bf16.gmra.mxu3 %vm687_vm0, %v6644_v1  ;;  %v1110_v4 = vpop.f32.mrf.mxu1 }
  0xd7   :  { %v1354_v3 = vpop.f32.mrf.mxu2 }
  0xd8   :  { %v7970_v5 = vadd.f32 %v1603_v52, %v1354_v3  ;;  %v858_v7 = vpop.f32.mrf.mxu0 }
  0xd9   :  { %v1608_v10 = vpop.f32.mrf.mxu3  ;;  %7033 = vmatmul.msk.bf16.gmra.mxu1 %vm687_vm0, %v6644_v1  ;;  %v7981_v16 = vadd.f32 %v1107_v57, %v858_v7 }
  0xda   :  { %13450 = vst [vmem:[#allocation15_spill] sm:$0xff] %v7970_v5  ;;  %v1846_v8 = vadd.f32 %v7970_v5, %v7967_v2 }
  0xdb   :  { %13451 = vst [vmem:[#allocation16_spill] sm:$0xff] %v7981_v16 }
  0xdc   :  { %1847 = vadd.xlane.f32.xlu0 %v1846_v8  ;;  %v7171_v8 = vld [vmem:[%s13033_s1 + $0xf4] sm:$0xf] }
  0xde   :  { %v1112_v15 = vpop.f32.mrf.mxu1 }
  0xdf   :  { %v1356_v13 = vpop.f32.mrf.mxu2 }
  0xe0   :  { %v7983_v17 = vadd.f32 %v1605_v0, %v1356_v13  ;;  %v861_v20 = vpop.f32.mrf.mxu0  ;;  %v6656_v0 = vor.u32 %v7170_v62, %v6655_v61  ;;  %v6671_v61 = vld [vmem:[%s13033_s1 + $0x100] sm:$0xf]  ;;  %v7174_v62 = vld [vmem:[%s13033_s1 + $0x104] sm:$0xf0] }
  0xe1   :  { %v1610_v24 = vpop.f32.mrf.mxu3  ;;  %v7993_v27 = vadd.f32 %v1110_v4, %v861_v20 }
  0xe2   :  { %13452 = vst [vmem:[#allocation17_spill] sm:$0xff] %v7983_v17  ;;  %v1849_v23 = vadd.f32 %v7983_v17, %v7981_v16 }
  0xe3   :  { %900 = vmatmul.bf16.gmra.mxu0 %v6640_v14  ;;  %13453 = vst [vmem:[#allocation18_spill] sm:$0xff] %v7993_v27 }
  0xe4   :  { %1398 = vmatmul.bf16.gmra.mxu2 %v6640_v14  ;;  %1850 = vadd.xlane.f32.xlu1 %v1849_v23 }
  0xe6   :  { %7082 = vmatmul.msk.bf16.gmra.mxu3 %vm687_vm0, %v6652_v25  ;;  %v1115_v30 = vpop.f32.mrf.mxu1 }
  0xe7   :  { %v1359_v28 = vpop.f32.mrf.mxu2 }
  0xe8   :  { %v7996_v31 = vadd.f32 %v1608_v10, %v1359_v28  ;;  %v863_v32 = vpop.f32.mrf.mxu0  ;;  %v6665_v10 = vld [vmem:[%s13033_s1 + $0xf8] sm:$0xf0]  ;;  %v7172_v28 = vld [vmem:[%s13033_s1 + $0xf4] sm:$0xf0] }
  0xe9   :  { %v1613_v34 = vpop.f32.mrf.mxu3  ;;  %7034 = vmatmul.msk.bf16.gmra.mxu1 %vm687_vm0, %v6652_v25  ;;  %v8007_v42 = vadd.f32 %v1112_v15, %v863_v32  ;;  %v6668_v13 = vor.u32 %v7171_v8, %v6665_v10  ;;  %v6663_v25 = vld [vmem:[%s13033_s1 + $0xf0] sm:$0xf] }
  0xea   :  { %13454 = vst [vmem:[#allocation19_spill] sm:$0xff] %v7996_v31  ;;  %v1852_v33 = vadd.f32 %v7996_v31, %v7993_v27  ;;  %v6664_v32 = vor.u32 %v7172_v28, %v6663_v25 }
  0xeb   :  { %13455 = vst [vmem:[#allocation20_spill] sm:$0xff] %v8007_v42 }
  0xec   :  { %1853 = vadd.xlane.f32.xlu2 %v1852_v33 }
  0xee   :  { %v1117_v41 = vpop.f32.mrf.mxu1 }
  0xef   :  { %v1361_v37 = vpop.f32.mrf.mxu2 }
  0xf0   :  { %v8009_v43 = vadd.f32 %v1610_v24, %v1361_v37  ;;  %v866_v44 = vpop.f32.mrf.mxu0  ;;  %v7173_v37 = vld [vmem:[%s13033_s1 + $0x104] sm:$0xf] }
  0xf1   :  { %v1615_v50 = vpop.f32.mrf.mxu3  ;;  %v8019_v52 = vadd.f32 %v1115_v30, %v866_v44 }
  0xf2   :  { %13456 = vst [vmem:[#allocation21_spill] sm:$0xff] %v8009_v43  ;;  %v1855_v48 = vadd.f32 %v8009_v43, %v8007_v42 }
  0xf3   :  { %905 = vmatmul.bf16.gmra.mxu0 %v6648_v40  ;;  %13457 = vst [vmem:[#allocation22_spill] sm:$0xff] %v8019_v52 }
  0xf4   :  { %1403 = vmatmul.bf16.gmra.mxu2 %v6648_v40  ;;  %1856 = vadd.xlane.f32.xlu0 %v1855_v48  ;;  %v6673_v40 = vld [vmem:[%s13033_s1 + $0x108] sm:$0xf0] }
  0xf5   :  { %v6676_v45 = vor.u32 %v7173_v37, %v6673_v40 }
  0xf6   :  { %7083 = vmatmul.msk.bf16.gmra.mxu3 %vm687_vm0, %v6660_v51  ;;  %v1120_v54 = vpop.f32.mrf.mxu1 }
  0xf7   :  { %v1364_v53 = vpop.f32.mrf.mxu2 }
  0xf8   :  { %v8022_v55 = vadd.f32 %v1613_v34, %v1364_v53  ;;  %v868_v56 = vpop.f32.mrf.mxu0 }
  0xf9   :  { %v1618_v60 = vpop.f32.mrf.mxu3  ;;  %7035 = vmatmul.msk.bf16.gmra.mxu1 %vm687_vm0, %v6660_v51  ;;  %v8033_v3 = vadd.f32 %v1117_v41, %v868_v56  ;;  %v2213_v56 = vand.u32 127, %v2212_v47 }
  0xfa   :  { %13458 = vst [vmem:[#allocation23_spill] sm:$0xff] %v8022_v55  ;;  %v1858_v57 = vadd.f32 %v8022_v55, %v8019_v52 }
  0xfb   :  { %13459 = vst [vmem:[#allocation24_spill] sm:$0xff] %v8033_v3 }
  0xfc   :  { %1859 = vadd.xlane.f32.xlu1 %v1858_v57 }
  0xfe   :  { %v1122_v1 = vpop.f32.mrf.mxu1 }
  0xff   :  { %v1366_v63 = vpop.f32.mrf.mxu2 }
 0x100   :  { %v8035_v4 = vadd.f32 %v1615_v50, %v1366_v63  ;;  %v871_v7 = vpop.f32.mrf.mxu0  ;;  %v8085_v63 = vadd.s32 128, %v2213_v56 }
 0x101   :  { %v1620_v12 = vpop.f32.mrf.mxu3  ;;  %v8045_v14 = vadd.f32 %v1120_v54, %v871_v7  ;;  %v6672_v7 = vor.u32 %v7174_v62, %v6671_v61  ;;  %v7176_v61 = vld [vmem:[%s13033_s1 + $0x114] sm:$0xf0] }
 0x102   :  { %13460 = vst [vmem:[#allocation25_spill] sm:$0xff] %v8035_v4  ;;  %v1861_v11 = vadd.f32 %v8035_v4, %v8033_v3  ;;  %vm2216_vm1 = vcmp.lt.s32.totalorder %v8085_v63, 196 }
 0x103   :  { %910 = vmatmul.bf16.gmra.mxu0 %v6656_v0  ;;  %13461 = vst [vmem:[#allocation26_spill] sm:$0xff] %v8045_v14 }
 0x104   :  { %1408 = vmatmul.bf16.gmra.mxu2 %v6656_v0  ;;  %1862 = vadd.xlane.f32.xlu2 %v1861_v11 }
 0x106   :  { %7084 = vmatmul.msk.bf16.gmra.mxu3 %vm687_vm0, %v6668_v13  ;;  %v1125_v20 = vpop.f32.mrf.mxu1 }
 0x107   :  { %v1369_v15 = vpop.f32.mrf.mxu2 }
 0x108   :  { %v8048_v21 = vadd.f32 %v1618_v60, %v1369_v15  ;;  %v873_v22 = vpop.f32.mrf.mxu0  ;;  %v7175_v15 = vld [vmem:[%s13033_s1 + $0x114] sm:$0xf] }
 0x109   :  { %v1623_v24 = vpop.f32.mrf.mxu3  ;;  %7036 = vmatmul.msk.bf16.gmra.mxu1 %vm687_vm0, %v6668_v13  ;;  %v8059_v34 = vadd.f32 %v1122_v1, %v873_v22 }
 0x10a   :  { %13462 = vst [vmem:[#allocation27_spill] sm:$0xff] %v8048_v21  ;;  %v1864_v23 = vadd.f32 %v8048_v21, %v8045_v14 }
 0x10b   :  { %13463 = vst [vmem:[#allocation28_spill] sm:$0xff] %v8059_v34 }
 0x10c   :  { %1865 = vadd.xlane.f32.xlu0 %v1864_v23 }
 0x10e   :  { %v1127_v33 = vpop.f32.mrf.mxu1 }
 0x10f   :  { %v1371_v30 = vpop.f32.mrf.mxu2 }
 0x110   :  { %v8061_v35 = vadd.f32 %v1620_v12, %v1371_v30  ;;  %v876_v36 = vpop.f32.mrf.mxu0 }
 0x111   :  { %v1625_v44 = vpop.f32.mrf.mxu3  ;;  %v8071_v48 = vadd.f32 %v1125_v20, %v876_v36  ;;  %v6681_v20 = vld [vmem:[%s13033_s1 + $0x118] sm:$0xf0] }
 0x112   :  { %13464 = vst [vmem:[#allocation29_spill] sm:$0xff] %v8061_v35  ;;  %v1867_v41 = vadd.f32 %v8061_v35, %v8059_v34  ;;  %v6684_v28 = vor.u32 %v7175_v15, %v6681_v20 }
 0x113   :  { %915 = vmatmul.bf16.gmra.mxu0 %v6664_v32  ;;  %13465 = vst [vmem:[#allocation30_spill] sm:$0xff] %v8071_v48 }
 0x114   :  { %1413 = vmatmul.bf16.gmra.mxu2 %v6664_v32  ;;  %1868 = vadd.xlane.f32.xlu1 %v1867_v41 }
 0x116   :  { %7085 = vmatmul.msk.bf16.gmra.mxu3 %vm687_vm0, %v6676_v45  ;;  %v1130_v51 = vpop.f32.mrf.mxu1 }
 0x117   :  { %v1374_v50 = vpop.f32.mrf.mxu2 }
 0x118   :  { %v8074_v53 = vadd.f32 %v1623_v24, %v1374_v50  ;;  %v878_v54 = vpop.f32.mrf.mxu0 }
 0x119   :  { %v1628_v60 = vpop.f32.mrf.mxu3  ;;  %7037 = vmatmul.msk.bf16.gmra.mxu1 %vm687_vm0, %v6676_v45  ;;  %v8087_v8 = vadd.f32 %v1127_v33, %v878_v54 }
 0x11a   :  { %13466 = vst [vmem:[#allocation31_spill] sm:$0xff] %v8074_v53  ;;  %v1870_v57 = vadd.f32 %v8074_v53, %v8071_v48 }
 0x11b   :  { %13467 = vst [vmem:[#allocation32_spill] sm:$0xff] %v8087_v8 }
 0x11c   :  { %1871 = vadd.xlane.f32.xlu2 %v1870_v57 }
 0x11e   :  { %v1132_v13 = vpop.f32.mrf.mxu1 }
 0x11f   :  { %v1830_v0 = vpop.xlane.xlu0 %1829  ;;  %v1376_v1 = vpop.f32.mrf.mxu2 }
 0x120   :  { %v8089_v10 = vmul.f32 0.0051020407, %v1830_v0  ;;  %v8091_v11 = vadd.f32 %v1625_v44, %v1376_v1  ;;  %v881_v12 = vpop.f32.mrf.mxu0 }
 0x121   :  { %v1630_v23 = vpop.f32.mrf.mxu3  ;;  %v8108_v32 = vadd.f32 %v1130_v51, %v881_v12 }
 0x122   :  { %13468 = vst [vmem:[#allocation33_spill] sm:$0xff] %v8091_v11  ;;  %v1873_v22 = vadd.f32 %v8091_v11, %v8087_v8  ;;  %v2217_v24 = vsub.f32 %v7889_v6, %v8089_v10  ;;  %v2218_v25 = vsub.f32 %v7892_v9, %v8089_v10 }
 0x123   :  { %920 = vmatmul.bf16.gmra.mxu0 %v6672_v7  ;;  %13469 = vst [vmem:[#allocation34_spill] sm:$0xff] %v8108_v32 }
 0x124   :  { %1418 = vmatmul.bf16.gmra.mxu2 %v6672_v7  ;;  %1874 = vadd.xlane.f32.xlu0 %v1873_v22  ;;  %v2410_v30 = vsel %vm2216_vm1, %v2218_v25, 0.0  ;;  %v2601_v33 = vmul.f32 %v2217_v24, %v2217_v24 }
 0x125   :  { %v2602_v36 = vmul.f32 %v2410_v30, %v2410_v30 }
 0x126   :  { %7086 = vmatmul.msk.bf16.gmra.mxu3 %vm687_vm0, %v6684_v28  ;;  %v1135_v47 = vpop.f32.mrf.mxu1 }
 0x127   :  { %v1833_v37 = vpop.xlane.xlu0 %1832  ;;  %v1379_v40 = vpop.f32.mrf.mxu2  ;;  %v2793_v50 = vadd.f32 %v2602_v36, %v2601_v33 }
 0x128   :  { %v8111_v41 = vmul.f32 0.0051020407, %v1833_v37  ;;  %v8113_v44 = vadd.f32 %v1628_v60, %v1379_v40  ;;  %v883_v45 = vpop.f32.mrf.mxu0  ;;  %v6679_v60 = vld [vmem:[%s13033_s1 + $0x110] sm:$0xf] }
 0x129   :  { %v1633_v56 = vpop.f32.mrf.mxu3  ;;  %7038 = vmatmul.msk.bf16.gmra.mxu1 %vm687_vm0, %v6684_v28  ;;  %v6680_v15 = vor.u32 %v7176_v61, %v6679_v60  ;;  %v8130_v20 = vadd.f32 %v1132_v13, %v883_v45 }
 0x12a   :  { %13470 = vst [vmem:[#allocation35_spill] sm:$0xff] %v8113_v44  ;;  %v1876_v54 = vadd.f32 %v8113_v44, %v8108_v32  ;;  %v2219_v51 = vsub.f32 %v7903_v18, %v8111_v41  ;;  %v2220_v57 = vsub.f32 %v7905_v19, %v8111_v41 }
 0x12b   :  { %13471 = vst [vmem:[#allocation36_spill] sm:$0xff] %v8130_v20 }
 0x12c   :  { %2794 = vadd.xlane.f32.xlu0 %v2793_v50  ;;  %1877 = vadd.xlane.f32.xlu1 %v1876_v54  ;;  %v2412_v62 = vsel %vm2216_vm1, %v2220_v57, 0.0  ;;  %v2603_v0 = vmul.f32 %v2219_v51, %v2219_v51 }
 0x12d   :  { %v2604_v1 = vmul.f32 %v2412_v62, %v2412_v62 }
 0x12e   :  { %v1137_v28 = vpop.f32.mrf.mxu1 }
 0x12f   :  { %v1836_v7 = vpop.xlane.xlu1 %1835  ;;  %v1381_v12 = vpop.f32.mrf.mxu2  ;;  %v2796_v30 = vadd.f32 %v2604_v1, %v2603_v0 }
 0x130   :  { %v8132_v22 = vmul.f32 0.0051020407, %v1836_v7  ;;  %v8134_v24 = vadd.f32 %v1630_v23, %v1381_v12  ;;  %v886_v25 = vpop.f32.mrf.mxu0 }
 0x131   :  { %v1635_v36 = vpop.f32.mrf.mxu3  ;;  %v8144_v23 = vadd.f32 %v1135_v47, %v886_v25 }
 0x132   :  { %13472 = vst [vmem:[#allocation37_spill] sm:$0xff] %v8134_v24  ;;  %v1879_v33 = vadd.f32 %v8134_v24, %v8130_v20  ;;  %v2222_v37 = vsub.f32 %v7918_v29, %v8132_v22  ;;  %v2221_v40 = vsub.f32 %v7915_v26, %v8132_v22 }
 0x133   :  { %925 = vmatmul.bf16.gmra.mxu0 %v6680_v15  ;;  %13473 = vst [vmem:[#allocation38_spill] sm:$0xff] %v8144_v23 }
 0x134   :  { %1423 = vmatmul.bf16.gmra.mxu2 %v6680_v15  ;;  %2797 = vadd.xlane.f32.xlu1 %v2796_v30  ;;  %v2414_v13 = vsel %vm2216_vm1, %v2222_v37, 0.0  ;;  %v2605_v54 = vmul.f32 %v2221_v40, %v2221_v40 }
 0x135   :  { %1880 = vadd.xlane.f32.xlu2 %v1879_v33  ;;  %v2606_v51 = vmul.f32 %v2414_v13, %v2414_v13 }
 0x136   :  { %v1140_v62 = vpop.f32.mrf.mxu1 }
 0x137   :  { %v1839_v45 = vpop.xlane.xlu1 %1838  ;;  %v1384_v50 = vpop.f32.mrf.mxu2  ;;  %v2799_v12 = vadd.f32 %v2606_v51, %v2605_v54 }
 0x138   :  { %v8146_v57 = vmul.f32 0.0051020407, %v1839_v45  ;;  %v8148_v60 = vadd.f32 %v1633_v56, %v1384_v50  ;;  %v888_v61 = vpop.f32.mrf.mxu0 }
 0x139   :  { %v1638_v1 = vpop.f32.mrf.mxu3  ;;  %v8158_v37 = vadd.f32 %v1137_v28, %v888_v61 }
 0x13a   :  { %13474 = vst [vmem:[#allocation39_spill] sm:$0xff] %v8148_v60  ;;  %v1882_v0 = vadd.f32 %v8148_v60, %v8144_v23  ;;  %v2223_v7 = vsub.f32 %v7929_v38, %v8146_v57  ;;  %v2224_v47 = vsub.f32 %v7931_v39, %v8146_v57 }
 0x13b   :  { %13475 = vst [vmem:[#allocation40_spill] sm:$0xff] %v8158_v37 }
 0x13c   :  { %1883 = vadd.xlane.f32.xlu0 %v1882_v0  ;;  %v2416_v15 = vsel %vm2216_vm1, %v2224_v47, 0.0  ;;  %v2607_v56 = vmul.f32 %v2223_v7, %v2223_v7 }
 0x13d   :  { %2800 = vadd.xlane.f32.xlu2 %v2799_v12  ;;  %v2608_v25 = vmul.f32 %v2416_v15, %v2416_v15 }
 0x13e   :  { %v1142_v50 = vpop.f32.mrf.mxu1 }
 0x13f   :  { %v1842_v30 = vpop.xlane.xlu2 %1841  ;;  %v1386_v33 = vpop.f32.mrf.mxu2  ;;  %v2802_v9 = vadd.f32 %v2608_v25, %v2607_v56 }
 0x140   :  { %v8160_v40 = vmul.f32 0.0051020407, %v1842_v30  ;;  %v8162_v13 = vadd.f32 %v1635_v36, %v1386_v33  ;;  %v891_v45 = vpop.f32.mrf.mxu0 }
 0x141   :  { %v1640_v51 = vpop.f32.mrf.mxu3  ;;  %v8172_v36 = vadd.f32 %v1140_v62, %v891_v45 }
 0x142   :  { %13476 = vst [vmem:[#allocation41_spill] sm:$0xff] %v8162_v13  ;;  %v1885_v54 = vadd.f32 %v8162_v13, %v8158_v37  ;;  %v2225_v0 = vsub.f32 %v7941_v46, %v8160_v40  ;;  %v2226_v7 = vsub.f32 %v7944_v49, %v8160_v40 }
 0x143   :  { %13477 = vst [vmem:[#allocation42_spill] sm:$0xff] %v8172_v36 }
 0x144   :  { %2803 = vadd.xlane.f32.xlu0 %v2802_v9  ;;  %1886 = vadd.xlane.f32.xlu1 %v1885_v54  ;;  %v2418_v28 = vsel %vm2216_vm1, %v2226_v7, 0.0  ;;  %v2609_v61 = vmul.f32 %v2225_v0, %v2225_v0 }
 0x145   :  { %v2610_v47 = vmul.f32 %v2418_v28, %v2418_v28 }
 0x146   :  { %v1145_v33 = vpop.f32.mrf.mxu1 }
 0x147   :  { %v1845_v12 = vpop.xlane.xlu2 %1844  ;;  %v1389_v15 = vpop.f32.mrf.mxu2  ;;  %v2805_v6 = vadd.f32 %v2610_v47, %v2609_v61 }
 0x148   :  { %v8174_v56 = vmul.f32 0.0051020407, %v1845_v12  ;;  %v8176_v25 = vadd.f32 %v1638_v1, %v1389_v15  ;;  %v893_v30 = vpop.f32.mrf.mxu0 }
 0x149   :  { %v1643_v54 = vpop.f32.mrf.mxu3  ;;  %v8186_v61 = vadd.f32 %v1142_v50, %v893_v30  ;;  %v7177_v50 = vld [vmem:[%s13033_s1 + $0x124] sm:$0xf] }
 0x14a   :  { %13478 = vst [vmem:[#allocation43_spill] sm:$0xff] %v8176_v25  ;;  %v1888_v9 = vadd.f32 %v8176_v25, %v8172_v36  ;;  %v2227_v7 = vsub.f32 %v7955_v58, %v8174_v56  ;;  %v2228_v62 = vsub.f32 %v7957_v59, %v8174_v56 }
 0x14b   :  { %13479 = vst [vmem:[#allocation44_spill] sm:$0xff] %v8186_v61 }
 0x14c   :  { %2806 = vadd.xlane.f32.xlu1 %v2805_v6  ;;  %1889 = vadd.xlane.f32.xlu2 %v1888_v9  ;;  %v2420_v45 = vsel %vm2216_vm1, %v2228_v62, 0.0  ;;  %v2611_v1 = vmul.f32 %v2227_v7, %v2227_v7  ;;  %v6687_v6 = vld [vmem:[%s13033_s1 + $0x120] sm:$0xf]  ;;  %v7178_v9 = vld [vmem:[%s13033_s1 + $0x124] sm:$0xf0] }
 0x14d   :  { %v2612_v0 = vmul.f32 %v2420_v45, %v2420_v45  ;;  %v6688_v62 = vor.u32 %v7178_v9, %v6687_v6 }
 0x14e   :  { %v1147_v58 = vpop.f32.mrf.mxu1 }
 0x14f   :  { %v1848_v28 = vpop.xlane.xlu0 %1847  ;;  %v1391_v12 = vpop.f32.mrf.mxu2  ;;  %v2808_v7 = vadd.f32 %v2612_v0, %v2611_v1  ;;  %1428 = vmatmul.bf16.gmra.mxu2 %v6688_v62  ;;  %930 = vmatmul.bf16.gmra.mxu0 %v6688_v62 }
 0x150   :  { %v8188_v47 = vmul.f32 0.0051020407, %v1848_v28  ;;  %v8190_v15 = vadd.f32 %v1640_v51, %v1391_v12  ;;  %v896_v49 = vpop.f32.mrf.mxu0  ;;  %v6689_v51 = vld [vmem:[%s13033_s1 + $0x128] sm:$0xf0] }
 0x151   :  { %v1645_v45 = vpop.f32.mrf.mxu3  ;;  %v6692_v1 = vor.u32 %v7177_v50, %v6689_v51  ;;  %v8214_v6 = vadd.f32 %v1145_v33, %v896_v49 }
 0x152   :  { %13480 = vst [vmem:[#allocation45_spill] sm:$0xff] %v8190_v15  ;;  %v1891_v30 = vadd.f32 %v8190_v15, %v8186_v61  ;;  %v2229_v28 = vsub.f32 %v7967_v2, %v8188_v47  ;;  %v2230_v12 = vsub.f32 %v7970_v5, %v8188_v47 }
 0x153   :  { %7087 = vmatmul.msk.bf16.gmra.mxu3 %vm687_vm0, %v6692_v1  ;;  %7039 = vmatmul.msk.bf16.gmra.mxu1 %vm687_vm0, %v6692_v1  ;;  %13481 = vst [vmem:[#allocation46_spill] sm:$0xff] %v8214_v6 }
 0x154   :  { %2809 = vadd.xlane.f32.xlu2 %v2808_v7  ;;  %1892 = vadd.xlane.f32.xlu0 %v1891_v30  ;;  %v2422_v0 = vsel %vm2216_vm1, %v2230_v12, 0.0  ;;  %v2613_v9 = vmul.f32 %v2229_v28, %v2229_v28 }
 0x155   :  { %v2614_v59 = vmul.f32 %v2422_v0, %v2422_v0 }
 0x156   :  { %v1150_v7 = vpop.f32.mrf.mxu1 }
 0x157   :  { %v1851_v2 = vpop.xlane.xlu1 %1850  ;;  %v1394_v46 = vpop.f32.mrf.mxu2  ;;  %v2811_v51 = vadd.f32 %v2614_v59, %v2613_v9 }
 0x158   :  { %v8216_v19 = vmul.f32 0.0051020407, %v1851_v2  ;;  %v8218_v50 = vadd.f32 %v1643_v54, %v1394_v46  ;;  %v898_v62 = vpop.f32.mrf.mxu0 }
 0x159   :  { %v1648_v12 = vpop.f32.mrf.mxu3  ;;  %v8228_v59 = vadd.f32 %v1147_v58, %v898_v62 }
 0x15a   :  { %13482 = vst [vmem:[#allocation47_spill] sm:$0xff] %v8218_v50  ;;  %v1894_v30 = vadd.f32 %v8218_v50, %v8214_v6  ;;  %v2231_v1 = vsub.f32 %v7981_v16, %v8216_v19  ;;  %v2232_v49 = vsub.f32 %v7983_v17, %v8216_v19 }
 0x15b   :  { %13483 = vst [vmem:[#allocation48_spill] sm:$0xff] %v8228_v59 }
 0x15c   :  { %2812 = vadd.xlane.f32.xlu0 %v2811_v51  ;;  %1895 = vadd.xlane.f32.xlu1 %v1894_v30  ;;  %v2424_v2 = vsel %vm2216_vm1, %v2232_v49, 0.0  ;;  %v2615_v46 = vmul.f32 %v2231_v1, %v2231_v1 }
 0x15d   :  { %v2616_v33 = vmul.f32 %v2424_v2, %v2424_v2 }
 0x15e   :  { %v1152_v18 = vpop.f32.mrf.mxu1 }
 0x15f   :  { %v1854_v54 = vpop.xlane.xlu2 %1853  ;;  %v1396_v28 = vpop.f32.mrf.mxu2  ;;  %v2814_v16 = vadd.f32 %v2616_v33, %v2615_v46 }
 0x160   :  { %v8230_v0 = vmul.f32 0.0051020407, %v1854_v54  ;;  %v8232_v9 = vadd.f32 %v1645_v45, %v1396_v28  ;;  %v901_v5 = vpop.f32.mrf.mxu0 }
 0x161   :  { %v1650_v30 = vpop.f32.mrf.mxu3  ;;  %v8242_v45 = vadd.f32 %v1150_v7, %v901_v5 }
 0x162   :  { %13484 = vst [vmem:[#allocation49_spill] sm:$0xff] %v8232_v9  ;;  %v1897_v51 = vadd.f32 %v8232_v9, %v8228_v59  ;;  %v2233_v49 = vsub.f32 %v7993_v27, %v8230_v0  ;;  %v2234_v1 = vsub.f32 %v7996_v31, %v8230_v0 }
 0x163   :  { %13485 = vst [vmem:[#allocation50_spill] sm:$0xff] %v8242_v45 }
 0x164   :  { %2815 = vadd.xlane.f32.xlu1 %v2814_v16  ;;  %1898 = vadd.xlane.f32.xlu2 %v1897_v51  ;;  %v2426_v58 = vsel %vm2216_vm1, %v2234_v1, 0.0  ;;  %v2617_v62 = vmul.f32 %v2233_v49, %v2233_v49 }
 0x165   :  { %v2618_v2 = vmul.f32 %v2426_v58, %v2426_v58 }
 0x166   :  { %v1155_v27 = vpop.f32.mrf.mxu1 }
 0x167   :  { %v1857_v46 = vpop.xlane.xlu0 %1856  ;;  %v1399_v33 = vpop.f32.mrf.mxu2  ;;  %v2817_v39 = vadd.f32 %v2618_v2, %v2617_v62 }
 0x168   :  { %v8244_v54 = vmul.f32 0.0051020407, %v1857_v46  ;;  %v8246_v28 = vadd.f32 %v1648_v12, %v1399_v33  ;;  %v903_v17 = vpop.f32.mrf.mxu0 }
 0x169   :  { %v1653_v51 = vpop.f32.mrf.mxu3  ;;  %v8256_v62 = vadd.f32 %v1152_v18, %v903_v17 }
 0x16a   :  { %13486 = vst [vmem:[#allocation51_spill] sm:$0xff] %v8246_v28  ;;  %v1900_v16 = vadd.f32 %v8246_v28, %v8242_v45  ;;  %v2235_v1 = vsub.f32 %v8007_v42, %v8244_v54  ;;  %v2236_v5 = vsub.f32 %v8009_v43, %v8244_v54 }
 0x16b   :  { %13487 = vst [vmem:[#allocation52_spill] sm:$0xff] %v8256_v62 }
 0x16c   :  { %2818 = vadd.xlane.f32.xlu2 %v2817_v39  ;;  %1901 = vadd.xlane.f32.xlu0 %v1900_v16  ;;  %v2428_v7 = vsel %vm2216_vm1, %v2236_v5, 0.0  ;;  %v2619_v12 = vmul.f32 %v2235_v1, %v2235_v1 }
 0x16d   :  { %v2620_v49 = vmul.f32 %v2428_v7, %v2428_v7 }
 0x16e   :  { %v1157_v42 = vpop.f32.mrf.mxu1 }
 0x16f   :  { %v1860_v58 = vpop.xlane.xlu1 %1859  ;;  %v1401_v46 = vpop.f32.mrf.mxu2  ;;  %v2820_v38 = vadd.f32 %v2620_v49, %v2619_v12 }
 0x170   :  { %v8258_v2 = vmul.f32 0.0051020407, %v1860_v58  ;;  %v8260_v33 = vadd.f32 %v1650_v30, %v1401_v46  ;;  %v906_v31 = vpop.f32.mrf.mxu0 }
 0x171   :  { %v1655_v16 = vpop.f32.mrf.mxu3  ;;  %v8270_v17 = vadd.f32 %v1155_v27, %v906_v31 }
 0x172   :  { %13488 = vst [vmem:[#allocation53_spill] sm:$0xff] %v8260_v33  ;;  %v1903_v39 = vadd.f32 %v8260_v33, %v8256_v62  ;;  %v2237_v5 = vsub.f32 %v8019_v52, %v8258_v2  ;;  %v2238_v1 = vsub.f32 %v8022_v55, %v8258_v2 }
 0x173   :  { %13489 = vst [vmem:[#allocation54_spill] sm:$0xff] %v8270_v17 }
 0x174   :  { %2821 = vadd.xlane.f32.xlu0 %v2820_v38  ;;  %1904 = vadd.xlane.f32.xlu1 %v1903_v39  ;;  %v2430_v18 = vsel %vm2216_vm1, %v2238_v1, 0.0  ;;  %v2621_v30 = vmul.f32 %v2237_v5, %v2237_v5 }
 0x175   :  { %v2622_v7 = vmul.f32 %v2430_v18, %v2430_v18 }
 0x176   :  { %v1160_v38 = vpop.f32.mrf.mxu1 }
 0x177   :  { %v1863_v12 = vpop.xlane.xlu2 %1862  ;;  %v1404_v49 = vpop.f32.mrf.mxu2  ;;  %v2823_v52 = vadd.f32 %v2622_v7, %v2621_v30 }
 0x178   :  { %v8272_v58 = vmul.f32 0.0051020407, %v1863_v12  ;;  %v8274_v46 = vadd.f32 %v1653_v51, %v1404_v49  ;;  %v908_v43 = vpop.f32.mrf.mxu0 }
 0x179   :  { %v1658_v31 = vpop.f32.mrf.mxu3  ;;  %v8284_v7 = vadd.f32 %v1157_v42, %v908_v43 }
 0x17a   :  { %13490 = vst [vmem:[#allocation55_spill] sm:$0xff] %v8272_v58  ;;  %v1906_v55 = vadd.f32 %v8274_v46, %v8270_v17  ;;  %v2239_v39 = vsub.f32 %v8033_v3, %v8272_v58  ;;  %v2240_v27 = vsub.f32 %v8035_v4, %v8272_v58 }
 0x17b   :  { %13491 = vst [vmem:[#allocation56_spill] sm:$0xff] %v8274_v46 }
 0x17c   :  { %2824 = vadd.xlane.f32.xlu1 %v2823_v52  ;;  %1907 = vadd.xlane.f32.xlu2 %v1906_v55  ;;  %v2432_v5 = vsel %vm2216_vm1, %v2240_v27, 0.0  ;;  %v2623_v51 = vmul.f32 %v2239_v39, %v2239_v39  ;;  %13492 = vst [vmem:[#allocation57_spill] sm:$0xff] %v8284_v7 }
 0x17d   :  { %v2624_v1 = vmul.f32 %v2432_v5, %v2432_v5 }
 0x17e   :  { %v1162_v27 = vpop.f32.mrf.mxu1 }
 0x17f   :  { %v1866_v18 = vpop.xlane.xlu0 %1865  ;;  %v1406_v30 = vpop.f32.mrf.mxu2  ;;  %v2826_v29 = vadd.f32 %v2624_v1, %v2623_v51 }
 0x180   :  { %v8286_v12 = vmul.f32 0.0051020407, %v1866_v18  ;;  %v8288_v49 = vadd.f32 %v1655_v16, %v1406_v30  ;;  %v911_v3 = vpop.f32.mrf.mxu0 }
 0x181   :  { %v8298_v43 = vadd.f32 %v1160_v38, %v911_v3  ;;  %v1660_v16 = vpop.f32.mrf.mxu3 }
 0x182   :  { %13493 = vst [vmem:[#allocation58_spill] sm:$0xff] %v8288_v49  ;;  %v1909_v52 = vadd.f32 %v8288_v49, %v8284_v7  ;;  %v2241_v55 = vsub.f32 %v8045_v14, %v8286_v12  ;;  %v2242_v39 = vsub.f32 %v8048_v21, %v8286_v12 }
 0x183   :  { %13494 = vst [vmem:[#allocation59_spill] sm:$0xff] %v8298_v43 }
 0x184   :  { %2827 = vadd.xlane.f32.xlu2 %v2826_v29  ;;  %1910 = vadd.xlane.f32.xlu0 %v1909_v52  ;;  %v2434_v42 = vsel %vm2216_vm1, %v2242_v39, 0.0  ;;  %v2625_v5 = vmul.f32 %v2241_v55, %v2241_v55 }
 0x185   :  { %v2626_v51 = vmul.f32 %v2434_v42, %v2434_v42  ;;  %v6695_v42 = vld [vmem:[%s13033_s1 + $0x130] sm:$0xf] }
 0x187   :  { %v1869_v1 = vpop.xlane.xlu1 %1868  ;;  %v1409_v18 = vpop.f32.mrf.mxu2  ;;  %v2829_v26 = vadd.f32 %v2626_v51, %v2625_v5  ;;  %v7180_v5 = vld [vmem:[%s13033_s1 + $0x134] sm:$0xf0]  ;;  %v7179_v51 = vld [vmem:[%s13033_s1 + $0x134] sm:$0xf] }
 0x188   :  { %v8300_v30 = vmul.f32 0.0051020407, %v1869_v1  ;;  %v8302_v4 = vadd.f32 %v1658_v31, %v1409_v18  ;;  %v913_v14 = vpop.f32.mrf.mxu0  ;;  %v1165_v31 = vpop.f32.mrf.mxu1  ;;  %v6696_v18 = vor.u32 %v7180_v5, %v6695_v42 }
 0x18a   :  { %13495 = vst [vmem:[#allocation60_spill] sm:$0xff] %v8302_v4  ;;  %v1912_v29 = vadd.f32 %v8302_v4, %v8298_v43  ;;  %v2243_v52 = vsub.f32 %v8059_v34, %v8300_v30  ;;  %v2244_v3 = vsub.f32 %v8061_v35, %v8300_v30  ;;  %1433 = vmatmul.bf16.gmra.mxu2 %v6696_v18 }
 0x18b   :  { %935 = vmatmul.bf16.gmra.mxu0 %v6696_v18 }
 0x18c   :  { %2830 = vadd.xlane.f32.xlu0 %v2829_v26  ;;  %1913 = vadd.xlane.f32.xlu1 %v1912_v29  ;;  %v2436_v38 = vsel %vm2216_vm1, %v2244_v3, 0.0  ;;  %v2627_v55 = vmul.f32 %v2243_v52, %v2243_v52  ;;  %v6697_v29 = vld [vmem:[%s13033_s1 + $0x138] sm:$0xf0]  ;;  %v8324_v52 = vadd.f32 %v1162_v27, %v913_v14  ;;  %v1663_v3 = vpop.f32.mrf.mxu3 }
 0x18d   :  { %v2628_v39 = vmul.f32 %v2436_v38, %v2436_v38  ;;  %v6700_v34 = vor.u32 %v7179_v51, %v6697_v29 }
 0x18e   :  { %13496 = vst [vmem:[#allocation61_spill] sm:$0xff] %v8324_v52 }
 0x18f   :  { %v1872_v26 = vpop.xlane.xlu2 %1871  ;;  %v1411_v1 = vpop.f32.mrf.mxu2  ;;  %v2832_v58 = vadd.f32 %v2628_v39, %v2627_v55  ;;  %7088 = vmatmul.msk.bf16.gmra.mxu3 %vm687_vm0, %v6700_v34  ;;  %7040 = vmatmul.msk.bf16.gmra.mxu1 %vm687_vm0, %v6700_v34 }
 0x190   :  { %v8326_v38 = vmul.f32 0.0051020407, %v1872_v26  ;;  %v8328_v21 = vadd.f32 %v1660_v16, %v1411_v1  ;;  %v916_v35 = vpop.f32.mrf.mxu0  ;;  %v1167_v26 = vpop.f32.mrf.mxu1 }
 0x191   :  { %v8340_v16 = vadd.f32 %v1165_v31, %v916_v35 }
 0x192   :  { %13497 = vst [vmem:[#allocation62_spill] sm:$0xff] %v8326_v38  ;;  %v1915_v43 = vadd.f32 %v8328_v21, %v8324_v52  ;;  %v2245_v42 = vsub.f32 %v8071_v48, %v8326_v38  ;;  %v2246_v14 = vsub.f32 %v8074_v53, %v8326_v38 }
 0x193   :  { %13498 = vst [vmem:[#allocation63_spill] sm:$0xff] %v8328_v21 }
 0x194   :  { %2833 = vadd.xlane.f32.xlu1 %v2832_v58  ;;  %1916 = vadd.xlane.f32.xlu2 %v1915_v43  ;;  %v2438_v27 = vsel %vm2216_vm1, %v2246_v14, 0.0  ;;  %13499 = vst [vmem:[#allocation64_spill] sm:$0xff] %v8340_v16  ;;  %v2629_v55 = vmul.f32 %v2245_v42, %v2245_v42  ;;  %v1665_v53 = vpop.f32.mrf.mxu3 }
 0x195   :  { %v2630_v39 = vmul.f32 %v2438_v27, %v2438_v27 }
 0x197   :  { %v1875_v5 = vpop.xlane.xlu0 %1874  ;;  %v1414_v51 = vpop.f32.mrf.mxu2  ;;  %v2835_v48 = vadd.f32 %v2630_v39, %v2629_v55 }
 0x198   :  { %v8342_v1 = vmul.f32 0.0051020407, %v1875_v5  ;;  %v8344_v18 = vadd.f32 %v1663_v3, %v1414_v51  ;;  %v918_v29 = vpop.f32.mrf.mxu0 }
 0x199   :  { %v8356_v5 = vadd.f32 %v1167_v26, %v918_v29 }
 0x19a   :  { %13500 = vst [vmem:[#allocation65_spill] sm:$0xff] %v8344_v18  ;;  %v1918_v34 = vadd.f32 %v8344_v18, %v8340_v16  ;;  %v2247_v58 = vsub.f32 %v8087_v8, %v8342_v1  ;;  %v2248_v35 = vsub.f32 %v8091_v11, %v8342_v1  ;;  %v1170_v8 = vpop.f32.mrf.mxu1 }
 0x19b   :  { %13502 = vst [vmem:[#allocation67_spill] sm:$0xff] %v8356_v5 }
 0x19c   :  { %2836 = vadd.xlane.f32.xlu2 %v2835_v48  ;;  %1919 = vadd.xlane.f32.xlu0 %v1918_v34  ;;  %v2440_v43 = vsel %vm2216_vm1, %v2248_v35, 0.0  ;;  %v2631_v31 = vmul.f32 %v2247_v58, %v2247_v58 }
 0x19d   :  { %v2632_v3 = vmul.f32 %v2440_v43, %v2440_v43 }
 0x19f   :  { %v2795_v42 = vpop.xlane.xlu0 %2794  ;;  %v1878_v14 = vpop.xlane.xlu1 %1877  ;;  %v2838_v34 = vadd.f32 %v2632_v3, %v2631_v31 }
 0x1a0   :  { %v3081_v27 = vmul.f32 0.0051020407, %v2795_v42  ;;  %v8354_v55 = vmul.f32 0.0051020407, %v1878_v14  ;;  %v1416_v39 = vpop.f32.mrf.mxu2  ;;  %v921_v48 = vpop.f32.mrf.mxu0 }
 0x1a1   :  { %v8358_v51 = vadd.f32 %v1665_v53, %v1416_v39  ;;  %v1668_v42 = vpop.f32.mrf.mxu3  ;;  %v8371_v26 = vadd.f32 %v1170_v8, %v921_v48 }
 0x1a2   :  { %13501 = vst [vmem:[#allocation66_spill] sm:$0xff] %v8354_v55  ;;  %v8360_v38 = vadd.f32 0.001, %v3081_v27  ;;  %v2250_v35 = vsub.f32 %v8113_v44, %v8354_v55  ;;  %v2249_v43 = vsub.f32 %v8108_v32, %v8354_v55 }
 0x1a3   :  { %13503 = vst [vmem:[#allocation68_spill] sm:$0xff] %v8358_v51  ;;  %v1921_v58 = vadd.f32 %v8358_v51, %v8356_v5 }
 0x1a4   :  { %7323 = vrsqrt.f32 %v8360_v38  ;;  %2839 = vadd.xlane.f32.xlu0 %v2838_v34  ;;  %v2442_v53 = vsel %vm2216_vm1, %v2250_v35, 0.0  ;;  %13504 = vst [vmem:[#allocation69_spill] sm:$0xff] %v8371_v26  ;;  %v2633_v31 = vmul.f32 %v2249_v43, %v2249_v43  ;;  %v1172_v35 = vpop.f32.mrf.mxu1  ;;  %vm3375_vm3 = vweird.f32 %v8360_v38 }
 0x1a5   :  { %1922 = vadd.xlane.f32.xlu1 %v1921_v58  ;;  %v2634_v3 = vmul.f32 %v2442_v53, %v2442_v53 }
 0x1a7   :  { %v2798_v29 = vpop.xlane.xlu1 %2797  ;;  %v2841_v51 = vadd.f32 %v2634_v3, %v2633_v31 }
 0x1a8   :  { %v3082_v14 = vmul.f32 0.0051020407, %v2798_v29  ;;  %v1881_v27 = vpop.xlane.xlu2 %1880  ;;  %v1419_v39 = vpop.f32.mrf.mxu2  ;;  %v13084_v29 = vmov 0  }
 0x1a9   :  { %v8373_v11 = vmul.f32 0.0051020407, %v1881_v27  ;;  %v8375_v44 = vadd.f32 %v1668_v42, %v1419_v39  ;;  %v923_v58 = vpop.f32.mrf.mxu0  ;;  %v1670_v42 = vpop.f32.mrf.mxu3  ;;  %7240 = vset.pattern.permute.xlu2 %v13084_v29  ;;  %7241 = vset.pattern.permute.xlu1 %v13084_v29 }
 0x1aa   :  { %v7324_v32 = vpop.eup %7323  ;;  %v3274_v5 = vadd.f32 0.001, %v3082_v14  ;;  %v8388_v39 = vadd.f32 %v1172_v35, %v923_v58 }
 0x1ab   :  { %13505 = vst [vmem:[#allocation70_spill] sm:$0xff] %v8373_v11  ;;  %v1924_v34 = vadd.f32 %v8375_v44, %v8371_v26  ;;  %v2251_v8 = vsub.f32 %v8130_v20, %v8373_v11  ;;  %v3370_v48 = vmul.f32 %v7324_v32, %v8360_v38  ;;  %v2252_v43 = vsub.f32 %v8134_v24, %v8373_v11  ;;  %v3178_v38 = vld [vmem:[%s13034_s2 + $0x8] sm:$0xff] }
 0x1ac   :  { %13506 = vst [vmem:[#allocation71_spill] sm:$0xff] %v8375_v44  ;;  %7325 = vrsqrt.f32 %v3274_v5  ;;  %v1175_v55 = vpop.f32.mrf.mxu1  ;;  %vm3376_vm2 = vweird.f32 %v7324_v32  ;;  %vm3385_vm6 = vweird.f32 %v3274_v5 }
 0x1ad   :  { %2842 = vadd.xlane.f32.xlu1 %v2841_v51  ;;  %1925 = vadd.xlane.f32.xlu2 %v1924_v34  ;;  %v2444_v53 = vsel %vm2216_vm1, %v2252_v43, 0.0  ;;  %v2635_v31 = vmul.f32 %v2251_v8, %v2251_v8  ;;  %v3371_v14 = vmul.f32 %v7324_v32, %v3370_v48  ;;  %13507 = vst [vmem:[#allocation72_spill] sm:$0xff] %v8388_v39  ;;  %vm3377_vm4 = vmor %vm3375_vm3, %vm3376_vm2 }
 0x1ae   :  { %v2636_v3 = vmul.f32 %v2444_v53, %v2444_v53 }
 0x1af   :  { %v3372_v11 = vmul.f32 0.5, %v3371_v14 }
 0x1b0   :  { %v1421_v27 = vpop.f32.mrf.mxu2  ;;  %v2844_v51 = vadd.f32 %v2636_v3, %v2635_v31 }
 0x1b1   :  { %v8390_v20 = vadd.f32 %v1670_v42, %v1421_v27  ;;  %v926_v4 = vpop.f32.mrf.mxu0  ;;  %v3373_v8 = vsub.f32 1.5, %v3372_v11  ;;  %v1673_v53 = vpop.f32.mrf.mxu3 }
 0x1b2   :  { %v7326_v24 = vpop.eup %7325  ;;  %v8394_v29 = vadd.f32 %v1175_v55, %v926_v4  ;;  %v3177_v4 = vld [vmem:[%s13034_s2] sm:$0xff] }
 0x1b3   :  { %13508 = vst [vmem:[#allocation73_spill] sm:$0xff] %v8390_v20  ;;  %v1927_v34 = vadd.f32 %v8390_v20, %v8388_v39  ;;  %v3380_v43 = vmul.f32 %v7326_v24, %v3274_v5  ;;  %v3374_v3 = vmul.f32 %v7324_v32, %v3373_v8  ;;  %vm3386_vm5 = vweird.f32 %v7326_v24  ;;  %v7182_v5 = vld [vmem:[%s13033_s1 + $0x144] sm:$0xf0] }
 0x1b4   :  { %13509 = vst [vmem:[#allocation74_spill] sm:$0xff] %v8394_v29  ;;  %vm3387_vm7 = vmor %vm3385_vm6, %vm3386_vm5 }
 0x1b5   :  { %2845 = vadd.xlane.f32.xlu2 %v2844_v51  ;;  %1928 = vadd.xlane.f32.xlu0 %v1927_v34  ;;  %v3381_v48 = vmul.f32 %v7326_v24, %v3380_v43  ;;  %v3378_v11 = vsel %vm3377_vm4, %v7324_v32, %v3374_v3  ;;  %v6703_v32 = vld [vmem:[%s13033_s1 + $0x140] sm:$0xf]  ;;  %v7184_v3 = vld [vmem:[%s13033_s1 + $0x154] sm:$0xf0] }
 0x1b6   :  { %v8404_v55 = vmul.f32 %v3378_v11, %v3177_v4  ;;  %v6704_v8 = vor.u32 %v7182_v5, %v6703_v32 }
 0x1b7   :  { %v3382_v31 = vmul.f32 0.5, %v3381_v48 }
 0x1b8   :  { %v1424_v35 = vpop.f32.mrf.mxu2  ;;  %13511 = vst [vmem:[#allocation76_spill] sm:$0xff] %v8404_v55  ;;  %v4425_v51 = vmul.f32 %v8404_v55, %v8089_v10  ;;  %v7181_v10 = vld [vmem:[%s13033_s1 + $0x144] sm:$0xf]  ;;  %1438 = vmatmul.bf16.gmra.mxu2 %v6704_v8  ;;  %940 = vmatmul.bf16.gmra.mxu0 %v6704_v8 }
 0x1b9   :  { %v8396_v58 = vadd.f32 %v1673_v53, %v1424_v35  ;;  %v3383_v14 = vsub.f32 1.5, %v3382_v31  ;;  %v1884_v53 = vpop.xlane.xlu0 %1883  ;;  %v6711_v31 = vld [vmem:[%s13033_s1 + $0x150] sm:$0xf]  ;;  %v928_v8 = vpop.f32.mrf.mxu0 }
 0x1ba   :  { %v6712_v11 = vor.u32 %v7184_v3, %v6711_v31  ;;  %v1887_v31 = vpop.xlane.xlu1 %1886 }
 0x1bb   :  { %13510 = vst [vmem:[#allocation75_spill] sm:$0xff] %v8396_v58  ;;  %v1930_v42 = vadd.f32 %v8396_v58, %v8394_v29  ;;  %v3384_v27 = vmul.f32 %v7326_v24, %v3383_v14  ;;  %v7183_v14 = vld [vmem:[%s13033_s1 + $0x154] sm:$0xf] }
 0x1bd   :  { %1931 = vadd.xlane.f32.xlu1 %v1930_v42  ;;  %v3388_v34 = vsel %vm3387_vm7, %v7326_v24, %v3384_v27  ;;  %v6705_v24 = vld [vmem:[%s13033_s1 + $0x148] sm:$0xf0]  ;;  %v2801_v42 = vpop.xlane.xlu2 %2800 }
 0x1be   :  { %v4330_v43 = vmul.f32 %v3388_v34, %v3178_v38  ;;  %v6708_v48 = vor.u32 %v7181_v10, %v6705_v24  ;;  %v8442_v34 = vmul.f32 0.0051020407, %v1884_v53  ;;  %v1177_v10 = vpop.f32.mrf.mxu1  ;;  %v1675_v24 = vpop.f32.mrf.mxu3 }
 0x1c0   :  { %7089 = vmatmul.msk.bf16.gmra.mxu3 %vm687_vm0, %v6708_v48  ;;  %7041 = vmatmul.msk.bf16.gmra.mxu1 %vm687_vm0, %v6708_v48  ;;  %v4426_v35 = vmul.f32 %v4330_v43, %v8111_v41  ;;  %v6713_v41 = vld [vmem:[%s13033_s1 + $0x158] sm:$0xf0]  ;;  %v2254_v5 = vsub.f32 %v8148_v60, %v8442_v34  ;;  %v1426_v48 = vpop.f32.mrf.mxu2 }
 0x1c1   :  { %v2804_v4 = vpop.xlane.xlu0 %2803  ;;  %v6716_v27 = vor.u32 %v7183_v14, %v6713_v41 }
 0x1c2   :  { %v3084_v38 = vmul.f32 0.0051020407, %v2804_v4 }
 0x1c4   :  { %v3276_v32 = vadd.f32 0.001, %v3084_v38 }
 0x1c6   :  { %vm3405_vm12 = vweird.f32 %v3276_v32 }
 0x1c8   :  { %1443 = vmatmul.bf16.gmra.mxu2 %v6712_v11  ;;  %945 = vmatmul.bf16.gmra.mxu0 %v6712_v11  ;;  %v8450_v11 = vmul.f32 0.0051020407, %v1887_v31 }
 0x1c9   :  { %4617 = vrot.lane.b32.xlu0 %v4425_v51, %s7591_s23  ;;  %v3083_v51 = vmul.f32 0.0051020407, %v2801_v42  ;;  %v2446_v42 = vsel %vm2216_vm1, %v2254_v5, 0.0 }
 0x1ca   :  { %v2638_v3 = vmul.f32 %v2446_v42, %v2446_v42  ;;  %13512 = vst [vmem:[#allocation77_spill] sm:$0xff] %v8450_v11  ;;  %v2256_v42 = vsub.f32 %v8162_v13, %v8450_v11 }
 0x1cc   :  { %v931_v41 = vpop.f32.mrf.mxu0 }
 0x1cd   :  { %5008 = vperm.xlu2 %7240, %v4330_v43   ;;  %v3275_v43 = vadd.f32 0.001, %v3083_v51  ;;  %v8452_v51 = vadd.f32 %v1675_v24, %v1426_v48 }
 0x1cf   :  { %7327 = vrsqrt.f32 %v3275_v43  ;;  %13513 = vst [vmem:[#allocation78_spill] sm:$0xff] %v8452_v51  ;;  %vm3395_vm10 = vweird.f32 %v3275_v43 }
 0x1d0   :  { %7090 = vmatmul.msk.bf16.gmra.mxu3 %vm687_vm0, %v6716_v27  ;;  %7042 = vmatmul.msk.bf16.gmra.mxu1 %vm687_vm0, %v6716_v27  ;;  %7329 = vrsqrt.f32 %v3276_v32  ;;  %v1180_v27 = vpop.f32.mrf.mxu1 }
 0x1d1   :  { %v8456_v5 = vadd.f32 %v1180_v27, %v931_v41 }
 0x1d2   :  { %v1429_v55 = vpop.f32.mrf.mxu2 }
 0x1d3   :  { %13515 = vst [vmem:[#allocation80_spill] sm:$0xff] %v8456_v5 }
 0x1d5   :  { %v7328_v14 = vpop.eup %7327 }
 0x1d6   :  { %4619 = vrot.lane.b32.xlu1 %v4426_v35, %s7591_s23  ;;  %v2253_v35 = vsub.f32 %v8144_v23, %v8442_v34  ;;  %v7330_v4 = vpop.eup %7329  ;;  %v1678_v38 = vpop.f32.mrf.mxu3  ;;  %v3390_v60 = vmul.f32 %v7328_v14, %v3275_v43  ;;  %v8454_v23 = vadd.f32 %v1177_v10, %v928_v8  ;;  %vm3396_vm8 = vweird.f32 %v7328_v14 }
 0x1d7   :  { %v3400_v58 = vmul.f32 %v7330_v4, %v3276_v32  ;;  %vm3406_vm9 = vweird.f32 %v7330_v4  ;;  %vm3397_vm11 = vmor %vm3395_vm10, %vm3396_vm8 }
 0x1d8   :  { %v2637_v53 = vmul.f32 %v2253_v35, %v2253_v35  ;;  %13514 = vst [vmem:[#allocation79_spill] sm:$0xff] %v8454_v23  ;;  %v8458_v35 = vadd.f32 %v1678_v38, %v1429_v55  ;;  %v1933_v31 = vadd.f32 %v8452_v51, %v8454_v23  ;;  %v3391_v24 = vmul.f32 %v7328_v14, %v3390_v60  ;;  %vm3407_vm13 = vmor %vm3405_vm12, %vm3406_vm9 }
 0x1d9   :  { %v3401_v48 = vmul.f32 %v7330_v4, %v3400_v58 }
 0x1da   :  { %v2847_v29 = vadd.f32 %v2638_v3, %v2637_v53  ;;  %13516 = vst [vmem:[#allocation81_spill] sm:$0xff] %v8458_v35  ;;  %v2255_v53 = vsub.f32 %v8158_v37, %v8450_v11  ;;  %v1936_v10 = vadd.f32 %v8458_v35, %v8456_v5  ;;  %v3392_v55 = vmul.f32 0.5, %v3391_v24  ;;  %v3180_v24 = vld [vmem:[%s13034_s2 + $0x18] sm:$0xff] }
 0x1db   :  { %v3402_v8 = vmul.f32 0.5, %v3401_v48 }
 0x1dc   :  { %v2639_v3 = vmul.f32 %v2255_v53, %v2255_v53  ;;  %v3393_v27 = vsub.f32 1.5, %v3392_v55 }
 0x1dd   :  { %v3403_v38 = vsub.f32 1.5, %v3402_v8 }
 0x1de   :  { %v3394_v60 = vmul.f32 %v7328_v14, %v3393_v27  ;;  %v1680_v55 = vpop.f32.mrf.mxu3  ;;  %v1893_v27 = vpop.xlane.xlu0 %1892 }
 0x1df   :  { %v3404_v58 = vmul.f32 %v7330_v4, %v3403_v38 }
 0x1e1   :  { %v3408_v48 = vsel %vm3407_vm13, %v7330_v4, %v3404_v58  ;;  %v7185_v58 = vld [vmem:[%s13033_s1 + $0x164] sm:$0xf] }
 0x1e2   :  { %v8479_v53 = vmul.f32 %v3408_v48, %v3180_v24  ;;  %v6721_v24 = vld [vmem:[%s13033_s1 + $0x168] sm:$0xf0] }
 0x1e3   :  { %v6724_v48 = vor.u32 %v7185_v58, %v6721_v24 }
 0x1e4   :  { %v4428_v32 = vmul.f32 %v8479_v53, %v8146_v57  ;;  %v6719_v57 = vld [vmem:[%s13033_s1 + $0x160] sm:$0xf] }
 0x1e5   :  { %7091 = vmatmul.msk.bf16.gmra.mxu3 %vm687_vm0, %v6724_v48  ;;  %7043 = vmatmul.msk.bf16.gmra.mxu1 %vm687_vm0, %v6724_v48 }
 0x1f3   :  { %2848 = vadd.xlane.f32.xlu0 %v2847_v29  ;;  %v2448_v29 = vsel %vm2216_vm1, %v2256_v42, 0.0  ;;  %v8473_v42 = vld [vmem:[%s13034_s2 + $0x10] sm:$0xff] }
 0x1f4   :  { %v2640_v41 = vmul.f32 %v2448_v29, %v2448_v29  ;;  %v1182_v29 = vpop.f32.mrf.mxu1 }
 0x1f6   :  { %1934 = vadd.xlane.f32.xlu2 %v1933_v31  ;;  %v2850_v13 = vadd.f32 %v2640_v41, %v2639_v3  ;;  %v3398_v31 = vsel %vm3397_vm11, %v7328_v14, %v3394_v60  ;;  %v1431_v14 = vpop.f32.mrf.mxu2  ;;  %v7186_v60 = vld [vmem:[%s13033_s1 + $0x164] sm:$0xf0] }
 0x1fb   :  { %1937 = vadd.xlane.f32.xlu0 %v1936_v10  ;;  %v933_v10 = vpop.f32.mrf.mxu0 }
 0x200   :  { %2851 = vadd.xlane.f32.xlu1 %v2850_v13  ;;  %v4331_v13 = vmul.f32 %v3398_v31, %v8473_v42  ;;  %v6720_v31 = vor.u32 %v7186_v60, %v6719_v57 }
 0x202   :  { %v4427_v43 = vmul.f32 %v4331_v13, %v8132_v22  ;;  %1448 = vmatmul.bf16.gmra.mxu2 %v6720_v31  ;;  %950 = vmatmul.bf16.gmra.mxu0 %v6720_v31 }
 0x208   :  { %v936_v8 = vpop.f32.mrf.mxu0 }
 0x20c   :  { %v1185_v3 = vpop.f32.mrf.mxu1 }
 0x20d   :  { %v1434_v4 = vpop.f32.mrf.mxu2  ;;  %v8486_v38 = vadd.f32 %v1185_v3, %v936_v8 }
 0x20e   :  { %4621 = vrot.lane.b32.xlu2 %v4427_v43, %s7591_s23  ;;  %v2813_v43 = vpop.xlane.xlu0 %2812 }
 0x20f   :  { %4623 = vrot.lane.b32.xlu0 %v4428_v32, %s7591_s23  ;;  %13517 = vst [vmem:[#allocation82_spill] sm:$0xff] %v8486_v38  ;;  %v2807_v32 = vpop.xlane.xlu1 %2806  ;;  %v3087_v3 = vmul.f32 0.0051020407, %v2813_v43 }
 0x210   :  { %v938_v37 = vpop.f32.mrf.mxu0 }
 0x211   :  { %v3279_v60 = vadd.f32 0.001, %v3087_v3 }
 0x212   :  { %v1683_v41 = vpop.f32.mrf.mxu3 }
 0x213   :  { %v8488_v22 = vadd.f32 %v1683_v41, %v1434_v4  ;;  %v8506_v4 = vmul.f32 0.0051020407, %v1893_v27  ;;  %v3085_v41 = vmul.f32 0.0051020407, %v2807_v32  ;;  %7331 = vrsqrt.f32 %v3279_v60 }
 0x214   :  { %v1187_v11 = vpop.f32.mrf.mxu1  ;;  %vm3435_vm2 = vweird.f32 %v3279_v60 }
 0x215   :  { %13518 = vst [vmem:[#allocation83_spill] sm:$0xff] %v8488_v22  ;;  %v2260_v58 = vsub.f32 %v8190_v15, %v8506_v4  ;;  %v3277_v31 = vadd.f32 0.001, %v3085_v41  ;;  %v2259_v27 = vsub.f32 %v8186_v61, %v8506_v4  ;;  %v8520_v61 = vadd.f32 %v1187_v11, %v938_v37 }
 0x216   :  { %13520 = vst [vmem:[#allocation85_spill] sm:$0xff] %v8506_v4 }
 0x217   :  { %7333 = vrsqrt.f32 %v3277_v31  ;;  %v2643_v3 = vmul.f32 %v2259_v27, %v2259_v27  ;;  %13521 = vst [vmem:[#allocation86_spill] sm:$0xff] %v8520_v61  ;;  %v8526_v27 = vadd.f32 %v1680_v55, %v1431_v14  ;;  %vm3415_vm4 = vweird.f32 %v3277_v31  ;;  %v3181_v14 = vld [vmem:[%s13034_s2 + $0x20] sm:$0xff] }
 0x219   :  { %5013 = vperm.xlu1 %7241, %v4331_v13   ;;  %v1890_v13 = vpop.xlane.xlu2 %1889  ;;  %v7332_v15 = vpop.eup %7331  ;;  %13524 = vst [vmem:[#allocation89_spill] sm:$0xff] %v8526_v27 }
 0x21a   :  { %v8504_v8 = vmul.f32 0.0051020407, %v1890_v13  ;;  %v2452_v13 = vsel %vm2216_vm1, %v2260_v58, 0.0  ;;  %v3430_v51 = vmul.f32 %v7332_v15, %v3279_v60  ;;  %vm3436_vm14 = vweird.f32 %v7332_v15 }
 0x21b   :  { %vm3437_vm3 = vmor %vm3435_vm2, %vm3436_vm14 }
 0x21c   :  { %13519 = vst [vmem:[#allocation84_spill] sm:$0xff] %v8504_v8  ;;  %v2258_v57 = vsub.f32 %v8176_v25, %v8504_v8  ;;  %v2257_v24 = vsub.f32 %v8172_v36, %v8504_v8  ;;  %v2644_v25 = vmul.f32 %v2452_v13, %v2452_v13  ;;  %v1436_v36 = vpop.f32.mrf.mxu2  ;;  %v1685_v8 = vpop.f32.mrf.mxu3 }
 0x21d   :  { %v7334_v23 = vpop.eup %7333  ;;  %v8522_v4 = vadd.f32 %v1685_v8, %v1436_v36 }
 0x21e   :  { %v2450_v48 = vsel %vm2216_vm1, %v2258_v57, 0.0  ;;  %v2641_v43 = vmul.f32 %v2257_v24, %v2257_v24  ;;  %v2856_v57 = vadd.f32 %v2644_v25, %v2643_v3  ;;  %v3410_v58 = vmul.f32 %v7334_v23, %v3277_v31 }
 0x21f   :  { %v2642_v32 = vmul.f32 %v2450_v48, %v2450_v48  ;;  %13522 = vst [vmem:[#allocation87_spill] sm:$0xff] %v8522_v4  ;;  %v3431_v24 = vmul.f32 %v7332_v15, %v3430_v51  ;;  %v8524_v48 = vadd.f32 %v1182_v29, %v933_v10  ;;  %v1945_v13 = vadd.f32 %v8522_v4, %v8520_v61  ;;  %v3183_v10 = vld [vmem:[%s13034_s2 + $0x30] sm:$0xff] }
 0x220   :  { %vm3416_vm15 = vweird.f32 %v7334_v23 }
 0x221   :  { %v2853_v41 = vadd.f32 %v2642_v32, %v2641_v43  ;;  %13523 = vst [vmem:[#allocation88_spill] sm:$0xff] %v8524_v48  ;;  %v3411_v43 = vmul.f32 %v7334_v23, %v3410_v58  ;;  %v3432_v32 = vmul.f32 0.5, %v3431_v24  ;;  %v1939_v25 = vadd.f32 %v8526_v27, %v8524_v48  ;;  %vm3417_vm5 = vmor %vm3415_vm4, %vm3416_vm15 }
 0x223   :  { %v3412_v3 = vmul.f32 0.5, %v3411_v43  ;;  %v3433_v37 = vsub.f32 1.5, %v3432_v32  ;;  %v6729_v32 = vld [vmem:[%s13033_s1 + $0x178] sm:$0xf0] }
 0x225   :  { %v3413_v36 = vsub.f32 1.5, %v3412_v3  ;;  %v3434_v11 = vmul.f32 %v7332_v15, %v3433_v37  ;;  %v1902_v3 = vpop.xlane.xlu0 %1901  ;;  %v6735_v37 = vld [vmem:[%s13033_s1 + $0x180] sm:$0xf] }
 0x227   :  { %v3414_v51 = vmul.f32 %v7334_v23, %v3413_v36  ;;  %v3438_v29 = vsel %vm3437_vm3, %v7332_v15, %v3434_v11  ;;  %v7190_v36 = vld [vmem:[%s13033_s1 + $0x184] sm:$0xf0]  ;;  %v7189_v11 = vld [vmem:[%s13033_s1 + $0x184] sm:$0xf] }
 0x228   :  { %v8539_v8 = vmul.f32 %v3438_v29, %v3183_v10  ;;  %v6737_v10 = vld [vmem:[%s13033_s1 + $0x188] sm:$0xf0] }
 0x229   :  { %v3418_v55 = vsel %vm3417_vm5, %v7334_v23, %v3414_v51  ;;  %v6736_v51 = vor.u32 %v7190_v36, %v6735_v37 }
 0x22a   :  { %v4431_v60 = vmul.f32 %v8539_v8, %v8188_v47  ;;  %v7188_v47 = vld [vmem:[%s13033_s1 + $0x174] sm:$0xf0] }
 0x22d   :  { %v2822_v29 = vpop.xlane.xlu0 %2821 }
 0x237   :  { %2854 = vadd.xlane.f32.xlu2 %v2853_v41  ;;  %v4333_v41 = vmul.f32 %v3418_v55, %v3181_v14  ;;  %v6740_v14 = vor.u32 %v7189_v11, %v6737_v10  ;;  %v2810_v55 = vpop.xlane.xlu2 %2809 }
 0x239   :  { %2857 = vadd.xlane.f32.xlu0 %v2856_v57  ;;  %v4429_v31 = vmul.f32 %v4333_v41, %v8160_v40  ;;  %v941_v57 = vpop.f32.mrf.mxu0  ;;  %v7187_v40 = vld [vmem:[%s13033_s1 + $0x174] sm:$0xf] }
 0x23b   :  { %v1439_v58 = vpop.f32.mrf.mxu2 }
 0x23d   :  { %v1190_v15 = vpop.f32.mrf.mxu1 }
 0x241   :  { %1946 = vadd.xlane.f32.xlu0 %v1945_v13  ;;  %v8546_v13 = vadd.f32 %v1190_v15, %v941_v57  ;;  %v3086_v57 = vmul.f32 0.0051020407, %v2810_v55 }
 0x243   :  { %1940 = vadd.xlane.f32.xlu1 %v1939_v25  ;;  %v1688_v24 = vpop.f32.mrf.mxu3  ;;  %13525 = vst [vmem:[#allocation90_spill] sm:$0xff] %v8546_v13  ;;  %v6732_v25 = vor.u32 %v7187_v40, %v6729_v32  ;;  %v1899_v32 = vpop.xlane.xlu2 %1898 }
 0x244   :  { %v8548_v23 = vadd.f32 %v1688_v24, %v1439_v58  ;;  %v8580_v58 = vpop.f32.mrf.mxu0  ;;  %v8598_v11 = vmul.f32 0.0051020407, %v1899_v32 }
 0x245   :  { %7092 = vmatmul.msk.bf16.gmra.mxu3 %vm687_vm0, %v6732_v25  ;;  %7044 = vmatmul.msk.bf16.gmra.mxu1 %vm687_vm0, %v6732_v25  ;;  %v8582_v24 = vpop.f32.mrf.mxu1 }
 0x246   :  { %13526 = vst [vmem:[#allocation91_spill] sm:$0xff] %v8548_v23  ;;  %v2263_v27 = vsub.f32 %v8228_v59, %v8598_v11 }
 0x247   :  { %13529 = vst [vmem:[#allocation94_spill] sm:$0xff] %v8598_v11 }
 0x24f   :  { %5018 = vperm.xlu2 %7240, %v8479_v53   ;;  %v6727_v53 = vld [vmem:[%s13033_s1 + $0x170] sm:$0xf] }
 0x250   :  { %v6728_v43 = vor.u32 %v7188_v47, %v6727_v53  ;;  %v8584_v53 = vpop.f32.mrf.mxu2  ;;  %v8586_v47 = vpop.f32.mrf.mxu3 }
 0x252   :  { %1453 = vmatmul.bf16.gmra.mxu2 %v6728_v43  ;;  %955 = vmatmul.bf16.gmra.mxu0 %v6728_v43  ;;  %v8590_v43 = vadd.f32 0.001, %v3086_v57  ;;  %v2264_v57 = vsub.f32 %v8232_v9, %v8598_v11 }
 0x254   :  { %vm3425_vm10 = vweird.f32 %v8590_v43 }
 0x255   :  { %4629 = vrot.lane.b32.xlu0 %v4431_v60, %s7591_s23  ;;  %v3090_v60 = vmul.f32 0.0051020407, %v2822_v29  ;;  %7093 = vmatmul.msk.bf16.gmra.mxu3 %vm687_vm0, %v6740_v14 }
 0x256   :  { %7045 = vmatmul.msk.bf16.gmra.mxu1 %vm687_vm0, %v6740_v14 }
 0x257   :  { %4625 = vrot.lane.b32.xlu2 %v4429_v31, %s7591_s23  ;;  %v8577_v31 = vmul.f32 0.0051020407, %v1902_v3  ;;  %v3282_v15 = vadd.f32 0.001, %v3090_v60  ;;  %v1195_v60 = vpop.f32.mrf.mxu1 }
 0x258   :  { %v1693_v32 = vpop.f32.mrf.mxu3 }
 0x259   :  { %13527 = vst [vmem:[#allocation92_spill] sm:$0xff] %v8577_v31  ;;  %v2266_v40 = vsub.f32 %v8246_v28, %v8577_v31  ;;  %7335 = vrsqrt.f32 %v3282_v15  ;;  %v2265_v3 = vsub.f32 %v8242_v45, %v8577_v31  ;;  %v1444_v28 = vpop.f32.mrf.mxu2  ;;  %vm3465_vm7 = vweird.f32 %v3282_v15 }
 0x25a   :  { %7337 = vrsqrt.f32 %v8590_v43  ;;  %v8615_v31 = vadd.f32 %v1693_v32, %v1444_v28 }
 0x25b   :  { %v2458_v37 = vsel %vm2216_vm1, %v2266_v40, 0.0  ;;  %v1942_v40 = vadd.f32 %v8488_v22, %v8486_v38  ;;  %v2456_v38 = vsel %vm2216_vm1, %v2264_v57, 0.0 }
 0x25c   :  { %5023 = vperm.xlu1 %7241, %v4333_v41   ;;  %v1896_v41 = vpop.xlane.xlu1 %1895  ;;  %v2650_v10 = vmul.f32 %v2458_v37, %v2458_v37  ;;  %13531 = vst [vmem:[#allocation96_spill] sm:$0xff] %v8615_v31 }
 0x25d   :  { %v8592_v25 = vmul.f32 0.0051020407, %v1896_v41  ;;  %v946_v41 = vpop.f32.mrf.mxu0 }
 0x25e   :  { %v8613_v9 = vadd.f32 %v1195_v60, %v946_v41 }
 0x25f   :  { %13528 = vst [vmem:[#allocation93_spill] sm:$0xff] %v8592_v25  ;;  %v2262_v29 = vsub.f32 %v8218_v50, %v8592_v25  ;;  %v7336_v55 = vpop.eup %7335  ;;  %v2261_v45 = vsub.f32 %v8214_v6, %v8592_v25  ;;  %v2648_v25 = vmul.f32 %v2456_v38, %v2456_v38 }
 0x260   :  { %v7338_v50 = vpop.eup %7337  ;;  %v3460_v48 = vmul.f32 %v7336_v55, %v3282_v15  ;;  %13530 = vst [vmem:[#allocation95_spill] sm:$0xff] %v8613_v9  ;;  %v1954_v59 = vadd.f32 %v8615_v31, %v8613_v9  ;;  %vm3466_vm6 = vweird.f32 %v7336_v55 }
 0x261   :  { %v2454_v37 = vsel %vm2216_vm1, %v2262_v29, 0.0  ;;  %v2645_v6 = vmul.f32 %v2261_v45, %v2261_v45  ;;  %vm3467_vm8 = vmor %vm3465_vm7, %vm3466_vm6  ;;  %vm3426_vm9 = vweird.f32 %v7338_v50 }
 0x262   :  { %1458 = vmatmul.bf16.gmra.mxu2 %v6736_v51  ;;  %960 = vmatmul.bf16.gmra.mxu0 %v6736_v51  ;;  %v2649_v51 = vmul.f32 %v2265_v3, %v2265_v3  ;;  %v3461_v29 = vmul.f32 %v7336_v55, %v3460_v48  ;;  %vm3427_vm11 = vmor %vm3425_vm10, %vm3426_vm9 }
 0x264   :  { %v2816_v36 = vpop.xlane.xlu1 %2815  ;;  %v2865_v3 = vadd.f32 %v2650_v10, %v2649_v51  ;;  %v2646_v51 = vmul.f32 %v2454_v37, %v2454_v37  ;;  %v3420_v10 = vmul.f32 %v7338_v50, %v8590_v43  ;;  %v3462_v60 = vmul.f32 0.5, %v3461_v29  ;;  %v8641_v43 = vpop.f32.mrf.mxu3 }
 0x265   :  { %v3088_v14 = vmul.f32 0.0051020407, %v2816_v36 }
 0x266   :  { %v3421_v41 = vmul.f32 %v7338_v50, %v3420_v10  ;;  %v3463_v45 = vsub.f32 1.5, %v3462_v60 }
 0x267   :  { %v3280_v36 = vadd.f32 0.001, %v3088_v14  ;;  %v2647_v14 = vmul.f32 %v2263_v27, %v2263_v27 }
 0x268   :  { %v3422_v57 = vmul.f32 0.5, %v3421_v41  ;;  %v3464_v11 = vmul.f32 %v7336_v55, %v3463_v45 }
 0x269   :  { %7339 = vrsqrt.f32 %v3280_v36  ;;  %v2862_v28 = vadd.f32 %v2648_v25, %v2647_v14  ;;  %vm3445_vm13 = vweird.f32 %v3280_v36 }
 0x26a   :  { %v3423_v37 = vsub.f32 1.5, %v3422_v57  ;;  %v3468_v38 = vsel %vm3467_vm8, %v7336_v55, %v3464_v11  ;;  %v8637_v11 = vpop.f32.mrf.mxu1  ;;  %v8639_v55 = vpop.f32.mrf.mxu2 }
 0x26c   :  { %v3424_v27 = vmul.f32 %v7338_v50, %v3423_v37  ;;  %v1698_v37 = vpop.f32.mrf.mxu3 }
 0x26e   :  { %v3428_v10 = vsel %vm3427_vm11, %v7338_v50, %v3424_v27 }
 0x26f   :  { %v7340_v32 = vpop.eup %7339 }
 0x270   :  { %vm3446_vm12 = vweird.f32 %v7340_v32 }
 0x271   :  { %vm3447_vm14 = vmor %vm3445_vm13, %vm3446_vm12 }
 0x272   :  { %v1200_v57 = vpop.f32.mrf.mxu1 }
 0x27f   :  { %2866 = vadd.xlane.f32.xlu0 %v2865_v3  ;;  %v2859_v3 = vadd.f32 %v2646_v51, %v2645_v6  ;;  %v3186_v6 = vld [vmem:[%s13034_s2 + $0x48] sm:$0xff] }
 0x280   :  { %1943 = vadd.xlane.f32.xlu2 %v1942_v40  ;;  %v3440_v40 = vmul.f32 %v7340_v32, %v3280_v36  ;;  %v3182_v51 = vld [vmem:[%s13034_s2 + $0x28] sm:$0xff] }
 0x281   :  { %v8633_v14 = vmul.f32 %v3428_v10, %v3182_v51 }
 0x282   :  { %v3441_v48 = vmul.f32 %v7340_v32, %v3440_v40 }
 0x283   :  { %13532 = vst [vmem:[#allocation97_spill] sm:$0xff] %v8633_v14  ;;  %v4430_v50 = vmul.f32 %v8633_v14, %v8174_v56  ;;  %v1911_v56 = vpop.xlane.xlu0 %1910 }
 0x284   :  { %v3442_v25 = vmul.f32 0.5, %v3441_v48  ;;  %v8660_v27 = vmul.f32 0.0051020407, %v1911_v56 }
 0x285   :  { %v1449_v36 = vpop.f32.mrf.mxu2 }
 0x286   :  { %2860 = vadd.xlane.f32.xlu1 %v2859_v3  ;;  %v3443_v15 = vsub.f32 1.5, %v3442_v25  ;;  %v8635_v3 = vpop.f32.mrf.mxu0  ;;  %v8655_v48 = vadd.f32 %v1698_v37, %v1449_v36  ;;  %v2272_v25 = vsub.f32 %v8288_v49, %v8660_v27  ;;  %v2271_v51 = vsub.f32 %v8284_v7, %v8660_v27 }
 0x287   :  { %1955 = vadd.xlane.f32.xlu0 %v1954_v59  ;;  %v8626_v59 = vmul.f32 %v3468_v38, %v3186_v6 }
 0x288   :  { %2863 = vadd.xlane.f32.xlu2 %v2862_v28  ;;  %v3444_v41 = vmul.f32 %v7340_v32, %v3443_v15  ;;  %13534 = vst [vmem:[#allocation99_spill] sm:$0xff] %v8655_v48  ;;  %v2464_v10 = vsel %vm2216_vm1, %v2272_v25, 0.0  ;;  %v8668_v15 = vpop.xlane.xlu2 %2818 }
 0x289   :  { %v4434_v29 = vmul.f32 %v8626_v59, %v8244_v54  ;;  %v3184_v54 = vld [vmem:[%s13034_s2 + $0x38] sm:$0xff] }
 0x28a   :  { %v3448_v60 = vsel %vm3447_vm14, %v7340_v32, %v3444_v41  ;;  %v2656_v41 = vmul.f32 %v2464_v10, %v2464_v10 }
 0x28b   :  { %v8651_v45 = vmul.f32 %v3448_v60, %v3184_v54  ;;  %v2831_v38 = vpop.xlane.xlu0 %2830  ;;  %v1202_v60 = vpop.f32.mrf.mxu1 }
 0x28c   :  { %v3093_v32 = vmul.f32 0.0051020407, %v2831_v38 }
 0x28d   :  { %v4432_v6 = vmul.f32 %v8651_v45, %v8216_v19  ;;  %v8670_v19 = vpop.xlane.xlu1 %1904 }
 0x28e   :  { %v951_v28 = vpop.f32.mrf.mxu0 }
 0x28f   :  { %v8653_v40 = vadd.f32 %v1200_v57, %v951_v28  ;;  %v1451_v28 = vpop.f32.mrf.mxu2  ;;  %v1700_v57 = vpop.f32.mrf.mxu3 }
 0x290   :  { %v1908_v56 = vpop.xlane.xlu2 %1907  ;;  %v8674_v38 = vadd.f32 %v1700_v57, %v1451_v28 }
 0x291   :  { %13533 = vst [vmem:[#allocation98_spill] sm:$0xff] %v8653_v40  ;;  %v8678_v14 = vmul.f32 0.0051020407, %v1908_v56 }
 0x292   :  { %13536 = vst [vmem:[#allocation101_spill] sm:$0xff] %v8674_v38 }
 0x293   :  { %13537 = vst [vmem:[#allocation102_spill] sm:$0xff] %v8678_v14 }
 0x295   :  { %v2825_v25 = vpop.xlane.xlu1 %2824 }
 0x296   :  { %v953_v54 = vpop.f32.mrf.mxu0  ;;  %v3091_v49 = vmul.f32 0.0051020407, %v2825_v25 }
 0x298   :  { %v3283_v28 = vadd.f32 0.001, %v3091_v49  ;;  %v3189_v49 = vld [vmem:[%s13034_s2 + $0x60] sm:$0xff] }
 0x29a   :  { %vm3475_vm5 = vweird.f32 %v3283_v28 }
 0x29b   :  { %4635 = vrot.lane.b32.xlu0 %v4434_v29, %s7591_s23  ;;  %v2655_v29 = vmul.f32 %v2271_v51, %v2271_v51 }
 0x29d   :  { %v2874_v36 = vadd.f32 %v2656_v41, %v2655_v29  ;;  %v8684_v29 = vadd.f32 %v8582_v24, %v8580_v58  ;;  %v8688_v41 = vadd.f32 %v8586_v47, %v8584_v53 }
 0x29f   :  { %4627 = vrot.lane.b32.xlu1 %v4430_v50, %s7591_s23  ;;  %13538 = vst [vmem:[#allocation103_spill] sm:$0xff] %v8684_v29  ;;  %v1951_v57 = vadd.f32 %v8688_v41, %v8684_v29 }
 0x2a0   :  { %5033 = vperm.xlu2 %7240, %v8539_v8   ;;  %v3285_v8 = vadd.f32 0.001, %v3093_v32  ;;  %v1948_v32 = vadd.f32 %v8548_v23, %v8546_v13  ;;  %13539 = vst [vmem:[#allocation104_spill] sm:$0xff] %v8688_v41 }
 0x2a2   :  { %7341 = vrsqrt.f32 %v3285_v8  ;;  %vm3495_vm2 = vweird.f32 %v3285_v8 }
 0x2a3   :  { %7343 = vrsqrt.f32 %v3283_v28 }
 0x2a8   :  { %4631 = vrot.lane.b32.xlu2 %v4432_v6, %s7591_s23  ;;  %v7342_v50 = vpop.eup %7341  ;;  %v8672_v6 = vadd.f32 %v1202_v60, %v953_v54  ;;  %v2270_v60 = vsub.f32 %v8274_v46, %v8678_v14 }
 0x2a9   :  { %v3490_v37 = vmul.f32 %v7342_v50, %v3285_v8  ;;  %vm3496_vm15 = vweird.f32 %v7342_v50  ;;  %v7344_v25 = vpop.eup %7343  ;;  %v7192_v8 = vld [vmem:[%s13033_s1 + $0x194] sm:$0xf0] }
 0x2aa   :  { %13535 = vst [vmem:[#allocation100_spill] sm:$0xff] %v8672_v6  ;;  %v1963_v10 = vadd.f32 %v8674_v38, %v8672_v6  ;;  %v2462_v58 = vsel %vm2216_vm1, %v2270_v60, 0.0  ;;  %vm3497_vm3 = vmor %vm3495_vm2, %vm3496_vm15  ;;  %v7191_v60 = vld [vmem:[%s13033_s1 + $0x194] sm:$0xf]  ;;  %vm3476_vm4 = vweird.f32 %v7344_v25 }
 0x2ab   :  { %v3491_v51 = vmul.f32 %v7342_v50, %v3490_v37  ;;  %v2654_v53 = vmul.f32 %v2462_v58, %v2462_v58  ;;  %vm3477_vm6 = vmor %vm3475_vm5, %vm3476_vm4 }
 0x2ad   :  { %v3492_v54 = vmul.f32 0.5, %v3491_v51 }
 0x2af   :  { %v3493_v37 = vsub.f32 1.5, %v3492_v54  ;;  %v6743_v54 = vld [vmem:[%s13033_s1 + $0x190] sm:$0xf] }
 0x2b1   :  { %v3494_v47 = vmul.f32 %v7342_v50, %v3493_v37 }
 0x2c5   :  { %2875 = vadd.xlane.f32.xlu0 %v2874_v36  ;;  %v2269_v36 = vsub.f32 %v8270_v17, %v8678_v14 }
 0x2c7   :  { %v2653_v24 = vmul.f32 %v2269_v36, %v2269_v36 }
 0x2c9   :  { %1949 = vadd.xlane.f32.xlu1 %v1948_v32  ;;  %v2871_v56 = vadd.f32 %v2654_v53, %v2653_v24  ;;  %v3498_v32 = vsel %vm3497_vm3, %v7342_v50, %v3494_v47  ;;  %v6745_v50 = vld [vmem:[%s13033_s1 + $0x198] sm:$0xf0]  ;;  %v1920_v47 = vpop.xlane.xlu0 %1919 }
 0x2ca   :  { %v8701_v51 = vmul.f32 %v3498_v32, %v3189_v49  ;;  %v6748_v37 = vor.u32 %v7191_v60, %v6745_v50 }
 0x2cc   :  { %v4437_v36 = vmul.f32 %v8701_v51, %v8286_v12  ;;  %7094 = vmatmul.msk.bf16.gmra.mxu3 %vm687_vm0, %v6748_v37  ;;  %7046 = vmatmul.msk.bf16.gmra.mxu1 %vm687_vm0, %v6748_v37  ;;  %v3187_v12 = vld [vmem:[%s13034_s2 + $0x50] sm:$0xff] }
 0x2cd   :  { %1964 = vadd.xlane.f32.xlu0 %v1963_v10  ;;  %v3470_v10 = vmul.f32 %v7344_v25, %v3283_v28  ;;  %v3089_v28 = vmul.f32 0.0051020407, %v8668_v15 }
 0x2cf   :  { %v3471_v58 = vmul.f32 %v7344_v25, %v3470_v10  ;;  %v956_v32 = vpop.f32.mrf.mxu0  ;;  %v1205_v10 = vpop.f32.mrf.mxu1 }
 0x2d1   :  { %1952 = vadd.xlane.f32.xlu2 %v1951_v57  ;;  %v6744_v57 = vor.u32 %v7192_v8, %v6743_v54  ;;  %v3472_v24 = vmul.f32 0.5, %v3471_v58  ;;  %v8725_v8 = vadd.f32 %v1205_v10, %v956_v32  ;;  %v2840_v50 = vpop.xlane.xlu0 %2839  ;;  %v8738_v58 = vmul.f32 0.0051020407, %v8670_v19 }
 0x2d2   :  { %v3096_v37 = vmul.f32 0.0051020407, %v2840_v50 }
 0x2d3   :  { %1463 = vmatmul.bf16.gmra.mxu2 %v6744_v57  ;;  %965 = vmatmul.bf16.gmra.mxu0 %v6744_v57  ;;  %v3473_v53 = vsub.f32 1.5, %v3472_v24  ;;  %13540 = vst [vmem:[#allocation105_spill] sm:$0xff] %v8725_v8  ;;  %v2267_v32 = vsub.f32 %v8256_v62, %v8738_v58 }
 0x2d4   :  { %13543 = vst [vmem:[#allocation108_spill] sm:$0xff] %v8738_v58  ;;  %v3288_v24 = vadd.f32 0.001, %v3096_v37 }
 0x2d5   :  { %v1454_v54 = vpop.f32.mrf.mxu2 }
 0x2d6   :  { %vm3525_vm11 = vweird.f32 %v3288_v24 }
 0x2d9   :  { %2872 = vadd.xlane.f32.xlu2 %v2871_v56  ;;  %v3474_v56 = vmul.f32 %v7344_v25, %v3473_v53  ;;  %v8740_v53 = vpop.f32.mrf.mxu0 }
 0x2db   :  { %v3478_v49 = vsel %vm3477_vm6, %v7344_v25, %v3474_v56  ;;  %v8735_v25 = vmul.f32 0.0051020407, %v1920_v47  ;;  %v8742_v56 = vpop.f32.mrf.mxu1  ;;  %v2268_v47 = vsub.f32 %v8260_v33, %v8738_v58 }
 0x2dc   :  { %v8729_v57 = vmul.f32 %v3478_v49, %v3187_v12 }
 0x2dd   :  { %13542 = vst [vmem:[#allocation107_spill] sm:$0xff] %v8735_v25  ;;  %v8744_v12 = vpop.f32.mrf.mxu2  ;;  %v2277_v19 = vsub.f32 %v8340_v16, %v8735_v25  ;;  %v2460_v10 = vsel %vm2216_vm1, %v2268_v47, 0.0 }
 0x2e1   :  { %4641 = vrot.lane.b32.xlu0 %v4437_v36, %s7591_s23  ;;  %v4435_v36 = vmul.f32 %v8729_v57, %v8258_v2  ;;  %v2278_v2 = vsub.f32 %v8344_v18, %v8735_v25  ;;  %v961_v46 = vpop.f32.mrf.mxu0 }
 0x2e2   :  { %5038 = vperm.xlu1 %7241, %v8651_v45   ;;  %v1703_v45 = vpop.f32.mrf.mxu3 }
 0x2e3   :  { %v8727_v60 = vadd.f32 %v1703_v45, %v1454_v54  ;;  %v2470_v49 = vsel %vm2216_vm1, %v2278_v2, 0.0  ;;  %v2661_v45 = vmul.f32 %v2277_v19, %v2277_v19  ;;  %v1210_v17 = vpop.f32.mrf.mxu1  ;;  %v8764_v19 = vpop.xlane.xlu2 %2827 }
 0x2e4   :  { %v2662_v50 = vmul.f32 %v2470_v49, %v2470_v49  ;;  %v8760_v13 = vadd.f32 %v1210_v17, %v961_v46 }
 0x2e5   :  { %13541 = vst [vmem:[#allocation106_spill] sm:$0xff] %v8727_v60  ;;  %v1459_v7 = vpop.f32.mrf.mxu2 }
 0x2e6   :  { %v2883_v33 = vadd.f32 %v2662_v50, %v2661_v45  ;;  %13544 = vst [vmem:[#allocation109_spill] sm:$0xff] %v8760_v13 }
 0x2ea   :  { %v8746_v15 = vpop.f32.mrf.mxu3 }
 0x2eb   :  { %v1917_v50 = vpop.xlane.xlu2 %1916 }
 0x2f1   :  { %5048 = vperm.xlu2 %7240, %v8626_v59   ;;  %v3281_v59 = vadd.f32 0.001, %v3089_v28  ;;  %v2651_v28 = vmul.f32 %v2267_v32, %v2267_v32  ;;  %v8766_v32 = vpop.xlane.xlu1 %1913 }
 0x2f2   :  { %v1708_v16 = vpop.f32.mrf.mxu3 }
 0x2f3   :  { %7345 = vrsqrt.f32 %v3281_v59  ;;  %v8762_v62 = vadd.f32 %v1708_v16, %v1459_v7  ;;  %vm3455_vm8 = vweird.f32 %v3281_v59  ;;  %v8770_v7 = vmul.f32 0.0051020407, %v1917_v50 }
 0x2f4   :  { %7347 = vrsqrt.f32 %v3288_v24 }
 0x2f5   :  { %13545 = vst [vmem:[#allocation110_spill] sm:$0xff] %v8762_v62 }
 0x2f6   :  { %13546 = vst [vmem:[#allocation111_spill] sm:$0xff] %v8770_v7 }
 0x2f9   :  { %4637 = vrot.lane.b32.xlu2 %v4435_v36, %s7591_s23  ;;  %v7346_v54 = vpop.eup %7345  ;;  %v2652_v36 = vmul.f32 %v2460_v10, %v2460_v10  ;;  %v1972_v10 = vadd.f32 %v8762_v62, %v8760_v13  ;;  %v2834_v46 = vpop.xlane.xlu1 %2833 }
 0x2fa   :  { %v7348_v37 = vpop.eup %7347  ;;  %v3450_v18 = vmul.f32 %v7346_v54, %v3281_v59  ;;  %vm3456_vm7 = vweird.f32 %v7346_v54  ;;  %v3094_v59 = vmul.f32 0.0051020407, %v2834_v46 }
 0x2fb   :  { %v3520_v14 = vmul.f32 %v7348_v37, %v3288_v24  ;;  %v2868_v2 = vadd.f32 %v2652_v36, %v2651_v28  ;;  %vm8772_vm9 = vmor %vm3455_vm8, %vm3456_vm7  ;;  %vm3526_vm10 = vweird.f32 %v7348_v37  ;;  %v3185_v28 = vld [vmem:[%s13034_s2 + $0x40] sm:$0xff]  ;;  %v1960_v24 = vadd.f32 %v8655_v48, %v8653_v40 }
 0x2fc   :  { %v3451_v47 = vmul.f32 %v7346_v54, %v3450_v18  ;;  %vm3527_vm12 = vmor %vm3525_vm11, %vm3526_vm10  ;;  %v13583_v40 = vld [vmem:[#allocation78_spill] sm:$0xff] }
 0x2fd   :  { %v3521_v49 = vmul.f32 %v7348_v37, %v3520_v14  ;;  %v6751_v14 = vld [vmem:[%s13033_s1 + $0x1a0] sm:$0xf] }
 0x2fe   :  { %v3452_v23 = vmul.f32 0.5, %v3451_v47  ;;  %v6753_v47 = vld [vmem:[%s13033_s1 + $0x1a8] sm:$0xf0] }
 0x2ff   :  { %v3522_v25 = vmul.f32 0.5, %v3521_v49  ;;  %v2276_v49 = vsub.f32 %v8328_v21, %v8770_v7 }
 0x300   :  { %v3453_v45 = vsub.f32 1.5, %v3452_v23  ;;  %v7194_v23 = vld [vmem:[%s13033_s1 + $0x1a4] sm:$0xf0] }
 0x301   :  { %v2468_v16 = vsel %vm2216_vm1, %v2276_v49, 0.0 }
 0x302   :  { %v3454_v17 = vmul.f32 %v7346_v54, %v3453_v45  ;;  %v3192_v45 = vld [vmem:[%s13034_s2 + $0x78] sm:$0xff] }
 0x304   :  { %v3458_v36 = vsel %vm8772_vm9, %v7346_v54, %v3454_v17  ;;  %v2275_v17 = vsub.f32 %v8324_v52, %v8770_v7  ;;  %v13564_v7 = vld [vmem:[#allocation59_spill] sm:$0xff] }
 0x305   :  { %v8800_v54 = vmul.f32 %v3458_v36, %v3185_v28  ;;  %v6759_v28 = vld [vmem:[%s13033_s1 + $0x1b0] sm:$0xf]  ;;  %v7195_v36 = vld [vmem:[%s13033_s1 + $0x1b4] sm:$0xf] }
 0x307   :  { %13549 = vst [vmem:[#allocation112_spill] sm:$0xff] %v8800_v54 }
 0x30b   :  { %2884 = vadd.xlane.f32.xlu0 %v2883_v33  ;;  %v3523_v33 = vsub.f32 1.5, %v3522_v25  ;;  %v7193_v25 = vld [vmem:[%s13033_s1 + $0x1a4] sm:$0xf] }
 0x30c   :  { %2869 = vadd.xlane.f32.xlu1 %v2868_v2  ;;  %v6752_v2 = vor.u32 %v7194_v23, %v6751_v14  ;;  %v2660_v14 = vmul.f32 %v2468_v16, %v2468_v16  ;;  %v1929_v16 = vpop.xlane.xlu0 %1928 }
 0x30d   :  { %v3524_v18 = vmul.f32 %v7348_v37, %v3523_v33  ;;  %v3286_v33 = vadd.f32 0.001, %v3094_v59 }
 0x30e   :  { %1468 = vmatmul.bf16.gmra.mxu2 %v6752_v2  ;;  %970 = vmatmul.bf16.gmra.mxu0 %v6752_v2 }
 0x30f   :  { %v3528_v50 = vsel %vm3527_vm12, %v7348_v37, %v3524_v18  ;;  %v4433_v37 = vmul.f32 %v8800_v54, %v8230_v0  ;;  %7349 = vrsqrt.f32 %v3286_v33  ;;  %v2659_v18 = vmul.f32 %v2275_v17, %v2275_v17  ;;  %v7196_v0 = vld [vmem:[%s13033_s1 + $0x1b4] sm:$0xf0] }
 0x310   :  { %v8806_v46 = vmul.f32 %v3528_v50, %v3192_v45  ;;  %v6760_v2 = vor.u32 %v7196_v0, %v6759_v28  ;;  %vm3505_vm14 = vweird.f32 %v3286_v33 }
 0x312   :  { %v4440_v23 = vmul.f32 %v8806_v46, %v8342_v1  ;;  %v6761_v1 = vld [vmem:[%s13033_s1 + $0x1b8] sm:$0xf0] }
 0x313   :  { %1973 = vadd.xlane.f32.xlu0 %v1972_v10  ;;  %v6756_v10 = vor.u32 %v7193_v25, %v6753_v47  ;;  %v2880_v25 = vadd.f32 %v2660_v14, %v2659_v18  ;;  %v6764_v49 = vor.u32 %v7195_v36, %v6761_v1  ;;  %v8832_v18 = vmul.f32 0.0051020407, %v1929_v16  ;;  %v3190_v14 = vld [vmem:[%s13034_s2 + $0x68] sm:$0xff] }
 0x314   :  { %v8845_v36 = vpop.permute.xlu0 %4617  ;;  %v8855_v1 = vadd.f32 %v8637_v11, %v8635_v3 }
 0x315   :  { %7095 = vmatmul.msk.bf16.gmra.mxu3 %vm687_vm0, %v6756_v10  ;;  %7047 = vmatmul.msk.bf16.gmra.mxu1 %vm687_vm0, %v6756_v10  ;;  %v7350_v59 = vpop.eup %7349  ;;  %13550 = vst [vmem:[#allocation113_spill] sm:$0xff] %v8832_v18 }
 0x316   :  { %v3500_v47 = vmul.f32 %v7350_v59, %v3286_v33  ;;  %vm3506_vm13 = vweird.f32 %v7350_v59  ;;  %v2284_v33 = vsub.f32 %v8390_v20, %v8832_v18  ;;  %13551 = vst [vmem:[#allocation114_spill] sm:$0xff] %v8855_v1 }
 0x317   :  { %vm3507_vm15 = vmor %vm3505_vm14, %vm3506_vm13 }
 0x318   :  { %v3501_v10 = vmul.f32 %v7350_v59, %v3500_v47  ;;  %v8859_v47 = vadd.f32 %v8641_v43, %v8639_v55 }
 0x31a   :  { %v3502_v45 = vmul.f32 0.5, %v3501_v10  ;;  %13552 = vst [vmem:[#allocation115_spill] sm:$0xff] %v8859_v47 }
 0x31c   :  { %v3503_v50 = vsub.f32 1.5, %v3502_v45  ;;  %v2849_v45 = vpop.xlane.xlu0 %2848 }
 0x31e   :  { %1473 = vmatmul.bf16.gmra.mxu2 %v6760_v2  ;;  %975 = vmatmul.bf16.gmra.mxu0 %v6760_v2  ;;  %v2283_v2 = vsub.f32 %v8388_v39, %v8832_v18 }
 0x322   :  { %1961 = vadd.xlane.f32.xlu2 %v1960_v24  ;;  %v8830_v24 = vpop.xlane.xlu2 %2836 }
 0x324   :  { %v8869_v11 = vpop.xlane.xlu0 %1937 }
 0x325   :  { %4633 = vrot.lane.b32.xlu1 %v4433_v37, %s7591_s23  ;;  %7096 = vmatmul.msk.bf16.gmra.mxu3 %vm687_vm0, %v6764_v49  ;;  %v3504_v37 = vmul.f32 %v7350_v59, %v3503_v50 }
 0x326   :  { %7048 = vmatmul.msk.bf16.gmra.mxu1 %vm687_vm0, %v6764_v49  ;;  %v2667_v49 = vmul.f32 %v2283_v2, %v2283_v2  ;;  %v8881_v2 = vpop.f32.mrf.mxu1 }
 0x327   :  { %4647 = vrot.lane.b32.xlu0 %v4440_v23, %s7591_s23  ;;  %v3508_v23 = vsel %vm3507_vm15, %v7350_v59, %v3504_v37 }
 0x328   :  { %v8841_v0 = vmul.f32 %v3508_v23, %v3190_v14  ;;  %v8874_v14 = vpop.xlane.xlu1 %1922 }
 0x32a   :  { %2881 = vadd.xlane.f32.xlu2 %v2880_v25  ;;  %v1926_v17 = vpop.xlane.xlu2 %1925  ;;  %v13136_v25 = vmov 1   ;;  %v4438_v59 = vmul.f32 %v8841_v0, %v8300_v30  ;;  %v1957_v30 = vadd.f32 %v8859_v47, %v8855_v1 }
 0x32b   :  { %7246 = vset.pattern.permute.xlu0 %v13136_v25 }
 0x32c   :  { %v8871_v55 = vpop.permute.xlu0 %4623 }
 0x332   :  { %v8839_v28 = vpop.xlane.xlu2 %2845 }
 0x334   :  { %v8876_v23 = vpop.xlane.xlu0 %2857 }
 0x33a   :  { %v8865_v50 = vpop.permute.xlu2 %5008 }
 0x342   :  { %5063 = vperm.xlu2 %7240, %v8701_v51   ;;  %v2476_v51 = vsel %vm2216_vm1, %v2284_v33, 0.0  ;;  %v8867_v3 = vpop.xlane.xlu2 %1934  ;;  %v8879_v33 = vpop.f32.mrf.mxu0 }
 0x343   :  { %v2668_v10 = vmul.f32 %v2476_v51, %v2476_v51  ;;  %v8885_v51 = vpop.f32.mrf.mxu2 }
 0x345   :  { %v2892_v16 = vadd.f32 %v2668_v10, %v2667_v49  ;;  %v8887_v49 = vpop.f32.mrf.mxu3  ;;  %v8895_v10 = vadd.f32 %v8746_v15, %v8744_v12 }
 0x347   :  { %13555 = vst [vmem:[#allocation118_spill] sm:$0xff] %v8895_v10 }
 0x34a   :  { %4643 = vrot.lane.b32.xlu2 %v4438_v59, %s7591_s23  ;;  %v4622_v43 = vpop.permute.xlu2 %4621  ;;  %v8883_v59 = vmul.f32 0.0051020407, %v1926_v17 }
 0x34b   :  { %7242 = vset.pattern.permute.xlu2 %v13136_v25  ;;  %v4907_v37 = vsub.f32 %v8473_v42, %v4622_v43  ;;  %v8891_v42 = vadd.f32 %v8742_v56, %v8740_v53  ;;  %v8903_v43 = vpop.xlane.xlu0 %1946 }
 0x34c   :  { %13553 = vst [vmem:[#allocation116_spill] sm:$0xff] %v8883_v59  ;;  %v2281_v17 = vsub.f32 %v8371_v26, %v8883_v59 }
 0x34d   :  { %13554 = vst [vmem:[#allocation117_spill] sm:$0xff] %v8891_v42 }
 0x34e   :  { %v2665_v15 = vmul.f32 %v2281_v17, %v2281_v17  ;;  %v8923_v17 = vmul.f32 0.0051020407, %v8766_v32 }
 0x34f   :  { %1958 = vadd.xlane.f32.xlu1 %v1957_v30  ;;  %v1969_v30 = vadd.f32 %v8895_v10, %v8891_v42  ;;  %v1713_v21 = vpop.f32.mrf.mxu3 }
 0x350   :  { %v966_v56 = vpop.f32.mrf.mxu0  ;;  %13559 = vst [vmem:[#allocation122_spill] sm:$0xff] %v8923_v17  ;;  %v2273_v1 = vsub.f32 %v13564_v7, %v8923_v17 }
 0x351   :  { %2893 = vadd.xlane.f32.xlu0 %v2892_v16  ;;  %v2843_v16 = vpop.xlane.xlu1 %2842 }
 0x352   :  { %v3097_v12 = vmul.f32 0.0051020407, %v2843_v16 }
 0x354   :  { %v8911_v26 = vadd.f32 0.001, %v3097_v12 }
 0x356   :  { %v1464_v25 = vpop.f32.mrf.mxu2  ;;  %7351 = vrsqrt.f32 %v8911_v26  ;;  %vm3535_vm5 = vweird.f32 %v8911_v26 }
 0x357   :  { %v8909_v20 = vadd.f32 %v1713_v21, %v1464_v25 }
 0x359   :  { %13557 = vst [vmem:[#allocation120_spill] sm:$0xff] %v8909_v20 }
 0x35c   :  { %v8927_v25 = vpop.eup %7351 }
 0x35d   :  { %v3530_v32 = vmul.f32 %v8927_v25, %v8911_v26  ;;  %vm3536_vm3 = vweird.f32 %v8927_v25 }
 0x35e   :  { %vm3537_vm7 = vmor %vm3535_vm5, %vm3536_vm3 }
 0x365   :  { %5685 = vperm.xlu0 %7246, %v4907_v37   ;;  %v1215_v37 = vpop.f32.mrf.mxu1 }
 0x366   :  { %v8907_v54 = vadd.f32 %v1215_v37, %v966_v56  ;;  %v1466_v56 = vpop.f32.mrf.mxu2  ;;  %v1715_v37 = vpop.f32.mrf.mxu3 }
 0x368   :  { %5053 = vperm.xlu1 %7241, %v8729_v57   ;;  %v2282_v57 = vsub.f32 %v8375_v44, %v8883_v59  ;;  %v3099_v44 = vmul.f32 0.0051020407, %v2849_v45  ;;  %13556 = vst [vmem:[#allocation119_spill] sm:$0xff] %v8907_v54  ;;  %v8915_v59 = vpop.permute.xlu0 %4629 }
 0x369   :  { %13558 = vst [vmem:[#allocation121_spill] sm:$0xff] %v8915_v59 }
 0x36a   :  { %v2474_v53 = vsel %vm2216_vm1, %v2282_v57, 0.0  ;;  %v8913_v39 = vadd.f32 0.001, %v3099_v44  ;;  %v8929_v44 = vpop.xlane.xlu2 %2854 }
 0x36b   :  { %v2666_v52 = vmul.f32 %v2474_v53, %v2474_v53  ;;  %13560 = vst [vmem:[#allocation123_spill] sm:$0xff] %v8929_v44 }
 0x36c   :  { %7353 = vrsqrt.f32 %v8913_v39  ;;  %vm3555_vm4 = vweird.f32 %v8913_v39 }
 0x36d   :  { %v2889_v57 = vadd.f32 %v2666_v52, %v2665_v15  ;;  %v968_v52 = vpop.f32.mrf.mxu0  ;;  %v1217_v53 = vpop.f32.mrf.mxu1 }
 0x370   :  { %v8925_v21 = vpop.xlane.xlu0 %2866 }
 0x372   :  { %v8931_v16 = vpop.eup %7353 }
 0x373   :  { %1970 = vadd.xlane.f32.xlu2 %v1969_v30  ;;  %v3092_v30 = vmul.f32 0.0051020407, %v8764_v19  ;;  %v13561_v19 = vld [vmem:[#allocation60_spill] sm:$0xff]  ;;  %v3550_v15 = vmul.f32 %v8931_v16, %v8913_v39  ;;  %vm3556_vm2 = vweird.f32 %v8931_v16 }
 0x374   :  { %v2274_v12 = vsub.f32 %v13561_v19, %v8923_v17  ;;  %v3531_v19 = vmul.f32 %v8927_v25, %v3530_v32  ;;  %v7515_v32 = vld [vmem:[%s13034_s2] sm:$0xff]  ;;  %vm3557_vm6 = vmor %vm3555_vm4, %vm3556_vm2 }
 0x375   :  { %v8920_v45 = vadd.f32 0.001, %v3092_v30  ;;  %v8942_v30 = vadd.f32 %v1715_v37, %v1466_v56  ;;  %v3551_v10 = vmul.f32 %v8931_v16, %v3550_v15  ;;  %v2657_v56 = vmul.f32 %v2273_v1, %v2273_v1 }
 0x376   :  { %v2466_v42 = vsel %vm2216_vm1, %v2274_v12, 0.0  ;;  %v3532_v17 = vmul.f32 0.5, %v3531_v19  ;;  %v4905_v15 = vsub.f32 %v7515_v32, %v8845_v36  ;;  %v7197_v36 = vld [vmem:[%s13033_s1 + $0x1c4] sm:$0xf] }
 0x377   :  { %7355 = vrsqrt.f32 %v8920_v45  ;;  %13563 = vst [vmem:[#allocation125_spill] sm:$0xff] %v8942_v30  ;;  %v2658_v37 = vmul.f32 %v2466_v42, %v2466_v42  ;;  %v3552_v13 = vmul.f32 0.5, %v3551_v10  ;;  %v6767_v42 = vld [vmem:[%s13033_s1 + $0x1c0] sm:$0xf]  ;;  %v7198_v10 = vld [vmem:[%s13033_s1 + $0x1c4] sm:$0xf0]  ;;  %vm3485_vm9 = vweird.f32 %v8920_v45 }
 0x378   :  { %v8946_v47 = vpop.xlane.xlu0 %1955  ;;  %v6768_v19 = vor.u32 %v7198_v10, %v6767_v42 }
 0x379   :  { %v2877_v12 = vadd.f32 %v2658_v37, %v2657_v56 }
 0x37a   :  { %1478 = vmatmul.bf16.gmra.mxu2 %v6768_v19  ;;  %980 = vmatmul.bf16.gmra.mxu0 %v6768_v19 }
 0x37b   :  { %2890 = vadd.xlane.f32.xlu2 %v2889_v57  ;;  %v8940_v57 = vadd.f32 %v1217_v53, %v968_v52  ;;  %v8956_v53 = vpop.permute.xlu2 %5018 }
 0x37d   :  { %13562 = vst [vmem:[#allocation124_spill] sm:$0xff] %v8940_v57  ;;  %v8952_v18 = vpop.eup %7355  ;;  %v1981_v52 = vadd.f32 %v8942_v30, %v8940_v57  ;;  %v3533_v57 = vsub.f32 1.5, %v3532_v17  ;;  %v3553_v30 = vsub.f32 1.5, %v3552_v13  ;;  %v6769_v13 = vld [vmem:[%s13033_s1 + $0x1c8] sm:$0xf0] }
 0x37e   :  { %v3480_v7 = vmul.f32 %v8952_v18, %v8920_v45  ;;  %vm3486_vm8 = vweird.f32 %v8952_v18 }
 0x37f   :  { %v3554_v56 = vmul.f32 %v8931_v16, %v3553_v30  ;;  %v3534_v37 = vmul.f32 %v8927_v25, %v3533_v57  ;;  %v3195_v30 = vld [vmem:[%s13034_s2 + $0x90] sm:$0xff]  ;;  %v13567_v57 = vmov 0   ;;  %vm3487_vm10 = vmor %vm3485_vm9, %vm3486_vm8 }
 0x380   :  { %v3481_v62 = vmul.f32 %v8952_v18, %v3480_v7  ;;  %v8965_v1 = vpop.permute.xlu0 %4635  ;;  %v6772_v7 = vor.u32 %v7197_v36, %v6769_v13 }
 0x381   :  { %13565 = vst [vmem:[#allocation126_spill] sm:$0xff] %v8965_v1  ;;  %v3538_v39 = vsel %vm3537_vm7, %v8927_v25, %v3534_v37  ;;  %v13569_v25 = vld [vmem:[#allocation66_spill] sm:$0xff]  ;;  %v9065_v1 = vmul.f32 0.0051020407, %v8867_v3 }
 0x382   :  { %v3482_v17 = vmul.f32 0.5, %v3481_v62  ;;  %7097 = vmatmul.msk.bf16.gmra.mxu3 %vm687_vm0, %v6772_v7  ;;  %7049 = vmatmul.msk.bf16.gmra.mxu1 %vm687_vm0, %v6772_v7 }
 0x383   :  { %13581 = vst [vmem:[#allocation136_spill] sm:$0xff] %v9065_v1  ;;  %v2288_v48 = vsub.f32 %v13583_v40, %v9065_v1 }
 0x384   :  { %v3483_v62 = vsub.f32 1.5, %v3482_v17  ;;  %v3188_v17 = vld [vmem:[%s13034_s2 + $0x58] sm:$0xff] }
 0x386   :  { %v3484_v13 = vmul.f32 %v8952_v18, %v3483_v62  ;;  %v13573_v62 = vmov 1  }
 0x388   :  { %v8993_v32 = vpop.xlane.xlu0 %2875 }
 0x38b   :  { %v971_v26 = vpop.f32.mrf.mxu0 }
 0x38f   :  { %1982 = vadd.xlane.f32.xlu0 %v1981_v52  ;;  %v8980_v52 = vpop.permute.xlu2 %4625 }
 0x390   :  { %13566 = vst [vmem:[#allocation127_spill] sm:$0xff] %v8980_v52  ;;  %v13584_v52 = vld [vmem:[#allocation79_spill] sm:$0xff] }
 0x391   :  { %v1469_v37 = vpop.f32.mrf.mxu2 }
 0x392   :  { %2878 = vadd.xlane.f32.xlu1 %v2877_v12  ;;  %v3558_v12 = vsel %vm3557_vm6, %v8931_v16, %v3554_v56  ;;  %v1220_v42 = vpop.f32.mrf.mxu1  ;;  %v3488_v56 = vsel %vm3487_vm10, %v8952_v18, %v3484_v13 }
 0x393   :  { %5675 = vperm.xlu2 %7242, %v4905_v15   ;;  %v3193_v15 = vld [vmem:[%s13034_s2 + $0x80] sm:$0xff]  ;;  %v9001_v10 = vmul.f32 %v3558_v12, %v3195_v30  ;;  %v9003_v36 = vadd.f32 %v1220_v42, %v971_v26  ;;  %v9020_v12 = vpop.xlane.xlu0 %1964 }
 0x394   :  { %v9008_v19 = vmul.f32 %v3538_v39, %v3193_v15  ;;  %13570 = vst [vmem:[#allocation66_spill] sm:$0xff] %v9020_v12  ;;  %v13575_v39 = vld [vmem:[#allocation55_spill] sm:$0xff] }
 0x395   :  { %13568 = vst [vmem:[#allocation128_spill] sm:$0xff] %v9003_v36 }
 0x396   :  { %v4441_v7 = vmul.f32 %v9008_v19, %v13569_v25  ;;  %v9043_v25 = vmul.f32 0.0051020407, %v8869_v11 }
 0x397   :  { %v9006_v16 = vpop.xlane.xlu2 %1943 }
 0x398   :  { %v1718_v30 = vpop.f32.mrf.mxu3  ;;  %13579 = vst [vmem:[#allocation134_spill] sm:$0xff] %v9043_v25 }
 0x399   :  { %v9023_v45 = vadd.f32 %v1718_v30, %v1469_v37 }
 0x39b   :  { %7243 = vset.pattern.permute.xlu2 %v13567_v57  ;;  %13571 = vst [vmem:[#allocation129_spill] sm:$0xff] %v9023_v45  ;;  %v9034_v18 = vpop.permute.xlu0 %4641 }
 0x39c   :  { %5078 = vperm.xlu2 %7243, %v8806_v46   ;;  %v4443_v46 = vmul.f32 %v9001_v10, %v8442_v34  ;;  %v9026_v34 = vmul.f32 %v3488_v56, %v3188_v17  ;;  %13576 = vst [vmem:[#allocation55_spill] sm:$0xff] %v9034_v18  ;;  %v9058_v18 = vpop.f32.mrf.mxu2 }
 0x39e   :  { %13572 = vst [vmem:[#allocation130_spill] sm:$0xff] %v9026_v34  ;;  %v4436_v26 = vmul.f32 %v9026_v34, %v13575_v39  ;;  %v9052_v39 = vpop.f32.mrf.mxu0  ;;  %v2290_v34 = vsub.f32 %v8458_v35, %v9043_v25 }
 0x39f   :  { %v9029_v15 = vpop.xlane.xlu2 %2863 }
 0x3a0   :  { %13574 = vst [vmem:[#allocation131_spill] sm:$0xff] %v9029_v15  ;;  %v9060_v11 = vpop.f32.mrf.mxu3 }
 0x3a3   :  { %4653 = vrot.lane.b32.xlu0 %v4443_v46, %s7591_s23  ;;  %v9038_v13 = vpop.xlane.xlu0 %2884  ;;  %v9040_v46 = vpop.xlane.xlu1 %1931 }
 0x3a4   :  { %4649 = vrot.lane.b32.xlu2 %v4441_v7, %s7591_s23  ;;  %13578 = vst [vmem:[#allocation133_spill] sm:$0xff] %v9038_v13  ;;  %v3102_v7 = vmul.f32 0.0051020407, %v8876_v23  ;;  %v2289_v23 = vsub.f32 %v8456_v5, %v9043_v25  ;;  %v1978_v5 = vadd.f32 %v8909_v20, %v8907_v54  ;;  %v1474_v58 = vpop.f32.mrf.mxu2 }
 0x3a5   :  { %7247 = vset.pattern.permute.xlu2 %v13573_v62 }
 0x3a6   :  { %v3294_v30 = vadd.f32 0.001, %v3102_v7  ;;  %v2482_v7 = vsel %vm2216_vm1, %v2290_v34, 0.0  ;;  %v976_v3 = vpop.f32.mrf.mxu0  ;;  %v2287_v34 = vsub.f32 %v13584_v52, %v9065_v1  ;;  %v1966_v52 = vadd.f32 %v8727_v60, %v8725_v8 }
 0x3a7   :  { %v9036_v42 = vpop.permute.xlu2 %5033  ;;  %v2674_v35 = vmul.f32 %v2482_v7, %v2482_v7 }
 0x3a8   :  { %13577 = vst [vmem:[#allocation132_spill] sm:$0xff] %v9036_v42  ;;  %7357 = vrsqrt.f32 %v3294_v30  ;;  %v1723_v6 = vpop.f32.mrf.mxu3  ;;  %vm3585_vm12 = vweird.f32 %v3294_v30 }
 0x3a9   :  { %v9085_v54 = vadd.f32 %v1723_v6, %v1474_v58  ;;  %v13588_v6 = vld [vmem:[#allocation6_spill] sm:$0xff] }
 0x3ab   :  { %4639 = vrot.lane.b32.xlu1 %v4436_v26, %s7591_s23  ;;  %v9048_v56 = vpop.xlane.xlu0 %1973  ;;  %v9050_v37 = vpop.permute.xlu1 %4619  ;;  %13587 = vst [vmem:[#allocation140_spill] sm:$0xff] %v9085_v54 }
 0x3ac   :  { %13580 = vst [vmem:[#allocation135_spill] sm:$0xff] %v9048_v56  ;;  %v9054_v26 = vpop.f32.mrf.mxu1  ;;  %v2673_v56 = vmul.f32 %v2289_v23, %v2289_v23  ;;  %v2480_v23 = vsel %vm2216_vm1, %v2288_v48, 0.0 }
 0x3ae   :  { %v7358_v25 = vpop.eup %7357  ;;  %v2901_v44 = vadd.f32 %v2674_v35, %v2673_v56  ;;  %v2671_v35 = vmul.f32 %v2287_v34, %v2287_v34  ;;  %v2672_v56 = vmul.f32 %v2480_v23, %v2480_v23 }
 0x3af   :  { %v9046_v17 = vpop.permute.xlu2 %4631  ;;  %v3580_v7 = vmul.f32 %v7358_v25, %v3294_v30  ;;  %vm3586_vm11 = vweird.f32 %v7358_v25 }
 0x3b0   :  { %vm3587_vm13 = vmor %vm3585_vm12, %vm3586_vm11 }
 0x3b1   :  { %v3581_v12 = vmul.f32 %v7358_v25, %v3580_v7 }
 0x3b3   :  { %v9071_v15 = vpop.permute.xlu0 %4647  ;;  %v2852_v59 = vpop.xlane.xlu1 %2851 }
 0x3b4   :  { %13582 = vst [vmem:[#allocation137_spill] sm:$0xff] %v9071_v15  ;;  %v1225_v13 = vpop.f32.mrf.mxu1  ;;  %v3100_v38 = vmul.f32 0.0051020407, %v2852_v59 }
 0x3b5   :  { %v9083_v15 = vadd.f32 %v1225_v13, %v976_v3  ;;  %v13589_v13 = vld [vmem:[#allocation7_spill] sm:$0xff] }
 0x3b6   :  { %v3292_v1 = vadd.f32 0.001, %v3100_v38 }
 0x3b7   :  { %v9067_v42 = vpop.xlane.xlu2 %1952  ;;  %13586 = vst [vmem:[#allocation139_spill] sm:$0xff] %v9083_v15  ;;  %v1990_v48 = vadd.f32 %v9085_v54, %v9083_v15 }
 0x3b8   :  { %7359 = vrsqrt.f32 %v3292_v1  ;;  %vm3565_vm15 = vweird.f32 %v3292_v1 }
 0x3bf   :  { %v9081_v40 = vpop.xlane.xlu2 %2872 }
 0x3c0   :  { %13585 = vst [vmem:[#allocation138_spill] sm:$0xff] %v9081_v40  ;;  %v3582_v40 = vmul.f32 0.5, %v3581_v12 }
 0x3c2   :  { %v3583_v8 = vsub.f32 1.5, %v3582_v40 }
 0x3c4   :  { %v9087_v20 = vpop.xlane.xlu0 %2893  ;;  %v3584_v38 = vmul.f32 %v7358_v25, %v3583_v8  ;;  %v7516_v8 = vld [vmem:[%s13034_s2 + $0x18] sm:$0xff] }
 0x3c5   :  { %v4908_v30 = vsub.f32 %v7516_v8, %v8871_v55 }
 0x3c7   :  { %v9095_v59 = vpop.permute.xlu2 %5048 }
 0x3c8   :  { %13590 = vst [vmem:[#allocation6_spill] sm:$0xff] %v9095_v59 }
 0x3cd   :  { %1979 = vadd.xlane.f32.xlu2 %v1978_v5  ;;  %2902 = vadd.xlane.f32.xlu0 %v2901_v44  ;;  %v5014_v5 = vpop.permute.xlu1 %5013  ;;  %v2898_v44 = vadd.f32 %v2672_v56, %v2671_v35  ;;  %v3198_v35 = vld [vmem:[%s13034_s2 + $0xa8] sm:$0xff]  ;;  %v3588_v56 = vsel %vm3587_vm13, %v7358_v25, %v3584_v38 }
 0x3ce   :  { %v5485_v58 = vmul.f32 %v5014_v5, %v13588_v6  ;;  %v5486_v3 = vmul.f32 %v5014_v5, %v13589_v13 }
 0x3cf   :  { %v9106_v40 = vpop.permute.xlu2 %4637 }
 0x3d5   :  { %1967 = vadd.xlane.f32.xlu1 %v1966_v52  ;;  %2899 = vadd.xlane.f32.xlu2 %v2898_v44  ;;  %v7360_v52 = vpop.eup %7359  ;;  %v13591_v44 = vld [vmem:[#allocation85_spill] sm:$0xff] }
 0x3d6   :  { %1991 = vadd.xlane.f32.xlu0 %v1990_v48  ;;  %v3560_v12 = vmul.f32 %v7360_v52, %v3292_v1  ;;  %v9108_v48 = vmul.f32 %v3588_v56, %v3198_v35  ;;  %vm3566_vm14 = vweird.f32 %v7360_v52  ;;  %v9138_v35 = vmul.f32 0.0051020407, %v8903_v43 }
 0x3d7   :  { %v5686_v34 = vpop.permute.xlu0 %5685  ;;  %v9112_v13 = vpop.xlane.xlu2 %1961  ;;  %vm3567_vm2 = vmor %vm3565_vm15, %vm3566_vm14 }
 0x3d8   :  { %v6157_v23 = vadd.f32 %v5686_v34, %v5485_v58  ;;  %v6158_v7 = vadd.f32 %v5686_v34, %v5486_v3  ;;  %v3561_v5 = vmul.f32 %v7360_v52, %v3560_v12  ;;  %v4446_v6 = vmul.f32 %v9108_v48, %v13591_v44 }
 0x3d9   :  { %v3095_v12 = vmul.f32 0.0051020407, %v8830_v24  ;;  %v2296_v56 = vsub.f32 %v8522_v4, %v9138_v35  ;;  %v2295_v44 = vsub.f32 %v8520_v61, %v9138_v35  ;;  %v13596_v24 = vld [vmem:[#allocation68_spill] sm:$0xff] }
 0x3da   :  { %6349 = vst [vmem:[%s13035_s3 + $0x20] sm:$0xff] %v6157_v23  ;;  %v3562_v58 = vmul.f32 0.5, %v3561_v5  ;;  %v3196_v23 = vld [vmem:[%s13034_s2 + $0x98] sm:$0xff] }
 0x3db   :  { %6350 = vst [vmem:[%s13035_s3 + $0x28] sm:$0xff] %v6158_v7 }
 0x3dc   :  { %v3563_v25 = vsub.f32 1.5, %v3562_v58  ;;  %v2679_v58 = vmul.f32 %v2295_v44, %v2295_v44 }
 0x3de   :  { %v3564_v3 = vmul.f32 %v7360_v52, %v3563_v25 }
 0x3df   :  { %v9120_v34 = vpop.xlane.xlu2 %2881 }
 0x3e0   :  { %13592 = vst [vmem:[#allocation7_spill] sm:$0xff] %v9120_v34  ;;  %v3568_v7 = vsel %vm3567_vm2, %v7360_v52, %v3564_v3  ;;  %v3287_v52 = vadd.f32 0.001, %v3095_v12 }
 0x3e1   :  { %v9128_v55 = vmul.f32 %v3568_v7, %v3196_v23  ;;  %v6775_v7 = vld [vmem:[%s13033_s1 + $0x1d0] sm:$0xf] }
 0x3e2   :  { %7361 = vrsqrt.f32 %v3287_v52  ;;  %vm3515_vm4 = vweird.f32 %v3287_v52 }
 0x3e7   :  { %v9132_v1 = vpop.permute.xlu2 %5063 }
 0x3e8   :  { %13594 = vst [vmem:[#allocation85_spill] sm:$0xff] %v9132_v1  ;;  %v7362_v23 = vpop.eup %7361 }
 0x3e9   :  { %v3510_v61 = vmul.f32 %v7362_v23, %v3287_v52  ;;  %vm3516_vm3 = vweird.f32 %v7362_v23 }
 0x3ea   :  { %4659 = vrot.lane.b32.xlu0 %v4446_v6, %s7591_s23  ;;  %v2488_v6 = vsel %vm2216_vm1, %v2296_v56, 0.0  ;;  %vm3517_vm5 = vmor %vm3515_vm4, %vm3516_vm3 }
 0x3eb   :  { %v2680_v8 = vmul.f32 %v2488_v6, %v2488_v6 }
 0x3ed   :  { %5690 = vperm.xlu2 %7247, %v4908_v30   ;;  %v2910_v12 = vadd.f32 %v2680_v8, %v2679_v58 }
 0x3ee   :  { %5068 = vperm.xlu1 %7241, %v8841_v0   ;;  %v13593_v0 = vld [vmem:[#allocation77_spill] sm:$0xff] }
 0x3ef   :  { %v4444_v38 = vmul.f32 %v9128_v55, %v13593_v0  ;;  %13595 = vst [vmem:[#allocation77_spill] sm:$0xff] %v9138_v35  ;;  %v9145_v5 = vpop.permute.xlu2 %4643  ;;  %v7200_v0 = vld [vmem:[%s13033_s1 + $0x1d4] sm:$0xf0] }
 0x3f0   :  { %v6776_v6 = vor.u32 %v7200_v0, %v6775_v7  ;;  %v9183_v0 = vpop.xlane.xlu1 %1940  ;;  %v13612_v35 = vld [vmem:[#allocation9_spill] sm:$0xff] }
 0x3f1   :  { %v5488_v34 = vmul.f32 %v8956_v53, %v13612_v35 }
 0x3f2   :  { %1483 = vmatmul.bf16.gmra.mxu2 %v6776_v6  ;;  %985 = vmatmul.bf16.gmra.mxu0 %v6776_v6 }
 0x3f5   :  { %7248 = vset.pattern.permute.xlu2 %v13567_v57 }
 0x3f6   :  { %5093 = vperm.xlu2 %7248, %v9001_v10   ;;  %7244 = vset.pattern.permute.xlu1 %v13573_v62  ;;  %v9141_v10 = vmul.f32 0.0051020407, %v8874_v14  ;;  %v13597_v14 = vld [vmem:[#allocation67_spill] sm:$0xff] }
 0x3f7   :  { %v9157_v3 = vpop.xlane.xlu2 %1970 }
 0x3f8   :  { %v2280_v43 = vsub.f32 %v13596_v24, %v9141_v10  ;;  %v2279_v30 = vsub.f32 %v13597_v14, %v9141_v10  ;;  %v3511_v14 = vmul.f32 %v7362_v23, %v3510_v61  ;;  %v9211_v52 = vpop.permute.xlu1 %5023 }
 0x3fa   :  { %v2472_v25 = vsel %vm2216_vm1, %v2280_v43, 0.0  ;;  %v2663_v56 = vmul.f32 %v2279_v30, %v2279_v30  ;;  %v6777_v43 = vld [vmem:[%s13033_s1 + $0x1d8] sm:$0xf0]  ;;  %v3512_v8 = vmul.f32 0.5, %v3511_v14  ;;  %v9177_v30 = vadd.f32 %v9054_v26, %v9052_v39  ;;  %v7202_v39 = vld [vmem:[%s13033_s1 + $0x1e4] sm:$0xf0] }
 0x3fb   :  { %v2664_v44 = vmul.f32 %v2472_v25, %v2472_v25  ;;  %v9181_v25 = vadd.f32 %v9060_v11, %v9058_v18  ;;  %v7201_v18 = vld [vmem:[%s13033_s1 + $0x1e4] sm:$0xf]  ;;  %v6785_v11 = vld [vmem:[%s13033_s1 + $0x1e8] sm:$0xf0]  ;;  %v7517_v14 = vld [vmem:[%s13034_s2 + $0x38] sm:$0xff] }
 0x3fc   :  { %13599 = vst [vmem:[#allocation142_spill] sm:$0xff] %v9177_v30  ;;  %v3513_v7 = vsub.f32 1.5, %v3512_v8 }
 0x3fd   :  { %v2886_v24 = vadd.f32 %v2664_v44, %v2663_v56  ;;  %13600 = vst [vmem:[#allocation143_spill] sm:$0xff] %v9181_v25  ;;  %v6788_v56 = vor.u32 %v7201_v18, %v6785_v11  ;;  %v9208_v44 = vld [vmem:[%s13034_s2 + $0x70] sm:$0xff] }
 0x3fe   :  { %4655 = vrot.lane.b32.xlu2 %v4444_v38, %s7591_s23  ;;  %v7199_v38 = vld [vmem:[%s13033_s1 + $0x1d4] sm:$0xf] }
 0x3ff   :  { %7251 = vset.pattern.permute.xlu2 %v13573_v62  ;;  %v6780_v4 = vor.u32 %v7199_v38, %v6777_v43  ;;  %v9173_v58 = vpop.xlane.xlu2 %2890  ;;  %v1987_v38 = vadd.f32 %v9181_v25, %v9177_v30  ;;  %v9214_v43 = vpop.f32.mrf.mxu0 }
 0x400   :  { %13598 = vst [vmem:[#allocation141_spill] sm:$0xff] %v9173_v58 }
 0x401   :  { %7098 = vmatmul.msk.bf16.gmra.mxu3 %vm687_vm0, %v6780_v4  ;;  %7050 = vmatmul.msk.bf16.gmra.mxu1 %vm687_vm0, %v6780_v4  ;;  %v3514_v4 = vmul.f32 %v7362_v23, %v3513_v7  ;;  %v9221_v7 = vpop.f32.mrf.mxu2 }
 0x403   :  { %v3518_v6 = vsel %vm3517_vm5, %v7362_v23, %v3514_v4  ;;  %v13604_v23 = vld [vmem:[#allocation62_spill] sm:$0xff] }
 0x404   :  { %v9219_v8 = vmul.f32 %v3518_v6, %v9208_v44  ;;  %v3105_v6 = vmul.f32 0.0051020407, %v8925_v21 }
 0x406   :  { %13602 = vst [vmem:[#allocation145_spill] sm:$0xff] %v9219_v8  ;;  %v4439_v4 = vmul.f32 %v9219_v8, %v13604_v23  ;;  %v7518_v23 = vld [vmem:[%s13034_s2 + $0x28] sm:$0xff] }
 0x407   :  { %v9187_v61 = vpop.permute.xlu2 %5675  ;;  %v981_v18 = vpop.f32.mrf.mxu0 }
 0x408   :  { %13601 = vst [vmem:[#allocation144_spill] sm:$0xff] %v9187_v61 }
 0x409   :  { %v1479_v11 = vpop.f32.mrf.mxu2 }
 0x411   :  { %7099 = vmatmul.msk.bf16.gmra.mxu3 %vm687_vm0, %v6788_v56  ;;  %7051 = vmatmul.msk.bf16.gmra.mxu1 %vm687_vm0, %v6788_v56 }
 0x414   :  { %2911 = vadd.xlane.f32.xlu0 %v2910_v12  ;;  %v4912_v12 = vsub.f32 %v7517_v14, %v9046_v17  ;;  %v9216_v17 = vpop.f32.mrf.mxu1 }
 0x418   :  { %2887 = vadd.xlane.f32.xlu1 %v2886_v24  ;;  %v6783_v24 = vld [vmem:[%s13033_s1 + $0x1e0] sm:$0xf] }
 0x419   :  { %v6784_v26 = vor.u32 %v7202_v39, %v6783_v24  ;;  %v9225_v24 = vpop.permute.xlu2 %5078  ;;  %v2861_v39 = vpop.xlane.xlu1 %2860 }
 0x41a   :  { %13603 = vst [vmem:[#allocation146_spill] sm:$0xff] %v9225_v24  ;;  %v3297_v24 = vadd.f32 0.001, %v3105_v6  ;;  %v3103_v35 = vmul.f32 0.0051020407, %v2861_v39 }
 0x41b   :  { %1488 = vmatmul.bf16.gmra.mxu2 %v6784_v26  ;;  %990 = vmatmul.bf16.gmra.mxu0 %v6784_v26 }
 0x41c   :  { %v1230_v26 = vpop.f32.mrf.mxu1  ;;  %7363 = vrsqrt.f32 %v3297_v24  ;;  %vm3615_vm7 = vweird.f32 %v3297_v24 }
 0x421   :  { %v9235_v61 = vpop.permute.xlu2 %4649  ;;  %v4628_v58 = vpop.permute.xlu1 %4627 }
 0x422   :  { %v7364_v30 = vpop.eup %7363 }
 0x423   :  { %v3610_v25 = vmul.f32 %v7364_v30, %v3297_v24  ;;  %vm3616_vm6 = vweird.f32 %v7364_v30 }
 0x424   :  { %vm3617_vm8 = vmor %vm3615_vm7, %vm3616_vm6 }
 0x425   :  { %v3611_v60 = vmul.f32 %v7364_v30, %v3610_v25 }
 0x427   :  { %1988 = vadd.xlane.f32.xlu2 %v1987_v38  ;;  %v9223_v38 = vpop.f32.mrf.mxu3  ;;  %v3612_v15 = vmul.f32 0.5, %v3611_v60  ;;  %v9270_v60 = vmul.f32 0.0051020407, %v9006_v16 }
 0x428   :  { %5710 = vperm.xlu0 %7246, %v4912_v12   ;;  %v9230_v12 = vadd.f32 %v1230_v26, %v981_v18  ;;  %v983_v18 = vpop.f32.mrf.mxu0  ;;  %v1232_v26 = vpop.f32.mrf.mxu1 }
 0x429   :  { %v9245_v6 = vadd.f32 %v1232_v26, %v983_v18  ;;  %v3613_v25 = vsub.f32 1.5, %v3612_v15  ;;  %v9263_v18 = vadd.f32 %v8881_v2, %v8879_v33  ;;  %13615 = vst [vmem:[#allocation152_spill] sm:$0xff] %v9270_v60  ;;  %v2294_v15 = vsub.f32 %v8488_v22, %v9270_v60  ;;  %v3201_v33 = vld [vmem:[%s13034_s2 + $0xc0] sm:$0xff]  ;;  %v13617_v26 = vld [vmem:[#allocation92_spill] sm:$0xff]  ;;  %v13624_v22 = vld [vmem:[#allocation17_spill] sm:$0xff] }
 0x42a   :  { %13605 = vst [vmem:[#allocation62_spill] sm:$0xff] %v9230_v12 }
 0x42b   :  { %13609 = vst [vmem:[#allocation150_spill] sm:$0xff] %v9245_v6 }
 0x42f   :  { %v1728_v14 = vpop.f32.mrf.mxu3 }
 0x430   :  { %v9232_v56 = vadd.f32 %v1728_v14, %v1479_v11  ;;  %v1481_v11 = vpop.f32.mrf.mxu2 }
 0x431   :  { %4645 = vrot.lane.b32.xlu1 %v4439_v4, %s7591_s23  ;;  %v4910_v4 = vsub.f32 %v7518_v23, %v4628_v58  ;;  %v13611_v23 = vld [vmem:[#allocation8_spill] sm:$0xff] }
 0x432   :  { %13606 = vst [vmem:[#allocation147_spill] sm:$0xff] %v9232_v56 }
 0x433   :  { %13613 = vst [vmem:[#allocation8_spill] sm:$0xff] %v9263_v18 }
 0x437   :  { %v1730_v14 = vpop.f32.mrf.mxu3 }
 0x438   :  { %v9247_v1 = vadd.f32 %v1730_v14, %v1481_v11  ;;  %v9287_v14 = vpop.xlane.xlu0 %1982 }
 0x43a   :  { %13610 = vst [vmem:[#allocation151_spill] sm:$0xff] %v9247_v1  ;;  %v1999_v58 = vadd.f32 %v9247_v1, %v9245_v6 }
 0x43f   :  { %5700 = vperm.xlu2 %7251, %v4910_v4   ;;  %v5487_v4 = vmul.f32 %v8956_v53, %v13611_v23  ;;  %v9267_v53 = vadd.f32 %v8887_v49, %v8885_v51  ;;  %v3295_v51 = vadd.f32 0.001, %v3103_v35  ;;  %v13616_v49 = vld [vmem:[#allocation82_spill] sm:$0xff] }
 0x440   :  { %v9240_v8 = vpop.xlane.xlu2 %1979  ;;  %v2293_v16 = vsub.f32 %v13616_v49, %v9270_v60 }
 0x441   :  { %13607 = vst [vmem:[#allocation148_spill] sm:$0xff] %v9240_v8  ;;  %7365 = vrsqrt.f32 %v3295_v51  ;;  %vm3595_vm10 = vweird.f32 %v3295_v51 }
 0x442   :  { %13614 = vst [vmem:[#allocation9_spill] sm:$0xff] %v9267_v53  ;;  %v2677_v24 = vmul.f32 %v2293_v16, %v2293_v16  ;;  %v9300_v16 = vpop.xlane.xlu1 %1949 }
 0x447   :  { %7253 = vset.pattern.permute.xlu2 %v13567_v57 }
 0x448   :  { %v9243_v21 = vpop.xlane.xlu2 %2899 }
 0x449   :  { %13608 = vst [vmem:[#allocation149_spill] sm:$0xff] %v9243_v21 }
 0x450   :  { %v5691_v8 = vpop.permute.xlu2 %5690 }
 0x451   :  { %v6159_v54 = vadd.f32 %v5691_v8, %v5487_v4  ;;  %v6160_v59 = vadd.f32 %v5691_v8, %v5488_v34  ;;  %v3614_v34 = vmul.f32 %v7364_v30, %v3613_v25  ;;  %v9290_v25 = vpop.permute.xlu0 %4653 }
 0x452   :  { %2000 = vadd.xlane.f32.xlu0 %v1999_v58  ;;  %v7366_v58 = vpop.eup %7365  ;;  %13618 = vst [vmem:[#allocation92_spill] sm:$0xff] %v9290_v25 }
 0x453   :  { %6351 = vst [vmem:[%s13035_s3 + $0x30] sm:$0xff] %v6159_v54  ;;  %v1975_v54 = vadd.f32 %v9267_v53, %v9263_v18  ;;  %v3618_v2 = vsel %vm3617_vm8, %v7364_v30, %v3614_v34  ;;  %v3590_v23 = vmul.f32 %v7366_v58, %v3295_v51  ;;  %vm3596_vm9 = vweird.f32 %v7366_v58  ;;  %v5039_v51 = vpop.permute.xlu1 %5038  ;;  %v7521_v18 = vld [vmem:[%s13034_s2 + $0x40] sm:$0xff] }
 0x454   :  { %6352 = vst [vmem:[%s13035_s3 + $0x38] sm:$0xff] %v6160_v59  ;;  %v2486_v59 = vsel %vm2216_vm1, %v2294_v15, 0.0  ;;  %v9283_v8 = vmul.f32 %v3618_v2, %v3201_v33  ;;  %vm3597_vm11 = vmor %vm3595_vm10, %vm3596_vm9  ;;  %v5496_v49 = vmul.f32 %v5039_v51, %v13624_v22 }
 0x455   :  { %v2678_v39 = vmul.f32 %v2486_v59, %v2486_v59  ;;  %v3591_v4 = vmul.f32 %v7366_v58, %v3590_v23 }
 0x456   :  { %v4449_v11 = vmul.f32 %v9283_v8, %v13617_v26 }
 0x457   :  { %v2907_v30 = vadd.f32 %v2678_v39, %v2677_v24  ;;  %v3592_v35 = vmul.f32 0.5, %v3591_v4  ;;  %v9303_v24 = vmul.f32 0.0051020407, %v8946_v47 }
 0x459   :  { %v3593_v15 = vsub.f32 1.5, %v3592_v35  ;;  %v9296_v33 = vpop.xlane.xlu0 %2902  ;;  %13619 = vst [vmem:[#allocation153_spill] sm:$0xff] %v9303_v24  ;;  %v6791_v35 = vld [vmem:[%s13033_s1 + $0x1f0] sm:$0xf] }
 0x45b   :  { %1976 = vadd.xlane.f32.xlu1 %v1975_v54  ;;  %v7519_v54 = vld [vmem:[%s13034_s2 + $0x8] sm:$0xff]  ;;  %v3594_v2 = vmul.f32 %v7366_v58, %v3593_v15  ;;  %v7204_v15 = vld [vmem:[%s13033_s1 + $0x1f4] sm:$0xf0] }
 0x45c   :  { %v4906_v34 = vsub.f32 %v7519_v54, %v9050_v37  ;;  %v3199_v37 = vld [vmem:[%s13034_s2 + $0xb0] sm:$0xff]  ;;  %v9326_v54 = vpop.xlane.xlu1 %2869 }
 0x45d   :  { %v3598_v59 = vsel %vm3597_vm11, %v7366_v58, %v3594_v2  ;;  %v7203_v2 = vld [vmem:[%s13033_s1 + $0x1f4] sm:$0xf] }
 0x45e   :  { %v9311_v26 = vmul.f32 %v3598_v59, %v3199_v37  ;;  %v3098_v59 = vmul.f32 0.0051020407, %v8839_v28  ;;  %v9348_v28 = vmul.f32 0.0051020407, %v9040_v46  ;;  %v13627_v46 = vld [vmem:[#allocation74_spill] sm:$0xff] }
 0x461   :  { %v9308_v39 = vpop.xlane.xlu0 %1991 }
 0x466   :  { %4665 = vrot.lane.b32.xlu0 %v4449_v11, %s7591_s23  ;;  %v13620_v11 = vld [vmem:[#allocation93_spill] sm:$0xff] }
 0x467   :  { %v4447_v47 = vmul.f32 %v9311_v26, %v13620_v11  ;;  %v6793_v11 = vld [vmem:[%s13033_s1 + $0x1f8] sm:$0xf0] }
 0x468   :  { %2908 = vadd.xlane.f32.xlu2 %v2907_v30  ;;  %v2301_v30 = vsub.f32 %v8613_v9, %v9303_v24 }
 0x46a   :  { %v2685_v23 = vmul.f32 %v2301_v30, %v2301_v30 }
 0x474   :  { %5680 = vperm.xlu1 %7244, %v4906_v34  }
 0x47c   :  { %7245 = vset.pattern.permute.xlu1 %v13567_v57 }
 0x47d   :  { %5083 = vperm.xlu1 %7245, %v9008_v19   ;;  %v2302_v19 = vsub.f32 %v8615_v31, %v9303_v24  ;;  %v13623_v31 = vld [vmem:[#allocation16_spill] sm:$0xff] }
 0x47e   :  { %v1235_v30 = vpop.f32.mrf.mxu1  ;;  %v5495_v9 = vmul.f32 %v5039_v51, %v13623_v31 }
 0x47f   :  { %v2494_v58 = vsel %vm2216_vm1, %v2302_v19, 0.0  ;;  %v6792_v19 = vor.u32 %v7204_v15, %v6791_v35  ;;  %v1484_v35 = vpop.f32.mrf.mxu2 }
 0x480   :  { %5108 = vperm.xlu2 %7253, %v9108_v48   ;;  %v9324_v48 = vpop.permute.xlu0 %4659  ;;  %v2686_v4 = vmul.f32 %v2494_v58, %v2494_v58  ;;  %v6796_v58 = vor.u32 %v7203_v2, %v6793_v11 }
 0x481   :  { %13621 = vst [vmem:[#allocation93_spill] sm:$0xff] %v9324_v48  ;;  %1493 = vmatmul.bf16.gmra.mxu2 %v6792_v19  ;;  %995 = vmatmul.bf16.gmra.mxu0 %v6792_v19  ;;  %v13626_v19 = vld [vmem:[#allocation75_spill] sm:$0xff]  ;;  %v3108_v48 = vmul.f32 0.0051020407, %v8993_v32 }
 0x482   :  { %v2919_v34 = vadd.f32 %v2686_v4, %v2685_v23  ;;  %7100 = vmatmul.msk.bf16.gmra.mxu3 %vm687_vm0, %v6796_v58  ;;  %7052 = vmatmul.msk.bf16.gmra.mxu1 %vm687_vm0, %v6796_v58  ;;  %v3290_v4 = vadd.f32 0.001, %v3098_v59  ;;  %v2285_v59 = vsub.f32 %v13627_v46, %v9348_v28 }
 0x484   :  { %v1733_v15 = vpop.f32.mrf.mxu3  ;;  %7367 = vrsqrt.f32 %v3290_v4  ;;  %v2669_v51 = vmul.f32 %v2285_v59, %v2285_v59  ;;  %vm3545_vm13 = vweird.f32 %v3290_v4 }
 0x485   :  { %7249 = vset.pattern.permute.xlu1 %v13573_v62  ;;  %v9352_v2 = vadd.f32 %v1733_v15, %v1484_v35 }
 0x487   :  { %13625 = vst [vmem:[#allocation16_spill] sm:$0xff] %v9352_v2 }
 0x488   :  { %4661 = vrot.lane.b32.xlu2 %v4447_v47, %s7591_s23  ;;  %v9338_v37 = vpop.xlane.xlu0 %2911  ;;  %v986_v47 = vpop.f32.mrf.mxu0 }
 0x489   :  { %7255 = vset.pattern.permute.xlu2 %v13573_v62  ;;  %v9343_v23 = vadd.f32 %v1235_v30, %v986_v47  ;;  %v2286_v47 = vsub.f32 %v13626_v19, %v9348_v28 }
 0x48a   :  { %v7368_v31 = vpop.eup %7367 }
 0x48b   :  { %13622 = vst [vmem:[#allocation154_spill] sm:$0xff] %v9343_v23  ;;  %v2478_v22 = vsel %vm2216_vm1, %v2286_v47, 0.0  ;;  %v3540_v15 = vmul.f32 %v7368_v31, %v3290_v4  ;;  %v1996_v47 = vadd.f32 %v9232_v56, %v9230_v12  ;;  %vm3546_vm12 = vweird.f32 %v7368_v31 }
 0x48c   :  { %vm3547_vm14 = vmor %vm3545_vm13, %vm3546_vm12 }
 0x48d   :  { %v3541_v19 = vmul.f32 %v7368_v31, %v3540_v15  ;;  %v9390_v15 = vpop.f32.mrf.mxu3 }
 0x490   :  { %2920 = vadd.xlane.f32.xlu0 %v2919_v34  ;;  %v4634_v34 = vpop.permute.xlu1 %4633 }
 0x491   :  { %v4913_v53 = vsub.f32 %v7521_v18, %v4634_v34 }
 0x498   :  { %v9361_v60 = vpop.xlane.xlu1 %1958 }
 0x49a   :  { %v5711_v11 = vpop.permute.xlu0 %5710 }
 0x49b   :  { %v6167_v30 = vadd.f32 %v5711_v11, %v5495_v9  ;;  %v6168_v58 = vadd.f32 %v5711_v11, %v5496_v49  ;;  %v2670_v9 = vmul.f32 %v2478_v22, %v2478_v22  ;;  %v7520_v49 = vld [vmem:[%s13034_s2 + $0x50] sm:$0xff] }
 0x49c   :  { %v4915_v35 = vsub.f32 %v7520_v49, %v9106_v40  ;;  %v9386_v49 = vpop.f32.mrf.mxu0 }
 0x49d   :  { %6359 = vst [vmem:[%s13035_s3 + $0x70] sm:$0xff] %v6167_v30  ;;  %v2895_v11 = vadd.f32 %v2670_v9, %v2669_v51  ;;  %v9384_v51 = vld [vmem:[%s13034_s2 + $0x88] sm:$0xff]  ;;  %v3300_v9 = vadd.f32 0.001, %v3108_v48 }
 0x49e   :  { %6360 = vst [vmem:[%s13035_s3 + $0x78] sm:$0xff] %v6168_v58  ;;  %v3542_v58 = vmul.f32 0.5, %v3541_v19 }
 0x49f   :  { %7369 = vrsqrt.f32 %v3300_v9  ;;  %vm3645_vm2 = vweird.f32 %v3300_v9 }
 0x4a0   :  { %v9372_v30 = vpop.permute.xlu1 %5053  ;;  %v3543_v59 = vsub.f32 1.5, %v3542_v58  ;;  %v13629_v58 = vld [vmem:[#allocation70_spill] sm:$0xff] }
 0x4a2   :  { %v3544_v22 = vmul.f32 %v7368_v31, %v3543_v59 }
 0x4a4   :  { %5725 = vperm.xlu0 %7246, %v4915_v35   ;;  %v3548_v19 = vsel %vm3547_vm14, %v7368_v31, %v3544_v22  ;;  %v9388_v35 = vpop.f32.mrf.mxu1  ;;  %v991_v31 = vpop.f32.mrf.mxu0 }
 0x4a5   :  { %v9395_v32 = vmul.f32 %v3548_v19, %v9384_v51  ;;  %v7370_v48 = vpop.eup %7369  ;;  %v1738_v22 = vpop.f32.mrf.mxu3 }
 0x4a6   :  { %v3640_v12 = vmul.f32 %v7370_v48, %v3300_v9  ;;  %vm3646_vm15 = vweird.f32 %v7370_v48  ;;  %v13634_v9 = vld [vmem:[#allocation4_spill] sm:$0xff] }
 0x4a7   :  { %2896 = vadd.xlane.f32.xlu1 %v2895_v11  ;;  %v9392_v11 = vpop.f32.mrf.mxu2  ;;  %13628 = vst [vmem:[#allocation17_spill] sm:$0xff] %v9395_v32  ;;  %vm3647_vm3 = vmor %vm3645_vm2, %vm3646_vm15 }
 0x4a8   :  { %v9376_v46 = vpop.xlane.xlu1 %2878 }
 0x4ac   :  { %v1240_v59 = vpop.f32.mrf.mxu1 }
 0x4ad   :  { %v9404_v25 = vadd.f32 %v1240_v59, %v991_v31  ;;  %v9428_v59 = vmul.f32 0.0051020407, %v9067_v42 }
 0x4af   :  { %v1489_v21 = vpop.f32.mrf.mxu2  ;;  %13630 = vst [vmem:[#allocation70_spill] sm:$0xff] %v9404_v25 }
 0x4b0   :  { %v9379_v40 = vpop.permute.xlu1 %4639  ;;  %v9406_v19 = vadd.f32 %v1738_v22, %v1489_v21  ;;  %13633 = vst [vmem:[#allocation157_spill] sm:$0xff] %v9428_v59  ;;  %v5483_v22 = vmul.f32 %v8865_v50, %v13634_v9 }
 0x4b1   :  { %1997 = vadd.xlane.f32.xlu2 %v1996_v47  ;;  %v4442_v47 = vmul.f32 %v9395_v32, %v13629_v58  ;;  %v3641_v58 = vmul.f32 %v7370_v48, %v3640_v12  ;;  %v3204_v12 = vld [vmem:[%s13034_s2 + $0xd8] sm:$0xff] }
 0x4b2   :  { %13631 = vst [vmem:[#allocation155_spill] sm:$0xff] %v9406_v19 }
 0x4b3   :  { %v3642_v32 = vmul.f32 0.5, %v3641_v58  ;;  %v13635_v58 = vld [vmem:[#allocation5_spill] sm:$0xff] }
 0x4b5   :  { %v3643_v6 = vsub.f32 1.5, %v3642_v32 }
 0x4b7   :  { %v3644_v21 = vmul.f32 %v7370_v48, %v3643_v6  ;;  %v3106_v6 = vmul.f32 0.0051020407, %v9326_v54 }
 0x4b8   :  { %v9397_v4 = vpop.xlane.xlu1 %1967 }
 0x4b9   :  { %v3648_v18 = vsel %vm3647_vm3, %v7370_v48, %v3644_v21  ;;  %v5484_v48 = vmul.f32 %v8865_v50, %v13635_v58 }
 0x4c0   :  { %4651 = vrot.lane.b32.xlu1 %v4442_v47, %s7591_s23  ;;  %v9402_v56 = vpop.permute.xlu1 %5068  ;;  %v2008_v47 = vadd.f32 %v9406_v19, %v9404_v25 }
 0x4c8   :  { %v9413_v24 = vpop.xlane.xlu1 %2887 }
 0x4c9   :  { %5715 = vperm.xlu2 %7255, %v4913_v53   ;;  %v9421_v53 = vmul.f32 %v3648_v18, %v3204_v12  ;;  %v2299_v18 = vsub.f32 %v8684_v29, %v9428_v59 }
 0x4cb   :  { %v4452_v32 = vmul.f32 %v9421_v53, %v8660_v27  ;;  %v1984_v27 = vadd.f32 %v9023_v45, %v9003_v36  ;;  %v2683_v54 = vmul.f32 %v2299_v18, %v2299_v18 }
 0x4ce   :  { %2009 = vadd.xlane.f32.xlu0 %v2008_v47  ;;  %v2300_v47 = vsub.f32 %v8688_v41, %v9428_v59 }
 0x4d0   :  { %v9416_v31 = vpop.permute.xlu1 %4645  ;;  %v2492_v50 = vsel %vm2216_vm1, %v2300_v47, 0.0  ;;  %v13638_v47 = vld [vmem:[#allocation101_spill] sm:$0xff] }
 0x4d1   :  { %7257 = vset.pattern.permute.xlu2 %v13567_v57  ;;  %v2684_v9 = vmul.f32 %v2492_v50, %v2492_v50 }
 0x4d8   :  { %v9423_v34 = vpop.xlane.xlu1 %1976 }
 0x4d9   :  { %13632 = vst [vmem:[#allocation156_spill] sm:$0xff] %v9423_v34 }
 0x4e2   :  { %4671 = vrot.lane.b32.xlu0 %v4452_v32, %s7591_s23  ;;  %v3298_v32 = vadd.f32 0.001, %v3106_v6 }
 0x4e4   :  { %7371 = vrsqrt.f32 %v3298_v32  ;;  %vm3625_vm5 = vweird.f32 %v3298_v32 }
 0x4e6   :  { %v5681_v21 = vpop.permute.xlu1 %5680 }
 0x4e7   :  { %v6155_v12 = vadd.f32 %v5681_v21, %v5483_v22  ;;  %v6156_v42 = vadd.f32 %v5681_v21, %v5484_v48  ;;  %v2916_v22 = vadd.f32 %v2684_v9, %v2683_v54  ;;  %v13636_v21 = vld [vmem:[#allocation66_spill] sm:$0xff]  ;;  %v13640_v54 = vld [vmem:[#allocation100_spill] sm:$0xff] }
 0x4e8   :  { %v9451_v41 = vmul.f32 0.0051020407, %v13636_v21 }
 0x4e9   :  { %6347 = vst [vmem:[%s13035_s3 + $0x10] sm:$0xff] %v6155_v12  ;;  %v9453_v12 = vpop.xlane.xlu0 %2000 }
 0x4ea   :  { %6348 = vst [vmem:[%s13035_s3 + $0x18] sm:$0xff] %v6156_v42  ;;  %1985 = vadd.xlane.f32.xlu1 %v1984_v27  ;;  %v7372_v58 = vpop.eup %7371  ;;  %v2308_v59 = vsub.f32 %v13638_v47, %v9451_v41  ;;  %v7522_v27 = vld [vmem:[%s13034_s2 + $0x20] sm:$0xff]  ;;  %v13639_v42 = vld [vmem:[#allocation127_spill] sm:$0xff]  ;;  %v2307_v9 = vsub.f32 %v13640_v54, %v9451_v41 }
 0x4eb   :  { %v3620_v48 = vmul.f32 %v7372_v58, %v3298_v32  ;;  %13637 = vst [vmem:[#allocation4_spill] sm:$0xff] %v9451_v41  ;;  %v4909_v18 = vsub.f32 %v7522_v27, %v13639_v42  ;;  %vm3626_vm4 = vweird.f32 %v7372_v58  ;;  %v6799_v32 = vld [vmem:[%s13033_s1 + $0x200] sm:$0xf]  ;;  %v6801_v42 = vld [vmem:[%s13033_s1 + $0x208] sm:$0xf0] }
 0x4ec   :  { %v2691_v21 = vmul.f32 %v2307_v9, %v2307_v9  ;;  %vm3627_vm6 = vmor %vm3625_vm5, %vm3626_vm4  ;;  %v9494_v9 = vpop.f32.mrf.mxu0 }
 0x4ed   :  { %v3621_v6 = vmul.f32 %v7372_v58, %v3620_v48 }
 0x4ef   :  { %v3622_v29 = vmul.f32 0.5, %v3621_v6 }
 0x4f1   :  { %v3623_v50 = vsub.f32 1.5, %v3622_v29  ;;  %v9465_v6 = vpop.permute.xlu0 %4665  ;;  %v3202_v29 = vld [vmem:[%s13034_s2 + $0xc8] sm:$0xff] }
 0x4f2   :  { %2917 = vadd.xlane.f32.xlu2 %v2916_v22  ;;  %v2500_v22 = vsel %vm2216_vm1, %v2308_v59, 0.0  ;;  %13641 = vst [vmem:[#allocation5_spill] sm:$0xff] %v9465_v6  ;;  %v7523_v6 = vld [vmem:[%s13034_s2 + $0x68] sm:$0xff] }
 0x4f3   :  { %v3624_v48 = vmul.f32 %v7372_v58, %v3623_v50  ;;  %v2692_v47 = vmul.f32 %v2500_v22, %v2500_v22  ;;  %v9496_v22 = vpop.f32.mrf.mxu1 }
 0x4f5   :  { %v3628_v36 = vsel %vm3627_vm6, %v7372_v58, %v3624_v48  ;;  %v2928_v27 = vadd.f32 %v2692_v47, %v2691_v21  ;;  %v7206_v58 = vld [vmem:[%s13033_s1 + $0x204] sm:$0xf0]  ;;  %v9499_v48 = vpop.f32.mrf.mxu2  ;;  %v9501_v21 = vpop.f32.mrf.mxu3 }
 0x4f6   :  { %v9473_v59 = vmul.f32 %v3628_v36, %v3202_v29  ;;  %v6800_v47 = vor.u32 %v7206_v58, %v6799_v32  ;;  %v13644_v29 = vld [vmem:[#allocation22_spill] sm:$0xff]  ;;  %v13645_v32 = vld [vmem:[#allocation23_spill] sm:$0xff] }
 0x4f7   :  { %v5502_v58 = vmul.f32 %v9372_v30, %v13645_v32 }
 0x4f8   :  { %1498 = vmatmul.bf16.gmra.mxu2 %v6800_v47  ;;  %1000 = vmatmul.bf16.gmra.mxu0 %v6800_v47 }
 0x503   :  { %5695 = vperm.xlu1 %7249, %v4909_v18   ;;  %v13643_v18 = vld [vmem:[#allocation108_spill] sm:$0xff] }
 0x504   :  { %v4450_v50 = vmul.f32 %v9473_v59, %v13643_v18  ;;  %v1245_v18 = vpop.f32.mrf.mxu1 }
 0x505   :  { %v1743_v32 = vpop.f32.mrf.mxu3 }
 0x50a   :  { %5123 = vperm.xlu2 %7257, %v9283_v8   ;;  %v7205_v8 = vld [vmem:[%s13033_s1 + $0x204] sm:$0xf] }
 0x50b   :  { %7250 = vset.pattern.permute.xlu1 %v13567_v57  ;;  %v6804_v36 = vor.u32 %v7205_v8, %v6801_v42 }
 0x50c   :  { %2929 = vadd.xlane.f32.xlu0 %v2928_v27  ;;  %5098 = vperm.xlu1 %7250, %v9128_v55   ;;  %v9487_v55 = vpop.xlane.xlu0 %2920  ;;  %v5501_v27 = vmul.f32 %v9372_v30, %v13644_v29  ;;  %v7208_v30 = vld [vmem:[%s13033_s1 + $0x214] sm:$0xf0]  ;;  %v1247_v34 = vpop.f32.mrf.mxu1 }
 0x50d   :  { %13642 = vst [vmem:[#allocation66_spill] sm:$0xff] %v9487_v55  ;;  %7101 = vmatmul.msk.bf16.gmra.mxu3 %vm687_vm0, %v6804_v36  ;;  %7053 = vmatmul.msk.bf16.gmra.mxu1 %vm687_vm0, %v6804_v36  ;;  %v996_v36 = vpop.f32.mrf.mxu0 }
 0x50e   :  { %v9520_v29 = vadd.f32 %v1245_v18, %v996_v36  ;;  %v4918_v36 = vsub.f32 %v7523_v6, %v9145_v5  ;;  %v13648_v18 = vld [vmem:[#allocation123_spill] sm:$0xff] }
 0x510   :  { %13646 = vst [vmem:[#allocation127_spill] sm:$0xff] %v9520_v29 }
 0x512   :  { %4667 = vrot.lane.b32.xlu2 %v4450_v50, %s7591_s23  ;;  %v6807_v50 = vld [vmem:[%s13033_s1 + $0x210] sm:$0xf] }
 0x513   :  { %7259 = vset.pattern.permute.xlu2 %v13573_v62 }
 0x514   :  { %7252 = vset.pattern.permute.xlu1 %v13573_v62 }
 0x515   :  { %v998_v19 = vpop.f32.mrf.mxu0 }
 0x516   :  { %v5726_v8 = vpop.permute.xlu0 %5725 }
 0x517   :  { %v6173_v47 = vadd.f32 %v5726_v8, %v5501_v27  ;;  %v6174_v42 = vadd.f32 %v5726_v8, %v5502_v58  ;;  %v1494_v27 = vpop.f32.mrf.mxu2  ;;  %v6808_v58 = vor.u32 %v7208_v30, %v6807_v50  ;;  %v7207_v8 = vld [vmem:[%s13033_s1 + $0x214] sm:$0xf]  ;;  %v3101_v50 = vmul.f32 0.0051020407, %v13648_v18 }
 0x519   :  { %6365 = vst [vmem:[%s13035_s3 + $0xa0] sm:$0xff] %v6173_v47  ;;  %v6809_v47 = vld [vmem:[%s13033_s1 + $0x218] sm:$0xf0]  ;;  %1503 = vmatmul.bf16.gmra.mxu2 %v6808_v58  ;;  %1005 = vmatmul.bf16.gmra.mxu0 %v6808_v58  ;;  %v3293_v30 = vadd.f32 0.001, %v3101_v50  ;;  %v9553_v50 = vadd.f32 %v9390_v15, %v9392_v11  ;;  %v9557_v15 = vadd.f32 %v1247_v34, %v998_v19  ;;  %v13658_v34 = vld [vmem:[#allocation84_spill] sm:$0xff] }
 0x51a   :  { %6366 = vst [vmem:[%s13035_s3 + $0xa8] sm:$0xff] %v6174_v42  ;;  %v9528_v42 = vadd.f32 %v1743_v32, %v1494_v27  ;;  %v6812_v54 = vor.u32 %v7207_v8, %v6809_v47  ;;  %v9538_v27 = vmul.f32 0.0051020407, %v9183_v0  ;;  %v13650_v32 = vld [vmem:[#allocation89_spill] sm:$0xff]  ;;  %v13651_v47 = vld [vmem:[#allocation88_spill] sm:$0xff]  ;;  %v9549_v0 = vadd.f32 %v9388_v35, %v9386_v49  ;;  %v1745_v35 = vpop.f32.mrf.mxu3 }
 0x51b   :  { %7373 = vrsqrt.f32 %v3293_v30  ;;  %13654 = vst [vmem:[#allocation123_spill] sm:$0xff] %v9553_v50  ;;  %vm3575_vm8 = vweird.f32 %v3293_v30 }
 0x51c   :  { %13647 = vst [vmem:[#allocation108_spill] sm:$0xff] %v9528_v42  ;;  %v2292_v8 = vsub.f32 %v13650_v32, %v9538_v27  ;;  %v2291_v5 = vsub.f32 %v13651_v47, %v9538_v27 }
 0x51d   :  { %7102 = vmatmul.msk.bf16.gmra.mxu3 %vm687_vm0, %v6812_v54  ;;  %7054 = vmatmul.msk.bf16.gmra.mxu1 %vm687_vm0, %v6812_v54  ;;  %13649 = vst [vmem:[#allocation22_spill] sm:$0xff] %v9538_v27 }
 0x51e   :  { %v2484_v6 = vsel %vm2216_vm1, %v2292_v8, 0.0  ;;  %v2675_v18 = vmul.f32 %v2291_v5, %v2291_v5  ;;  %13653 = vst [vmem:[#allocation23_spill] sm:$0xff] %v9549_v0  ;;  %v2005_v8 = vadd.f32 %v9553_v50, %v9549_v0 }
 0x51f   :  { %v2676_v41 = vmul.f32 %v2484_v6, %v2484_v6  ;;  %v1496_v49 = vpop.f32.mrf.mxu2 }
 0x520   :  { %5740 = vperm.xlu0 %7246, %v4918_v36   ;;  %v13652_v36 = vld [vmem:[#allocation133_spill] sm:$0xff] }
 0x521   :  { %v7374_v58 = vpop.eup %7373  ;;  %v3111_v45 = vmul.f32 0.0051020407, %v13652_v36  ;;  %v2904_v25 = vadd.f32 %v2676_v41, %v2675_v18  ;;  %13655 = vst [vmem:[#allocation133_spill] sm:$0xff] %v9557_v15 }
 0x522   :  { %v3570_v54 = vmul.f32 %v7374_v58, %v3293_v30  ;;  %vm3576_vm7 = vweird.f32 %v7374_v58 }
 0x523   :  { %v3303_v32 = vadd.f32 0.001, %v3111_v45  ;;  %v9559_v45 = vadd.f32 %v1745_v35, %v1496_v49  ;;  %vm3577_vm9 = vmor %vm3575_vm8, %vm3576_vm7  ;;  %v13659_v49 = vld [vmem:[#allocation121_spill] sm:$0xff] }
 0x524   :  { %v3571_v47 = vmul.f32 %v7374_v58, %v3570_v54 }
 0x525   :  { %7375 = vrsqrt.f32 %v3303_v32  ;;  %13656 = vst [vmem:[#allocation158_spill] sm:$0xff] %v9559_v45  ;;  %v2017_v11 = vadd.f32 %v9559_v45, %v9557_v15  ;;  %vm3675_vm11 = vweird.f32 %v3303_v32 }
 0x526   :  { %v3572_v36 = vmul.f32 0.5, %v3571_v47  ;;  %v9566_v47 = vld [vmem:[%s13034_s2 + $0xa0] sm:$0xff] }
 0x528   :  { %v3573_v6 = vsub.f32 1.5, %v3572_v36  ;;  %v7524_v36 = vld [vmem:[%s13034_s2 + $0x58] sm:$0xff] }
 0x52a   :  { %v3574_v41 = vmul.f32 %v7374_v58, %v3573_v6  ;;  %v4916_v6 = vsub.f32 %v7524_v36, %v9379_v40  ;;  %v13660_v40 = vld [vmem:[#allocation107_spill] sm:$0xff] }
 0x52b   :  { %v7376_v5 = vpop.eup %7375 }
 0x52c   :  { %v3670_v27 = vmul.f32 %v7376_v5, %v3303_v32  ;;  %v3578_v18 = vsel %vm3577_vm9, %v7374_v58, %v3574_v41  ;;  %vm3676_vm10 = vweird.f32 %v7376_v5  ;;  %v7525_v58 = vld [vmem:[%s13034_s2 + $0x30] sm:$0xff] }
 0x52d   :  { %vm3677_vm12 = vmor %vm3675_vm11, %vm3676_vm10  ;;  %v4911_v35 = vsub.f32 %v7525_v58, %v13659_v49 }
 0x536   :  { %2905 = vadd.xlane.f32.xlu1 %v2904_v25  ;;  %v3671_v25 = vmul.f32 %v7376_v5, %v3670_v27 }
 0x538   :  { %v3672_v54 = vmul.f32 0.5, %v3671_v25  ;;  %v9582_v25 = vpop.permute.xlu1 %5083 }
 0x53a   :  { %v3673_v19 = vsub.f32 1.5, %v3672_v54 }
 0x53b   :  { %2006 = vadd.xlane.f32.xlu2 %v2005_v8  ;;  %v9569_v8 = vmul.f32 %v3578_v18, %v9566_v47 }
 0x53c   :  { %v3674_v27 = vmul.f32 %v7376_v5, %v3673_v19  ;;  %v9599_v19 = vmul.f32 0.0051020407, %v9112_v13 }
 0x53d   :  { %13657 = vst [vmem:[#allocation159_spill] sm:$0xff] %v9569_v8  ;;  %v4445_v30 = vmul.f32 %v9569_v8, %v13658_v34 }
 0x53e   :  { %v3678_v41 = vsel %vm3677_vm12, %v7376_v5, %v3674_v27  ;;  %13661 = vst [vmem:[#allocation84_spill] sm:$0xff] %v9599_v19  ;;  %v13663_v27 = vld [vmem:[#allocation99_spill] sm:$0xff] }
 0x53f   :  { %v2306_v36 = vsub.f32 %v13663_v27, %v9599_v19  ;;  %v13667_v27 = vld [vmem:[#allocation135_spill] sm:$0xff] }
 0x540   :  { %v9592_v54 = vpop.xlane.xlu1 %2896 }
 0x548   :  { %v9596_v5 = vpop.permute.xlu1 %4651 }
 0x54a   :  { %2018 = vadd.xlane.f32.xlu0 %v2017_v11  ;;  %v3207_v11 = vld [vmem:[%s13034_s2 + $0xf0] sm:$0xff] }
 0x54b   :  { %v9587_v18 = vmul.f32 %v3678_v41, %v3207_v11  ;;  %v13665_v41 = vld [vmem:[#allocation10_spill] sm:$0xff] }
 0x54c   :  { %v5489_v11 = vmul.f32 %v9211_v52, %v13665_v41  ;;  %v13673_v41 = vld [vmem:[#allocation109_spill] sm:$0xff] }
 0x54d   :  { %v4455_v32 = vmul.f32 %v9587_v18, %v13660_v40  ;;  %v13666_v40 = vld [vmem:[#allocation11_spill] sm:$0xff] }
 0x54e   :  { %v5490_v13 = vmul.f32 %v9211_v52, %v13666_v40 }
 0x54f   :  { %4657 = vrot.lane.b32.xlu1 %v4445_v30, %s7591_s23  ;;  %v3109_v30 = vmul.f32 0.0051020407, %v9376_v46 }
 0x551   :  { %v3301_v49 = vadd.f32 0.001, %v3109_v30  ;;  %v13670_v30 = vld [vmem:[#allocation110_spill] sm:$0xff] }
 0x553   :  { %5730 = vperm.xlu2 %7259, %v4916_v6   ;;  %v13664_v6 = vld [vmem:[#allocation98_spill] sm:$0xff]  ;;  %7377 = vrsqrt.f32 %v3301_v49  ;;  %vm3655_vm14 = vweird.f32 %v3301_v49 }
 0x554   :  { %v2305_v58 = vsub.f32 %v13664_v6, %v9599_v19  ;;  %v9617_v6 = vpop.xlane.xlu0 %2009 }
 0x555   :  { %13669 = vst [vmem:[#allocation10_spill] sm:$0xff] %v9617_v6 }
 0x556   :  { %v2689_v8 = vmul.f32 %v2305_v58, %v2305_v58  ;;  %v9629_v58 = vadd.f32 %v9216_v17, %v9214_v43 }
 0x557   :  { %5705 = vperm.xlu1 %7252, %v4911_v35   ;;  %v2498_v35 = vsel %vm2216_vm1, %v2306_v36, 0.0 }
 0x558   :  { %v2690_v50 = vmul.f32 %v2498_v35, %v2498_v35  ;;  %13671 = vst [vmem:[#allocation11_spill] sm:$0xff] %v9629_v58 }
 0x559   :  { %v7378_v35 = vpop.eup %7377 }
 0x55a   :  { %v2925_v52 = vadd.f32 %v2690_v50, %v2689_v8  ;;  %v3650_v40 = vmul.f32 %v7378_v35, %v3301_v49  ;;  %vm3656_vm13 = vweird.f32 %v7378_v35  ;;  %v3205_v49 = vld [vmem:[%s13034_s2 + $0xe0] sm:$0xff] }
 0x55b   :  { %7261 = vset.pattern.permute.xlu2 %v13567_v57  ;;  %vm3657_vm15 = vmor %vm3655_vm14, %vm3656_vm13 }
 0x55c   :  { %v9641_v8 = vpop.permute.xlu0 %4671 }
 0x55d   :  { %v9601_v34 = vpop.xlane.xlu1 %1985  ;;  %13674 = vst [vmem:[#allocation160_spill] sm:$0xff] %v9641_v8 }
 0x55e   :  { %4677 = vrot.lane.b32.xlu0 %v4455_v32, %s7591_s23  ;;  %13662 = vst [vmem:[#allocation121_spill] sm:$0xff] %v9601_v34  ;;  %v9615_v34 = vmul.f32 0.0051020407, %v13667_v27  ;;  %v9633_v27 = vadd.f32 %v9223_v38, %v9221_v7 }
 0x55f   :  { %7254 = vset.pattern.permute.xlu1 %v13567_v57 }
 0x560   :  { %13668 = vst [vmem:[#allocation107_spill] sm:$0xff] %v9615_v34  ;;  %v2314_v36 = vsub.f32 %v13670_v30, %v9615_v34  ;;  %v6815_v30 = vld [vmem:[%s13033_s1 + $0x220] sm:$0xf] }
 0x561   :  { %13672 = vst [vmem:[#allocation135_spill] sm:$0xff] %v9633_v27 }
 0x562   :  { %v2506_v50 = vsel %vm2216_vm1, %v2314_v36, 0.0  ;;  %v7210_v36 = vld [vmem:[%s13033_s1 + $0x224] sm:$0xf0] }
 0x563   :  { %v2698_v17 = vmul.f32 %v2506_v50, %v2506_v50  ;;  %v13677_v50 = vld [vmem:[#allocation29_spill] sm:$0xff] }
 0x575   :  { %v5696_v32 = vpop.permute.xlu1 %5695 }
 0x576   :  { %v6161_v46 = vadd.f32 %v5696_v32, %v5489_v11  ;;  %v6162_v0 = vadd.f32 %v5696_v32, %v5490_v13  ;;  %v2313_v11 = vsub.f32 %v13673_v41, %v9615_v34  ;;  %v3651_v13 = vmul.f32 %v7378_v35, %v3650_v40  ;;  %v13676_v40 = vld [vmem:[#allocation28_spill] sm:$0xff] }
 0x578   :  { %6353 = vst [vmem:[%s13035_s3 + $0x40] sm:$0xff] %v6161_v46  ;;  %v2697_v43 = vmul.f32 %v2313_v11, %v2313_v11  ;;  %v3652_v38 = vmul.f32 0.5, %v3651_v13  ;;  %v7209_v11 = vld [vmem:[%s13033_s1 + $0x224] sm:$0xf]  ;;  %v6817_v13 = vld [vmem:[%s13033_s1 + $0x228] sm:$0xf0] }
 0x579   :  { %6354 = vst [vmem:[%s13035_s3 + $0x48] sm:$0xff] %v6162_v0  ;;  %v1993_v0 = vadd.f32 %v9633_v27, %v9629_v58 }
 0x57a   :  { %v2937_v7 = vadd.f32 %v2698_v17, %v2697_v43  ;;  %v3653_v46 = vsub.f32 1.5, %v3652_v38  ;;  %v5508_v43 = vmul.f32 %v9402_v56, %v13677_v50  ;;  %v6816_v17 = vor.u32 %v7210_v36, %v6815_v30  ;;  %v7526_v30 = vld [vmem:[%s13034_s2 + $0x80] sm:$0xff] }
 0x57b   :  { %v6820_v38 = vor.u32 %v7209_v11, %v6817_v13 }
 0x57c   :  { %2926 = vadd.xlane.f32.xlu2 %v2925_v52  ;;  %v3654_v52 = vmul.f32 %v7378_v35, %v3653_v46  ;;  %1508 = vmatmul.bf16.gmra.mxu2 %v6816_v17 }
 0x57d   :  { %1010 = vmatmul.bf16.gmra.mxu0 %v6816_v17  ;;  %7103 = vmatmul.msk.bf16.gmra.mxu3 %vm687_vm0, %v6820_v38 }
 0x57e   :  { %v3658_v46 = vsel %vm3657_vm15, %v7378_v35, %v3654_v52  ;;  %7055 = vmatmul.msk.bf16.gmra.mxu1 %vm687_vm0, %v6820_v38  ;;  %v13678_v35 = vld [vmem:[#allocation122_spill] sm:$0xff] }
 0x57f   :  { %v9643_v32 = vpop.xlane.xlu0 %2929 }
 0x580   :  { %13675 = vst [vmem:[#allocation161_spill] sm:$0xff] %v9643_v32 }
 0x581   :  { %1994 = vadd.xlane.f32.xlu1 %v1993_v0  ;;  %v5507_v0 = vmul.f32 %v9402_v56, %v13676_v40  ;;  %v9673_v56 = vmul.f32 %v3658_v46, %v3205_v49 }
 0x583   :  { %v4453_v52 = vmul.f32 %v9673_v56, %v13678_v35 }
 0x588   :  { %2938 = vadd.xlane.f32.xlu0 %v2937_v7 }
 0x58a   :  { %v1250_v36 = vpop.f32.mrf.mxu1 }
 0x590   :  { %v1748_v11 = vpop.f32.mrf.mxu3 }
 0x592   :  { %v5741_v7 = vpop.permute.xlu0 %5740 }
 0x593   :  { %v6179_v41 = vadd.f32 %v5741_v7, %v5507_v0  ;;  %v6180_v19 = vadd.f32 %v5741_v7, %v5508_v43  ;;  %v9691_v43 = vpop.permute.xlu1 %5098  ;;  %v9695_v7 = vpop.f32.mrf.mxu1 }
 0x594   :  { %5138 = vperm.xlu2 %7261, %v9421_v53   ;;  %v4921_v53 = vsub.f32 %v7526_v30, %v9235_v61  ;;  %v3114_v61 = vmul.f32 0.0051020407, %v9087_v20  ;;  %v9702_v30 = vmul.f32 0.0051020407, %v9300_v16  ;;  %v13683_v20 = vld [vmem:[#allocation91_spill] sm:$0xff] }
 0x595   :  { %6371 = vst [vmem:[%s13035_s3 + $0xd0] sm:$0xff] %v6179_v41  ;;  %v1001_v41 = vpop.f32.mrf.mxu0 }
 0x596   :  { %6372 = vst [vmem:[%s13035_s3 + $0xd8] sm:$0xff] %v6180_v19  ;;  %v1499_v19 = vpop.f32.mrf.mxu2  ;;  %v9684_v40 = vadd.f32 %v1250_v36, %v1001_v41  ;;  %v3306_v17 = vadd.f32 0.001, %v3114_v61  ;;  %v13684_v41 = vld [vmem:[#allocation90_spill] sm:$0xff] }
 0x597   :  { %v9686_v0 = vadd.f32 %v1748_v11, %v1499_v19  ;;  %13682 = vst [vmem:[#allocation122_spill] sm:$0xff] %v9702_v30  ;;  %v2297_v36 = vsub.f32 %v13684_v41, %v9702_v30  ;;  %v2014_v41 = vadd.f32 %v9528_v42, %v9520_v29 }
 0x598   :  { %13679 = vst [vmem:[#allocation28_spill] sm:$0xff] %v9684_v40  ;;  %v9699_v46 = vpop.f32.mrf.mxu3  ;;  %7379 = vrsqrt.f32 %v3306_v17  ;;  %vm3705_vm3 = vweird.f32 %v3306_v17 }
 0x599   :  { %13680 = vst [vmem:[#allocation29_spill] sm:$0xff] %v9686_v0 }
 0x59a   :  { %5113 = vperm.xlu1 %7254, %v9311_v26   ;;  %v13681_v26 = vld [vmem:[#allocation131_spill] sm:$0xff] }
 0x59b   :  { %v3104_v50 = vmul.f32 0.0051020407, %v13681_v26  ;;  %v1255_v11 = vpop.f32.mrf.mxu1 }
 0x59c   :  { %5755 = vperm.xlu0 %7246, %v4921_v53   ;;  %4673 = vrot.lane.b32.xlu2 %v4453_v52, %s7591_s23  ;;  %v2298_v53 = vsub.f32 %v13683_v20, %v9702_v30  ;;  %v2681_v20 = vmul.f32 %v2297_v36, %v2297_v36  ;;  %v13688_v36 = vld [vmem:[#allocation132_spill] sm:$0xff] }
 0x59d   :  { %7263 = vset.pattern.permute.xlu2 %v13573_v62  ;;  %v9693_v13 = vpop.f32.mrf.mxu0  ;;  %v3296_v49 = vadd.f32 0.001, %v3104_v50 }
 0x59e   :  { %v9697_v38 = vpop.f32.mrf.mxu2  ;;  %v7380_v52 = vpop.eup %7379  ;;  %v2490_v50 = vsel %vm2216_vm1, %v2298_v53, 0.0 }
 0x59f   :  { %7381 = vrsqrt.f32 %v3296_v49  ;;  %v3700_v8 = vmul.f32 %v7380_v52, %v3306_v17  ;;  %v2682_v34 = vmul.f32 %v2490_v50, %v2490_v50  ;;  %vm3706_vm2 = vweird.f32 %v7380_v52  ;;  %v13691_v17 = vld [vmem:[#allocation113_spill] sm:$0xff] }
 0x5a0   :  { %v1753_v26 = vpop.f32.mrf.mxu3  ;;  %vm3707_vm5 = vmor %vm3705_vm3, %vm3706_vm2  ;;  %vm3605_vm6 = vweird.f32 %v3296_v49 }
 0x5a1   :  { %v3701_v45 = vmul.f32 %v7380_v52, %v3700_v8  ;;  %v2913_v30 = vadd.f32 %v2682_v34, %v2681_v20 }
 0x5a2   :  { %7256 = vset.pattern.permute.xlu1 %v13573_v62 }
 0x5a3   :  { %v3702_v0 = vmul.f32 0.5, %v3701_v45 }
 0x5a5   :  { %v1006_v19 = vpop.f32.mrf.mxu0  ;;  %v7382_v16 = vpop.eup %7381  ;;  %v3703_v50 = vsub.f32 1.5, %v3702_v0 }
 0x5a6   :  { %v1504_v61 = vpop.f32.mrf.mxu2  ;;  %v9712_v58 = vadd.f32 %v1255_v11, %v1006_v19  ;;  %v3600_v15 = vmul.f32 %v7382_v16, %v3296_v49  ;;  %v13687_v11 = vld [vmem:[#allocation14_spill] sm:$0xff]  ;;  %vm3606_vm4 = vweird.f32 %v7382_v16  ;;  %v4919_v49 = vsub.f32 %v9208_v44, %v9416_v31 }
 0x5a7   :  { %v9714_v27 = vadd.f32 %v1753_v26, %v1504_v61  ;;  %v5493_v61 = vmul.f32 %v13688_v36, %v13687_v11  ;;  %v13689_v26 = vld [vmem:[#allocation15_spill] sm:$0xff]  ;;  %vm3607_vm7 = vmor %vm3605_vm6, %vm3606_vm4  ;;  %v9760_v11 = vmul.f32 0.0051020407, %v9287_v14  ;;  %v9765_v31 = vmul.f32 0.0051020407, %v9157_v3 }
 0x5a8   :  { %13685 = vst [vmem:[#allocation131_spill] sm:$0xff] %v9712_v58  ;;  %v3601_v53 = vmul.f32 %v7382_v16, %v3600_v15  ;;  %v5494_v8 = vmul.f32 %v13688_v36, %v13689_v26  ;;  %v3704_v15 = vmul.f32 %v7380_v52, %v3703_v50  ;;  %v13696_v36 = vld [vmem:[#allocation125_spill] sm:$0xff]  ;;  %v3112_v26 = vmul.f32 0.0051020407, %v9413_v24 }
 0x5a9   :  { %v9706_v35 = vpop.xlane.xlu1 %2905  ;;  %13686 = vst [vmem:[#allocation162_spill] sm:$0xff] %v9714_v27  ;;  %v2026_v6 = vadd.f32 %v9714_v27, %v9712_v58 }
 0x5aa   :  { %v3602_v19 = vmul.f32 0.5, %v3601_v53  ;;  %v13693_v53 = vld [vmem:[#allocation126_spill] sm:$0xff]  ;;  %13694 = vst [vmem:[#allocation132_spill] sm:$0xff] %v9760_v11 }
 0x5ab   :  { %13695 = vst [vmem:[#allocation15_spill] sm:$0xff] %v9765_v31 }
 0x5ac   :  { %v3603_v34 = vsub.f32 1.5, %v3602_v19 }
 0x5ae   :  { %v3604_v45 = vmul.f32 %v7382_v16, %v3603_v34  ;;  %v13698_v34 = vld [vmem:[#allocation124_spill] sm:$0xff] }
 0x5b0   :  { %v3608_v0 = vsel %vm3607_vm7, %v7382_v16, %v3604_v45  ;;  %v7527_v16 = vld [vmem:[%s13034_s2 + $0x48] sm:$0xff]  ;;  %v13699_v45 = vld [vmem:[#allocation117_spill] sm:$0xff] }
 0x5b1   :  { %v4914_v19 = vsub.f32 %v7527_v16, %v13693_v53  ;;  %v6825_v16 = vld [vmem:[%s13033_s1 + $0x238] sm:$0xf0] }
 0x5bd   :  { %v9762_v44 = vpop.xlane.xlu0 %2018 }
 0x5c1   :  { %v9716_v32 = vpop.permute.xlu1 %4657 }
 0x5c4   :  { %2914 = vadd.xlane.f32.xlu1 %v2913_v30 }
 0x5c5   :  { %2015 = vadd.xlane.f32.xlu2 %v2014_v41 }
 0x5c6   :  { %2027 = vadd.xlane.f32.xlu0 %v2026_v6  ;;  %v3708_v6 = vsel %vm3707_vm5, %v7380_v52, %v3704_v15  ;;  %v13692_v52 = vld [vmem:[#allocation94_spill] sm:$0xff]  ;;  %v2319_v15 = vsub.f32 %v13698_v34, %v9760_v11  ;;  %v9828_v34 = vpop.f32.mrf.mxu3 }
 0x5c8   :  { %v2703_v24 = vmul.f32 %v2319_v15, %v2319_v15 }
 0x5c9   :  { %v5706_v40 = vpop.permute.xlu1 %5705 }
 0x5ca   :  { %v6165_v55 = vadd.f32 %v5706_v40, %v5493_v61  ;;  %v6166_v29 = vadd.f32 %v5706_v40, %v5494_v8  ;;  %v3210_v40 = vld [vmem:[%s13034_s2 + $0x108] sm:$0xff]  ;;  %v2320_v61 = vsub.f32 %v13696_v36, %v9760_v11  ;;  %v13697_v8 = vld [vmem:[#allocation118_spill] sm:$0xff]  ;;  %v9826_v36 = vpop.f32.mrf.mxu2 }
 0x5cb   :  { %v9735_v30 = vmul.f32 %v3708_v6, %v3210_v40  ;;  %v2312_v50 = vsub.f32 %v13697_v8, %v9765_v31  ;;  %v2311_v6 = vsub.f32 %v13699_v45, %v9765_v31  ;;  %v9778_v40 = vadd.f32 0.001, %v3112_v26 }
 0x5cc   :  { %6357 = vst [vmem:[%s13035_s3 + $0x60] sm:$0xff] %v6165_v55  ;;  %v9740_v55 = vld [vmem:[%s13034_s2 + $0xb8] sm:$0xff]  ;;  %v2512_v14 = vsel %vm2216_vm1, %v2320_v61, 0.0 }
 0x5cd   :  { %6358 = vst [vmem:[%s13035_s3 + $0x68] sm:$0xff] %v6166_v29  ;;  %v9743_v29 = vmul.f32 %v3608_v0, %v9740_v55  ;;  %v4458_v20 = vmul.f32 %v9735_v30, %v13691_v17  ;;  %v2504_v3 = vsel %vm2216_vm1, %v2312_v50, 0.0  ;;  %v2704_v17 = vmul.f32 %v2512_v14, %v2512_v14 }
 0x5ce   :  { %7383 = vrsqrt.f32 %v9778_v40  ;;  %v2695_v53 = vmul.f32 %v2311_v6, %v2311_v6  ;;  %v9805_v6 = vpop.permute.xlu2 %5093  ;;  %vm3685_vm9 = vweird.f32 %v9778_v40 }
 0x5cf   :  { %13690 = vst [vmem:[#allocation14_spill] sm:$0xff] %v9743_v29  ;;  %v4448_v41 = vmul.f32 %v9743_v29, %v13692_v52  ;;  %v2946_v26 = vadd.f32 %v2704_v17, %v2703_v24  ;;  %v6831_v24 = vld [vmem:[%s13033_s1 + $0x240] sm:$0xf]  ;;  %v7214_v17 = vld [vmem:[%s13033_s1 + $0x244] sm:$0xf0] }
 0x5d0   :  { %v9782_v0 = vpop.permute.xlu0 %4677  ;;  %v6832_v8 = vor.u32 %v7214_v17, %v6831_v24 }
 0x5d1   :  { %13700 = vst [vmem:[#allocation113_spill] sm:$0xff] %v9782_v0 }
 0x5d4   :  { %v7384_v15 = vpop.eup %7383 }
 0x5d5   :  { %vm3686_vm8 = vweird.f32 %v7384_v15 }
 0x5d6   :  { %v4656_v24 = vpop.permute.xlu2 %4655  ;;  %vm3687_vm10 = vmor %vm3685_vm9, %vm3686_vm8 }
 0x5da   :  { %4683 = vrot.lane.b32.xlu0 %v4458_v20, %s7591_s23  ;;  %v6823_v20 = vld [vmem:[%s13033_s1 + $0x230] sm:$0xf] }
 0x5dd   :  { %4663 = vrot.lane.b32.xlu1 %v4448_v41, %s7591_s23  ;;  %5745 = vperm.xlu2 %7263, %v4919_v49   ;;  %v7212_v49 = vld [vmem:[%s13033_s1 + $0x234] sm:$0xf0]  ;;  %v7211_v41 = vld [vmem:[%s13033_s1 + $0x234] sm:$0xf] }
 0x5de   :  { %v6824_v52 = vor.u32 %v7212_v49, %v6823_v20  ;;  %v6828_v61 = vor.u32 %v7211_v41, %v6825_v16  ;;  %v9801_v20 = vpop.f32.mrf.mxu0  ;;  %v9803_v49 = vpop.f32.mrf.mxu1  ;;  %v7213_v41 = vld [vmem:[%s13033_s1 + $0x244] sm:$0xf]  ;;  %v6833_v16 = vld [vmem:[%s13033_s1 + $0x248] sm:$0xf0] }
 0x5df   :  { %v6836_v29 = vor.u32 %v7213_v41, %v6833_v16 }
 0x5e0   :  { %1513 = vmatmul.bf16.gmra.mxu2 %v6824_v52  ;;  %1015 = vmatmul.bf16.gmra.mxu0 %v6824_v52  ;;  %v2002_v52 = vadd.f32 %v9352_v2, %v9343_v23 }
 0x5e1   :  { %7104 = vmatmul.msk.bf16.gmra.mxu3 %vm687_vm0, %v6828_v61  ;;  %7056 = vmatmul.msk.bf16.gmra.mxu1 %vm687_vm0, %v6828_v61 }
 0x5e5   :  { %5720 = vperm.xlu1 %7256, %v4914_v19   ;;  %7265 = vset.pattern.permute.xlu2 %v13567_v57  ;;  %v2696_v19 = vmul.f32 %v2504_v3, %v2504_v3  ;;  %v3680_v3 = vmul.f32 %v7384_v15, %v9778_v40 }
 0x5e7   :  { %v2934_v50 = vadd.f32 %v2696_v19, %v2695_v53  ;;  %v3681_v53 = vmul.f32 %v7384_v15, %v3680_v3  ;;  %v13701_v19 = vld [vmem:[#allocation34_spill] sm:$0xff] }
 0x5e8   :  { %v5513_v61 = vmul.f32 %v9582_v25, %v13701_v19 }
 0x5e9   :  { %v3682_v23 = vmul.f32 0.5, %v3681_v53 }
 0x5eb   :  { %v3683_v17 = vsub.f32 1.5, %v3682_v23  ;;  %v3208_v23 = vld [vmem:[%s13034_s2 + $0xf8] sm:$0xff] }
 0x5ed   :  { %7258 = vset.pattern.permute.xlu1 %v13567_v57 }
 0x5f0   :  { %1518 = vmatmul.bf16.gmra.mxu2 %v6832_v8  ;;  %1020 = vmatmul.bf16.gmra.mxu0 %v6832_v8 }
 0x5f1   :  { %7105 = vmatmul.msk.bf16.gmra.mxu3 %vm687_vm0, %v6836_v29  ;;  %7057 = vmatmul.msk.bf16.gmra.mxu1 %vm687_vm0, %v6836_v29 }
 0x5fb   :  { %v9799_v14 = vpop.xlane.xlu0 %2938  ;;  %v1260_v3 = vpop.f32.mrf.mxu1 }
 0x5ff   :  { %v1509_v8 = vpop.f32.mrf.mxu2 }
 0x600   :  { %v1758_v41 = vpop.f32.mrf.mxu3 }
 0x601   :  { %v9843_v16 = vadd.f32 %v1758_v41, %v1509_v8 }
 0x603   :  { %13704 = vst [vmem:[#allocation126_spill] sm:$0xff] %v9843_v16 }
 0x604   :  { %2947 = vadd.xlane.f32.xlu0 %v2946_v26  ;;  %v13702_v26 = vld [vmem:[#allocation35_spill] sm:$0xff] }
 0x606   :  { %2935 = vadd.xlane.f32.xlu2 %v2934_v50  ;;  %v5514_v50 = vmul.f32 %v9582_v25, %v13702_v26  ;;  %v1011_v25 = vpop.f32.mrf.mxu0 }
 0x60e   :  { %v5756_v45 = vpop.permute.xlu0 %5755  ;;  %v1013_v26 = vpop.f32.mrf.mxu0 }
 0x60f   :  { %v6185_v31 = vadd.f32 %v5756_v45, %v5513_v61  ;;  %v6186_v0 = vadd.f32 %v5756_v45, %v5514_v50  ;;  %2003 = vadd.xlane.f32.xlu1 %v2002_v52  ;;  %v9838_v45 = vadd.f32 %v1260_v3, %v1011_v25  ;;  %v3117_v61 = vmul.f32 0.0051020407, %v9296_v33  ;;  %v1262_v50 = vpop.f32.mrf.mxu1  ;;  %v1511_v25 = vpop.f32.mrf.mxu2 }
 0x610   :  { %v1760_v3 = vpop.f32.mrf.mxu3 }
 0x611   :  { %6377 = vst [vmem:[%s13035_s3 + $0x100] sm:$0xff] %v6185_v31  ;;  %v7528_v31 = vld [vmem:[%s13034_s2 + $0x98] sm:$0xff]  ;;  %v3309_v40 = vadd.f32 0.001, %v3117_v61 }
 0x612   :  { %6378 = vst [vmem:[%s13035_s3 + $0x108] sm:$0xff] %v6186_v0  ;;  %v4924_v52 = vsub.f32 %v7528_v31, %v4656_v24  ;;  %v3684_v0 = vmul.f32 %v7384_v15, %v3683_v17  ;;  %v9861_v24 = vadd.f32 %v1262_v50, %v1013_v26  ;;  %v9863_v17 = vadd.f32 %v1760_v3, %v1511_v25  ;;  %v13707_v31 = vld [vmem:[#allocation138_spill] sm:$0xff] }
 0x613   :  { %13703 = vst [vmem:[#allocation94_spill] sm:$0xff] %v9838_v45  ;;  %7385 = vrsqrt.f32 %v3309_v40  ;;  %v3107_v33 = vmul.f32 0.0051020407, %v13707_v31  ;;  %v9877_v26 = vadd.f32 %v9695_v7, %v9693_v13  ;;  %v9881_v50 = vadd.f32 %v9699_v46, %v9697_v38  ;;  %v3213_v46 = vld [vmem:[%s13034_s2 + $0x120] sm:$0xff] }
 0x614   :  { %v3688_v29 = vsel %vm3687_vm10, %v7384_v15, %v3684_v0  ;;  %v9859_v15 = vpop.xlane.xlu1 %1994  ;;  %13705 = vst [vmem:[#allocation34_spill] sm:$0xff] %v9861_v24  ;;  %v9871_v0 = vmul.f32 0.0051020407, %v9361_v60  ;;  %v13711_v60 = vld [vmem:[#allocation114_spill] sm:$0xff]  ;;  %vm3735_vm12 = vweird.f32 %v3309_v40 }
 0x615   :  { %v9850_v53 = vmul.f32 %v3688_v29, %v3208_v23  ;;  %13706 = vst [vmem:[#allocation35_spill] sm:$0xff] %v9863_v17  ;;  %v3299_v41 = vadd.f32 0.001, %v3107_v33  ;;  %v13708_v23 = vld [vmem:[#allocation115_spill] sm:$0xff]  ;;  %v2023_v13 = vadd.f32 %v9881_v50, %v9877_v26 }
 0x616   :  { %13709 = vst [vmem:[#allocation138_spill] sm:$0xff] %v9877_v26  ;;  %v2303_v3 = vsub.f32 %v13711_v60, %v9871_v0 }
 0x617   :  { %v4456_v19 = vmul.f32 %v9850_v53, %v9141_v10  ;;  %7387 = vrsqrt.f32 %v3299_v41  ;;  %13710 = vst [vmem:[#allocation163_spill] sm:$0xff] %v9881_v50  ;;  %vm3635_vm15 = vweird.f32 %v3299_v41 }
 0x618   :  { %5770 = vperm.xlu0 %7246, %v4924_v52   ;;  %v2687_v7 = vmul.f32 %v2303_v3, %v2303_v3  ;;  %v13713_v3 = vld [vmem:[#allocation20_spill] sm:$0xff] }
 0x61c   :  { %v9868_v8 = vpop.permute.xlu1 %5113 }
 0x61e   :  { %5153 = vperm.xlu2 %7265, %v9587_v18   ;;  %v7386_v18 = vpop.eup %7385 }
 0x61f   :  { %v3730_v10 = vmul.f32 %v7386_v18, %v3309_v40  ;;  %vm3736_vm11 = vweird.f32 %v7386_v18  ;;  %v7388_v33 = vpop.eup %7387  ;;  %v13712_v40 = vld [vmem:[#allocation134_spill] sm:$0xff] }
 0x620   :  { %vm3737_vm13 = vmor %vm3735_vm12, %vm3736_vm11  ;;  %vm3636_vm14 = vweird.f32 %v7388_v33 }
 0x621   :  { %v3731_v52 = vmul.f32 %v7386_v18, %v3730_v10  ;;  %vm3637_vm2 = vmor %vm3635_vm15, %vm3636_vm14 }
 0x623   :  { %v3732_v29 = vmul.f32 0.5, %v3731_v52 }
 0x625   :  { %v3733_v61 = vsub.f32 1.5, %v3732_v29 }
 0x626   :  { %4679 = vrot.lane.b32.xlu2 %v4456_v19, %s7591_s23  ;;  %v2304_v19 = vsub.f32 %v13708_v23, %v9871_v0 }
 0x627   :  { %7267 = vset.pattern.permute.xlu2 %v13573_v62  ;;  %v3734_v10 = vmul.f32 %v7386_v18, %v3733_v61 }
 0x628   :  { %5128 = vperm.xlu1 %7258, %v9473_v59   ;;  %v2035_v59 = vadd.f32 %v9863_v17, %v9861_v24  ;;  %v2496_v31 = vsel %vm2216_vm1, %v2304_v19, 0.0 }
 0x629   :  { %v2688_v52 = vmul.f32 %v2496_v31, %v2496_v31  ;;  %v3738_v38 = vsel %vm3737_vm13, %v7386_v18, %v3734_v10  ;;  %v13714_v31 = vld [vmem:[#allocation6_spill] sm:$0xff]  ;;  %v13715_v10 = vld [vmem:[#allocation21_spill] sm:$0xff] }
 0x62a   :  { %v9896_v23 = vmul.f32 %v3738_v38, %v3213_v46  ;;  %v5499_v18 = vmul.f32 %v13714_v31, %v13713_v3  ;;  %v5500_v50 = vmul.f32 %v13714_v31, %v13715_v10  ;;  %v13722_v3 = vld [vmem:[#allocation139_spill] sm:$0xff] }
 0x62b   :  { %v2922_v61 = vadd.f32 %v2688_v52, %v2687_v7 }
 0x62c   :  { %v4461_v60 = vmul.f32 %v9896_v23, %v13712_v40 }
 0x630   :  { %7260 = vset.pattern.permute.xlu1 %v13573_v62 }
 0x637   :  { %v9883_v25 = vpop.xlane.xlu1 %2914 }
 0x642   :  { %2036 = vadd.xlane.f32.xlu0 %v2035_v59  ;;  %v3630_v59 = vmul.f32 %v7388_v33, %v3299_v41  ;;  %v9927_v41 = vmul.f32 0.0051020407, %v9308_v39 }
 0x644   :  { %v3631_v19 = vmul.f32 %v7388_v33, %v3630_v59  ;;  %13718 = vst [vmem:[#allocation20_spill] sm:$0xff] %v9927_v41  ;;  %v2325_v39 = vsub.f32 %v13722_v3, %v9927_v41 }
 0x646   :  { %v3632_v26 = vmul.f32 0.5, %v3631_v19  ;;  %v2709_v10 = vmul.f32 %v2325_v39, %v2325_v39 }
 0x648   :  { %v3633_v7 = vsub.f32 1.5, %v3632_v26 }
 0x64a   :  { %v3634_v52 = vmul.f32 %v7388_v33, %v3633_v7 }
 0x64c   :  { %v3638_v38 = vsel %vm3637_vm2, %v7388_v33, %v3634_v52  ;;  %v9930_v33 = vpop.xlane.xlu0 %2027 }
 0x64f   :  { %v9894_v29 = vpop.permute.xlu1 %4663  ;;  %2024 = vadd.xlane.f32.xlu2 %v2023_v13 }
 0x652   :  { %2923 = vadd.xlane.f32.xlu1 %v2922_v61  ;;  %v13720_v61 = vld [vmem:[#allocation140_spill] sm:$0xff] }
 0x653   :  { %v2326_v19 = vsub.f32 %v13720_v61, %v9927_v41  ;;  %v13729_v61 = vld [vmem:[#allocation119_spill] sm:$0xff] }
 0x655   :  { %v2518_v31 = vsel %vm2216_vm1, %v2326_v19, 0.0  ;;  %v13728_v19 = vld [vmem:[#allocation120_spill] sm:$0xff] }
 0x656   :  { %4689 = vrot.lane.b32.xlu0 %v4461_v60, %s7591_s23  ;;  %v9914_v60 = vld [vmem:[%s13034_s2 + $0xd0] sm:$0xff] }
 0x657   :  { %v5721_v2 = vpop.permute.xlu1 %5720  ;;  %v9919_v26 = vmul.f32 %v3638_v38, %v9914_v60  ;;  %v13724_v38 = vld [vmem:[#allocation148_spill] sm:$0xff] }
 0x658   :  { %v6171_v24 = vadd.f32 %v5721_v2, %v5499_v18  ;;  %v6172_v13 = vadd.f32 %v5721_v2, %v5500_v50  ;;  %v4922_v2 = vsub.f32 %v9384_v51, %v9596_v5  ;;  %v13717_v50 = vld [vmem:[#allocation102_spill] sm:$0xff]  ;;  %v13719_v5 = vld [vmem:[#allocation55_spill] sm:$0xff]  ;;  %v9944_v18 = vpop.permute.xlu0 %4683 }
 0x659   :  { %13716 = vst [vmem:[#allocation134_spill] sm:$0xff] %v9919_v26  ;;  %v4451_v46 = vmul.f32 %v9919_v26, %v13717_v50  ;;  %v7529_v51 = vld [vmem:[%s13034_s2 + $0x60] sm:$0xff] }
 0x65a   :  { %6363 = vst [vmem:[%s13035_s3 + $0x90] sm:$0xff] %v6171_v24  ;;  %v9921_v24 = vpop.xlane.xlu2 %1988  ;;  %v4917_v59 = vsub.f32 %v7529_v51, %v13719_v5  ;;  %v3115_v5 = vmul.f32 0.0051020407, %v9592_v54  ;;  %v6839_v54 = vld [vmem:[%s13033_s1 + $0x250] sm:$0xf] }
 0x65b   :  { %6364 = vst [vmem:[%s13035_s3 + $0x98] sm:$0xff] %v6172_v13  ;;  %v2710_v13 = vmul.f32 %v2518_v31, %v2518_v31 }
 0x65c   :  { %13723 = vst [vmem:[#allocation21_spill] sm:$0xff] %v9944_v18 }
 0x65d   :  { %v2955_v52 = vadd.f32 %v2710_v13, %v2709_v10  ;;  %v1016_v50 = vpop.f32.mrf.mxu0  ;;  %v3307_v13 = vadd.f32 0.001, %v3115_v5 }
 0x65f   :  { %7389 = vrsqrt.f32 %v3307_v13  ;;  %vm3715_vm4 = vweird.f32 %v3307_v13 }
 0x662   :  { %v9938_v40 = vpop.permute.xlu2 %5700 }
 0x663   :  { %13721 = vst [vmem:[#allocation6_spill] sm:$0xff] %v9938_v40 }
 0x664   :  { %v1763_v3 = vpop.f32.mrf.mxu3 }
 0x667   :  { %5760 = vperm.xlu2 %7267, %v4922_v2   ;;  %v9950_v2 = vmul.f32 0.0051020407, %v13724_v38 }
 0x669   :  { %13725 = vst [vmem:[#allocation102_spill] sm:$0xff] %v9950_v2  ;;  %v2318_v39 = vsub.f32 %v13728_v19, %v9950_v2  ;;  %v2317_v10 = vsub.f32 %v13729_v61, %v9950_v2  ;;  %v13730_v19 = vld [vmem:[#allocation40_spill] sm:$0xff]  ;;  %v13731_v61 = vld [vmem:[#allocation41_spill] sm:$0xff] }
 0x66a   :  { %v9946_v7 = vpop.xlane.xlu2 %2908  ;;  %v5519_v5 = vmul.f32 %v9691_v43, %v13730_v19  ;;  %v6841_v2 = vld [vmem:[%s13033_s1 + $0x258] sm:$0xf0]  ;;  %v9996_v19 = vadd.f32 %v9496_v22, %v9494_v9  ;;  %v3211_v9 = vld [vmem:[%s13034_s2 + $0x110] sm:$0xff] }
 0x66b   :  { %4669 = vrot.lane.b32.xlu1 %v4451_v46, %s7591_s23  ;;  %v1265_v46 = vpop.f32.mrf.mxu1  ;;  %v2510_v38 = vsel %vm2216_vm1, %v2318_v39, 0.0  ;;  %v5520_v39 = vmul.f32 %v9691_v43, %v13731_v61  ;;  %v2701_v41 = vmul.f32 %v2317_v10, %v2317_v10 }
 0x66c   :  { %v9952_v51 = vadd.f32 %v1265_v46, %v1016_v50  ;;  %v7216_v50 = vld [vmem:[%s13033_s1 + $0x254] sm:$0xf0]  ;;  %v7215_v46 = vld [vmem:[%s13033_s1 + $0x254] sm:$0xf]  ;;  %v2702_v17 = vmul.f32 %v2510_v38, %v2510_v38  ;;  %13733 = vst [vmem:[#allocation41_spill] sm:$0xff] %v9996_v19 }
 0x66d   :  { %v6840_v26 = vor.u32 %v7216_v50, %v6839_v54  ;;  %v6844_v11 = vor.u32 %v7215_v46, %v6841_v2  ;;  %v3120_v38 = vmul.f32 0.0051020407, %v9338_v37  ;;  %v10013_v54 = vpop.f32.mrf.mxu3 }
 0x66e   :  { %13726 = vst [vmem:[#allocation55_spill] sm:$0xff] %v9952_v51  ;;  %v2943_v43 = vadd.f32 %v2702_v17, %v2701_v41 }
 0x66f   :  { %7269 = vset.pattern.permute.xlu2 %v13567_v57  ;;  %1523 = vmatmul.bf16.gmra.mxu2 %v6840_v26  ;;  %v3312_v22 = vadd.f32 0.001, %v3120_v38 }
 0x670   :  { %1025 = vmatmul.bf16.gmra.mxu0 %v6840_v26  ;;  %7106 = vmatmul.msk.bf16.gmra.mxu3 %vm687_vm0, %v6844_v11  ;;  %v7530_v26 = vld [vmem:[%s13034_s2 + $0xb0] sm:$0xff] }
 0x671   :  { %7058 = vmatmul.msk.bf16.gmra.mxu1 %vm687_vm0, %v6844_v11  ;;  %7391 = vrsqrt.f32 %v3312_v22  ;;  %vm3765_vm7 = vweird.f32 %v3312_v22 }
 0x672   :  { %v9959_v31 = vpop.permute.xlu2 %5108 }
 0x673   :  { %5735 = vperm.xlu1 %7260, %v4917_v59  }
 0x677   :  { %v9955_v59 = vpop.xlane.xlu0 %2947 }
 0x678   :  { %13727 = vst [vmem:[#allocation148_spill] sm:$0xff] %v9955_v59 }
 0x67a   :  { %v4662_v61 = vpop.permute.xlu2 %4661 }
 0x67b   :  { %7262 = vset.pattern.permute.xlu1 %v13567_v57 }
 0x680   :  { %2956 = vadd.xlane.f32.xlu0 %v2955_v52  ;;  %v1514_v52 = vpop.f32.mrf.mxu2 }
 0x681   :  { %v9978_v40 = vadd.f32 %v1763_v3, %v1514_v52  ;;  %v7390_v3 = vpop.eup %7389 }
 0x682   :  { %v3710_v2 = vmul.f32 %v7390_v3, %v3307_v13  ;;  %vm3716_vm3 = vweird.f32 %v7390_v3  ;;  %v7392_v13 = vpop.eup %7391 }
 0x683   :  { %13732 = vst [vmem:[#allocation40_spill] sm:$0xff] %v9978_v40  ;;  %vm3717_vm5 = vmor %vm3715_vm4, %vm3716_vm3  ;;  %vm3766_vm6 = vweird.f32 %v7392_v13 }
 0x684   :  { %v3711_v11 = vmul.f32 %v7390_v3, %v3710_v2  ;;  %vm3767_vm8 = vmor %vm3765_vm7, %vm3766_vm6 }
 0x686   :  { %v3712_v17 = vmul.f32 0.5, %v3711_v11 }
 0x688   :  { %v10015_v50 = vpop.f32.mrf.mxu2 }
 0x68a   :  { %v5771_v18 = vpop.permute.xlu0 %5770 }
 0x68b   :  { %v6191_v42 = vadd.f32 %v5771_v18, %v5519_v5  ;;  %v6192_v59 = vadd.f32 %v5771_v18, %v5520_v39  ;;  %v4927_v18 = vsub.f32 %v7530_v26, %v4662_v61  ;;  %v3760_v61 = vmul.f32 %v7392_v13, %v3312_v22  ;;  %v13740_v22 = vld [vmem:[#allocation106_spill] sm:$0xff] }
 0x68d   :  { %6383 = vst [vmem:[%s13035_s3 + $0x130] sm:$0xff] %v6191_v42  ;;  %v10000_v42 = vadd.f32 %v9501_v21, %v9499_v48  ;;  %v10009_v48 = vpop.f32.mrf.mxu0  ;;  %v10011_v21 = vpop.f32.mrf.mxu1 }
 0x68e   :  { %6384 = vst [vmem:[%s13035_s3 + $0x138] sm:$0xff] %v6192_v59  ;;  %v3713_v59 = vsub.f32 1.5, %v3712_v17 }
 0x68f   :  { %13734 = vst [vmem:[#allocation164_spill] sm:$0xff] %v10000_v42  ;;  %v2011_v41 = vadd.f32 %v10000_v42, %v9996_v19  ;;  %v10063_v19 = vpop.xlane.xlu2 %1997 }
 0x690   :  { %2944 = vadd.xlane.f32.xlu2 %v2943_v43  ;;  %v3714_v10 = vmul.f32 %v7390_v3, %v3713_v59  ;;  %v1519_v39 = vpop.f32.mrf.mxu2  ;;  %v1768_v43 = vpop.f32.mrf.mxu3  ;;  %v3216_v59 = vld [vmem:[%s13034_s2 + $0x138] sm:$0xff] }
 0x691   :  { %v10026_v26 = vadd.f32 %v1768_v43, %v1519_v39 }
 0x692   :  { %v3718_v52 = vsel %vm3717_vm5, %v7390_v3, %v3714_v10  ;;  %v13738_v10 = vld [vmem:[#allocation7_spill] sm:$0xff] }
 0x693   :  { %v10017_v46 = vmul.f32 %v3718_v52, %v3211_v9  ;;  %13736 = vst [vmem:[#allocation166_spill] sm:$0xff] %v10026_v26  ;;  %v3110_v38 = vmul.f32 0.0051020407, %v13738_v10 }
 0x694   :  { %5785 = vperm.xlu0 %7246, %v4927_v18   ;;  %v3761_v18 = vmul.f32 %v7392_v13, %v3760_v61  ;;  %v2032_v61 = vadd.f32 %v9843_v16, %v9838_v45  ;;  %v13744_v16 = vld [vmem:[#allocation27_spill] sm:$0xff] }
 0x695   :  { %v4459_v37 = vmul.f32 %v10017_v46, %v9348_v28  ;;  %v1270_v5 = vpop.f32.mrf.mxu1 }
 0x696   :  { %v3762_v2 = vmul.f32 0.5, %v3761_v18  ;;  %v13741_v18 = vld [vmem:[#allocation105_spill] sm:$0xff] }
 0x698   :  { %v3763_v11 = vsub.f32 1.5, %v3762_v2 }
 0x69a   :  { %v3764_v17 = vmul.f32 %v7392_v13, %v3763_v11 }
 0x69d   :  { %2012 = vadd.xlane.f32.xlu1 %v2011_v41  ;;  %v10031_v41 = vpop.xlane.xlu1 %2003 }
 0x69e   :  { %13737 = vst [vmem:[#allocation167_spill] sm:$0xff] %v10031_v41 }
 0x6a5   :  { %v10039_v9 = vpop.permute.xlu1 %5128 }
 0x6a8   :  { %5168 = vperm.xlu2 %7269, %v9735_v30   ;;  %v1021_v30 = vpop.f32.mrf.mxu0 }
 0x6a9   :  { %v10024_v3 = vadd.f32 %v1270_v5, %v1021_v30  ;;  %v10042_v30 = vmul.f32 0.0051020407, %v9397_v4  ;;  %v13739_v5 = vld [vmem:[#allocation77_spill] sm:$0xff] }
 0x6ab   :  { %13735 = vst [vmem:[#allocation165_spill] sm:$0xff] %v10024_v3  ;;  %v2044_v28 = vadd.f32 %v10026_v26, %v10024_v3  ;;  %v13763_v3 = vld [vmem:[#allocation66_spill] sm:$0xff] }
 0x6ac   :  { %v3123_v26 = vmul.f32 0.0051020407, %v13763_v3 }
 0x6b0   :  { %4685 = vrot.lane.b32.xlu2 %v4459_v37, %s7591_s23  ;;  %v3302_v37 = vadd.f32 0.001, %v3110_v38 }
 0x6b1   :  { %7271 = vset.pattern.permute.xlu2 %v13573_v62 }
 0x6b2   :  { %7393 = vrsqrt.f32 %v3302_v37  ;;  %vm3665_vm10 = vweird.f32 %v3302_v37 }
 0x6b6   :  { %5143 = vperm.xlu1 %7262, %v9673_v56   ;;  %v3768_v56 = vsel %vm3767_vm8, %v7392_v13, %v3764_v17  ;;  %v2310_v13 = vsub.f32 %v13740_v22, %v10042_v30  ;;  %v13743_v22 = vld [vmem:[#allocation85_spill] sm:$0xff] }
 0x6b7   :  { %v10037_v52 = vmul.f32 %v3768_v56, %v3216_v59 }
 0x6b8   :  { %v2502_v4 = vsel %vm2216_vm1, %v2310_v13, 0.0  ;;  %v7394_v2 = vpop.eup %7393 }
 0x6b9   :  { %v4464_v39 = vmul.f32 %v10037_v52, %v13739_v5  ;;  %v2694_v17 = vmul.f32 %v2502_v4, %v2502_v4  ;;  %v3660_v56 = vmul.f32 %v7394_v2, %v3302_v37  ;;  %v10072_v4 = vmul.f32 0.0051020407, %v9453_v12  ;;  %v10085_v12 = vld [vmem:[%s13034_s2 + $0xe8] sm:$0xff] }
 0x6ba   :  { %vm3666_vm9 = vweird.f32 %v7394_v2 }
 0x6bb   :  { %v3661_v38 = vmul.f32 %v7394_v2, %v3660_v56  ;;  %13745 = vst [vmem:[#allocation7_spill] sm:$0xff] %v10072_v4  ;;  %vm3667_vm11 = vmor %vm3665_vm10, %vm3666_vm9 }
 0x6bd   :  { %v3662_v5 = vmul.f32 0.5, %v3661_v38 }
 0x6be   :  { %2045 = vadd.xlane.f32.xlu0 %v2044_v28  ;;  %7264 = vset.pattern.permute.xlu1 %v13573_v62  ;;  %v2309_v28 = vsub.f32 %v13741_v18, %v10042_v30  ;;  %v5506_v18 = vmul.f32 %v13743_v22, %v13744_v16  ;;  %v10074_v16 = vpop.xlane.xlu0 %2036 }
 0x6c0   :  { %v2693_v11 = vmul.f32 %v2309_v28, %v2309_v28  ;;  %v3663_v28 = vsub.f32 1.5, %v3662_v5 }
 0x6c2   :  { %v2931_v10 = vadd.f32 %v2694_v17, %v2693_v11  ;;  %v3664_v11 = vmul.f32 %v7394_v2, %v3663_v28  ;;  %v13747_v17 = vld [vmem:[#allocation150_spill] sm:$0xff]  ;;  %v7218_v28 = vld [vmem:[%s13033_s1 + $0x264] sm:$0xf0] }
 0x6c3   :  { %v2331_v56 = vsub.f32 %v13747_v17, %v10072_v4 }
 0x6c5   :  { %v10049_v43 = vpop.xlane.xlu1 %2923  ;;  %v2715_v5 = vmul.f32 %v2331_v56, %v2331_v56  ;;  %v6849_v56 = vld [vmem:[%s13033_s1 + $0x268] sm:$0xf0] }
 0x6c8   :  { %v10094_v38 = vpop.permute.xlu0 %4689 }
 0x6c9   :  { %13749 = vst [vmem:[#allocation85_spill] sm:$0xff] %v10094_v38 }
 0x6d2   :  { %4695 = vrot.lane.b32.xlu0 %v4464_v39, %s7591_s23  ;;  %v13742_v39 = vld [vmem:[#allocation26_spill] sm:$0xff] }
 0x6d3   :  { %v5505_v45 = vmul.f32 %v13743_v22, %v13742_v39  ;;  %v10078_v22 = vpop.permute.xlu2 %5715 }
 0x6d4   :  { %13746 = vst [vmem:[#allocation77_spill] sm:$0xff] %v10078_v22 }
 0x6d9   :  { %2033 = vadd.xlane.f32.xlu2 %v2032_v61 }
 0x6dd   :  { %v10057_v59 = vpop.permute.xlu1 %4669 }
 0x6e0   :  { %2932 = vadd.xlane.f32.xlu1 %v2931_v10 }
 0x6e5   :  { %v5736_v13 = vpop.permute.xlu1 %5735 }
 0x6e6   :  { %v6177_v42 = vadd.f32 %v5736_v13, %v5505_v45  ;;  %v6178_v61 = vadd.f32 %v5736_v13, %v5506_v18  ;;  %v2332_v45 = vsub.f32 %v9247_v1, %v10072_v4  ;;  %v3668_v18 = vsel %vm3667_vm11, %v7394_v2, %v3664_v11  ;;  %v13750_v2 = vld [vmem:[#allocation111_spill] sm:$0xff]  ;;  %v7217_v11 = vld [vmem:[%s13033_s1 + $0x264] sm:$0xf] }
 0x6e7   :  { %v10090_v37 = vmul.f32 %v3668_v18, %v10085_v12 }
 0x6e8   :  { %6369 = vst [vmem:[%s13035_s3 + $0xc0] sm:$0xff] %v6177_v42  ;;  %v4925_v42 = vsub.f32 %v9566_v47, %v9716_v32  ;;  %v2524_v10 = vsel %vm2216_vm1, %v2332_v45, 0.0  ;;  %v10096_v32 = vpop.xlane.xlu2 %2917  ;;  %v1023_v45 = vpop.f32.mrf.mxu0 }
 0x6e9   :  { %6370 = vst [vmem:[%s13035_s3 + $0xc8] sm:$0xff] %v6178_v61  ;;  %v2716_v47 = vmul.f32 %v2524_v10, %v2524_v10  ;;  %v4454_v39 = vmul.f32 %v10090_v37, %v13750_v2  ;;  %v6847_v61 = vld [vmem:[%s13033_s1 + $0x260] sm:$0xf]  ;;  %v6852_v2 = vor.u32 %v7217_v11, %v6849_v56  ;;  %v13757_v56 = vld [vmem:[#allocation47_spill] sm:$0xff] }
 0x6ea   :  { %13748 = vst [vmem:[#allocation26_spill] sm:$0xff] %v10090_v37  ;;  %v6848_v18 = vor.u32 %v7218_v28, %v6847_v61  ;;  %v7531_v61 = vld [vmem:[%s13034_s2 + $0x78] sm:$0xff]  ;;  %v7532_v37 = vld [vmem:[%s13034_s2 + $0xc8] sm:$0xff] }
 0x6eb   :  { %v2964_v13 = vadd.f32 %v2716_v47, %v2715_v5  ;;  %v1521_v5 = vpop.f32.mrf.mxu2  ;;  %v1770_v47 = vpop.f32.mrf.mxu3  ;;  %7107 = vmatmul.msk.bf16.gmra.mxu3 %vm687_vm0, %v6852_v2  ;;  %7059 = vmatmul.msk.bf16.gmra.mxu1 %vm687_vm0, %v6852_v2  ;;  %v13754_v28 = vld [vmem:[#allocation137_spill] sm:$0xff]  ;;  %v10133_v2 = vmul.f32 0.0051020407, %v9921_v24 }
 0x6ec   :  { %1528 = vmatmul.bf16.gmra.mxu2 %v6848_v18  ;;  %1030 = vmatmul.bf16.gmra.mxu0 %v6848_v18  ;;  %v5526_v18 = vmul.f32 %v9868_v8, %v13757_v56  ;;  %v7220_v24 = vld [vmem:[%s13033_s1 + $0x274] sm:$0xf0] }
 0x6f1   :  { %5775 = vperm.xlu2 %7271, %v4925_v42   ;;  %v1272_v42 = vpop.f32.mrf.mxu1 }
 0x6f2   :  { %v10114_v10 = vadd.f32 %v1272_v42, %v1023_v45  ;;  %v4920_v45 = vsub.f32 %v7531_v61, %v13754_v28  ;;  %v10126_v42 = vpop.permute.xlu2 %5123  ;;  %v7219_v28 = vld [vmem:[%s13033_s1 + $0x274] sm:$0xf] }
 0x6f3   :  { %v10118_v1 = vpop.xlane.xlu0 %2956  ;;  %13755 = vst [vmem:[#allocation137_spill] sm:$0xff] %v10126_v42  ;;  %v1773_v4 = vpop.f32.mrf.mxu3  ;;  %v3315_v42 = vadd.f32 0.001, %v3123_v26  ;;  %v3214_v26 = vld [vmem:[%s13034_s2 + $0x128] sm:$0xff] }
 0x6f4   :  { %13751 = vst [vmem:[#allocation27_spill] sm:$0xff] %v10114_v10 }
 0x6f5   :  { %13753 = vst [vmem:[#allocation168_spill] sm:$0xff] %v10118_v1  ;;  %vm3795_vm2 = vweird.f32 %v3315_v42 }
 0x6f9   :  { %4675 = vrot.lane.b32.xlu1 %v4454_v39, %s7591_s23  ;;  %7273 = vset.pattern.permute.xlu2 %v13567_v57  ;;  %v10116_v39 = vadd.f32 %v1770_v47, %v1521_v5 }
 0x6fa   :  { %v4668_v61 = vpop.permute.xlu2 %4667 }
 0x6fb   :  { %13752 = vst [vmem:[#allocation111_spill] sm:$0xff] %v10116_v39  ;;  %v4930_v38 = vsub.f32 %v7532_v37, %v4668_v61 }
 0x6fc   :  { %2965 = vadd.xlane.f32.xlu0 %v2964_v13  ;;  %v13756_v13 = vld [vmem:[#allocation46_spill] sm:$0xff] }
 0x6fd   :  { %v5525_v11 = vmul.f32 %v9868_v8, %v13756_v13  ;;  %13758 = vst [vmem:[#allocation46_spill] sm:$0xff] %v10133_v2  ;;  %v6855_v8 = vld [vmem:[%s13033_s1 + $0x270] sm:$0xf]  ;;  %v1026_v13 = vpop.f32.mrf.mxu0 }
 0x6fe   :  { %v6856_v56 = vor.u32 %v7220_v24, %v6855_v8  ;;  %v13761_v8 = vld [vmem:[#allocation142_spill] sm:$0xff] }
 0x6ff   :  { %v2323_v24 = vsub.f32 %v13761_v8, %v10133_v2  ;;  %v13764_v8 = vld [vmem:[#allocation28_spill] sm:$0xff] }
 0x700   :  { %1533 = vmatmul.bf16.gmra.mxu2 %v6856_v56  ;;  %1035 = vmatmul.bf16.gmra.mxu0 %v6856_v56 }
 0x701   :  { %5750 = vperm.xlu1 %7264, %v4920_v45   ;;  %v3118_v45 = vmul.f32 0.0051020407, %v9706_v35  ;;  %v1524_v35 = vpop.f32.mrf.mxu2  ;;  %v2707_v37 = vmul.f32 %v2323_v24, %v2323_v24 }
 0x705   :  { %v1028_v24 = vpop.f32.mrf.mxu0 }
 0x706   :  { %v5786_v5 = vpop.permute.xlu0 %5785 }
 0x707   :  { %v6197_v47 = vadd.f32 %v5786_v5, %v5525_v11  ;;  %v6198_v17 = vadd.f32 %v5786_v5, %v5526_v18  ;;  %v1275_v11 = vpop.f32.mrf.mxu1  ;;  %v13759_v18 = vld [vmem:[#allocation143_spill] sm:$0xff] }
 0x708   :  { %v2324_v5 = vsub.f32 %v13759_v18, %v10133_v2  ;;  %v3310_v18 = vadd.f32 0.001, %v3118_v45  ;;  %v13765_v45 = vld [vmem:[#allocation29_spill] sm:$0xff] }
 0x709   :  { %6389 = vst [vmem:[%s13035_s3 + $0x160] sm:$0xff] %v6197_v47  ;;  %7266 = vset.pattern.permute.xlu1 %v13567_v57  ;;  %v10157_v47 = vadd.f32 %v1275_v11, %v1026_v13  ;;  %v10166_v13 = vadd.f32 %v1773_v4, %v1524_v35 }
 0x70a   :  { %6390 = vst [vmem:[%s13035_s3 + $0x168] sm:$0xff] %v6198_v17  ;;  %v6857_v17 = vld [vmem:[%s13033_s1 + $0x278] sm:$0xf0]  ;;  %7395 = vrsqrt.f32 %v3310_v18  ;;  %vm3745_vm13 = vweird.f32 %v3310_v18 }
 0x70b   :  { %13760 = vst [vmem:[#allocation47_spill] sm:$0xff] %v10157_v47  ;;  %v6860_v22 = vor.u32 %v7219_v28, %v6857_v17  ;;  %v2516_v28 = vsel %vm2216_vm1, %v2324_v5, 0.0  ;;  %7397 = vrsqrt.f32 %v3315_v42 }
 0x70c   :  { %13762 = vst [vmem:[#allocation169_spill] sm:$0xff] %v10166_v13  ;;  %v2708_v61 = vmul.f32 %v2516_v28, %v2516_v28 }
 0x70d   :  { %7108 = vmatmul.msk.bf16.gmra.mxu3 %vm687_vm0, %v6860_v22  ;;  %7060 = vmatmul.msk.bf16.gmra.mxu1 %vm687_vm0, %v6860_v22 }
 0x70e   :  { %v2952_v11 = vadd.f32 %v2708_v61, %v2707_v37  ;;  %v1526_v37 = vpop.f32.mrf.mxu2  ;;  %v1775_v61 = vpop.f32.mrf.mxu3 }
 0x70f   :  { %v1277_v28 = vpop.f32.mrf.mxu1 }
 0x710   :  { %5800 = vperm.xlu0 %7246, %v4930_v38   ;;  %v7396_v56 = vpop.eup %7395  ;;  %v2020_v38 = vadd.f32 %v13765_v45, %v13764_v8 }
 0x711   :  { %v3740_v17 = vmul.f32 %v7396_v56, %v3310_v18  ;;  %vm3746_vm12 = vweird.f32 %v7396_v56  ;;  %v7398_v5 = vpop.eup %7397 }
 0x712   :  { %vm3747_vm14 = vmor %vm3745_vm13, %vm3746_vm12  ;;  %vm3796_vm15 = vweird.f32 %v7398_v5 }
 0x713   :  { %v3741_v22 = vmul.f32 %v7396_v56, %v3740_v17  ;;  %v10177_v17 = vadd.f32 %v1277_v28, %v1028_v24  ;;  %vm3797_vm3 = vmor %vm3795_vm2, %vm3796_vm15  ;;  %v3219_v28 = vld [vmem:[%s13034_s2 + $0x150] sm:$0xff] }
 0x715   :  { %v3742_v1 = vmul.f32 0.5, %v3741_v22  ;;  %13766 = vst [vmem:[#allocation66_spill] sm:$0xff] %v10177_v17 }
 0x717   :  { %v3743_v4 = vsub.f32 1.5, %v3742_v1  ;;  %v10179_v1 = vadd.f32 %v1775_v61, %v1526_v37  ;;  %v13769_v61 = vld [vmem:[#allocation153_spill] sm:$0xff] }
 0x719   :  { %v3744_v35 = vmul.f32 %v7396_v56, %v3743_v4  ;;  %13767 = vst [vmem:[#allocation170_spill] sm:$0xff] %v10179_v1  ;;  %v2053_v18 = vadd.f32 %v10179_v1, %v10177_v17  ;;  %v13768_v4 = vld [vmem:[#allocation22_spill] sm:$0xff] }
 0x71a   :  { %2953 = vadd.xlane.f32.xlu2 %v2952_v11  ;;  %v3790_v11 = vmul.f32 %v7398_v5, %v3315_v42  ;;  %v13771_v42 = vld [vmem:[#allocation141_spill] sm:$0xff] }
 0x71b   :  { %v3748_v3 = vsel %vm3747_vm14, %v7396_v56, %v3744_v35 }
 0x71c   :  { %v10181_v22 = vmul.f32 %v3748_v3, %v3214_v26  ;;  %v3113_v3 = vmul.f32 0.0051020407, %v13771_v42 }
 0x71e   :  { %v4462_v2 = vmul.f32 %v10181_v22, %v13768_v4 }
 0x72b   :  { %2021 = vadd.xlane.f32.xlu1 %v2020_v38  ;;  %v3791_v38 = vmul.f32 %v7398_v5, %v3790_v11 }
 0x72d   :  { %v3792_v56 = vmul.f32 0.5, %v3791_v38  ;;  %v3305_v38 = vadd.f32 0.001, %v3113_v3 }
 0x72f   :  { %7399 = vrsqrt.f32 %v3305_v38  ;;  %vm3695_vm5 = vweird.f32 %v3305_v38 }
 0x731   :  { %v10230_v42 = vpop.xlane.xlu0 %2045 }
 0x732   :  { %5183 = vperm.xlu2 %7273, %v9896_v23   ;;  %v3793_v23 = vsub.f32 1.5, %v3792_v56  ;;  %13780 = vst [vmem:[#allocation171_spill] sm:$0xff] %v10230_v42 }
 0x734   :  { %v3794_v35 = vmul.f32 %v7398_v5, %v3793_v23  ;;  %v13776_v23 = vld [vmem:[#allocation9_spill] sm:$0xff] }
 0x736   :  { %v3798_v24 = vsel %vm3797_vm3, %v7398_v5, %v3794_v35  ;;  %v10208_v5 = vadd.f32 %v10013_v54, %v10015_v50 }
 0x737   :  { %v10193_v37 = vmul.f32 %v3798_v24, %v3219_v28  ;;  %v10219_v24 = vpop.xlane.xlu2 %2006  ;;  %v7400_v28 = vpop.eup %7399 }
 0x738   :  { %13773 = vst [vmem:[#allocation141_spill] sm:$0xff] %v10208_v5  ;;  %vm3696_vm4 = vweird.f32 %v7400_v28 }
 0x739   :  { %v4467_v11 = vmul.f32 %v10193_v37, %v13769_v61  ;;  %v13778_v61 = vld [vmem:[#allocation10_spill] sm:$0xff]  ;;  %vm3697_vm6 = vmor %vm3695_vm5, %vm3696_vm4 }
 0x73a   :  { %2054 = vadd.xlane.f32.xlu0 %v2053_v18  ;;  %4691 = vrot.lane.b32.xlu2 %v4462_v2, %s7591_s23  ;;  %v10199_v2 = vpop.xlane.xlu1 %2012  ;;  %v13774_v18 = vld [vmem:[#allocation156_spill] sm:$0xff] }
 0x73b   :  { %7275 = vset.pattern.permute.xlu2 %v13573_v62  ;;  %13770 = vst [vmem:[#allocation22_spill] sm:$0xff] %v10199_v2  ;;  %v10213_v4 = vmul.f32 0.0051020407, %v13774_v18 }
 0x73d   :  { %13775 = vst [vmem:[#allocation156_spill] sm:$0xff] %v10213_v4  ;;  %v2316_v35 = vsub.f32 %v13776_v23, %v10213_v4  ;;  %v3690_v23 = vmul.f32 %v7400_v28, %v3305_v38 }
 0x73f   :  { %v2508_v50 = vsel %vm2216_vm1, %v2316_v35, 0.0  ;;  %v10234_v8 = vpop.permute.xlu2 %5730  ;;  %v3691_v45 = vmul.f32 %v7400_v28, %v3690_v23  ;;  %v13783_v35 = vld [vmem:[#allocation70_spill] sm:$0xff] }
 0x740   :  { %v2700_v18 = vmul.f32 %v2508_v50, %v2508_v50  ;;  %13782 = vst [vmem:[#allocation172_spill] sm:$0xff] %v10234_v8  ;;  %v13785_v50 = vld [vmem:[#allocation146_spill] sm:$0xff] }
 0x741   :  { %v3692_v1 = vmul.f32 0.5, %v3691_v45 }
 0x742   :  { %v10210_v26 = vpop.permute.xlu1 %5143 }
 0x744   :  { %5158 = vperm.xlu1 %7266, %v9850_v53   ;;  %v10204_v53 = vadd.f32 %v10011_v21, %v10009_v48  ;;  %v13777_v21 = vld [vmem:[#allocation8_spill] sm:$0xff]  ;;  %v10246_v42 = vpop.permute.xlu0 %4695 }
 0x745   :  { %v2315_v54 = vsub.f32 %v13777_v21, %v10213_v4  ;;  %v13786_v4 = vld [vmem:[#allocation33_spill] sm:$0xff] }
 0x746   :  { %13772 = vst [vmem:[#allocation153_spill] sm:$0xff] %v10204_v53  ;;  %v2041_v56 = vadd.f32 %v10208_v5, %v10204_v53  ;;  %v13781_v53 = vld [vmem:[#allocation155_spill] sm:$0xff] }
 0x747   :  { %v2699_v3 = vmul.f32 %v2315_v54, %v2315_v54  ;;  %v13784_v54 = vld [vmem:[#allocation32_spill] sm:$0xff] }
 0x748   :  { %v5511_v2 = vmul.f32 %v13785_v50, %v13784_v54  ;;  %13787 = vst [vmem:[#allocation32_spill] sm:$0xff] %v10246_v42 }
 0x749   :  { %v2940_v21 = vadd.f32 %v2700_v18, %v2699_v3  ;;  %v10248_v3 = vpop.xlane.xlu2 %2926 }
 0x74a   :  { %13788 = vst [vmem:[#allocation146_spill] sm:$0xff] %v10248_v3 }
 0x74c   :  { %7268 = vset.pattern.permute.xlu1 %v13573_v62 }
 0x74e   :  { %4701 = vrot.lane.b32.xlu0 %v4467_v11, %s7591_s23  ;;  %v10228_v11 = vmul.f32 0.0051020407, %v13778_v61 }
 0x750   :  { %13779 = vst [vmem:[#allocation10_spill] sm:$0xff] %v10228_v11  ;;  %v2338_v5 = vsub.f32 %v13781_v53, %v10228_v11  ;;  %v2337_v17 = vsub.f32 %v13783_v35, %v10228_v11  ;;  %v5512_v53 = vmul.f32 %v13785_v50, %v13786_v4  ;;  %v6865_v50 = vld [vmem:[%s13033_s1 + $0x288] sm:$0xf0] }
 0x752   :  { %v2530_v61 = vsel %vm2216_vm1, %v2338_v5, 0.0  ;;  %v2721_v8 = vmul.f32 %v2337_v17, %v2337_v17  ;;  %v4928_v17 = vsub.f32 %v9740_v55, %v9894_v29  ;;  %v7222_v55 = vld [vmem:[%s13033_s1 + $0x284] sm:$0xf0]  ;;  %v7221_v29 = vld [vmem:[%s13033_s1 + $0x284] sm:$0xf] }
 0x753   :  { %v10221_v48 = vpop.xlane.xlu1 %2932  ;;  %v2722_v41 = vmul.f32 %v2530_v61, %v2530_v61 }
 0x755   :  { %v2973_v45 = vadd.f32 %v2722_v41, %v2721_v8  ;;  %v10265_v41 = vld [vmem:[%s13034_s2 + $0x100] sm:$0xff] }
 0x756   :  { %v6863_v8 = vld [vmem:[%s13033_s1 + $0x280] sm:$0xf] }
 0x757   :  { %v6864_v54 = vor.u32 %v7222_v55, %v6863_v8 }
 0x759   :  { %1538 = vmatmul.bf16.gmra.mxu2 %v6864_v54  ;;  %1040 = vmatmul.bf16.gmra.mxu0 %v6864_v54 }
 0x763   :  { %2042 = vadd.xlane.f32.xlu2 %v2041_v56 }
 0x76b   :  { %v10236_v56 = vpop.permute.xlu1 %4675 }
 0x76e   :  { %2941 = vadd.xlane.f32.xlu1 %v2940_v21  ;;  %v3693_v21 = vsub.f32 1.5, %v3692_v1  ;;  %v10260_v1 = vpop.permute.xlu2 %5138 }
 0x76f   :  { %v10258_v4 = vpop.xlane.xlu0 %2965  ;;  %13789 = vst [vmem:[#allocation33_spill] sm:$0xff] %v10260_v1  ;;  %v1529_v42 = vpop.f32.mrf.mxu2 }
 0x770   :  { %v3694_v5 = vmul.f32 %v7400_v28, %v3693_v21  ;;  %v6868_v21 = vor.u32 %v7221_v29, %v6865_v50 }
 0x772   :  { %7109 = vmatmul.msk.bf16.gmra.mxu3 %vm687_vm0, %v6868_v21  ;;  %7061 = vmatmul.msk.bf16.gmra.mxu1 %vm687_vm0, %v6868_v21  ;;  %v13797_v21 = vld [vmem:[#allocation92_spill] sm:$0xff] }
 0x773   :  { %v5751_v23 = vpop.permute.xlu1 %5750 }
 0x774   :  { %v6183_v18 = vadd.f32 %v5751_v23, %v5511_v2  ;;  %v6184_v35 = vadd.f32 %v5751_v23, %v5512_v53  ;;  %v3698_v2 = vsel %vm3697_vm6, %v7400_v28, %v3694_v5  ;;  %v13790_v53 = vld [vmem:[#allocation52_spill] sm:$0xff]  ;;  %v13791_v28 = vld [vmem:[#allocation53_spill] sm:$0xff]  ;;  %v1280_v5 = vpop.f32.mrf.mxu1 }
 0x775   :  { %v5531_v38 = vmul.f32 %v10039_v9, %v13790_v53  ;;  %v10281_v61 = vmul.f32 %v3698_v2, %v10265_v41  ;;  %v13794_v2 = vld [vmem:[#allocation116_spill] sm:$0xff] }
 0x776   :  { %6375 = vst [vmem:[%s13035_s3 + $0xf0] sm:$0xff] %v6183_v18  ;;  %v1031_v18 = vpop.f32.mrf.mxu0  ;;  %v4674_v29 = vpop.permute.xlu2 %4673 }
 0x777   :  { %6376 = vst [vmem:[%s13035_s3 + $0xf8] sm:$0xff] %v6184_v35  ;;  %v5532_v35 = vmul.f32 %v10039_v9, %v13791_v28  ;;  %v10286_v53 = vadd.f32 %v1280_v5, %v1031_v18  ;;  %v1778_v9 = vpop.f32.mrf.mxu3  ;;  %v4457_v8 = vmul.f32 %v10281_v61, %v13794_v2  ;;  %v7534_v18 = vld [vmem:[%s13034_s2 + $0x90] sm:$0xff]  ;;  %v10314_v5 = vmul.f32 0.0051020407, %v10063_v19  ;;  %v13800_v2 = vld [vmem:[#allocation147_spill] sm:$0xff] }
 0x778   :  { %2974 = vadd.xlane.f32.xlu0 %v2973_v45  ;;  %13792 = vst [vmem:[#allocation52_spill] sm:$0xff] %v10281_v61  ;;  %v10295_v55 = vadd.f32 %v1778_v9, %v1529_v42  ;;  %v1531_v42 = vpop.f32.mrf.mxu2  ;;  %v3121_v9 = vmul.f32 0.0051020407, %v9883_v25 }
 0x779   :  { %13793 = vst [vmem:[#allocation53_spill] sm:$0xff] %v10286_v53 }
 0x77a   :  { %13795 = vst [vmem:[#allocation116_spill] sm:$0xff] %v10295_v55 }
 0x77b   :  { %5790 = vperm.xlu2 %7275, %v4928_v17   ;;  %13799 = vst [vmem:[#allocation174_spill] sm:$0xff] %v10314_v5 }
 0x77c   :  { %v1282_v54 = vpop.f32.mrf.mxu1 }
 0x782   :  { %v5801_v23 = vpop.permute.xlu0 %5800 }
 0x783   :  { %v6203_v45 = vadd.f32 %v5801_v23, %v5531_v38  ;;  %v6204_v17 = vadd.f32 %v5801_v23, %v5532_v35  ;;  %7277 = vset.pattern.permute.xlu2 %v13567_v57  ;;  %v7533_v38 = vld [vmem:[%s13034_s2 + $0xe0] sm:$0xff]  ;;  %v1033_v35 = vpop.f32.mrf.mxu0  ;;  %v1780_v23 = vpop.f32.mrf.mxu3 }
 0x784   :  { %v4933_v28 = vsub.f32 %v7533_v38, %v4674_v29  ;;  %v10305_v50 = vadd.f32 %v1282_v54, %v1033_v35  ;;  %v13801_v29 = vld [vmem:[#allocation62_spill] sm:$0xff]  ;;  %v13802_v54 = vld [vmem:[#allocation161_spill] sm:$0xff] }
 0x785   :  { %6395 = vst [vmem:[%s13035_s3 + $0x190] sm:$0xff] %v6203_v45  ;;  %v4923_v45 = vsub.f32 %v7534_v18, %v13797_v21  ;;  %v2329_v38 = vsub.f32 %v13801_v29, %v10314_v5  ;;  %v1534_v29 = vpop.f32.mrf.mxu2 }
 0x786   :  { %6396 = vst [vmem:[%s13035_s3 + $0x198] sm:$0xff] %v6204_v17  ;;  %v10311_v17 = vadd.f32 %v1780_v23, %v1531_v42  ;;  %v3126_v42 = vmul.f32 0.0051020407, %v13802_v54 }
 0x787   :  { %4681 = vrot.lane.b32.xlu1 %v4457_v8, %s7591_s23  ;;  %13796 = vst [vmem:[#allocation173_spill] sm:$0xff] %v10305_v50  ;;  %v2330_v8 = vsub.f32 %v13800_v2, %v10314_v5  ;;  %v2713_v23 = vmul.f32 %v2329_v38, %v2329_v38 }
 0x788   :  { %13798 = vst [vmem:[#allocation92_spill] sm:$0xff] %v10311_v17  ;;  %v3318_v18 = vadd.f32 0.001, %v3126_v42  ;;  %v10333_v42 = vadd.f32 %v9803_v49, %v9801_v20  ;;  %v3217_v20 = vld [vmem:[%s13034_s2 + $0x140] sm:$0xff] }
 0x789   :  { %v2522_v35 = vsel %vm2216_vm1, %v2330_v8, 0.0 }
 0x78a   :  { %v2714_v19 = vmul.f32 %v2522_v35, %v2522_v35  ;;  %v1285_v11 = vpop.f32.mrf.mxu1  ;;  %13805 = vst [vmem:[#allocation176_spill] sm:$0xff] %v10333_v42  ;;  %vm3825_vm11 = vweird.f32 %v3318_v18 }
 0x78b   :  { %v1036_v61 = vpop.f32.mrf.mxu0 }
 0x78c   :  { %5815 = vperm.xlu0 %7246, %v4933_v28   ;;  %v3313_v28 = vadd.f32 0.001, %v3121_v9  ;;  %v2961_v21 = vadd.f32 %v2714_v19, %v2713_v23  ;;  %v10325_v3 = vadd.f32 %v1285_v11, %v1036_v61  ;;  %v10337_v23 = vadd.f32 %v9828_v34, %v9826_v36 }
 0x78e   :  { %7401 = vrsqrt.f32 %v3313_v28  ;;  %13803 = vst [vmem:[#allocation161_spill] sm:$0xff] %v10325_v3  ;;  %vm3775_vm8 = vweird.f32 %v3313_v28 }
 0x78f   :  { %5765 = vperm.xlu1 %7268, %v4923_v45   ;;  %7403 = vrsqrt.f32 %v3318_v18  ;;  %13806 = vst [vmem:[#allocation177_spill] sm:$0xff] %v10337_v23 }
 0x790   :  { %v1783_v9 = vpop.f32.mrf.mxu3 }
 0x791   :  { %v10327_v8 = vadd.f32 %v1783_v9, %v1534_v29  ;;  %v3222_v29 = vld [vmem:[%s13034_s2 + $0x168] sm:$0xff] }
 0x793   :  { %13804 = vst [vmem:[#allocation175_spill] sm:$0xff] %v10327_v8  ;;  %v2062_v35 = vadd.f32 %v10327_v8, %v10325_v3  ;;  %v1038_v8 = vpop.f32.mrf.mxu0 }
 0x794   :  { %v7402_v25 = vpop.eup %7401 }
 0x795   :  { %v3770_v45 = vmul.f32 %v7402_v25, %v3313_v28  ;;  %v7404_v2 = vpop.eup %7403  ;;  %vm3776_vm7 = vweird.f32 %v7402_v25  ;;  %v13807_v28 = vld [vmem:[#allocation122_spill] sm:$0xff] }
 0x796   :  { %v3820_v5 = vmul.f32 %v7404_v2, %v3318_v18  ;;  %vm3777_vm9 = vmor %vm3775_vm8, %vm3776_vm7  ;;  %vm3826_vm10 = vweird.f32 %v7404_v2 }
 0x797   :  { %7270 = vset.pattern.permute.xlu1 %v13567_v57  ;;  %v3771_v1 = vmul.f32 %v7402_v25, %v3770_v45  ;;  %vm3827_vm12 = vmor %vm3825_vm11, %vm3826_vm10 }
 0x798   :  { %v3821_v38 = vmul.f32 %v7404_v2, %v3820_v5 }
 0x799   :  { %v3772_v54 = vmul.f32 0.5, %v3771_v1  ;;  %v2029_v1 = vadd.f32 %v10337_v23, %v10333_v42 }
 0x79b   :  { %v3773_v19 = vsub.f32 1.5, %v3772_v54  ;;  %v10366_v54 = vmul.f32 0.0051020407, %v9762_v44  ;;  %v7223_v44 = vld [vmem:[%s13033_s1 + $0x294] sm:$0xf] }
 0x79d   :  { %v3774_v11 = vmul.f32 %v7402_v25, %v3773_v19 }
 0x79e   :  { %v10363_v18 = vpop.xlane.xlu1 %2021 }
 0x79f   :  { %v3778_v5 = vsel %vm3777_vm9, %v7402_v25, %v3774_v11  ;;  %13809 = vst [vmem:[#allocation122_spill] sm:$0xff] %v10363_v18 }
 0x7a0   :  { %v10345_v34 = vmul.f32 %v3778_v5, %v3217_v20  ;;  %v2050_v20 = vadd.f32 %v10166_v13, %v10157_v47 }
 0x7a2   :  { %v4465_v25 = vmul.f32 %v10345_v34, %v13807_v28 }
 0x7a4   :  { %2962 = vadd.xlane.f32.xlu2 %v2961_v21  ;;  %v3822_v21 = vmul.f32 0.5, %v3821_v38 }
 0x7a6   :  { %v3823_v61 = vsub.f32 1.5, %v3822_v21  ;;  %v13812_v21 = vld [vmem:[#allocation158_spill] sm:$0xff] }
 0x7a7   :  { %v2344_v11 = vsub.f32 %v13812_v21, %v10366_v54 }
 0x7a8   :  { %v3824_v36 = vmul.f32 %v7404_v2, %v3823_v61  ;;  %v7224_v61 = vld [vmem:[%s13033_s1 + $0x294] sm:$0xf0] }
 0x7a9   :  { %v2536_v21 = vsel %vm2216_vm1, %v2344_v11, 0.0  ;;  %v13819_v11 = vld [vmem:[#allocation128_spill] sm:$0xff] }
 0x7aa   :  { %v3828_v49 = vsel %vm3827_vm12, %v7404_v2, %v3824_v36  ;;  %v10361_v2 = vpop.xlane.xlu2 %2015 }
 0x7ab   :  { %v10353_v45 = vmul.f32 %v3828_v49, %v3222_v29  ;;  %v6873_v49 = vld [vmem:[%s13033_s1 + $0x298] sm:$0xf0] }
 0x7ac   :  { %v13814_v29 = vld [vmem:[#allocation133_spill] sm:$0xff] }
 0x7ad   :  { %v10368_v38 = vpop.xlane.xlu0 %2054  ;;  %v2343_v28 = vsub.f32 %v13814_v29, %v10366_v54  ;;  %v2728_v29 = vmul.f32 %v2536_v21, %v2536_v21 }
 0x7b6   :  { %2063 = vadd.xlane.f32.xlu0 %v2062_v35  ;;  %v13811_v35 = vld [vmem:[#allocation149_spill] sm:$0xff]  ;;  %v10384_v5 = vpop.permute.xlu1 %5158 }
 0x7b7   :  { %v3116_v19 = vmul.f32 0.0051020407, %v13811_v35 }
 0x7b9   :  { %2030 = vadd.xlane.f32.xlu1 %v2029_v1  ;;  %v10373_v1 = vpop.permute.xlu2 %5745 }
 0x7ba   :  { %13813 = vst [vmem:[#allocation149_spill] sm:$0xff] %v10373_v1 }
 0x7bc   :  { %5198 = vperm.xlu2 %7277, %v10037_v52   ;;  %v13808_v52 = vld [vmem:[#allocation4_spill] sm:$0xff] }
 0x7bd   :  { %v4470_v9 = vmul.f32 %v10353_v45, %v13808_v52  ;;  %13810 = vst [vmem:[#allocation4_spill] sm:$0xff] %v10366_v54  ;;  %v10393_v52 = vadd.f32 0.001, %v3116_v19  ;;  %v13817_v19 = vld [vmem:[#allocation129_spill] sm:$0xff] }
 0x7bf   :  { %7405 = vrsqrt.f32 %v10393_v52  ;;  %vm3725_vm14 = vweird.f32 %v10393_v52 }
 0x7c4   :  { %4697 = vrot.lane.b32.xlu2 %v4465_v25, %s7591_s23  ;;  %v6876_v25 = vor.u32 %v7223_v44, %v6873_v49  ;;  %v10407_v49 = vpop.xlane.xlu2 %2935 }
 0x7c5   :  { %7279 = vset.pattern.permute.xlu2 %v13573_v62  ;;  %13818 = vst [vmem:[#allocation178_spill] sm:$0xff] %v10407_v49  ;;  %v13824_v49 = vld [vmem:[#allocation39_spill] sm:$0xff] }
 0x7c6   :  { %7110 = vmatmul.msk.bf16.gmra.mxu3 %vm687_vm0, %v6876_v25  ;;  %7062 = vmatmul.msk.bf16.gmra.mxu1 %vm687_vm0, %v6876_v25  ;;  %v7406_v25 = vpop.eup %7405 }
 0x7c7   :  { %v3720_v42 = vmul.f32 %v7406_v25, %v10393_v52  ;;  %vm3726_vm13 = vweird.f32 %v7406_v25 }
 0x7c8   :  { %vm3727_vm15 = vmor %vm3725_vm14, %vm3726_vm13 }
 0x7c9   :  { %v3721_v13 = vmul.f32 %v7406_v25, %v3720_v42  ;;  %v1287_v42 = vpop.f32.mrf.mxu1 }
 0x7ca   :  { %4707 = vrot.lane.b32.xlu0 %v4470_v9, %s7591_s23  ;;  %v13815_v9 = vld [vmem:[#allocation121_spill] sm:$0xff] }
 0x7cb   :  { %v10396_v35 = vmul.f32 0.0051020407, %v13815_v9 }
 0x7cd   :  { %v2322_v44 = vsub.f32 %v13817_v19, %v10396_v35  ;;  %v10418_v19 = vpop.permute.xlu2 %5153 }
 0x7ce   :  { %13820 = vst [vmem:[#allocation179_spill] sm:$0xff] %v10418_v19  ;;  %v5518_v19 = vmul.f32 %v9805_v6, %v13824_v49 }
 0x7d2   :  { %5173 = vperm.xlu1 %7270, %v10017_v46   ;;  %v6871_v46 = vld [vmem:[%s13033_s1 + $0x290] sm:$0xf] }
 0x7d3   :  { %v6872_v36 = vor.u32 %v7224_v61, %v6871_v46  ;;  %v10402_v46 = vpop.permute.xlu0 %4701  ;;  %v2727_v61 = vmul.f32 %v2343_v28, %v2343_v28 }
 0x7d4   :  { %13816 = vst [vmem:[#allocation121_spill] sm:$0xff] %v10402_v46 }
 0x7d5   :  { %1543 = vmatmul.bf16.gmra.mxu2 %v6872_v36  ;;  %1045 = vmatmul.bf16.gmra.mxu0 %v6872_v36  ;;  %v2321_v36 = vsub.f32 %v13819_v11, %v10396_v35  ;;  %v2982_v1 = vadd.f32 %v2728_v29, %v2727_v61  ;;  %v13821_v11 = vld [vmem:[#allocation59_spill] sm:$0xff]  ;;  %v13822_v61 = vld [vmem:[#allocation60_spill] sm:$0xff] }
 0x7d6   :  { %v5537_v29 = vmul.f32 %v10210_v26, %v13821_v11  ;;  %v1536_v11 = vpop.f32.mrf.mxu2 }
 0x7d7   :  { %v2705_v21 = vmul.f32 %v2321_v36, %v2321_v36  ;;  %v3722_v36 = vmul.f32 0.5, %v3721_v13  ;;  %v1785_v13 = vpop.f32.mrf.mxu3 }
 0x7da   :  { %7272 = vset.pattern.permute.xlu1 %v13573_v62 }
 0x7e1   :  { %v10409_v9 = vpop.xlane.xlu1 %2941 }
 0x7eb   :  { %v10415_v28 = vpop.xlane.xlu0 %2974 }
 0x7ed   :  { %2051 = vadd.xlane.f32.xlu2 %v2050_v20  ;;  %v2514_v20 = vsel %vm2216_vm1, %v2322_v44, 0.0 }
 0x7ee   :  { %v2706_v46 = vmul.f32 %v2514_v20, %v2514_v20  ;;  %v13823_v20 = vld [vmem:[#allocation38_spill] sm:$0xff] }
 0x7ef   :  { %v5517_v3 = vmul.f32 %v9805_v6, %v13823_v20  ;;  %v3723_v6 = vsub.f32 1.5, %v3722_v36  ;;  %v1290_v36 = vpop.f32.mrf.mxu1 }
 0x7f0   :  { %v2949_v47 = vadd.f32 %v2706_v46, %v2705_v21  ;;  %v4680_v21 = vpop.permute.xlu2 %4679 }
 0x7f4   :  { %2983 = vadd.xlane.f32.xlu0 %v2982_v1  ;;  %v5538_v1 = vmul.f32 %v10210_v26, %v13822_v61 }
 0x7f9   :  { %v10420_v23 = vpop.permute.xlu1 %4681 }
 0x7fc   :  { %2950 = vadd.xlane.f32.xlu1 %v2949_v47 }
 0x7fe   :  { %v5816_v44 = vpop.permute.xlu0 %5815 }
 0x7ff   :  { %v6209_v54 = vadd.f32 %v5816_v44, %v5537_v29  ;;  %v6210_v18 = vadd.f32 %v5816_v44, %v5538_v1  ;;  %v4931_v29 = vsub.f32 %v9914_v60, %v10057_v59  ;;  %v7225_v60 = vld [vmem:[%s13033_s1 + $0x2a4] sm:$0xf]  ;;  %v6881_v59 = vld [vmem:[%s13033_s1 + $0x2a8] sm:$0xf0]  ;;  %v3724_v1 = vmul.f32 %v7406_v25, %v3723_v6  ;;  %v1041_v44 = vpop.f32.mrf.mxu0 }
 0x800   :  { %v6884_v61 = vor.u32 %v7225_v60, %v6881_v59  ;;  %v10471_v6 = vadd.f32 %v1290_v36, %v1041_v44  ;;  %v10488_v60 = vmul.f32 0.0051020407, %v10219_v24  ;;  %v3124_v59 = vmul.f32 0.0051020407, %v10049_v43  ;;  %v1292_v24 = vpop.f32.mrf.mxu1 }
 0x801   :  { %6401 = vst [vmem:[%s13035_s3 + $0x1c0] sm:$0xff] %v6209_v54  ;;  %v5766_v47 = vpop.permute.xlu1 %5765  ;;  %v6879_v54 = vld [vmem:[%s13033_s1 + $0x2a0] sm:$0xf]  ;;  %v3728_v20 = vsel %vm3727_vm15, %v7406_v25, %v3724_v1  ;;  %v13830_v25 = vld [vmem:[#allocation136_spill] sm:$0xff] }
 0x802   :  { %6402 = vst [vmem:[%s13035_s3 + $0x1c8] sm:$0xff] %v6210_v18  ;;  %v6189_v26 = vadd.f32 %v5766_v47, %v5517_v3  ;;  %v6190_v46 = vadd.f32 %v5766_v47, %v5518_v19  ;;  %v7226_v3 = vld [vmem:[%s13033_s1 + $0x2a4] sm:$0xf0]  ;;  %v7535_v19 = vld [vmem:[%s13034_s2 + $0xf8] sm:$0xff]  ;;  %7111 = vmatmul.msk.bf16.gmra.mxu3 %vm687_vm0, %v6884_v61  ;;  %7063 = vmatmul.msk.bf16.gmra.mxu1 %vm687_vm0, %v6884_v61  ;;  %v3316_v1 = vadd.f32 0.001, %v3124_v59 }
 0x803   :  { %v6880_v18 = vor.u32 %v7226_v3, %v6879_v54  ;;  %v4936_v49 = vsub.f32 %v7535_v19, %v4680_v21  ;;  %v10465_v47 = vld [vmem:[%s13034_s2 + $0x118] sm:$0xff]  ;;  %v10467_v21 = vadd.f32 %v1287_v42, %v1038_v8  ;;  %13827 = vst [vmem:[#allocation38_spill] sm:$0xff] %v10471_v6  ;;  %v7536_v8 = vld [vmem:[%s13034_s2 + $0xa8] sm:$0xff] }
 0x804   :  { %6381 = vst [vmem:[%s13035_s3 + $0x120] sm:$0xff] %v6189_v26  ;;  %v1539_v26 = vpop.f32.mrf.mxu2  ;;  %v10477_v52 = vmul.f32 %v3728_v20, %v10465_v47  ;;  %v13831_v42 = vld [vmem:[#allocation93_spill] sm:$0xff]  ;;  %v13833_v19 = vld [vmem:[#allocation123_spill] sm:$0xff]  ;;  %vm3805_vm6 = vweird.f32 %v3316_v1 }
 0x805   :  { %6382 = vst [vmem:[%s13035_s3 + $0x128] sm:$0xff] %v6190_v46  ;;  %5805 = vperm.xlu2 %7279, %v4931_v29   ;;  %1548 = vmatmul.bf16.gmra.mxu2 %v6880_v18  ;;  %v1788_v46 = vpop.f32.mrf.mxu3  ;;  %v10469_v29 = vadd.f32 %v1785_v13, %v1536_v11  ;;  %v4926_v13 = vsub.f32 %v7536_v8, %v13831_v42  ;;  %v13834_v61 = vld [vmem:[#allocation23_spill] sm:$0xff] }
 0x806   :  { %1050 = vmatmul.bf16.gmra.mxu0 %v6880_v18  ;;  %13825 = vst [vmem:[#allocation59_spill] sm:$0xff] %v10467_v21  ;;  %v10473_v54 = vadd.f32 %v1788_v46, %v1539_v26  ;;  %v4460_v3 = vmul.f32 %v10477_v52, %v13830_v25  ;;  %v3129_v18 = vmul.f32 0.0051020407, %v9799_v14  ;;  %v2335_v14 = vsub.f32 %v13834_v61, %v10488_v60 }
 0x807   :  { %13826 = vst [vmem:[#allocation60_spill] sm:$0xff] %v10469_v29  ;;  %v1043_v20 = vpop.f32.mrf.mxu0 }
 0x808   :  { %5830 = vperm.xlu0 %7246, %v4936_v49   ;;  %13828 = vst [vmem:[#allocation39_spill] sm:$0xff] %v10473_v54  ;;  %v3321_v11 = vadd.f32 0.001, %v3129_v18  ;;  %v2336_v49 = vsub.f32 %v13833_v19, %v10488_v60  ;;  %v2719_v25 = vmul.f32 %v2335_v14, %v2335_v14  ;;  %v10498_v18 = vadd.f32 %v1292_v24, %v1043_v20  ;;  %v3225_v24 = vld [vmem:[%s13034_s2 + $0x180] sm:$0xff] }
 0x809   :  { %13829 = vst [vmem:[#allocation180_spill] sm:$0xff] %v10477_v52 }
 0x80a   :  { %13832 = vst [vmem:[#allocation136_spill] sm:$0xff] %v10488_v60  ;;  %7407 = vrsqrt.f32 %v3321_v11  ;;  %v2528_v44 = vsel %vm2216_vm1, %v2336_v49, 0.0  ;;  %vm3855_vm3 = vweird.f32 %v3321_v11 }
 0x80b   :  { %7409 = vrsqrt.f32 %v3316_v1  ;;  %v2720_v43 = vmul.f32 %v2528_v44, %v2528_v44  ;;  %13835 = vst [vmem:[#allocation93_spill] sm:$0xff] %v10498_v18 }
 0x80c   :  { %v1541_v46 = vpop.f32.mrf.mxu2 }
 0x80d   :  { %7281 = vset.pattern.permute.xlu2 %v13567_v57  ;;  %v1790_v26 = vpop.f32.mrf.mxu3  ;;  %v2970_v42 = vadd.f32 %v2720_v43, %v2719_v25  ;;  %v10527_v25 = vmul.f32 0.0051020407, %v9930_v33 }
 0x80e   :  { %v10500_v8 = vadd.f32 %v1790_v26, %v1541_v46 }
 0x810   :  { %v7408_v36 = vpop.eup %7407  ;;  %13836 = vst [vmem:[#allocation181_spill] sm:$0xff] %v10500_v8  ;;  %v2071_v49 = vadd.f32 %v10500_v8, %v10498_v18 }
 0x811   :  { %v7410_v59 = vpop.eup %7409  ;;  %vm3856_vm2 = vweird.f32 %v7408_v36 }
 0x812   :  { %v3800_v61 = vmul.f32 %v7410_v59, %v3316_v1  ;;  %vm3857_vm4 = vmor %vm3855_vm3, %vm3856_vm2  ;;  %vm3806_vm5 = vweird.f32 %v7410_v59 }
 0x813   :  { %vm3807_vm7 = vmor %vm3805_vm6, %vm3806_vm5 }
 0x814   :  { %v3801_v52 = vmul.f32 %v7410_v59, %v3800_v61 }
 0x815   :  { %4687 = vrot.lane.b32.xlu1 %v4460_v3, %s7591_s23  ;;  %v3850_v3 = vmul.f32 %v7408_v36, %v3321_v11 }
 0x816   :  { %v3802_v14 = vmul.f32 0.5, %v3801_v52 }
 0x818   :  { %v3803_v20 = vsub.f32 1.5, %v3802_v14 }
 0x81a   :  { %v3804_v46 = vmul.f32 %v7410_v59, %v3803_v20  ;;  %v2059_v20 = vadd.f32 %v10311_v17, %v10305_v50  ;;  %v13852_v17 = vld [vmem:[#allocation45_spill] sm:$0xff] }
 0x81c   :  { %v3808_v11 = vsel %vm3807_vm7, %v7410_v59, %v3804_v46 }
 0x81d   :  { %5780 = vperm.xlu1 %7272, %v4926_v13   ;;  %v3851_v13 = vmul.f32 %v7408_v36, %v3850_v3 }
 0x81f   :  { %v3852_v19 = vmul.f32 0.5, %v3851_v13 }
 0x821   :  { %v3853_v60 = vsub.f32 1.5, %v3852_v19  ;;  %v2038_v19 = vadd.f32 %v9978_v40, %v9952_v51 }
 0x823   :  { %v3854_v29 = vmul.f32 %v7408_v36, %v3853_v60  ;;  %v13837_v60 = vld [vmem:[#allocation107_spill] sm:$0xff] }
 0x825   :  { %7274 = vset.pattern.permute.xlu1 %v13567_v57  ;;  %v3858_v44 = vsel %vm3857_vm4, %v7408_v36, %v3854_v29  ;;  %v3220_v29 = vld [vmem:[%s13034_s2 + $0x158] sm:$0xff]  ;;  %v10524_v36 = vpop.xlane.xlu2 %2024 }
 0x826   :  { %v10507_v26 = vmul.f32 %v3858_v44, %v3225_v24  ;;  %v10518_v61 = vmul.f32 %v3808_v11, %v3220_v29 }
 0x828   :  { %v4473_v52 = vmul.f32 %v10507_v26, %v13837_v60  ;;  %v4468_v1 = vmul.f32 %v10518_v61, %v9871_v0  ;;  %v2349_v0 = vsub.f32 %v9712_v58, %v10527_v25  ;;  %v7228_v60 = vld [vmem:[%s13033_s1 + $0x2b4] sm:$0xf0] }
 0x829   :  { %v10529_v43 = vpop.xlane.xlu0 %2063 }
 0x82a   :  { %v2733_v33 = vmul.f32 %v2349_v0, %v2349_v0  ;;  %v6889_v0 = vld [vmem:[%s13033_s1 + $0x2b8] sm:$0xf0] }
 0x82c   :  { %v10545_v14 = vpop.xlane.xlu1 %2030 }
 0x82d   :  { %v10534_v3 = vpop.permute.xlu2 %5760  ;;  %13841 = vst [vmem:[#allocation184_spill] sm:$0xff] %v10545_v14 }
 0x82e   :  { %2971 = vadd.xlane.f32.xlu2 %v2970_v42  ;;  %13838 = vst [vmem:[#allocation107_spill] sm:$0xff] %v10534_v3 }
 0x832   :  { %2072 = vadd.xlane.f32.xlu0 %v2071_v49 }
 0x835   :  { %v10543_v49 = vpop.xlane.xlu2 %2944 }
 0x836   :  { %13840 = vst [vmem:[#allocation183_spill] sm:$0xff] %v10543_v49 }
 0x83c   :  { %v10541_v13 = vpop.permute.xlu0 %4707 }
 0x83d   :  { %13839 = vst [vmem:[#allocation182_spill] sm:$0xff] %v10541_v13 }
 0x843   :  { %v1295_v46 = vpop.f32.mrf.mxu1 }
 0x846   :  { %4713 = vrot.lane.b32.xlu0 %v4473_v52, %s7591_s23  ;;  %5213 = vperm.xlu2 %7281, %v10193_v37   ;;  %v2350_v37 = vsub.f32 %v9714_v27, %v10527_v25  ;;  %v7227_v52 = vld [vmem:[%s13033_s1 + $0x2b4] sm:$0xf]  ;;  %v10570_v27 = vpop.permute.xlu1 %5173 }
 0x847   :  { %2039 = vadd.xlane.f32.xlu1 %v2038_v19  ;;  %v6887_v19 = vld [vmem:[%s13033_s1 + $0x2b0] sm:$0xf] }
 0x848   :  { %v2542_v42 = vsel %vm2216_vm1, %v2350_v37, 0.0  ;;  %v6888_v37 = vor.u32 %v7228_v60, %v6887_v19  ;;  %v13845_v19 = vld [vmem:[#allocation67_spill] sm:$0xff]  ;;  %v13846_v60 = vld [vmem:[#allocation68_spill] sm:$0xff] }
 0x849   :  { %v2734_v59 = vmul.f32 %v2542_v42, %v2542_v42  ;;  %v3119_v42 = vmul.f32 0.0051020407, %v9946_v7  ;;  %v5543_v7 = vmul.f32 %v10384_v5, %v13845_v19 }
 0x84a   :  { %1553 = vmatmul.bf16.gmra.mxu2 %v6888_v37  ;;  %1055 = vmatmul.bf16.gmra.mxu0 %v6888_v37 }
 0x84e   :  { %4703 = vrot.lane.b32.xlu2 %v4468_v1, %s7591_s23  ;;  %v1793_v1 = vpop.f32.mrf.mxu3 }
 0x84f   :  { %7283 = vset.pattern.permute.xlu2 %v13573_v62 }
 0x852   :  { %v1046_v24 = vpop.f32.mrf.mxu0 }
 0x853   :  { %v10560_v11 = vadd.f32 %v1295_v46, %v1046_v24  ;;  %v3311_v24 = vadd.f32 0.001, %v3119_v42  ;;  %v10575_v46 = vmul.f32 0.0051020407, %v9859_v15  ;;  %v13848_v42 = vld [vmem:[#allocation135_spill] sm:$0xff] }
 0x855   :  { %13842 = vst [vmem:[#allocation185_spill] sm:$0xff] %v10560_v11  ;;  %7411 = vrsqrt.f32 %v3311_v24  ;;  %v2328_v15 = vsub.f32 %v13848_v42, %v10575_v46  ;;  %vm3755_vm9 = vweird.f32 %v3311_v24 }
 0x856   :  { %v1795_v3 = vpop.f32.mrf.mxu3 }
 0x858   :  { %v1544_v29 = vpop.f32.mrf.mxu2 }
 0x85a   :  { %v1048_v37 = vpop.f32.mrf.mxu0 }
 0x860   :  { %5188 = vperm.xlu1 %7274, %v10181_v22   ;;  %v2991_v22 = vadd.f32 %v2734_v59, %v2733_v33  ;;  %v10566_v33 = vpop.permute.xlu2 %5168  ;;  %v10568_v59 = vadd.f32 %v1793_v1, %v1544_v29  ;;  %v5544_v29 = vmul.f32 %v10384_v5, %v13846_v60  ;;  %v1546_v13 = vpop.f32.mrf.mxu2 }
 0x861   :  { %13843 = vst [vmem:[#allocation186_spill] sm:$0xff] %v10566_v33 }
 0x862   :  { %13844 = vst [vmem:[#allocation187_spill] sm:$0xff] %v10568_v59 }
 0x867   :  { %v10547_v44 = vpop.xlane.xlu0 %2983 }
 0x868   :  { %7276 = vset.pattern.permute.xlu1 %v13573_v62  ;;  %v4686_v5 = vpop.permute.xlu2 %4685 }
 0x86f   :  { %v10593_v19 = vpop.xlane.xlu1 %2950 }
 0x870   :  { %2992 = vadd.xlane.f32.xlu0 %v2991_v22  ;;  %v6892_v22 = vor.u32 %v7227_v52, %v6889_v0  ;;  %v1297_v0 = vpop.f32.mrf.mxu1 }
 0x872   :  { %7112 = vmatmul.msk.bf16.gmra.mxu3 %vm687_vm0, %v6892_v22  ;;  %7064 = vmatmul.msk.bf16.gmra.mxu1 %vm687_vm0, %v6892_v22  ;;  %v10588_v22 = vadd.f32 %v1795_v3, %v1546_v13  ;;  %v7412_v3 = vpop.eup %7411 }
 0x873   :  { %vm3756_vm8 = vweird.f32 %v7412_v3 }
 0x874   :  { %13849 = vst [vmem:[#allocation68_spill] sm:$0xff] %v10588_v22  ;;  %vm3757_vm10 = vmor %vm3755_vm9, %vm3756_vm8 }
 0x877   :  { %2060 = vadd.xlane.f32.xlu2 %v2059_v20  ;;  %v10581_v20 = vadd.f32 %v1297_v0, %v1048_v37  ;;  %v3750_v0 = vmul.f32 %v7412_v3, %v3311_v24 }
 0x879   :  { %13847 = vst [vmem:[#allocation67_spill] sm:$0xff] %v10581_v20  ;;  %v3751_v51 = vmul.f32 %v7412_v3, %v3750_v0 }
 0x87a   :  { %v5831_v52 = vpop.permute.xlu0 %5830 }
 0x87b   :  { %v6215_v1 = vadd.f32 %v5831_v52, %v5543_v7  ;;  %v6216_v58 = vadd.f32 %v5831_v52, %v5544_v29  ;;  %v13850_v7 = vld [vmem:[#allocation11_spill] sm:$0xff]  ;;  %v2520_v29 = vsel %vm2216_vm1, %v2328_v15, 0.0  ;;  %v7537_v52 = vld [vmem:[%s13034_s2 + $0x110] sm:$0xff]  ;;  %v3752_v40 = vmul.f32 0.5, %v3751_v51 }
 0x87c   :  { %v2327_v60 = vsub.f32 %v13850_v7, %v10575_v46  ;;  %v2712_v37 = vmul.f32 %v2520_v29, %v2520_v29  ;;  %v4934_v7 = vsub.f32 %v10085_v12, %v10236_v56  ;;  %v13851_v15 = vld [vmem:[#allocation44_spill] sm:$0xff] }
 0x87d   :  { %6407 = vst [vmem:[%s13035_s3 + $0x1f0] sm:$0xff] %v6215_v1  ;;  %v4939_v1 = vsub.f32 %v7537_v52, %v4686_v5  ;;  %v5523_v50 = vmul.f32 %v9959_v31, %v13851_v15  ;;  %v5524_v5 = vmul.f32 %v9959_v31, %v13852_v17  ;;  %v13853_v51 = vld [vmem:[#allocation148_spill] sm:$0xff] }
 0x87e   :  { %6408 = vst [vmem:[%s13035_s3 + $0x1f8] sm:$0xff] %v6216_v58  ;;  %v2711_v13 = vmul.f32 %v2327_v60, %v2327_v60  ;;  %v3132_v12 = vmul.f32 0.0051020407, %v13853_v51 }
 0x87f   :  { %v1300_v0 = vpop.f32.mrf.mxu1 }
 0x880   :  { %v2958_v42 = vadd.f32 %v2712_v37, %v2711_v13  ;;  %v3324_v31 = vadd.f32 0.001, %v3132_v12 }
 0x882   :  { %7413 = vrsqrt.f32 %v3324_v31  ;;  %vm3885_vm12 = vweird.f32 %v3324_v31 }
 0x883   :  { %v1051_v37 = vpop.f32.mrf.mxu0 }
 0x884   :  { %5845 = vperm.xlu0 %7246, %v4939_v1   ;;  %v3753_v1 = vsub.f32 1.5, %v3752_v40  ;;  %v10621_v40 = vld [vmem:[%s13034_s2 + $0x130] sm:$0xff] }
 0x885   :  { %v1798_v15 = vpop.f32.mrf.mxu3 }
 0x886   :  { %v3754_v56 = vmul.f32 %v7412_v3, %v3753_v1  ;;  %v13859_v1 = vld [vmem:[#allocation5_spill] sm:$0xff] }
 0x887   :  { %v10602_v58 = vpop.permute.xlu1 %4687 }
 0x888   :  { %v7414_v13 = vpop.eup %7413  ;;  %v1549_v24 = vpop.f32.mrf.mxu2 }
 0x889   :  { %vm3886_vm11 = vweird.f32 %v7414_v13 }
 0x88a   :  { %2959 = vadd.xlane.f32.xlu1 %v2958_v42  ;;  %v13855_v42 = vld [vmem:[#allocation152_spill] sm:$0xff]  ;;  %vm3887_vm13 = vmor %vm3885_vm12, %vm3886_vm11 }
 0x88f   :  { %v5781_v52 = vpop.permute.xlu1 %5780  ;;  %5820 = vperm.xlu2 %7283, %v4934_v7  }
 0x890   :  { %v6195_v60 = vadd.f32 %v5781_v52, %v5523_v50  ;;  %v6196_v29 = vadd.f32 %v5781_v52, %v5524_v5  ;;  %v3758_v50 = vsel %vm3757_vm10, %v7412_v3, %v3754_v56  ;;  %v3880_v3 = vmul.f32 %v7414_v13, %v3324_v31 }
 0x891   :  { %v10624_v17 = vmul.f32 %v3758_v50, %v10621_v40  ;;  %v10629_v5 = vadd.f32 %v1300_v0, %v1051_v37  ;;  %v10631_v52 = vadd.f32 %v1798_v15, %v1549_v24  ;;  %v3127_v56 = vmul.f32 0.0051020407, %v10221_v48 }
 0x892   :  { %6387 = vst [vmem:[%s13035_s3 + $0x150] sm:$0xff] %v6195_v60  ;;  %v10634_v60 = vmul.f32 0.0051020407, %v10361_v2  ;;  %v3881_v12 = vmul.f32 %v7414_v13, %v3880_v3  ;;  %v13861_v2 = vld [vmem:[#allocation127_spill] sm:$0xff] }
 0x893   :  { %6388 = vst [vmem:[%s13035_s3 + $0x158] sm:$0xff] %v6196_v29  ;;  %v4463_v7 = vmul.f32 %v10624_v17, %v13855_v42  ;;  %v7538_v29 = vld [vmem:[%s13034_s2 + $0xc0] sm:$0xff]  ;;  %v2080_v50 = vadd.f32 %v10631_v52, %v10629_v5  ;;  %v13860_v42 = vld [vmem:[#allocation108_spill] sm:$0xff]  ;;  %v3319_v24 = vadd.f32 0.001, %v3127_v56  ;;  %v3228_v56 = vld [vmem:[%s13034_s2 + $0x198] sm:$0xff] }
 0x894   :  { %13854 = vst [vmem:[#allocation44_spill] sm:$0xff] %v10624_v17  ;;  %v4929_v51 = vsub.f32 %v7538_v29, %v13859_v1  ;;  %v3882_v37 = vmul.f32 0.5, %v3881_v12  ;;  %v2341_v0 = vsub.f32 %v13861_v2, %v10634_v60 }
 0x895   :  { %13856 = vst [vmem:[#allocation45_spill] sm:$0xff] %v10629_v5  ;;  %7415 = vrsqrt.f32 %v3319_v24  ;;  %vm3835_vm15 = vweird.f32 %v3319_v24 }
 0x896   :  { %13857 = vst [vmem:[#allocation148_spill] sm:$0xff] %v10631_v52  ;;  %v3883_v29 = vsub.f32 1.5, %v3882_v37  ;;  %v2725_v3 = vmul.f32 %v2341_v0, %v2341_v0  ;;  %v13862_v0 = vld [vmem:[#allocation132_spill] sm:$0xff] }
 0x897   :  { %7285 = vset.pattern.permute.xlu2 %v13567_v57  ;;  %13858 = vst [vmem:[#allocation152_spill] sm:$0xff] %v10634_v60 }
 0x898   :  { %v3884_v1 = vmul.f32 %v7414_v13, %v3883_v29 }
 0x89a   :  { %v3888_v12 = vsel %vm3887_vm13, %v7414_v13, %v3884_v1  ;;  %v3223_v13 = vld [vmem:[%s13034_s2 + $0x170] sm:$0xff]  ;;  %v2047_v1 = vadd.f32 %v10116_v39, %v10114_v10  ;;  %v7539_v39 = vld [vmem:[%s13034_s2 + $0x128] sm:$0xff] }
 0x8a3   :  { %4693 = vrot.lane.b32.xlu1 %v4463_v7, %s7591_s23  ;;  %v2342_v7 = vsub.f32 %v13860_v42, %v10634_v60  ;;  %v13871_v42 = vld [vmem:[#allocation74_spill] sm:$0xff] }
 0x8a4   :  { %v5549_v2 = vmul.f32 %v10570_v27, %v13871_v42  ;;  %v7232_v42 = vld [vmem:[%s13033_s1 + $0x2d4] sm:$0xf0] }
 0x8a5   :  { %v2534_v15 = vsel %vm2216_vm1, %v2342_v7, 0.0  ;;  %v10653_v7 = vmul.f32 %v3888_v12, %v3228_v56  ;;  %v10666_v12 = vpop.xlane.xlu2 %2033 }
 0x8a6   :  { %v2726_v48 = vmul.f32 %v2534_v15, %v2534_v15 }
 0x8a7   :  { %v4476_v15 = vmul.f32 %v10653_v7, %v13862_v0  ;;  %v13866_v0 = vld [vmem:[#allocation34_spill] sm:$0xff] }
 0x8a8   :  { %v2979_v17 = vadd.f32 %v2726_v48, %v2725_v3 }
 0x8ab   :  { %5795 = vperm.xlu1 %7276, %v4929_v51   ;;  %v7416_v51 = vpop.eup %7415 }
 0x8ac   :  { %vm3836_vm14 = vweird.f32 %v7416_v51 }
 0x8ad   :  { %vm3837_vm2 = vmor %vm3835_vm15, %vm3836_vm14 }
 0x8ae   :  { %2081 = vadd.xlane.f32.xlu0 %v2080_v50  ;;  %v3830_v50 = vmul.f32 %v7416_v51, %v3319_v24  ;;  %v10673_v24 = vmul.f32 0.0051020407, %v10074_v16 }
 0x8b0   :  { %v3831_v37 = vmul.f32 %v7416_v51, %v3830_v50  ;;  %13863 = vst [vmem:[#allocation5_spill] sm:$0xff] %v10673_v24  ;;  %v13865_v50 = vld [vmem:[#allocation35_spill] sm:$0xff] }
 0x8b2   :  { %v3832_v29 = vmul.f32 0.5, %v3831_v37  ;;  %v2356_v37 = vsub.f32 %v13865_v50, %v10673_v24  ;;  %v1302_v50 = vpop.f32.mrf.mxu1 }
 0x8b3   :  { %7278 = vset.pattern.permute.xlu1 %v13567_v57 }
 0x8b4   :  { %v3833_v3 = vsub.f32 1.5, %v3832_v29 }
 0x8b6   :  { %v3834_v31 = vmul.f32 %v7416_v51, %v3833_v3 }
 0x8b8   :  { %2980 = vadd.xlane.f32.xlu2 %v2979_v17  ;;  %v3838_v17 = vsel %vm3837_vm2, %v7416_v51, %v3834_v31  ;;  %v10675_v51 = vpop.xlane.xlu0 %2072 }
 0x8b9   :  { %v10662_v48 = vmul.f32 %v3838_v17, %v3223_v13  ;;  %v6895_v13 = vld [vmem:[%s13033_s1 + $0x2c0] sm:$0xf] }
 0x8bb   :  { %v4471_v56 = vmul.f32 %v10662_v48, %v10042_v30  ;;  %v2548_v30 = vsel %vm2216_vm1, %v2356_v37, 0.0 }
 0x8bc   :  { %v2740_v16 = vmul.f32 %v2548_v30, %v2548_v30 }
 0x8c0   :  { %v10687_v3 = vpop.permute.xlu0 %4713 }
 0x8c1   :  { %13868 = vst [vmem:[#allocation189_spill] sm:$0xff] %v10687_v3  ;;  %v13872_v3 = vld [vmem:[#allocation75_spill] sm:$0xff] }
 0x8c2   :  { %4719 = vrot.lane.b32.xlu0 %v4476_v15, %s7591_s23  ;;  %v2355_v15 = vsub.f32 %v13866_v0, %v10673_v24  ;;  %v1800_v0 = vpop.f32.mrf.mxu3 }
 0x8c4   :  { %v2739_v31 = vmul.f32 %v2355_v15, %v2355_v15  ;;  %v6897_v15 = vld [vmem:[%s13033_s1 + $0x2c8] sm:$0xf0] }
 0x8c6   :  { %v3000_v17 = vadd.f32 %v2740_v16, %v2739_v31 }
 0x8d0   :  { %5228 = vperm.xlu2 %7285, %v10353_v45   ;;  %v10677_v45 = vpop.permute.xlu2 %5775 }
 0x8d1   :  { %13864 = vst [vmem:[#allocation132_spill] sm:$0xff] %v10677_v45  ;;  %v10737_v45 = vpop.xlane.xlu1 %2039 }
 0x8d2   :  { %13875 = vst [vmem:[#allocation192_spill] sm:$0xff] %v10737_v45 }
 0x8d5   :  { %2048 = vadd.xlane.f32.xlu1 %v2047_v1  ;;  %v7230_v1 = vld [vmem:[%s13033_s1 + $0x2c4] sm:$0xf0] }
 0x8d6   :  { %v6896_v37 = vor.u32 %v7230_v1, %v6895_v13  ;;  %v1551_v1 = vpop.f32.mrf.mxu2 }
 0x8d8   :  { %4709 = vrot.lane.b32.xlu2 %v4471_v56, %s7591_s23  ;;  %v10685_v29 = vpop.xlane.xlu2 %2953  ;;  %v7229_v56 = vld [vmem:[%s13033_s1 + $0x2c4] sm:$0xf]  ;;  %1558 = vmatmul.bf16.gmra.mxu2 %v6896_v37 }
 0x8d9   :  { %7287 = vset.pattern.permute.xlu2 %v13573_v62  ;;  %13867 = vst [vmem:[#allocation188_spill] sm:$0xff] %v10685_v29  ;;  %v6900_v31 = vor.u32 %v7229_v56, %v6897_v15  ;;  %1060 = vmatmul.bf16.gmra.mxu0 %v6896_v37  ;;  %v10714_v56 = vadd.f32 %v1800_v0, %v1551_v1  ;;  %v6905_v0 = vld [vmem:[%s13033_s1 + $0x2d8] sm:$0xf0] }
 0x8db   :  { %7113 = vmatmul.msk.bf16.gmra.mxu3 %vm687_vm0, %v6900_v31  ;;  %7065 = vmatmul.msk.bf16.gmra.mxu1 %vm687_vm0, %v6900_v31  ;;  %13873 = vst [vmem:[#allocation74_spill] sm:$0xff] %v10714_v56  ;;  %v13883_v56 = vld [vmem:[#allocation137_spill] sm:$0xff] }
 0x8e0   :  { %v10704_v16 = vpop.permute.xlu2 %5183 }
 0x8e1   :  { %13869 = vst [vmem:[#allocation190_spill] sm:$0xff] %v10704_v16 }
 0x8e3   :  { %v10701_v30 = vpop.xlane.xlu0 %2992 }
 0x8ec   :  { %3001 = vadd.xlane.f32.xlu0 %v3000_v17  ;;  %v1053_v17 = vpop.f32.mrf.mxu0 }
 0x8ed   :  { %v10708_v13 = vadd.f32 %v1302_v50, %v1053_v17  ;;  %v6903_v50 = vld [vmem:[%s13033_s1 + $0x2d0] sm:$0xf] }
 0x8ee   :  { %5203 = vperm.xlu1 %7278, %v10345_v34   ;;  %v5550_v34 = vmul.f32 %v10570_v27, %v13872_v3  ;;  %v4692_v27 = vpop.permute.xlu2 %4691  ;;  %v6904_v17 = vor.u32 %v7232_v42, %v6903_v50  ;;  %v3122_v50 = vmul.f32 0.0051020407, %v10096_v32  ;;  %v10749_v42 = vpop.permute.xlu1 %5188 }
 0x8ef   :  { %13870 = vst [vmem:[#allocation191_spill] sm:$0xff] %v10708_v13  ;;  %v1305_v31 = vpop.f32.mrf.mxu1  ;;  %v4942_v16 = vsub.f32 %v7539_v39, %v4692_v27 }
 0x8f0   :  { %1563 = vmatmul.bf16.gmra.mxu2 %v6904_v17  ;;  %1065 = vmatmul.bf16.gmra.mxu0 %v6904_v17 }
 0x8f4   :  { %v1056_v3 = vpop.f32.mrf.mxu0 }
 0x8f5   :  { %v10735_v1 = vadd.f32 %v1305_v31, %v1056_v3  ;;  %v13879_v31 = vld [vmem:[#allocation16_spill] sm:$0xff] }
 0x8f6   :  { %v5846_v37 = vpop.permute.xlu0 %5845  ;;  %7280 = vset.pattern.permute.xlu1 %v13573_v62 }
 0x8f7   :  { %v6221_v15 = vadd.f32 %v5846_v37, %v5549_v2  ;;  %v6222_v60 = vadd.f32 %v5846_v37, %v5550_v34  ;;  %v7231_v2 = vld [vmem:[%s13033_s1 + $0x2d4] sm:$0xf]  ;;  %13874 = vst [vmem:[#allocation75_spill] sm:$0xff] %v10735_v1  ;;  %v1554_v34 = vpop.f32.mrf.mxu2  ;;  %v1803_v37 = vpop.f32.mrf.mxu3 }
 0x8f8   :  { %v10741_v10 = vadd.f32 %v1803_v37, %v1554_v34  ;;  %v13881_v34 = vld [vmem:[#allocation168_spill] sm:$0xff] }
 0x8f9   :  { %6413 = vst [vmem:[%s13035_s3 + $0x220] sm:$0xff] %v6221_v15  ;;  %v6908_v15 = vor.u32 %v7231_v2, %v6905_v0  ;;  %v3314_v2 = vadd.f32 0.001, %v3122_v50  ;;  %v13877_v0 = vld [vmem:[#allocation167_spill] sm:$0xff]  ;;  %v3135_v37 = vmul.f32 0.0051020407, %v13881_v34 }
 0x8fa   :  { %6414 = vst [vmem:[%s13035_s3 + $0x228] sm:$0xff] %v6222_v60  ;;  %v2068_v60 = vadd.f32 %v10473_v54, %v10471_v6  ;;  %v10752_v3 = vmul.f32 0.0051020407, %v13877_v0  ;;  %v13882_v34 = vld [vmem:[#allocation50_spill] sm:$0xff] }
 0x8fb   :  { %13876 = vst [vmem:[#allocation193_spill] sm:$0xff] %v10741_v10  ;;  %7114 = vmatmul.msk.bf16.gmra.mxu3 %vm687_vm0, %v6908_v15  ;;  %7066 = vmatmul.msk.bf16.gmra.mxu1 %vm687_vm0, %v6908_v15  ;;  %7417 = vrsqrt.f32 %v3314_v2  ;;  %v3327_v6 = vadd.f32 0.001, %v3135_v37  ;;  %v5529_v13 = vmul.f32 %v13883_v56, %v13882_v34  ;;  %vm3785_vm4 = vweird.f32 %v3314_v2 }
 0x8fc   :  { %13878 = vst [vmem:[#allocation167_spill] sm:$0xff] %v10752_v3  ;;  %v2334_v39 = vsub.f32 %v13879_v31, %v10752_v3  ;;  %v4937_v31 = vsub.f32 %v10265_v41, %v10420_v23  ;;  %v1058_v24 = vpop.f32.mrf.mxu0  ;;  %v3130_v34 = vmul.f32 0.0051020407, %v10409_v9 }
 0x8fd   :  { %v10756_v27 = vpop.xlane.xlu1 %2959  ;;  %7419 = vrsqrt.f32 %v3327_v6  ;;  %vm3915_vm7 = vweird.f32 %v3327_v6 }
 0x8fe   :  { %v2526_v32 = vsel %vm2216_vm1, %v2334_v39, 0.0  ;;  %v13884_v39 = vld [vmem:[#allocation51_spill] sm:$0xff] }
 0x8ff   :  { %v2718_v50 = vmul.f32 %v2526_v32, %v2526_v32  ;;  %v1805_v14 = vpop.f32.mrf.mxu3 }
 0x900   :  { %5860 = vperm.xlu0 %7246, %v4942_v16   ;;  %v13880_v16 = vld [vmem:[#allocation154_spill] sm:$0xff] }
 0x901   :  { %2069 = vadd.xlane.f32.xlu2 %v2068_v60  ;;  %v2333_v17 = vsub.f32 %v13880_v16, %v10752_v3  ;;  %v7418_v15 = vpop.eup %7417 }
 0x902   :  { %v3780_v0 = vmul.f32 %v7418_v15, %v3314_v2  ;;  %vm3786_vm3 = vweird.f32 %v7418_v15  ;;  %v10792_v2 = vmul.f32 0.0051020407, %v10524_v36  ;;  %v13891_v36 = vld [vmem:[#allocation160_spill] sm:$0xff] }
 0x903   :  { %v2717_v60 = vmul.f32 %v2333_v17, %v2333_v17  ;;  %v5530_v17 = vmul.f32 %v13883_v56, %v13884_v39  ;;  %v7420_v32 = vpop.eup %7419  ;;  %vm3787_vm5 = vmor %vm3785_vm4, %vm3786_vm3  ;;  %v3231_v39 = vld [vmem:[%s13034_s2 + $0x1b0] sm:$0xff] }
 0x904   :  { %v3781_v29 = vmul.f32 %v7418_v15, %v3780_v0  ;;  %v3910_v41 = vmul.f32 %v7420_v32, %v3327_v6  ;;  %vm3916_vm6 = vweird.f32 %v7420_v32  ;;  %13889 = vst [vmem:[#allocation51_spill] sm:$0xff] %v10792_v2  ;;  %v13892_v6 = vld [vmem:[#allocation138_spill] sm:$0xff] }
 0x905   :  { %v2967_v54 = vadd.f32 %v2718_v50, %v2717_v60  ;;  %v1307_v60 = vpop.f32.mrf.mxu1  ;;  %v1556_v50 = vpop.f32.mrf.mxu2  ;;  %vm3917_vm8 = vmor %vm3915_vm7, %vm3916_vm6 }
 0x906   :  { %v3782_v16 = vmul.f32 0.5, %v3781_v29  ;;  %v10778_v23 = vadd.f32 %v1307_v60, %v1058_v24  ;;  %v7540_v60 = vld [vmem:[%s13034_s2 + $0xd8] sm:$0xff] }
 0x908   :  { %v3783_v49 = vsub.f32 1.5, %v3782_v16  ;;  %13885 = vst [vmem:[#allocation168_spill] sm:$0xff] %v10778_v23 }
 0x90a   :  { %v3784_v29 = vmul.f32 %v7418_v15, %v3783_v49 }
 0x915   :  { %v10763_v45 = vpop.permute.xlu1 %4693 }
 0x918   :  { %2968 = vadd.xlane.f32.xlu1 %v2967_v54  ;;  %v10780_v54 = vadd.f32 %v1805_v14, %v1556_v50  ;;  %v13888_v14 = vld [vmem:[#allocation157_spill] sm:$0xff]  ;;  %v4932_v50 = vsub.f32 %v7540_v60, %v13891_v36 }
 0x919   :  { %5835 = vperm.xlu2 %7287, %v4937_v31   ;;  %v3788_v31 = vsel %vm3787_vm5, %v7418_v15, %v3784_v29  ;;  %v3322_v29 = vadd.f32 0.001, %v3130_v34 }
 0x91a   :  { %13886 = vst [vmem:[#allocation50_spill] sm:$0xff] %v10780_v54  ;;  %v2089_v56 = vadd.f32 %v10780_v54, %v10778_v23 }
 0x91b   :  { %7421 = vrsqrt.f32 %v3322_v29  ;;  %vm3865_vm10 = vweird.f32 %v3322_v29 }
 0x91d   :  { %v5796_v37 = vpop.permute.xlu1 %5795 }
 0x91e   :  { %v6201_v33 = vadd.f32 %v5796_v37, %v5529_v13  ;;  %v6202_v3 = vadd.f32 %v5796_v37, %v5530_v17  ;;  %v3911_v13 = vmul.f32 %v7420_v32, %v3910_v41  ;;  %v13890_v17 = vld [vmem:[#allocation163_spill] sm:$0xff] }
 0x91f   :  { %v2348_v37 = vsub.f32 %v13890_v17, %v10792_v2 }
 0x920   :  { %6393 = vst [vmem:[%s13035_s3 + $0x180] sm:$0xff] %v6201_v33  ;;  %v3912_v33 = vmul.f32 0.5, %v3911_v13  ;;  %v6911_v13 = vld [vmem:[%s13033_s1 + $0x2e0] sm:$0xf] }
 0x921   :  { %6394 = vst [vmem:[%s13035_s3 + $0x188] sm:$0xff] %v6202_v3  ;;  %7289 = vset.pattern.permute.xlu2 %v13567_v57  ;;  %v3218_v3 = vld [vmem:[%s13034_s2 + $0x148] sm:$0xff]  ;;  %v2540_v9 = vsel %vm2216_vm1, %v2348_v37, 0.0 }
 0x922   :  { %v10787_v16 = vmul.f32 %v3788_v31, %v3218_v3  ;;  %v3913_v24 = vsub.f32 1.5, %v3912_v33  ;;  %v7233_v31 = vld [vmem:[%s13033_s1 + $0x2e4] sm:$0xf]  ;;  %v13893_v33 = vld [vmem:[#allocation20_spill] sm:$0xff] }
 0x924   :  { %13887 = vst [vmem:[#allocation137_spill] sm:$0xff] %v10787_v16  ;;  %v4466_v49 = vmul.f32 %v10787_v16, %v13888_v14  ;;  %v3914_v0 = vmul.f32 %v7420_v32, %v3913_v24  ;;  %v6913_v14 = vld [vmem:[%s13033_s1 + $0x2e8] sm:$0xf0] }
 0x926   :  { %v3918_v15 = vsel %vm3917_vm8, %v7420_v32, %v3914_v0  ;;  %v2347_v32 = vsub.f32 %v13892_v6, %v10792_v2  ;;  %v2732_v0 = vmul.f32 %v2540_v9, %v2540_v9  ;;  %v13909_v2 = vld [vmem:[#allocation146_spill] sm:$0xff] }
 0x927   :  { %v10805_v41 = vmul.f32 %v3918_v15, %v3231_v39  ;;  %v6916_v15 = vor.u32 %v7233_v31, %v6913_v14  ;;  %v7422_v39 = vpop.eup %7421  ;;  %v10834_v31 = vpop.xlane.xlu0 %2081 }
 0x928   :  { %v3860_v37 = vmul.f32 %v7422_v39, %v3322_v29  ;;  %vm3866_vm9 = vweird.f32 %v7422_v39 }
 0x929   :  { %v4479_v3 = vmul.f32 %v10805_v41, %v13893_v33  ;;  %7115 = vmatmul.msk.bf16.gmra.mxu3 %vm687_vm0, %v6916_v15  ;;  %7067 = vmatmul.msk.bf16.gmra.mxu1 %vm687_vm0, %v6916_v15  ;;  %vm3867_vm11 = vmor %vm3865_vm10, %vm3866_vm9  ;;  %v13897_v15 = vld [vmem:[#allocation165_spill] sm:$0xff] }
 0x92a   :  { %2090 = vadd.xlane.f32.xlu0 %v2089_v56  ;;  %v7234_v56 = vld [vmem:[%s13033_s1 + $0x2e4] sm:$0xf0]  ;;  %v3861_v60 = vmul.f32 %v7422_v39, %v3860_v37  ;;  %v13898_v37 = vld [vmem:[#allocation156_spill] sm:$0xff] }
 0x92b   :  { %v6912_v24 = vor.u32 %v7234_v56, %v6911_v13  ;;  %v13894_v13 = vld [vmem:[#allocation171_spill] sm:$0xff] }
 0x92c   :  { %v3862_v36 = vmul.f32 0.5, %v3861_v60  ;;  %v10832_v56 = vmul.f32 0.0051020407, %v13894_v13 }
 0x92d   :  { %1568 = vmatmul.bf16.gmra.mxu2 %v6912_v24  ;;  %1070 = vmatmul.bf16.gmra.mxu0 %v6912_v24  ;;  %v13895_v24 = vld [vmem:[#allocation166_spill] sm:$0xff] }
 0x92e   :  { %v2362_v14 = vsub.f32 %v13895_v24, %v10832_v56  ;;  %v2361_v29 = vsub.f32 %v13897_v15, %v10832_v56  ;;  %v13903_v24 = vld [vmem:[#allocation89_spill] sm:$0xff] }
 0x92f   :  { %v5556_v15 = vmul.f32 %v10749_v42, %v13903_v24 }
 0x931   :  { %4699 = vrot.lane.b32.xlu1 %v4466_v49, %s7591_s23  ;;  %v2731_v49 = vmul.f32 %v2347_v32, %v2347_v32  ;;  %v3863_v32 = vsub.f32 1.5, %v3862_v36  ;;  %v2745_v36 = vmul.f32 %v2361_v29, %v2361_v29 }
 0x933   :  { %v2988_v34 = vadd.f32 %v2732_v0, %v2731_v49  ;;  %v3864_v9 = vmul.f32 %v7422_v39, %v3863_v32 }
 0x935   :  { %v3868_v33 = vsel %vm3867_vm11, %v7422_v39, %v3864_v9  ;;  %v2554_v39 = vsel %vm2216_vm1, %v2362_v14, 0.0  ;;  %v13902_v14 = vld [vmem:[#allocation88_spill] sm:$0xff] }
 0x936   :  { %v2746_v32 = vmul.f32 %v2554_v39, %v2554_v39 }
 0x938   :  { %v3009_v13 = vadd.f32 %v2746_v32, %v2745_v36 }
 0x939   :  { %5810 = vperm.xlu1 %7280, %v4932_v50   ;;  %v10829_v50 = vpop.xlane.xlu2 %2042 }
 0x93e   :  { %4725 = vrot.lane.b32.xlu0 %v4479_v3, %s7591_s23  ;;  %v3226_v3 = vld [vmem:[%s13034_s2 + $0x188] sm:$0xff] }
 0x93f   :  { %v10844_v0 = vmul.f32 %v3868_v33, %v3226_v3 }
 0x941   :  { %7282 = vset.pattern.permute.xlu1 %v13567_v57  ;;  %v10842_v49 = vpop.permute.xlu2 %5790  ;;  %v4474_v60 = vmul.f32 %v10844_v0, %v13898_v37  ;;  %v5555_v37 = vmul.f32 %v10749_v42, %v13902_v14  ;;  %v7541_v42 = vld [vmem:[%s13034_s2 + $0x140] sm:$0xff] }
 0x942   :  { %2989 = vadd.xlane.f32.xlu2 %v2988_v34  ;;  %13896 = vst [vmem:[#allocation157_spill] sm:$0xff] %v10842_v49  ;;  %v2056_v34 = vadd.f32 %v10295_v55, %v10286_v53 }
 0x949   :  { %v10857_v9 = vpop.xlane.xlu2 %2962 }
 0x94a   :  { %13900 = vst [vmem:[#allocation20_spill] sm:$0xff] %v10857_v9 }
 0x951   :  { %v10862_v3 = vpop.permute.xlu2 %5198 }
 0x952   :  { %13901 = vst [vmem:[#allocation171_spill] sm:$0xff] %v10862_v3 }
 0x958   :  { %v1310_v36 = vpop.f32.mrf.mxu1 }
 0x959   :  { %v4698_v17 = vpop.permute.xlu2 %4697 }
 0x95a   :  { %5243 = vperm.xlu2 %7289, %v10507_v26   ;;  %v10854_v26 = vpop.permute.xlu0 %4719  ;;  %v4945_v24 = vsub.f32 %v7541_v42, %v4698_v17  ;;  %v2077_v17 = vadd.f32 %v10588_v22, %v10581_v20  ;;  %v10889_v42 = vpop.xlane.xlu1 %2048 }
 0x95b   :  { %13899 = vst [vmem:[#allocation160_spill] sm:$0xff] %v10854_v26  ;;  %v1559_v32 = vpop.f32.mrf.mxu2 }
 0x95c   :  { %13908 = vst [vmem:[#allocation195_spill] sm:$0xff] %v10889_v42 }
 0x960   :  { %v1312_v14 = vpop.f32.mrf.mxu1 }
 0x962   :  { %4715 = vrot.lane.b32.xlu2 %v4474_v60, %s7591_s23  ;;  %v10860_v33 = vpop.xlane.xlu0 %3001 }
 0x963   :  { %2057 = vadd.xlane.f32.xlu1 %v2056_v34  ;;  %7291 = vset.pattern.permute.xlu2 %v13573_v62  ;;  %v1061_v34 = vpop.f32.mrf.mxu0 }
 0x968   :  { %3010 = vadd.xlane.f32.xlu0 %v3009_v13  ;;  %v1808_v13 = vpop.f32.mrf.mxu3 }
 0x969   :  { %v10880_v6 = vadd.f32 %v1808_v13, %v1559_v32  ;;  %v13910_v13 = vld [vmem:[#allocation22_spill] sm:$0xff] }
 0x96b   :  { %13905 = vst [vmem:[#allocation88_spill] sm:$0xff] %v10880_v6 }
 0x972   :  { %v5861_v60 = vpop.permute.xlu0 %5860 }
 0x973   :  { %v6227_v29 = vadd.f32 %v5861_v60, %v5555_v37  ;;  %v6228_v39 = vadd.f32 %v5861_v60, %v5556_v15  ;;  %v1063_v15 = vpop.f32.mrf.mxu0  ;;  %v1561_v37 = vpop.f32.mrf.mxu2 }
 0x974   :  { %v1810_v60 = vpop.f32.mrf.mxu3 }
 0x975   :  { %6419 = vst [vmem:[%s13035_s3 + $0x250] sm:$0xff] %v6227_v29  ;;  %v10878_v29 = vadd.f32 %v1310_v36, %v1061_v34  ;;  %v10884_v26 = vadd.f32 %v1810_v60, %v1561_v37  ;;  %v3125_v34 = vmul.f32 0.0051020407, %v13909_v2  ;;  %v10893_v36 = vpop.permute.xlu1 %5203  ;;  %v13913_v2 = vld [vmem:[#allocation41_spill] sm:$0xff] }
 0x976   :  { %6420 = vst [vmem:[%s13035_s3 + $0x258] sm:$0xff] %v6228_v39  ;;  %v10882_v39 = vadd.f32 %v1312_v14, %v1063_v15  ;;  %v10896_v15 = vmul.f32 0.0051020407, %v13910_v13  ;;  %v13912_v14 = vld [vmem:[#allocation164_spill] sm:$0xff] }
 0x977   :  { %13904 = vst [vmem:[#allocation156_spill] sm:$0xff] %v10878_v29  ;;  %v3317_v32 = vadd.f32 0.001, %v3125_v34  ;;  %v4940_v29 = vsub.f32 %v10465_v47, %v10602_v58 }
 0x978   :  { %13906 = vst [vmem:[#allocation89_spill] sm:$0xff] %v10882_v39  ;;  %v2340_v37 = vsub.f32 %v13912_v14, %v10896_v15  ;;  %v1315_v16 = vpop.f32.mrf.mxu1 }
 0x979   :  { %13907 = vst [vmem:[#allocation194_spill] sm:$0xff] %v10884_v26  ;;  %vm3815_vm2 = vweird.f32 %v3317_v32 }
 0x97a   :  { %13911 = vst [vmem:[#allocation146_spill] sm:$0xff] %v10896_v15  ;;  %v2532_v34 = vsel %vm2216_vm1, %v2340_v37, 0.0 }
 0x97b   :  { %v1066_v60 = vpop.f32.mrf.mxu0  ;;  %v2724_v9 = vmul.f32 %v2532_v34, %v2532_v34  ;;  %v13919_v34 = vld [vmem:[#allocation58_spill] sm:$0xff] }
 0x97c   :  { %5875 = vperm.xlu0 %7246, %v4945_v24   ;;  %5218 = vperm.xlu1 %7282, %v10518_v61   ;;  %v3138_v61 = vmul.f32 0.0051020407, %v10258_v4  ;;  %v10906_v13 = vadd.f32 %v1315_v16, %v1066_v60 }
 0x97e   :  { %v3330_v24 = vadd.f32 0.001, %v3138_v61  ;;  %v1813_v4 = vpop.f32.mrf.mxu3  ;;  %v2339_v61 = vsub.f32 %v13913_v2, %v10896_v15  ;;  %13914 = vst [vmem:[#allocation22_spill] sm:$0xff] %v10906_v13 }
 0x980   :  { %7423 = vrsqrt.f32 %v3330_v24  ;;  %v2723_v14 = vmul.f32 %v2339_v61, %v2339_v61  ;;  %v13918_v61 = vld [vmem:[#allocation33_spill] sm:$0xff]  ;;  %vm3945_vm13 = vweird.f32 %v3330_v24 }
 0x981   :  { %7425 = vrsqrt.f32 %v3317_v32  ;;  %v5536_v47 = vmul.f32 %v13918_v61, %v13919_v34 }
 0x982   :  { %v2976_v15 = vadd.f32 %v2724_v9, %v2723_v14 }
 0x984   :  { %7284 = vset.pattern.permute.xlu1 %v13573_v62 }
 0x986   :  { %v7424_v49 = vpop.eup %7423 }
 0x987   :  { %v3940_v55 = vmul.f32 %v7424_v49, %v3330_v24  ;;  %v7426_v42 = vpop.eup %7425  ;;  %vm3946_vm12 = vweird.f32 %v7424_v49  ;;  %v3221_v24 = vld [vmem:[%s13034_s2 + $0x160] sm:$0xff] }
 0x988   :  { %v3810_v20 = vmul.f32 %v7426_v42, %v3317_v32  ;;  %vm3947_vm14 = vmor %vm3945_vm13, %vm3946_vm12  ;;  %vm3816_vm15 = vweird.f32 %v7426_v42  ;;  %v10945_v32 = vmul.f32 0.0051020407, %v10666_v12  ;;  %v7542_v12 = vld [vmem:[%s13034_s2 + $0xf0] sm:$0xff] }
 0x989   :  { %v3941_v6 = vmul.f32 %v7424_v49, %v3940_v55  ;;  %vm3817_vm3 = vmor %vm3815_vm2, %vm3816_vm15 }
 0x98a   :  { %v3811_v16 = vmul.f32 %v7426_v42, %v3810_v20  ;;  %13922 = vst [vmem:[#allocation33_spill] sm:$0xff] %v10945_v32 }
 0x98b   :  { %2078 = vadd.xlane.f32.xlu2 %v2077_v17  ;;  %v1564_v17 = vpop.f32.mrf.mxu2  ;;  %v10900_v53 = vpop.xlane.xlu1 %2968  ;;  %v3942_v37 = vmul.f32 0.5, %v3941_v6 }
 0x98c   :  { %v10908_v3 = vadd.f32 %v1813_v4, %v1564_v17  ;;  %v3812_v17 = vmul.f32 0.5, %v3811_v16  ;;  %v13917_v4 = vld [vmem:[#allocation57_spill] sm:$0xff] }
 0x98d   :  { %v3943_v60 = vsub.f32 1.5, %v3942_v37  ;;  %v5535_v55 = vmul.f32 %v13918_v61, %v13917_v4  ;;  %v13923_v4 = vld [vmem:[#allocation84_spill] sm:$0xff]  ;;  %v3133_v61 = vmul.f32 0.0051020407, %v10593_v19 }
 0x98e   :  { %13915 = vst [vmem:[#allocation196_spill] sm:$0xff] %v10908_v3  ;;  %v2098_v22 = vadd.f32 %v10908_v3, %v10906_v13 }
 0x98f   :  { %v3944_v9 = vmul.f32 %v7424_v49, %v3943_v60 }
 0x991   :  { %v3948_v6 = vsel %vm3947_vm14, %v7424_v49, %v3944_v9  ;;  %v1815_v49 = vpop.f32.mrf.mxu3 }
 0x993   :  { %v1566_v60 = vpop.f32.mrf.mxu2 }
 0x9a3   :  { %v10914_v2 = vpop.permute.xlu1 %4699  ;;  %5850 = vperm.xlu2 %7291, %v4940_v29   ;;  %v1317_v29 = vpop.f32.mrf.mxu1 }
 0x9a4   :  { %13916 = vst [vmem:[#allocation197_spill] sm:$0xff] %v10914_v2  ;;  %v1068_v2 = vpop.f32.mrf.mxu0 }
 0x9a5   :  { %v10921_v20 = vadd.f32 %v1317_v29, %v1068_v2  ;;  %v3325_v29 = vadd.f32 0.001, %v3133_v61  ;;  %v3141_v61 = vmul.f32 0.0051020407, %v10415_v28 }
 0x9a6   :  { %2099 = vadd.xlane.f32.xlu0 %v2098_v22  ;;  %2977 = vadd.xlane.f32.xlu1 %v2976_v15  ;;  %v3813_v22 = vsub.f32 1.5, %v3812_v17  ;;  %v3234_v15 = vld [vmem:[%s13034_s2 + $0x1c8] sm:$0xff]  ;;  %v10942_v17 = vadd.f32 %v1815_v49, %v1566_v60 }
 0x9a7   :  { %v10932_v2 = vmul.f32 %v3948_v6, %v3234_v15  ;;  %7427 = vrsqrt.f32 %v3325_v29  ;;  %vm3895_vm5 = vweird.f32 %v3325_v29 }
 0x9a8   :  { %v3814_v14 = vmul.f32 %v7426_v42, %v3813_v22  ;;  %v13926_v22 = vld [vmem:[#allocation113_spill] sm:$0xff] }
 0x9a9   :  { %v4935_v6 = vsub.f32 %v7542_v12, %v13926_v22  ;;  %v3333_v12 = vadd.f32 0.001, %v3141_v61  ;;  %v13929_v22 = vld [vmem:[#allocation170_spill] sm:$0xff] }
 0x9aa   :  { %v3818_v37 = vsel %vm3817_vm3, %v7426_v42, %v3814_v14 }
 0x9ab   :  { %v5811_v58 = vpop.permute.xlu1 %5810  ;;  %7293 = vset.pattern.permute.xlu2 %v13567_v57  ;;  %v10939_v16 = vmul.f32 %v3818_v37, %v3221_v24  ;;  %7429 = vrsqrt.f32 %v3333_v12  ;;  %vm3975_vm8 = vweird.f32 %v3333_v12 }
 0x9ac   :  { %v6207_v13 = vadd.f32 %v5811_v58, %v5535_v55  ;;  %v6208_v3 = vadd.f32 %v5811_v58, %v5536_v47  ;;  %v13924_v55 = vld [vmem:[#allocation126_spill] sm:$0xff]  ;;  %v1818_v60 = vpop.f32.mrf.mxu3 }
 0x9ad   :  { %13921 = vst [vmem:[#allocation57_spill] sm:$0xff] %v10939_v16  ;;  %v4469_v42 = vmul.f32 %v10939_v16, %v13923_v4  ;;  %v2354_v34 = vsub.f32 %v13924_v55, %v10945_v32  ;;  %v13925_v47 = vld [vmem:[#allocation94_spill] sm:$0xff]  ;;  %v7428_v37 = vpop.eup %7427 }
 0x9ae   :  { %6399 = vst [vmem:[%s13035_s3 + $0x1b0] sm:$0xff] %v6207_v13  ;;  %v13920_v13 = vld [vmem:[#allocation7_spill] sm:$0xff]  ;;  %v2353_v58 = vsub.f32 %v13925_v47, %v10945_v32  ;;  %v3890_v24 = vmul.f32 %v7428_v37, %v3325_v29  ;;  %vm3896_vm4 = vweird.f32 %v7428_v37 }
 0x9af   :  { %6400 = vst [vmem:[%s13035_s3 + $0x1b8] sm:$0xff] %v6208_v3  ;;  %v4482_v3 = vmul.f32 %v10932_v2, %v13920_v13  ;;  %v2546_v9 = vsel %vm2216_vm1, %v2354_v34, 0.0  ;;  %v1071_v13 = vpop.f32.mrf.mxu0  ;;  %v10968_v34 = vmul.f32 0.0051020407, %v10368_v38  ;;  %vm3897_vm6 = vmor %vm3895_vm5, %vm3896_vm4 }
 0x9b0   :  { %v2737_v19 = vmul.f32 %v2353_v58, %v2353_v58  ;;  %v2738_v15 = vmul.f32 %v2546_v9, %v2546_v9  ;;  %v1569_v49 = vpop.f32.mrf.mxu2  ;;  %v3891_v58 = vmul.f32 %v7428_v37, %v3890_v24  ;;  %v10970_v9 = vpop.xlane.xlu0 %2090 }
 0x9b2   :  { %v2997_v14 = vadd.f32 %v2738_v15, %v2737_v19  ;;  %v3892_v19 = vmul.f32 0.5, %v3891_v58  ;;  %v13930_v15 = vld [vmem:[#allocation66_spill] sm:$0xff] }
 0x9b4   :  { %v1820_v58 = vpop.f32.mrf.mxu3 }
 0x9b7   :  { %v1073_v61 = vpop.f32.mrf.mxu0 }
 0x9b8   :  { %v10978_v28 = vpop.permute.xlu0 %4725 }
 0x9b9   :  { %13931 = vst [vmem:[#allocation84_spill] sm:$0xff] %v10978_v28 }
 0x9ba   :  { %4731 = vrot.lane.b32.xlu0 %v4482_v3, %s7591_s23  ;;  %v1320_v3 = vpop.f32.mrf.mxu1 }
 0x9bb   :  { %v10962_v4 = vadd.f32 %v1320_v3, %v1071_v13  ;;  %v3893_v13 = vsub.f32 1.5, %v3892_v19 }
 0x9bd   :  { %13927 = vst [vmem:[#allocation58_spill] sm:$0xff] %v10962_v4  ;;  %v3894_v24 = vmul.f32 %v7428_v37, %v3893_v13 }
 0x9bf   :  { %4705 = vrot.lane.b32.xlu1 %v4469_v42, %s7591_s23  ;;  %v10964_v42 = vadd.f32 %v1818_v60, %v1569_v49  ;;  %v7430_v60 = vpop.eup %7429  ;;  %v3898_v32 = vsel %vm3897_vm6, %v7428_v37, %v3894_v24 }
 0x9c0   :  { %vm3976_vm7 = vweird.f32 %v7430_v60 }
 0x9c1   :  { %13928 = vst [vmem:[#allocation7_spill] sm:$0xff] %v10964_v42  ;;  %vm3977_vm9 = vmor %vm3975_vm8, %vm3976_vm7 }
 0x9c2   :  { %v1322_v55 = vpop.f32.mrf.mxu1 }
 0x9c3   :  { %v10984_v19 = vadd.f32 %v1322_v55, %v1073_v61 }
 0x9c5   :  { %13932 = vst [vmem:[#allocation113_spill] sm:$0xff] %v10984_v19 }
 0x9c7   :  { %5825 = vperm.xlu1 %7284, %v4935_v6   ;;  %v2368_v6 = vsub.f32 %v13929_v22, %v10968_v34  ;;  %v1571_v22 = vpop.f32.mrf.mxu2 }
 0x9c9   :  { %v2560_v3 = vsel %vm2216_vm1, %v2368_v6, 0.0  ;;  %v3229_v6 = vld [vmem:[%s13034_s2 + $0x1a0] sm:$0xff] }
 0x9ca   :  { %v2752_v49 = vmul.f32 %v2560_v3, %v2560_v3  ;;  %v10990_v29 = vmul.f32 %v3898_v32, %v3229_v6 }
 0x9cc   :  { %2998 = vadd.xlane.f32.xlu2 %v2997_v14  ;;  %v2367_v14 = vsub.f32 %v13930_v15, %v10968_v34  ;;  %v3970_v15 = vmul.f32 %v7430_v60, %v3333_v12  ;;  %v4477_v37 = vmul.f32 %v10990_v29, %v10396_v35  ;;  %v2086_v12 = vadd.f32 %v10741_v10, %v10735_v1 }
 0x9ce   :  { %v2751_v38 = vmul.f32 %v2367_v14, %v2367_v14  ;;  %v10986_v14 = vadd.f32 %v1820_v58, %v1571_v22  ;;  %v3971_v3 = vmul.f32 %v7430_v60, %v3970_v15  ;;  %v13936_v58 = vld [vmem:[#allocation60_spill] sm:$0xff] }
 0x9cf   :  { %7286 = vset.pattern.permute.xlu1 %v13567_v57  ;;  %v2065_v6 = vadd.f32 %v13936_v58, %v10467_v21  ;;  %v13943_v58 = vld [vmem:[#allocation28_spill] sm:$0xff] }
 0x9d0   :  { %v3018_v47 = vadd.f32 %v2752_v49, %v2751_v38  ;;  %13933 = vst [vmem:[#allocation198_spill] sm:$0xff] %v10986_v14  ;;  %v2107_v38 = vadd.f32 %v10986_v14, %v10984_v19  ;;  %v3972_v49 = vmul.f32 0.5, %v3971_v3  ;;  %v3237_v3 = vld [vmem:[%s13034_s2 + $0x1e0] sm:$0xff] }
 0x9d2   :  { %v3973_v15 = vsub.f32 1.5, %v3972_v49 }
 0x9d4   :  { %v3974_v35 = vmul.f32 %v7430_v60, %v3973_v15 }
 0x9db   :  { %v10988_v13 = vpop.xlane.xlu0 %3010 }
 0x9e4   :  { %3019 = vadd.xlane.f32.xlu0 %v3018_v47  ;;  %5258 = vperm.xlu2 %7293, %v10653_v7   ;;  %v13934_v7 = vld [vmem:[#allocation90_spill] sm:$0xff]  ;;  %v13935_v47 = vld [vmem:[#allocation91_spill] sm:$0xff] }
 0x9e5   :  { %v5561_v55 = vmul.f32 %v10893_v36, %v13934_v7  ;;  %v5562_v22 = vmul.f32 %v10893_v36, %v13935_v47  ;;  %v3978_v36 = vsel %vm3977_vm9, %v7430_v60, %v3974_v35  ;;  %v3144_v7 = vmul.f32 0.0051020407, %v10547_v44  ;;  %v11026_v47 = vpop.xlane.xlu1 %2057  ;;  %v13940_v44 = vld [vmem:[#allocation161_spill] sm:$0xff] }
 0x9e7   :  { %v3336_v60 = vadd.f32 0.001, %v3144_v7 }
 0x9e9   :  { %7431 = vrsqrt.f32 %v3336_v60  ;;  %vm4005_vm11 = vweird.f32 %v3336_v60 }
 0x9ec   :  { %2108 = vadd.xlane.f32.xlu0 %v2107_v38  ;;  %4721 = vrot.lane.b32.xlu2 %v4477_v37, %s7591_s23  ;;  %v11013_v38 = vmul.f32 %v3978_v36, %v3237_v3  ;;  %v13937_v37 = vld [vmem:[#allocation10_spill] sm:$0xff] }
 0x9ed   :  { %7295 = vset.pattern.permute.xlu2 %v13573_v62 }
 0x9ee   :  { %v5876_v32 = vpop.permute.xlu0 %5875  ;;  %v4485_v49 = vmul.f32 %v11013_v38, %v13937_v37  ;;  %v11033_v35 = vpop.permute.xlu1 %5218 }
 0x9ef   :  { %v6233_v24 = vadd.f32 %v5876_v32, %v5561_v55  ;;  %v6234_v61 = vadd.f32 %v5876_v32, %v5562_v22  ;;  %v11024_v55 = vmul.f32 0.0051020407, %v10529_v43  ;;  %v13938_v22 = vld [vmem:[#allocation175_spill] sm:$0xff]  ;;  %v7432_v15 = vpop.eup %7431  ;;  %v13941_v43 = vld [vmem:[#allocation122_spill] sm:$0xff] }
 0x9f0   :  { %v11038_v37 = vmul.f32 0.0051020407, %v13941_v43  ;;  %vm4006_vm10 = vweird.f32 %v7432_v15 }
 0x9f1   :  { %6425 = vst [vmem:[%s13035_s3 + $0x280] sm:$0xff] %v6233_v24  ;;  %2066 = vadd.xlane.f32.xlu1 %v2065_v6  ;;  %v2374_v32 = vsub.f32 %v13938_v22, %v11024_v55  ;;  %v4000_v6 = vmul.f32 %v7432_v15, %v3336_v60  ;;  %v13942_v22 = vld [vmem:[#allocation29_spill] sm:$0xff]  ;;  %vm4007_vm12 = vmor %vm4005_vm11, %vm4006_vm10 }
 0x9f2   :  { %6426 = vst [vmem:[%s13035_s3 + $0x288] sm:$0xff] %v6234_v61  ;;  %v2373_v61 = vsub.f32 %v13940_v44, %v11024_v55  ;;  %v2345_v16 = vsub.f32 %v13943_v58, %v11038_v37 }
 0x9f3   :  { %v2566_v36 = vsel %vm2216_vm1, %v2374_v32, 0.0  ;;  %v4943_v32 = vsub.f32 %v10621_v40, %v10763_v45  ;;  %v3240_v40 = vld [vmem:[%s13034_s2 + $0x1f8] sm:$0xff]  ;;  %v13945_v45 = vld [vmem:[#allocation64_spill] sm:$0xff] }
 0x9f4   :  { %v2758_v7 = vmul.f32 %v2566_v36, %v2566_v36  ;;  %v2729_v36 = vmul.f32 %v2345_v16, %v2345_v16  ;;  %v13946_v16 = vld [vmem:[#allocation179_spill] sm:$0xff] }
 0xa00   :  { %4737 = vrot.lane.b32.xlu0 %v4485_v49, %s7591_s23  ;;  %v2757_v49 = vmul.f32 %v2373_v61, %v2373_v61 }
 0xa02   :  { %v3027_v28 = vadd.f32 %v2758_v7, %v2757_v49 }
 0xa0a   :  { %5233 = vperm.xlu1 %7286, %v10662_v48   ;;  %v13939_v48 = vld [vmem:[#allocation178_spill] sm:$0xff] }
 0xa0b   :  { %v3128_v24 = vmul.f32 0.0051020407, %v13939_v48  ;;  %v2346_v48 = vsub.f32 %v13942_v22, %v11038_v37 }
 0xa0d   :  { %v3320_v3 = vadd.f32 0.001, %v3128_v24  ;;  %v2538_v24 = vsel %vm2216_vm1, %v2346_v48, 0.0  ;;  %v5541_v48 = vmul.f32 %v13946_v16, %v13945_v45  ;;  %v3136_v45 = vmul.f32 0.0051020407, %v10756_v27 }
 0xa0e   :  { %v2730_v43 = vmul.f32 %v2538_v24, %v2538_v24 }
 0xa0f   :  { %7433 = vrsqrt.f32 %v3320_v3  ;;  %vm3845_vm14 = vweird.f32 %v3320_v3 }
 0xa12   :  { %7288 = vset.pattern.permute.xlu1 %v13573_v62 }
 0xa15   :  { %2087 = vadd.xlane.f32.xlu2 %v2086_v12  ;;  %v4001_v12 = vmul.f32 %v7432_v15, %v4000_v6  ;;  %v7434_v61 = vpop.eup %7433 }
 0xa16   :  { %v3840_v22 = vmul.f32 %v7434_v61, %v3320_v3  ;;  %vm3846_vm13 = vweird.f32 %v7434_v61  ;;  %v13952_v3 = vld [vmem:[#allocation153_spill] sm:$0xff] }
 0xa17   :  { %v4002_v21 = vmul.f32 0.5, %v4001_v12  ;;  %v2985_v12 = vadd.f32 %v2730_v43, %v2729_v36  ;;  %vm3847_vm15 = vmor %vm3845_vm14, %vm3846_vm13 }
 0xa18   :  { %v3841_v58 = vmul.f32 %v7434_v61, %v3840_v22 }
 0xa19   :  { %v11042_v44 = vpop.xlane.xlu1 %2977  ;;  %v4003_v6 = vsub.f32 1.5, %v4002_v21 }
 0xa1a   :  { %v3842_v21 = vmul.f32 0.5, %v3841_v58 }
 0xa1b   :  { %v4004_v49 = vmul.f32 %v7432_v15, %v4003_v6 }
 0xa1c   :  { %v3843_v43 = vsub.f32 1.5, %v3842_v21 }
 0xa1e   :  { %v3844_v58 = vmul.f32 %v7434_v61, %v3843_v43 }
 0xa2a   :  { %3028 = vadd.xlane.f32.xlu0 %v3027_v28  ;;  %v4008_v28 = vsel %vm4007_vm12, %v7432_v15, %v4004_v49  ;;  %v13948_v15 = vld [vmem:[#allocation4_spill] sm:$0xff] }
 0xa2b   :  { %v11060_v6 = vmul.f32 %v4008_v28, %v3240_v40  ;;  %v3224_v28 = vld [vmem:[%s13034_s2 + $0x178] sm:$0xff]  ;;  %v11075_v40 = vmul.f32 0.0051020407, %v10829_v50 }
 0xa2d   :  { %5865 = vperm.xlu2 %7295, %v4943_v32   ;;  %v13947_v32 = vld [vmem:[#allocation65_spill] sm:$0xff]  ;;  %v4488_v49 = vmul.f32 %v11060_v6, %v13948_v15  ;;  %13949 = vst [vmem:[#allocation91_spill] sm:$0xff] %v11075_v40  ;;  %v7543_v15 = vld [vmem:[%s13034_s2 + $0x108] sm:$0xff] }
 0xa2e   :  { %v5542_v24 = vmul.f32 %v13946_v16, %v13947_v32  ;;  %v13950_v16 = vld [vmem:[#allocation141_spill] sm:$0xff]  ;;  %v13951_v32 = vld [vmem:[#allocation15_spill] sm:$0xff] }
 0xa31   :  { %v11050_v7 = vpop.permute.xlu1 %4705 }
 0xa32   :  { %13944 = vst [vmem:[#allocation90_spill] sm:$0xff] %v11050_v7 }
 0xa34   :  { %2986 = vadd.xlane.f32.xlu1 %v2985_v12  ;;  %v3848_v12 = vsel %vm3847_vm15, %v7434_v61, %v3844_v58  ;;  %v2359_v61 = vsub.f32 %v13952_v3, %v11075_v40 }
 0xa35   :  { %7297 = vset.pattern.permute.xlu2 %v13567_v57  ;;  %v11077_v21 = vmul.f32 %v3848_v12, %v3224_v28 }
 0xa39   :  { %v5826_v60 = vpop.permute.xlu1 %5825 }
 0xa3a   :  { %v6213_v22 = vadd.f32 %v5826_v60, %v5541_v48  ;;  %v6214_v36 = vadd.f32 %v5826_v60, %v5542_v24  ;;  %v2360_v48 = vsub.f32 %v13950_v16, %v11075_v40  ;;  %v4472_v24 = vmul.f32 %v11077_v21, %v13951_v32 }
 0xa3b   :  { %v3328_v60 = vadd.f32 0.001, %v3136_v45  ;;  %v11095_v45 = vmul.f32 0.0051020407, %v10675_v51 }
 0xa3c   :  { %6405 = vst [vmem:[%s13035_s3 + $0x1e0] sm:$0xff] %v6213_v22  ;;  %v2552_v50 = vsel %vm2216_vm1, %v2360_v48, 0.0  ;;  %v3147_v22 = vmul.f32 0.0051020407, %v10701_v30 }
 0xa3d   :  { %6406 = vst [vmem:[%s13035_s3 + $0x1e8] sm:$0xff] %v6214_v36  ;;  %7435 = vrsqrt.f32 %v3328_v60  ;;  %v2743_v36 = vmul.f32 %v2359_v61, %v2359_v61  ;;  %v2744_v27 = vmul.f32 %v2552_v50, %v2552_v50  ;;  %v2380_v30 = vsub.f32 %v10500_v8, %v11095_v45 }
 0xa3e   :  { %4743 = vrot.lane.b32.xlu0 %v4488_v49, %s7591_s23  ;;  %v3339_v43 = vadd.f32 0.001, %v3147_v22  ;;  %v13953_v49 = vld [vmem:[#allocation21_spill] sm:$0xff]  ;;  %v2379_v61 = vsub.f32 %v10498_v18, %v11095_v45  ;;  %vm3925_vm3 = vweird.f32 %v3328_v60 }
 0xa3f   :  { %v4938_v58 = vsub.f32 %v7543_v15, %v13953_v49  ;;  %v3006_v12 = vadd.f32 %v2744_v27, %v2743_v36  ;;  %v2572_v22 = vsel %vm2216_vm1, %v2380_v30, 0.0  ;;  %v11107_v18 = vld [vmem:[%s13034_s2 + $0x1b8] sm:$0xff] }
 0xa40   :  { %7437 = vrsqrt.f32 %v3339_v43  ;;  %v2763_v27 = vmul.f32 %v2379_v61, %v2379_v61  ;;  %v2764_v15 = vmul.f32 %v2572_v22, %v2572_v22  ;;  %vm4035_vm6 = vweird.f32 %v3339_v43 }
 0xa41   :  { %v11137_v22 = vmul.f32 0.0051020407, %v10834_v31 }
 0xa43   :  { %v7436_v28 = vpop.eup %7435  ;;  %v2386_v31 = vsub.f32 %v10631_v52, %v11137_v22 }
 0xa44   :  { %v3920_v48 = vmul.f32 %v7436_v28, %v3328_v60  ;;  %vm3926_vm2 = vweird.f32 %v7436_v28  ;;  %v3243_v60 = vld [vmem:[%s13034_s2 + $0x210] sm:$0xff] }
 0xa45   :  { %vm3927_vm4 = vmor %vm3925_vm3, %vm3926_vm2 }
 0xa46   :  { %v7438_v32 = vpop.eup %7437 }
 0xa47   :  { %v4030_v50 = vmul.f32 %v7438_v32, %v3339_v43  ;;  %vm4036_vm5 = vweird.f32 %v7438_v32  ;;  %v3150_v43 = vmul.f32 0.0051020407, %v10860_v33  ;;  %v6921_v33 = vld [vmem:[%s13033_s1 + $0x2f8] sm:$0xf0] }
 0xa48   :  { %vm4037_vm7 = vmor %vm4035_vm6, %vm4036_vm5 }
 0xa49   :  { %v4031_v51 = vmul.f32 %v7438_v32, %v4030_v50  ;;  %v7236_v50 = vld [vmem:[%s13033_s1 + $0x2f4] sm:$0xf0] }
 0xa4d   :  { %4711 = vrot.lane.b32.xlu1 %v4472_v24, %s7591_s23  ;;  %v3921_v24 = vmul.f32 %v7436_v28, %v3920_v48 }
 0xa4f   :  { %v3922_v36 = vmul.f32 0.5, %v3921_v24 }
 0xa51   :  { %v3923_v49 = vsub.f32 1.5, %v3922_v36 }
 0xa53   :  { %v3924_v8 = vmul.f32 %v7436_v28, %v3923_v49  ;;  %v3139_v49 = vmul.f32 0.0051020407, %v10900_v53 }
 0xa55   :  { %5840 = vperm.xlu1 %7288, %v4938_v58   ;;  %v3036_v58 = vadd.f32 %v2764_v15, %v2763_v27  ;;  %v3928_v16 = vsel %vm3927_vm4, %v7436_v28, %v3924_v8  ;;  %v2052_v15 = vpop.xlane.xlu2 %2051 }
 0xa56   :  { %3007 = vadd.xlane.f32.xlu2 %v3006_v12  ;;  %v4032_v12 = vmul.f32 0.5, %v4031_v51  ;;  %v11111_v24 = vmul.f32 %v3928_v16, %v11107_v18  ;;  %v2074_v16 = vadd.f32 %v10568_v59, %v10560_v11  ;;  %v11142_v51 = vmul.f32 0.0051020407, %v2052_v15  ;;  %v13994_v11 = vld [vmem:[#allocation192_spill] sm:$0xff] }
 0xa58   :  { %v4033_v48 = vsub.f32 1.5, %v4032_v12  ;;  %v4480_v8 = vmul.f32 %v11111_v24, %v10575_v46  ;;  %v6919_v46 = vld [vmem:[%s13033_s1 + $0x2f0] sm:$0xf]  ;;  %13954 = vst [vmem:[#allocation10_spill] sm:$0xff] %v11142_v51  ;;  %v13955_v12 = vld [vmem:[#allocation169_spill] sm:$0xff] }
 0xa59   :  { %v6920_v36 = vor.u32 %v7236_v50, %v6919_v46 }
 0xa5a   :  { %v4034_v30 = vmul.f32 %v7438_v32, %v4033_v48  ;;  %v2366_v48 = vsub.f32 %v13955_v12, %v11142_v51  ;;  %v11190_v12 = vld [vmem:[%s13034_s2 + $0x1d0] sm:$0xff] }
 0xa5b   :  { %1573 = vmatmul.bf16.gmra.mxu2 %v6920_v36  ;;  %1075 = vmatmul.bf16.gmra.mxu0 %v6920_v36 }
 0xa5c   :  { %v4038_v61 = vsel %vm4037_vm7, %v7438_v32, %v4034_v30  ;;  %v3342_v32 = vadd.f32 0.001, %v3150_v43  ;;  %v2385_v30 = vsub.f32 %v10629_v5, %v11137_v22  ;;  %v2558_v46 = vsel %vm2216_vm1, %v2366_v48, 0.0 }
 0xa5d   :  { %7290 = vset.pattern.permute.xlu1 %v13567_v57  ;;  %v11119_v28 = vmul.f32 %v4038_v61, %v3243_v60  ;;  %v2095_v61 = vadd.f32 %v10884_v26, %v10882_v39  ;;  %v2578_v60 = vsel %vm2216_vm1, %v2386_v31, 0.0  ;;  %v2750_v36 = vmul.f32 %v2558_v46, %v2558_v46 }
 0xa5e   :  { %7439 = vrsqrt.f32 %v3342_v32  ;;  %v2769_v43 = vmul.f32 %v2385_v30, %v2385_v30  ;;  %v2770_v53 = vmul.f32 %v2578_v60, %v2578_v60  ;;  %v13958_v60 = vld [vmem:[#allocation183_spill] sm:$0xff]  ;;  %vm4065_vm8 = vweird.f32 %v3342_v32 }
 0xa5f   :  { %v3131_v5 = vmul.f32 0.0051020407, %v13958_v60 }
 0xa64   :  { %v11163_v52 = vpop.xlane.xlu1 %2066 }
 0xa65   :  { %13957 = vst [vmem:[#allocation178_spill] sm:$0xff] %v11163_v52 }
 0xa68   :  { %3037 = vadd.xlane.f32.xlu0 %v3036_v58  ;;  %v7440_v58 = vpop.eup %7439 }
 0xa6e   :  { %5273 = vperm.xlu2 %7297, %v10805_v41   ;;  %v4491_v41 = vmul.f32 %v11119_v28, %v10527_v25  ;;  %v7235_v25 = vld [vmem:[%s13033_s1 + $0x2f4] sm:$0xf] }
 0xa6f   :  { %v6924_v27 = vor.u32 %v7235_v25, %v6921_v33  ;;  %v3045_v33 = vadd.f32 %v2770_v53, %v2769_v43  ;;  %v13959_v43 = vld [vmem:[#allocation184_spill] sm:$0xff] }
 0xa70   :  { %v11169_v53 = vmul.f32 0.0051020407, %v13959_v43 }
 0xa71   :  { %7116 = vmatmul.msk.bf16.gmra.mxu3 %vm687_vm0, %v6924_v27  ;;  %7068 = vmatmul.msk.bf16.gmra.mxu1 %vm687_vm0, %v6924_v27  ;;  %vm4066_vm0 = vweird.f32 %v7440_v58 }
 0xa72   :  { %vm4067_vm9 = vmor %vm4065_vm8, %vm4066_vm0 }
 0xa76   :  { %4727 = vrot.lane.b32.xlu2 %v4480_v8, %s7591_s23  ;;  %v13956_v8 = vld [vmem:[#allocation47_spill] sm:$0xff] }
 0xa7c   :  { %4749 = vrot.lane.b32.xlu0 %v4491_v41, %s7591_s23  ;;  %v2365_v41 = vsub.f32 %v13956_v8, %v11142_v51  ;;  %v13967_v8 = vld [vmem:[#allocation186_spill] sm:$0xff] }
 0xa7e   :  { %v2749_v25 = vmul.f32 %v2365_v41, %v2365_v41  ;;  %v3323_v41 = vadd.f32 0.001, %v3131_v5  ;;  %v13961_v5 = vld [vmem:[#allocation176_spill] sm:$0xff] }
 0xa7f   :  { %2075 = vadd.xlane.f32.xlu1 %v2074_v16  ;;  %v4060_v16 = vmul.f32 %v7440_v58, %v3342_v32 }
 0xa80   :  { %v3015_v15 = vadd.f32 %v2750_v36, %v2749_v25  ;;  %vm3875_vm14 = vweird.f32 %v3323_v41 }
 0xa81   :  { %v4061_v50 = vmul.f32 %v7440_v58, %v4060_v16  ;;  %v11166_v16 = vpop.permute.xlu1 %5233 }
 0xa83   :  { %v4062_v27 = vmul.f32 0.5, %v4061_v50  ;;  %v3246_v50 = vld [vmem:[%s13034_s2 + $0x228] sm:$0xff] }
 0xa98   :  { %5248 = vperm.xlu1 %7290, %v10844_v0   ;;  %v3331_v0 = vadd.f32 0.001, %v3139_v49  ;;  %v4063_v49 = vsub.f32 1.5, %v4062_v27 }
 0xa9a   :  { %7441 = vrsqrt.f32 %v3331_v0  ;;  %v4064_v48 = vmul.f32 %v7440_v58, %v4063_v49  ;;  %v2351_v49 = vsub.f32 %v13961_v5, %v11169_v53  ;;  %vm3955_vm11 = vweird.f32 %v3331_v0 }
 0xa9b   :  { %7443 = vrsqrt.f32 %v3323_v41 }
 0xa9c   :  { %v4068_v46 = vsel %vm4067_vm9, %v7440_v58, %v4064_v48  ;;  %v2735_v43 = vmul.f32 %v2351_v49, %v2351_v49  ;;  %v13965_v49 = vld [vmem:[#allocation167_spill] sm:$0xff] }
 0xa9d   :  { %v11174_v36 = vmul.f32 %v4068_v46, %v3246_v50 }
 0xa9f   :  { %2096 = vadd.xlane.f32.xlu2 %v2095_v61 }
 0xaa0   :  { %7292 = vset.pattern.permute.xlu1 %v13573_v62  ;;  %v7442_v31 = vpop.eup %7441 }
 0xaa1   :  { %v3950_v30 = vmul.f32 %v7442_v31, %v3331_v0  ;;  %vm3956_vm10 = vweird.f32 %v7442_v31  ;;  %v11198_v0 = vpop.permute.xlu2 %5805 }
 0xaa2   :  { %vm3957_vm12 = vmor %vm3955_vm11, %vm3956_vm10  ;;  %13964 = vst [vmem:[#allocation64_spill] sm:$0xff] %v11198_v0  ;;  %v14002_v0 = vld [vmem:[#allocation80_spill] sm:$0xff] }
 0xaa3   :  { %v3951_v61 = vmul.f32 %v7442_v31, %v3950_v30  ;;  %v13962_v30 = vld [vmem:[#allocation5_spill] sm:$0xff] }
 0xaa4   :  { %v4494_v58 = vmul.f32 %v11174_v36, %v13962_v30 }
 0xaa5   :  { %v3952_v25 = vmul.f32 0.5, %v3951_v61  ;;  %v7444_v61 = vpop.eup %7443 }
 0xaa6   :  { %3046 = vadd.xlane.f32.xlu0 %v3045_v33  ;;  %v13960_v33 = vld [vmem:[#allocation177_spill] sm:$0xff]  ;;  %v3870_v50 = vmul.f32 %v7444_v61, %v3323_v41  ;;  %vm3876_vm13 = vweird.f32 %v7444_v61 }
 0xaa7   :  { %3016 = vadd.xlane.f32.xlu2 %v3015_v15  ;;  %v2352_v27 = vsub.f32 %v13960_v33, %v11169_v53  ;;  %v3953_v32 = vsub.f32 1.5, %v3952_v25  ;;  %v11178_v15 = vpop.xlane.xlu1 %2986  ;;  %v13968_v33 = vld [vmem:[#allocation73_spill] sm:$0xff]  ;;  %vm3877_vm15 = vmor %vm3875_vm14, %vm3876_vm13 }
 0xaa8   :  { %v5548_v5 = vmul.f32 %v13967_v8, %v13968_v33 }
 0xaa9   :  { %v2544_v60 = vsel %vm2216_vm1, %v2352_v27, 0.0  ;;  %v3954_v48 = vmul.f32 %v7442_v31, %v3953_v32 }
 0xaaa   :  { %v2736_v46 = vmul.f32 %v2544_v60, %v2544_v60 }
 0xaab   :  { %v3958_v25 = vsel %vm3957_vm12, %v7442_v31, %v3954_v48  ;;  %v13966_v48 = vld [vmem:[#allocation72_spill] sm:$0xff] }
 0xaac   :  { %v2994_v27 = vadd.f32 %v2736_v46, %v2735_v43  ;;  %v11196_v32 = vmul.f32 %v3958_v25, %v11190_v12  ;;  %v5547_v3 = vmul.f32 %v13967_v8, %v13966_v48  ;;  %v3153_v25 = vmul.f32 0.0051020407, %v10988_v13  ;;  %v3227_v13 = vld [vmem:[%s13034_s2 + $0x190] sm:$0xff] }
 0xaae   :  { %v4483_v31 = vmul.f32 %v11196_v32, %v13965_v49  ;;  %v3345_v8 = vadd.f32 0.001, %v3153_v25 }
 0xab0   :  { %7445 = vrsqrt.f32 %v3345_v8  ;;  %vm4095_vm3 = vweird.f32 %v3345_v8 }
 0xab6   :  { %v7446_v49 = vpop.eup %7445 }
 0xab7   :  { %vm4096_vm2 = vweird.f32 %v7446_v49 }
 0xab8   :  { %vm4097_vm4 = vmor %vm4095_vm3, %vm4096_vm2 }
 0xaba   :  { %4755 = vrot.lane.b32.xlu0 %v4494_v58, %s7591_s23  ;;  %v3871_v58 = vmul.f32 %v7444_v61, %v3870_v50  ;;  %v11207_v50 = vpop.xlane.xlu2 %2971 }
 0xabc   :  { %v3872_v60 = vmul.f32 0.5, %v3871_v58 }
 0xabe   :  { %v3873_v46 = vsub.f32 1.5, %v3872_v60  ;;  %v4090_v60 = vmul.f32 %v7446_v49, %v3345_v8  ;;  %v2100_v8 = vpop.xlane.xlu0 %2099 }
 0xabf   :  { %v11192_v30 = vpop.permute.xlu1 %4711  ;;  %5288 = vperm.xlu2 %7297, %v10932_v2  }
 0xac0   :  { %13963 = vst [vmem:[#allocation122_spill] sm:$0xff] %v11192_v30 }
 0xac2   :  { %2995 = vadd.xlane.f32.xlu1 %v2994_v27  ;;  %v3874_v27 = vmul.f32 %v7444_v61, %v3873_v46  ;;  %v11222_v33 = vpop.permute.xlu2 %5213  ;;  %v4091_v46 = vmul.f32 %v7446_v49, %v4090_v60 }
 0xac3   :  { %13969 = vst [vmem:[#allocation179_spill] sm:$0xff] %v11222_v33 }
 0xac7   :  { %v5841_v51 = vpop.permute.xlu1 %5840  ;;  %4733 = vrot.lane.b32.xlu2 %v4483_v31, %s7591_s23  ;;  %v13970_v31 = vld [vmem:[#allocation102_spill] sm:$0xff] }
 0xac8   :  { %v6219_v2 = vadd.f32 %v5841_v51, %v5547_v3  ;;  %v6220_v43 = vadd.f32 %v5841_v51, %v5548_v5  ;;  %v11217_v3 = vmul.f32 0.0051020407, %v10970_v9  ;;  %v3878_v51 = vsel %vm3877_vm15, %v7444_v61, %v3874_v27  ;;  %v7544_v27 = vld [vmem:[%s13034_s2 + $0x120] sm:$0xff] }
 0xac9   :  { %v11226_v58 = vmul.f32 %v3878_v51, %v3227_v13  ;;  %v13971_v51 = vld [vmem:[#allocation85_spill] sm:$0xff] }
 0xaca   :  { %6411 = vst [vmem:[%s13035_s3 + $0x210] sm:$0xff] %v6219_v2  ;;  %v2392_v5 = vsub.f32 %v10780_v54, %v11217_v3  ;;  %v2391_v41 = vsub.f32 %v10778_v23, %v11217_v3  ;;  %v4941_v13 = vsub.f32 %v7544_v27, %v13971_v51  ;;  %v4092_v54 = vmul.f32 0.5, %v4091_v46 }
 0xacb   :  { %6412 = vst [vmem:[%s13035_s3 + $0x218] sm:$0xff] %v6220_v43  ;;  %v4475_v9 = vmul.f32 %v11226_v58, %v13970_v31  ;;  %v11235_v43 = vpop.permute.xlu2 %4703 }
 0xacc   :  { %v2584_v61 = vsel %vm2216_vm1, %v2392_v5, 0.0  ;;  %v2775_v48 = vmul.f32 %v2391_v41, %v2391_v41  ;;  %v4093_v23 = vsub.f32 1.5, %v4092_v54  ;;  %v3142_v41 = vmul.f32 0.0051020407, %v11042_v44  ;;  %v3249_v54 = vld [vmem:[%s13034_s2 + $0x240] sm:$0xff] }
 0xacd   :  { %v2776_v2 = vmul.f32 %v2584_v61, %v2584_v61 }
 0xace   :  { %v4094_v60 = vmul.f32 %v7446_v49, %v4093_v23 }
 0xacf   :  { %v3054_v25 = vadd.f32 %v2776_v2, %v2775_v48  ;;  %v2104_v48 = vadd.f32 %v10964_v42, %v10962_v4  ;;  %v13974_v2 = vld [vmem:[#allocation173_spill] sm:$0xff] }
 0xad0   :  { %v4098_v27 = vsel %vm4097_vm4, %v7446_v49, %v4094_v60  ;;  %v11261_v60 = vpop.permute.xlu0 %4731 }
 0xad1   :  { %v11256_v44 = vmul.f32 %v4098_v27, %v3249_v54  ;;  %13975 = vst [vmem:[#allocation4_spill] sm:$0xff] %v11261_v60 }
 0xad3   :  { %v2061_v31 = vpop.xlane.xlu2 %2060 }
 0xad4   :  { %v11241_v5 = vmul.f32 0.0051020407, %v2061_v31  ;;  %v4497_v31 = vmul.f32 %v11256_v44, %v10832_v56 }
 0xad6   :  { %13972 = vst [vmem:[#allocation65_spill] sm:$0xff] %v11241_v5  ;;  %v2371_v46 = vsub.f32 %v13974_v2, %v11241_v5 }
 0xad8   :  { %v2755_v51 = vmul.f32 %v2371_v46, %v2371_v46  ;;  %v13976_v46 = vld [vmem:[#allocation191_spill] sm:$0xff] }
 0xadb   :  { %4717 = vrot.lane.b32.xlu1 %v4475_v9, %s7591_s23  ;;  %v13973_v9 = vld [vmem:[#allocation92_spill] sm:$0xff] }
 0xadc   :  { %v2372_v61 = vsub.f32 %v13973_v9, %v11241_v5 }
 0xade   :  { %v2564_v23 = vsel %vm2216_vm1, %v2372_v61, 0.0 }
 0xae3   :  { %5855 = vperm.xlu1 %7292, %v4941_v13   ;;  %v2756_v13 = vmul.f32 %v2564_v23, %v2564_v23  ;;  %v13977_v23 = vld [vmem:[#allocation74_spill] sm:$0xff] }
 0xae4   :  { %3055 = vadd.xlane.f32.xlu0 %v3054_v25  ;;  %v3334_v25 = vadd.f32 0.001, %v3142_v41  ;;  %v2083_v5 = vadd.f32 %v13977_v23, %v13976_v46 }
 0xae5   :  { %v3024_v9 = vadd.f32 %v2756_v13, %v2755_v51  ;;  %v11265_v51 = vmul.f32 0.0051020407, %v2100_v8  ;;  %v13980_v13 = vld [vmem:[#allocation196_spill] sm:$0xff] }
 0xae6   :  { %7447 = vrsqrt.f32 %v3334_v25  ;;  %vm3985_vm6 = vweird.f32 %v3334_v25 }
 0xaeb   :  { %7294 = vset.pattern.permute.xlu1 %v13567_v57 }
 0xaec   :  { %v7448_v41 = vpop.eup %7447 }
 0xaed   :  { %v3980_v49 = vmul.f32 %v7448_v41, %v3334_v25  ;;  %vm3986_vm5 = vweird.f32 %v7448_v41  ;;  %v1076_v25 = vpop.f32.mrf.mxu0 }
 0xaee   :  { %vm3987_vm7 = vmor %vm3985_vm6, %vm3986_vm5 }
 0xaef   :  { %v3981_v2 = vmul.f32 %v7448_v41, %v3980_v49 }
 0xaf0   :  { %2105 = vadd.xlane.f32.xlu2 %v2104_v48  ;;  %v3020_v48 = vpop.xlane.xlu0 %3019 }
 0xaf1   :  { %v3982_v61 = vmul.f32 0.5, %v3981_v2  ;;  %v3156_v27 = vmul.f32 0.0051020407, %v3020_v48  ;;  %v11270_v2 = vpop.permute.xlu2 %5820  ;;  %v13983_v48 = vld [vmem:[#allocation146_spill] sm:$0xff] }
 0xaf2   :  { %13978 = vst [vmem:[#allocation15_spill] sm:$0xff] %v11270_v2 }
 0xaf3   :  { %v3983_v33 = vsub.f32 1.5, %v3982_v61  ;;  %v3348_v30 = vadd.f32 0.001, %v3156_v27 }
 0xaf5   :  { %v3984_v54 = vmul.f32 %v7448_v41, %v3983_v33  ;;  %7449 = vrsqrt.f32 %v3348_v30  ;;  %vm4125_vm8 = vweird.f32 %v3348_v30 }
 0xaf7   :  { %v3988_v56 = vsel %vm3987_vm7, %v7448_v41, %v3984_v54  ;;  %v13982_v41 = vld [vmem:[#allocation22_spill] sm:$0xff] }
 0xaf8   :  { %4761 = vrot.lane.b32.xlu0 %v4497_v31, %s7591_s23  ;;  %3025 = vadd.xlane.f32.xlu2 %v3024_v9  ;;  %v3238_v9 = vld [vmem:[%s13034_s2 + $0x1e8] sm:$0xff]  ;;  %v2398_v31 = vsub.f32 %v13980_v13, %v11265_v51  ;;  %v2397_v61 = vsub.f32 %v13982_v41, %v11265_v51  ;;  %v1823_v13 = vpop.f32.mrf.mxu3 }
 0xaf9   :  { %v11273_v33 = vmul.f32 %v3988_v56, %v3238_v9  ;;  %v1574_v9 = vpop.f32.mrf.mxu2 }
 0xafa   :  { %v2590_v54 = vsel %vm2216_vm1, %v2398_v31, 0.0  ;;  %v2781_v60 = vmul.f32 %v2397_v61, %v2397_v61 }
 0xafb   :  { %13979 = vst [vmem:[#allocation21_spill] sm:$0xff] %v11273_v33  ;;  %v7450_v8 = vpop.eup %7449  ;;  %v4486_v27 = vmul.f32 %v11273_v33, %v13983_v48 }
 0xafc   :  { %v4120_v56 = vmul.f32 %v7450_v8, %v3348_v30  ;;  %vm4126_vm0 = vweird.f32 %v7450_v8  ;;  %v1078_v30 = vpop.f32.mrf.mxu0 }
 0xafd   :  { %vm4127_vm9 = vmor %vm4125_vm8, %vm4126_vm0 }
 0xafe   :  { %v4121_v40 = vmul.f32 %v7450_v8, %v4120_v56 }
 0xb00   :  { %v4122_v41 = vmul.f32 0.5, %v4121_v40  ;;  %v2109_v40 = vpop.xlane.xlu0 %2108 }
 0xb02   :  { %v4123_v48 = vsub.f32 1.5, %v4122_v41  ;;  %v11301_v41 = vpop.xlane.xlu1 %2075 }
 0xb03   :  { %13987 = vst [vmem:[#allocation72_spill] sm:$0xff] %v11301_v41 }
 0xb04   :  { %v4124_v31 = vmul.f32 %v7450_v8, %v4123_v48  ;;  %v13992_v48 = vld [vmem:[#allocation188_spill] sm:$0xff] }
 0xb06   :  { %v4128_v23 = vsel %vm4127_vm9, %v7450_v8, %v4124_v31  ;;  %v1576_v8 = vpop.f32.mrf.mxu2  ;;  %v3134_v31 = vmul.f32 0.0051020407, %v13992_v48 }
 0xb0d   :  { %2084 = vadd.xlane.f32.xlu1 %v2083_v5  ;;  %v1325_v5 = vpop.f32.mrf.mxu1 }
 0xb0e   :  { %v11277_v49 = vadd.f32 %v1325_v5, %v1076_v25  ;;  %v2782_v25 = vmul.f32 %v2590_v54, %v2590_v54  ;;  %v11288_v5 = vadd.f32 %v1823_v13, %v1574_v9  ;;  %v3252_v13 = vld [vmem:[%s13034_s2 + $0x258] sm:$0xff]  ;;  %v1825_v54 = vpop.f32.mrf.mxu3  ;;  %v11308_v9 = vpop.permute.xlu0 %4737 }
 0xb0f   :  { %13989 = vst [vmem:[#allocation73_spill] sm:$0xff] %v11308_v9  ;;  %v11325_v9 = vmul.f32 0.0051020407, %v13994_v11 }
 0xb10   :  { %5303 = vperm.xlu2 %7297, %v11013_v38   ;;  %13981 = vst [vmem:[#allocation183_spill] sm:$0xff] %v11277_v49  ;;  %v11285_v38 = vpop.xlane.xlu2 %2980  ;;  %v3063_v7 = vadd.f32 %v2782_v25, %v2781_v60  ;;  %v11299_v60 = vmul.f32 %v4128_v23, %v3252_v13  ;;  %v11312_v23 = vadd.f32 %v1825_v54, %v1576_v8  ;;  %v3145_v13 = vmul.f32 0.0051020407, %v11178_v15 }
 0xb11   :  { %13984 = vst [vmem:[#allocation184_spill] sm:$0xff] %v11288_v5  ;;  %v14004_v5 = vld [vmem:[#allocation81_spill] sm:$0xff] }
 0xb12   :  { %13986 = vst [vmem:[#allocation167_spill] sm:$0xff] %v11299_v60  ;;  %v11331_v54 = vadd.f32 0.001, %v3145_v13 }
 0xb13   :  { %13991 = vst [vmem:[#allocation85_spill] sm:$0xff] %v11312_v23 }
 0xb14   :  { %vm4015_vm14 = vweird.f32 %v11331_v54 }
 0xb15   :  { %v1327_v61 = vpop.f32.mrf.mxu1 }
 0xb16   :  { %v11310_v25 = vadd.f32 %v1327_v61, %v1078_v30  ;;  %v13995_v30 = vld [vmem:[#allocation38_spill] sm:$0xff]  ;;  %v3029_v48 = vpop.xlane.xlu0 %3028 }
 0xb18   :  { %4739 = vrot.lane.b32.xlu2 %v4486_v27, %s7591_s23  ;;  %v11290_v46 = vpop.permute.xlu2 %5228  ;;  %13990 = vst [vmem:[#allocation102_spill] sm:$0xff] %v11310_v25 }
 0xb19   :  { %13985 = vst [vmem:[#allocation5_spill] sm:$0xff] %v11290_v46 }
 0xb20   :  { %v11293_v27 = vpop.permute.xlu2 %4709 }
 0xb22   :  { %3064 = vadd.xlane.f32.xlu0 %v3063_v7 }
 0xb26   :  { %5263 = vperm.xlu1 %7294, %v10990_v29   ;;  %v4500_v29 = vmul.f32 %v11299_v60, %v10968_v34  ;;  %v13993_v34 = vld [vmem:[#allocation39_spill] sm:$0xff]  ;;  %v14003_v60 = vld [vmem:[#allocation190_spill] sm:$0xff] }
 0xb28   :  { %v2070_v7 = vpop.xlane.xlu2 %2069 }
 0xb29   :  { %v11306_v56 = vmul.f32 0.0051020407, %v2070_v7  ;;  %v11322_v7 = vadd.f32 0.001, %v3134_v31  ;;  %v13997_v31 = vld [vmem:[#allocation40_spill] sm:$0xff] }
 0xb2b   :  { %13988 = vst [vmem:[#allocation186_spill] sm:$0xff] %v11306_v56  ;;  %v2378_v46 = vsub.f32 %v13993_v34, %v11306_v56  ;;  %v2377_v61 = vsub.f32 %v13995_v30, %v11306_v56  ;;  %7451 = vrsqrt.f32 %v11322_v7  ;;  %v2358_v34 = vsub.f32 %v13997_v31, %v11325_v9  ;;  %v13998_v30 = vld [vmem:[#allocation55_spill] sm:$0xff] }
 0xb2c   :  { %7453 = vrsqrt.f32 %v11331_v54  ;;  %v2357_v13 = vsub.f32 %v13998_v30, %v11325_v9  ;;  %v3159_v56 = vmul.f32 0.0051020407, %v3029_v48  ;;  %v11353_v48 = vmul.f32 0.0051020407, %v2109_v40 }
 0xb2d   :  { %v2570_v15 = vsel %vm2216_vm1, %v2378_v46, 0.0  ;;  %v2761_v11 = vmul.f32 %v2377_v61, %v2377_v61  ;;  %v5553_v40 = vmul.f32 %v14003_v60, %v14002_v0  ;;  %vm3905_vm12 = vweird.f32 %v11322_v7 }
 0xb2e   :  { %7296 = vset.pattern.permute.xlu1 %v13573_v62  ;;  %v11318_v62 = vpop.permute.xlu1 %5248  ;;  %v2762_v59 = vmul.f32 %v2570_v15, %v2570_v15  ;;  %v11349_v31 = vadd.f32 0.001, %v3159_v56  ;;  %v2741_v61 = vmul.f32 %v2357_v13, %v2357_v13  ;;  %v2404_v56 = vsub.f32 %v10986_v14, %v11353_v48 }
 0xb30   :  { %v11329_v8 = vpop.permute.xlu2 %5835  ;;  %v3033_v46 = vadd.f32 %v2762_v59, %v2761_v11  ;;  %7455 = vrsqrt.f32 %v11349_v31  ;;  %vm4155_vm3 = vweird.f32 %v11349_v31 }
 0xb31   :  { %13996 = vst [vmem:[#allocation146_spill] sm:$0xff] %v11329_v8  ;;  %v11347_v8 = vpop.permute.xlu0 %4743 }
 0xb32   :  { %13999 = vst [vmem:[#allocation188_spill] sm:$0xff] %v11347_v8 }
 0xb36   :  { %4767 = vrot.lane.b32.xlu0 %v4500_v29, %s7591_s23  ;;  %v2113_v29 = vadd.f32 %v11312_v23, %v11310_v25  ;;  %v11339_v41 = vpop.xlane.xlu1 %2995  ;;  %v7452_v23 = vpop.eup %7451 }
 0xb37   :  { %v7454_v52 = vpop.eup %7453  ;;  %v3900_v33 = vmul.f32 %v7452_v23, %v11322_v7  ;;  %vm3906_vm10 = vweird.f32 %v7452_v23 }
 0xb38   :  { %v11343_v25 = vpop.xlane.xlu2 %2989  ;;  %v4010_v30 = vmul.f32 %v7454_v52, %v11331_v54  ;;  %vm4016_vm11 = vweird.f32 %v7454_v52  ;;  %vm3907_vm13 = vmor %vm3905_vm12, %vm3906_vm10 }
 0xb39   :  { %v3038_v13 = vpop.xlane.xlu0 %3037  ;;  %vm4017_vm15 = vmor %vm4015_vm14, %vm4016_vm11 }
 0xb3a   :  { %v4011_v11 = vmul.f32 %v7454_v52, %v4010_v30 }
 0xb40   :  { %v11358_v8 = vpop.permute.xlu2 %5243 }
 0xb41   :  { %2114 = vadd.xlane.f32.xlu2 %v2113_v29  ;;  %v2550_v29 = vsel %vm2216_vm1, %v2358_v34, 0.0  ;;  %v3901_v34 = vmul.f32 %v7452_v23, %v3900_v33  ;;  %14001 = vst [vmem:[#allocation199_spill] sm:$0xff] %v11358_v8  ;;  %v4012_v33 = vmul.f32 0.5, %v4011_v11 }
 0xb42   :  { %v2742_v15 = vmul.f32 %v2550_v29, %v2550_v29  ;;  %v7456_v29 = vpop.eup %7455 }
 0xb43   :  { %v4013_v4 = vsub.f32 1.5, %v4012_v33  ;;  %vm4156_vm2 = vweird.f32 %v7456_v29 }
 0xb44   :  { %v3003_v59 = vadd.f32 %v2742_v15, %v2741_v61  ;;  %v2403_v61 = vsub.f32 %v10984_v19, %v11353_v48  ;;  %v2596_v15 = vsel %vm2216_vm1, %v2404_v56, 0.0  ;;  %vm4157_vm4 = vmor %vm4155_vm3, %vm4156_vm2 }
 0xb46   :  { %v2787_v0 = vmul.f32 %v2403_v61, %v2403_v61 }
 0xb49   :  { %3034 = vadd.xlane.f32.xlu2 %v3033_v46  ;;  %v3902_v46 = vmul.f32 0.5, %v3901_v34  ;;  %v4150_v34 = vmul.f32 %v7456_v29, %v11349_v31  ;;  %v7545_v31 = vld [vmem:[%s13034_s2 + $0x138] sm:$0xff] }
 0xb4b   :  { %v3903_v49 = vsub.f32 1.5, %v3902_v46  ;;  %v4014_v46 = vmul.f32 %v7454_v52, %v4013_v4  ;;  %v3241_v4 = vld [vmem:[%s13034_s2 + $0x200] sm:$0xff] }
 0xb4d   :  { %v11355_v2 = vpop.permute.xlu1 %4717  ;;  %v3904_v56 = vmul.f32 %v7452_v23, %v3903_v49  ;;  %v4018_v49 = vsel %vm4017_vm15, %v7454_v52, %v4014_v46 }
 0xb4e   :  { %14000 = vst [vmem:[#allocation192_spill] sm:$0xff] %v11355_v2  ;;  %v5554_v2 = vmul.f32 %v14003_v60, %v14004_v5  ;;  %v2788_v5 = vmul.f32 %v2596_v15, %v2596_v15  ;;  %v11374_v60 = vpop.permute.xlu0 %4749 }
 0xb4f   :  { %14005 = vst [vmem:[#allocation80_spill] sm:$0xff] %v11374_v60 }
 0xb50   :  { %3004 = vadd.xlane.f32.xlu1 %v3003_v59  ;;  %v3162_v59 = vmul.f32 0.0051020407, %v3038_v13  ;;  %v4151_v13 = vmul.f32 %v7456_v29, %v4150_v34  ;;  %v14006_v34 = vld [vmem:[#allocation46_spill] sm:$0xff] }
 0xb52   :  { %v11379_v11 = vadd.f32 0.001, %v3162_v59  ;;  %v4152_v61 = vmul.f32 0.5, %v4151_v13 }
 0xb54   :  { %7457 = vrsqrt.f32 %v11379_v11  ;;  %vm4185_vm6 = vweird.f32 %v11379_v11 }
 0xb55   :  { %v5856_v30 = vpop.permute.xlu1 %5855 }
 0xb56   :  { %v6225_v8 = vadd.f32 %v5856_v30, %v5553_v40  ;;  %v6226_v14 = vadd.f32 %v5856_v30, %v5554_v2  ;;  %v11381_v2 = vpop.permute.xlu2 %4715  ;;  %v3072_v40 = vadd.f32 %v2788_v5, %v2787_v0  ;;  %v3047_v33 = vpop.xlane.xlu0 %3046  ;;  %v4153_v30 = vsub.f32 1.5, %v4152_v61 }
 0xb57   :  { %v3165_v59 = vmul.f32 0.0051020407, %v3047_v33 }
 0xb58   :  { %6417 = vst [vmem:[%s13035_s3 + $0x240] sm:$0xff] %v6225_v8  ;;  %v3908_v8 = vsel %vm3907_vm13, %v7452_v23, %v3904_v56  ;;  %v11395_v23 = vmul.f32 %v4018_v49, %v3241_v4  ;;  %v4154_v52 = vmul.f32 %v7456_v29, %v4153_v30 }
 0xb59   :  { %6418 = vst [vmem:[%s13035_s3 + $0x248] sm:$0xff] %v6226_v14  ;;  %v3230_v14 = vld [vmem:[%s13034_s2 + $0x1a8] sm:$0xff] }
 0xb5a   :  { %v11393_v7 = vmul.f32 %v3908_v8, %v3230_v14  ;;  %v7458_v15 = vpop.eup %7457  ;;  %v4489_v56 = vmul.f32 %v11395_v23, %v11038_v37  ;;  %v4158_v13 = vsel %vm4157_vm4, %v7456_v29, %v4154_v52  ;;  %v3255_v8 = vld [vmem:[%s13034_s2 + $0x270] sm:$0xff] }
 0xb5b   :  { %v4180_v5 = vmul.f32 %v7458_v15, %v11379_v11  ;;  %v11412_v37 = vmul.f32 %v4158_v13, %v3255_v8  ;;  %v14008_v14 = vld [vmem:[#allocation32_spill] sm:$0xff]  ;;  %vm4186_vm5 = vweird.f32 %v7458_v15 }
 0xb5c   :  { %v4478_v0 = vmul.f32 %v11393_v7, %v14006_v34  ;;  %v4944_v49 = vsub.f32 %v7545_v31, %v14008_v14  ;;  %vm4187_vm7 = vmor %vm4185_vm6, %vm4186_vm5  ;;  %v3258_v31 = vld [vmem:[%s13034_s2 + $0x288] sm:$0xff] }
 0xb5d   :  { %v4181_v46 = vmul.f32 %v7458_v15, %v4180_v5  ;;  %v4503_v29 = vmul.f32 %v11412_v37, %v11024_v55  ;;  %v7546_v55 = vld [vmem:[%s13034_s2 + $0x158] sm:$0xff] }
 0xb5e   :  { %v2079_v54 = vpop.xlane.xlu2 %2078  ;;  %v4948_v13 = vsub.f32 %v7546_v55, %v11235_v43  ;;  %v14012_v55 = vld [vmem:[#allocation67_spill] sm:$0xff] }
 0xb5f   :  { %v4182_v4 = vmul.f32 0.5, %v4181_v46 }
 0xb60   :  { %3073 = vadd.xlane.f32.xlu0 %v3072_v40  ;;  %v11405_v40 = vpop.permute.xlu0 %4755 }
 0xb61   :  { %5318 = vperm.xlu2 %7297, %v11060_v6   ;;  %v3357_v6 = vadd.f32 0.001, %v3165_v59  ;;  %14007 = vst [vmem:[#allocation190_spill] sm:$0xff] %v11405_v40  ;;  %v4183_v33 = vsub.f32 1.5, %v4182_v4  ;;  %v11436_v4 = vmul.f32 0.0051020407, %v2079_v54 }
 0xb63   :  { %7459 = vrsqrt.f32 %v3357_v6  ;;  %v4184_v52 = vmul.f32 %v7458_v15, %v4183_v33  ;;  %14010 = vst [vmem:[#allocation46_spill] sm:$0xff] %v11436_v4  ;;  %vm4215_vm0 = vweird.f32 %v3357_v6  ;;  %v2383_v54 = vsub.f32 %v14012_v55, %v11436_v4 }
 0xb65   :  { %v4188_v46 = vsel %vm4187_vm7, %v7458_v15, %v4184_v52  ;;  %v3148_v15 = vmul.f32 0.0051020407, %v11339_v41 }
 0xb66   :  { %v11410_v61 = vpop.permute.xlu2 %5850  ;;  %v11432_v14 = vmul.f32 %v4188_v46, %v3258_v31 }
 0xb68   :  { %v3056_v30 = vpop.xlane.xlu0 %3055  ;;  %v4506_v43 = vmul.f32 %v11432_v14, %v11095_v45 }
 0xb69   :  { %4723 = vrot.lane.b32.xlu1 %v4478_v0, %s7591_s23  ;;  %4745 = vrot.lane.b32.xlu2 %v4489_v56, %s7591_s23  ;;  %v7460_v59 = vpop.eup %7459  ;;  %v3168_v34 = vmul.f32 0.0051020407, %v3056_v30  ;;  %v14011_v30 = vld [vmem:[#allocation68_spill] sm:$0xff] }
 0xb6a   :  { %v4210_v5 = vmul.f32 %v7460_v59, %v3357_v6  ;;  %vm4216_vm8 = vweird.f32 %v7460_v59 }
 0xb6b   :  { %v3360_v56 = vadd.f32 0.001, %v3168_v34  ;;  %v2384_v34 = vsub.f32 %v14011_v30, %v11436_v4  ;;  %vm4217_vm9 = vmor %vm4215_vm0, %vm4216_vm8 }
 0xb6c   :  { %v4211_v8 = vmul.f32 %v7460_v59, %v4210_v5 }
 0xb6d   :  { %7461 = vrsqrt.f32 %v3360_v56  ;;  %v2576_v41 = vsel %vm2216_vm1, %v2384_v34, 0.0  ;;  %vm4245_vm10 = vweird.f32 %v3360_v56 }
 0xb6e   :  { %v11421_v0 = vpop.xlane.xlu2 %2998 }
 0xb71   :  { %5870 = vperm.xlu1 %7296, %v4944_v49   ;;  %v4212_v49 = vmul.f32 0.5, %v4211_v8  ;;  %v7547_v8 = vld [vmem:[%s13034_s2 + $0x170] sm:$0xff] }
 0xb72   :  { %v4951_v6 = vsub.f32 %v7547_v8, %v11293_v27  ;;  %v14015_v8 = vld [vmem:[#allocation88_spill] sm:$0xff] }
 0xb73   :  { %v4213_v33 = vsub.f32 1.5, %v4212_v49  ;;  %v3261_v49 = vld [vmem:[%s13034_s2 + $0x2a0] sm:$0xff] }
 0xb74   :  { %4773 = vrot.lane.b32.xlu0 %v4503_v29, %s7591_s23  ;;  %v7462_v29 = vpop.eup %7461 }
 0xb75   :  { %v4240_v52 = vmul.f32 %v7462_v29, %v3360_v56  ;;  %v4214_v5 = vmul.f32 %v7460_v59, %v4213_v33  ;;  %v2768_v33 = vmul.f32 %v2576_v41, %v2576_v41  ;;  %vm4246_vm11 = vweird.f32 %v7462_v29  ;;  %v14014_v41 = vld [vmem:[#allocation156_spill] sm:$0xff] }
 0xb76   :  { %v11434_v11 = vpop.permute.xlu2 %5258  ;;  %vm4247_vm12 = vmor %vm4245_vm10, %vm4246_vm11 }
 0xb77   :  { %14009 = vst [vmem:[#allocation81_spill] sm:$0xff] %v11434_v11  ;;  %v4241_v45 = vmul.f32 %v7462_v29, %v4240_v52  ;;  %v4218_v31 = vsel %vm4217_vm9, %v7460_v59, %v4214_v5  ;;  %v11457_v52 = vpop.permute.xlu0 %4761 }
 0xb78   :  { %14013 = vst [vmem:[#allocation32_spill] sm:$0xff] %v11457_v52  ;;  %v11459_v19 = vmul.f32 %v4218_v31, %v3261_v49 }
 0xb79   :  { %7298 = vset.pattern.permute.xlu1 %v13567_v57 }
 0xb7a   :  { %v4509_v27 = vmul.f32 %v11459_v19, %v11137_v22  ;;  %v7548_v22 = vld [vmem:[%s13034_s2 + $0x188] sm:$0xff] }
 0xb7b   :  { %v4954_v56 = vsub.f32 %v7548_v22, %v11381_v2 }
 0xb7c   :  { %5890 = vperm.xlu0 %7246, %v4948_v13   ;;  %v3340_v13 = vadd.f32 0.001, %v3148_v15  ;;  %v4242_v15 = vmul.f32 0.5, %v4241_v45 }
 0xb7e   :  { %v11446_v46 = vpop.permute.xlu2 %4721  ;;  %7463 = vrsqrt.f32 %v3340_v13  ;;  %v4243_v55 = vsub.f32 1.5, %v4242_v15  ;;  %vm4045_vm2 = vweird.f32 %v3340_v13 }
 0xb80   :  { %v4244_v5 = vmul.f32 %v7462_v29, %v4243_v55 }
 0xb84   :  { %4779 = vrot.lane.b32.xlu0 %v4506_v43, %s7591_s23  ;;  %v2767_v43 = vmul.f32 %v2383_v54, %v2383_v54  ;;  %v7464_v11 = vpop.eup %7463 }
 0xb85   :  { %v4040_v59 = vmul.f32 %v7464_v11, %v3340_v13  ;;  %vm4046_vm13 = vweird.f32 %v7464_v11 }
 0xb86   :  { %v3042_v34 = vadd.f32 %v2768_v33, %v2767_v43  ;;  %v11461_v30 = vpop.xlane.xlu2 %2087  ;;  %v4248_v43 = vsel %vm4247_vm12, %v7462_v29, %v4244_v5  ;;  %v3264_v33 = vld [vmem:[%s13034_s2 + $0x2b8] sm:$0xff]  ;;  %vm4047_vm3 = vmor %vm4045_vm2, %vm4046_vm13 }
 0xb87   :  { %v4041_v49 = vmul.f32 %v7464_v11, %v4040_v59  ;;  %v11477_v15 = vmul.f32 %v4248_v43, %v3264_v33  ;;  %v3267_v33 = vld [vmem:[%s13034_s2 + $0x2d0] sm:$0xff] }
 0xb89   :  { %14016 = vst [vmem:[#allocation156_spill] sm:$0xff] %v11477_v15  ;;  %v4512_v29 = vmul.f32 %v11477_v15, %v11217_v3  ;;  %v3244_v3 = vld [vmem:[%s13034_s2 + $0x218] sm:$0xff] }
 0xb8c   :  { %5905 = vperm.xlu0 %7246, %v4951_v6   ;;  %v2092_v6 = vadd.f32 %v14015_v8, %v14014_v41 }
 0xb8e   :  { %v11475_v55 = vpop.permute.xlu2 %5865 }
 0xb92   :  { %3043 = vadd.xlane.f32.xlu2 %v3042_v34  ;;  %v4042_v34 = vmul.f32 0.5, %v4041_v49 }
 0xb94   :  { %4785 = vrot.lane.b32.xlu0 %v4509_v27, %s7591_s23  ;;  %v4043_v59 = vsub.f32 1.5, %v4042_v34 }
 0xb95   :  { %v3065_v54 = vpop.xlane.xlu0 %3064 }
 0xb96   :  { %v3171_v45 = vmul.f32 0.0051020407, %v3065_v54  ;;  %v11481_v54 = vpop.xlane.xlu2 %3007  ;;  %v4044_v2 = vmul.f32 %v7464_v11, %v4043_v59 }
 0xb98   :  { %v3363_v31 = vadd.f32 0.001, %v3171_v45  ;;  %v4048_v49 = vsel %vm4047_vm3, %v7464_v11, %v4044_v2  ;;  %v14019_v2 = vld [vmem:[#allocation20_spill] sm:$0xff] }
 0xb99   :  { %v11495_v11 = vmul.f32 %v4048_v49, %v3244_v3 }
 0xb9a   :  { %7465 = vrsqrt.f32 %v3363_v31  ;;  %vm4275_vm14 = vweird.f32 %v3363_v31 }
 0xb9b   :  { %2093 = vadd.xlane.f32.xlu1 %v2092_v6  ;;  %v4492_v59 = vmul.f32 %v11495_v11, %v11169_v53  ;;  %v11515_v53 = vmul.f32 0.0051020407, %v11461_v30 }
 0xb9c   :  { %5920 = vperm.xlu0 %7246, %v4954_v56   ;;  %v7549_v56 = vld [vmem:[%s13034_s2 + $0x1a0] sm:$0xff] }
 0xb9d   :  { %14020 = vst [vmem:[#allocation20_spill] sm:$0xff] %v11515_v53 }
 0xba0   :  { %v7466_v27 = vpop.eup %7465 }
 0xba1   :  { %v4270_v5 = vmul.f32 %v7466_v27, %v3363_v31  ;;  %vm4276_vm15 = vweird.f32 %v7466_v27  ;;  %v4957_v31 = vsub.f32 %v7549_v56, %v11446_v46 }
 0xba2   :  { %vm4277_vm4 = vmor %vm4275_vm14, %vm4276_vm15 }
 0xba3   :  { %v4271_v45 = vmul.f32 %v7466_v27, %v4270_v5 }
 0xba4   :  { %4791 = vrot.lane.b32.xlu0 %v4512_v29, %s7591_s23  ;;  %v11499_v29 = vpop.permute.xlu2 %5273 }
 0xba5   :  { %v4272_v22 = vmul.f32 0.5, %v4271_v45  ;;  %14018 = vst [vmem:[#allocation200_spill] sm:$0xff] %v11499_v29 }
 0xba7   :  { %v4273_v6 = vsub.f32 1.5, %v4272_v22  ;;  %v3137_v22 = vmul.f32 0.0051020407, %v14019_v2 }
 0xba9   :  { %v4274_v43 = vmul.f32 %v7466_v27, %v4273_v6  ;;  %v11517_v6 = vpop.permute.xlu0 %4767  ;;  %v3329_v49 = vadd.f32 0.001, %v3137_v22 }
 0xbaa   :  { %5333 = vperm.xlu2 %7297, %v11119_v28   ;;  %14021 = vst [vmem:[#allocation201_spill] sm:$0xff] %v11517_v6 }
 0xbab   :  { %v4278_v13 = vsel %vm4277_vm4, %v7466_v27, %v4274_v43  ;;  %v11509_v27 = vpop.xlane.xlu1 %2084  ;;  %v14022_v43 = vld [vmem:[#allocation195_spill] sm:$0xff]  ;;  %7467 = vrsqrt.f32 %v3329_v49  ;;  %vm3935_vm8 = vweird.f32 %v3329_v49 }
 0xbac   :  { %5935 = vperm.xlu0 %7246, %v4957_v31   ;;  %v11497_v34 = vmul.f32 %v4278_v13, %v3267_v33  ;;  %v4728_v28 = vpop.permute.xlu2 %4727  ;;  %v11520_v3 = vmul.f32 0.0051020407, %v14022_v43  ;;  %v14023_v33 = vld [vmem:[#allocation111_spill] sm:$0xff]  ;;  %v2389_v31 = vsub.f32 %v10735_v1, %v11515_v53 }
 0xbad   :  { %v4960_v46 = vsub.f32 %v11107_v18, %v4728_v28  ;;  %v2390_v18 = vsub.f32 %v10741_v10, %v11515_v53  ;;  %v14024_v28 = vld [vmem:[#allocation27_spill] sm:$0xff] }
 0xbae   :  { %14017 = vst [vmem:[#allocation88_spill] sm:$0xff] %v11497_v34  ;;  %v4515_v5 = vmul.f32 %v11497_v34, %v11265_v51  ;;  %v2364_v56 = vsub.f32 %v14023_v33, %v11520_v3  ;;  %v2773_v22 = vmul.f32 %v2389_v31, %v2389_v31  ;;  %v14026_v34 = vld [vmem:[#allocation86_spill] sm:$0xff] }
 0xbaf   :  { %v2582_v13 = vsel %vm2216_vm1, %v2390_v18, 0.0 }
 0xbb0   :  { %v2556_v43 = vsel %vm2216_vm1, %v2364_v56, 0.0 }
 0xbb1   :  { %v2748_v29 = vmul.f32 %v2556_v43, %v2556_v43 }
 0xbb2   :  { %4751 = vrot.lane.b32.xlu2 %v4492_v59, %s7591_s23 }
 0xbb3   :  { %v11511_v45 = vpop.permute.xlu1 %5263 }
 0xbb4   :  { %4797 = vrot.lane.b32.xlu0 %v4515_v5, %s7591_s23  ;;  %5278 = vperm.xlu1 %7298, %v11111_v24   ;;  %v11532_v59 = vpop.xlane.xlu2 %2096 }
 0xbbc   :  { %5950 = vperm.xlu0 %7246, %v4960_v46   ;;  %v2363_v46 = vsub.f32 %v14024_v28, %v11520_v3 }
 0xbbe   :  { %v2747_v1 = vmul.f32 %v2363_v46, %v2363_v46  ;;  %v14027_v46 = vld [vmem:[#allocation171_spill] sm:$0xff] }
 0xbbf   :  { %v5559_v43 = vmul.f32 %v14027_v46, %v14026_v34 }
 0xbc0   :  { %v3012_v60 = vadd.f32 %v2748_v29, %v2747_v1 }
 0xbc3   :  { %v3005_v51 = vpop.xlane.xlu1 %3004 }
 0xbc4   :  { %v3151_v24 = vmul.f32 0.0051020407, %v3005_v51  ;;  %v2774_v51 = vmul.f32 %v2582_v13, %v2582_v13 }
 0xbc6   :  { %v11528_v30 = vadd.f32 0.001, %v3151_v24  ;;  %v7468_v24 = vpop.eup %7467  ;;  %v3051_v18 = vadd.f32 %v2774_v51, %v2773_v22  ;;  %v14028_v22 = vld [vmem:[#allocation87_spill] sm:$0xff] }
 0xbc7   :  { %v3930_v6 = vmul.f32 %v7468_v24, %v3329_v49  ;;  %v5560_v51 = vmul.f32 %v14027_v46, %v14028_v22  ;;  %vm3936_vm0 = vweird.f32 %v7468_v24 }
 0xbc8   :  { %7469 = vrsqrt.f32 %v11528_v30  ;;  %vm3937_vm9 = vmor %vm3935_vm8, %vm3936_vm0  ;;  %vm4075_vm11 = vweird.f32 %v11528_v30 }
 0xbc9   :  { %v3931_v31 = vmul.f32 %v7468_v24, %v3930_v6 }
 0xbcb   :  { %v3932_v4 = vmul.f32 0.5, %v3931_v31 }
 0xbcd   :  { %v3933_v28 = vsub.f32 1.5, %v3932_v4 }
 0xbce   :  { %v7470_v52 = vpop.eup %7469 }
 0xbcf   :  { %v4070_v13 = vmul.f32 %v7470_v52, %v11528_v30  ;;  %v3934_v4 = vmul.f32 %v7468_v24, %v3933_v28  ;;  %vm4076_vm10 = vweird.f32 %v7470_v52 }
 0xbd0   :  { %vm4077_vm12 = vmor %vm4075_vm11, %vm4076_vm10 }
 0xbd1   :  { %v4071_v33 = vmul.f32 %v7470_v52, %v4070_v13 }
 0xbd3   :  { %v3074_v5 = vpop.xlane.xlu0 %3073  ;;  %v4072_v15 = vmul.f32 0.5, %v4071_v33 }
 0xbd4   :  { %v3174_v2 = vmul.f32 0.0051020407, %v3074_v5  ;;  %v11541_v5 = vpop.xlane.xlu2 %3016 }
 0xbd5   :  { %v4073_v33 = vsub.f32 1.5, %v4072_v15  ;;  %v3233_v15 = vld [vmem:[%s13034_s2 + $0x1c0] sm:$0xff] }
 0xbd6   :  { %v3366_v10 = vadd.f32 0.001, %v3174_v2 }
 0xbd8   :  { %7471 = vrsqrt.f32 %v3366_v10  ;;  %vm4305_vm5 = vweird.f32 %v3366_v10 }
 0xbdb   :  { %v11539_v40 = vpop.permute.xlu1 %4723  ;;  %3052 = vadd.xlane.f32.xlu2 %v3051_v18 }
 0xbdc   :  { %14025 = vst [vmem:[#allocation195_spill] sm:$0xff] %v11539_v40  ;;  %v11553_v34 = vpop.permute.xlu2 %5288 }
 0xbdd   :  { %14030 = vst [vmem:[#allocation171_spill] sm:$0xff] %v11553_v34  ;;  %v14091_v34 = vld [vmem:[#allocation132_spill] sm:$0xff] }
 0xbde   :  { %v7472_v53 = vpop.eup %7471  ;;  %3013 = vadd.xlane.f32.xlu1 %v3012_v60 }
 0xbdf   :  { %v4300_v56 = vmul.f32 %v7472_v53, %v3366_v10  ;;  %vm4306_vm6 = vweird.f32 %v7472_v53  ;;  %v3270_v10 = vld [vmem:[%s13034_s2 + $0x2e8] sm:$0xff] }
 0xbe0   :  { %vm4307_vm7 = vmor %vm4305_vm5, %vm4306_vm6 }
 0xbe1   :  { %v4301_v2 = vmul.f32 %v7472_v53, %v4300_v56 }
 0xbe3   :  { %v4302_v40 = vmul.f32 0.5, %v4301_v2  ;;  %v5871_v1 = vpop.permute.xlu1 %5870  ;;  %v14031_v2 = vld [vmem:[#allocation114_spill] sm:$0xff] }
 0xbe4   :  { %v6231_v29 = vadd.f32 %v5871_v1, %v5559_v43  ;;  %v6232_v18 = vadd.f32 %v5871_v1, %v5560_v51  ;;  %v5567_v46 = vmul.f32 %v11033_v35, %v14031_v2  ;;  %v14032_v43 = vld [vmem:[#allocation115_spill] sm:$0xff]  ;;  %v3938_v51 = vsel %vm3937_vm9, %v7468_v24, %v3934_v4  ;;  %v14036_v4 = vld [vmem:[#allocation106_spill] sm:$0xff] }
 0xbe5   :  { %v4303_v6 = vsub.f32 1.5, %v4302_v40  ;;  %v5568_v22 = vmul.f32 %v11033_v35, %v14032_v43  ;;  %v4074_v1 = vmul.f32 %v7470_v52, %v4073_v33  ;;  %v11577_v35 = vmul.f32 %v3938_v51, %v3233_v15  ;;  %v14039_v43 = vld [vmem:[#allocation97_spill] sm:$0xff] }
 0xbe6   :  { %6423 = vst [vmem:[%s13035_s3 + $0x270] sm:$0xff] %v6231_v29  ;;  %v11551_v60 = vpop.permute.xlu0 %4773  ;;  %v3247_v29 = vld [vmem:[%s13034_s2 + $0x230] sm:$0xff]  ;;  %v14041_v51 = vld [vmem:[#allocation9_spill] sm:$0xff] }
 0xbe7   :  { %14029 = vst [vmem:[#allocation86_spill] sm:$0xff] %v11551_v60  ;;  %v4304_v31 = vmul.f32 %v7472_v53, %v4303_v6  ;;  %v4078_v24 = vsel %vm4077_vm12, %v7470_v52, %v4074_v1  ;;  %v5580_v1 = vmul.f32 %v11318_v62, %v14041_v51  ;;  %v14098_v60 = vld [vmem:[#allocation167_spill] sm:$0xff] }
 0xbe8   :  { %6424 = vst [vmem:[%s13035_s3 + $0x278] sm:$0xff] %v6232_v18  ;;  %v14033_v18 = vld [vmem:[#allocation174_spill] sm:$0xff] }
 0xbe9   :  { %v4308_v40 = vsel %vm4307_vm7, %v7472_v53, %v4304_v31  ;;  %v4481_v6 = vmul.f32 %v11577_v35, %v14033_v18  ;;  %v11589_v31 = vmul.f32 %v4078_v24, %v3247_v29  ;;  %v14044_v29 = vld [vmem:[#allocation130_spill] sm:$0xff] }
 0xbea   :  { %v11561_v13 = vmul.f32 %v4308_v40, %v3270_v10  ;;  %v14035_v40 = vld [vmem:[#allocation105_spill] sm:$0xff] }
 0xbeb   :  { %v4495_v52 = vmul.f32 %v11589_v31, %v11325_v9 }
 0xbec   :  { %v4518_v56 = vmul.f32 %v11561_v13, %v11353_v48  ;;  %v4734_v48 = vpop.permute.xlu2 %4733 }
 0xbed   :  { %v4963_v30 = vsub.f32 %v11190_v12, %v4734_v48  ;;  %v5574_v12 = vmul.f32 %v11166_v16, %v14036_v4  ;;  %v11624_v48 = vmul.f32 0.0051020407, %v11532_v59 }
 0xbee   :  { %4803 = vrot.lane.b32.xlu0 %v4518_v56, %s7591_s23  ;;  %v5891_v53 = vpop.permute.xlu0 %5890 }
 0xbef   :  { %v6239_v49 = vadd.f32 %v5891_v53, %v5567_v46  ;;  %v6240_v28 = vadd.f32 %v5891_v53, %v5568_v22  ;;  %v14037_v46 = vld [vmem:[#allocation76_spill] sm:$0xff] }
 0xbf1   :  { %6431 = vst [vmem:[%s13035_s3 + $0x2b0] sm:$0xff] %v6239_v49 }
 0xbf2   :  { %6432 = vst [vmem:[%s13035_s3 + $0x2b8] sm:$0xff] %v6240_v28  ;;  %v14042_v28 = vld [vmem:[#allocation112_spill] sm:$0xff] }
 0xbf3   :  { %5348 = vperm.xlu2 %7297, %v11174_v36   ;;  %v5573_v36 = vmul.f32 %v11166_v16, %v14035_v40  ;;  %v14040_v16 = vld [vmem:[#allocation8_spill] sm:$0xff]  ;;  %v14046_v40 = vld [vmem:[#allocation129_spill] sm:$0xff] }
 0xbf4   :  { %v5579_v22 = vmul.f32 %v11318_v62, %v14040_v16  ;;  %v2396_v62 = vsub.f32 %v10884_v26, %v11624_v48  ;;  %v5586_v59 = vmul.f32 %v11511_v45, %v14046_v40  ;;  %v3143_v26 = vmul.f32 0.0051020407, %v11285_v38 }
 0xbf6   :  { %5965 = vperm.xlu0 %7246, %v4963_v30   ;;  %v11591_v10 = vpop.permute.xlu0 %4779  ;;  %v2395_v30 = vsub.f32 %v10882_v39, %v11624_v48  ;;  %v2588_v18 = vsel %vm2216_vm1, %v2396_v62, 0.0  ;;  %v11728_v38 = vadd.f32 0.001, %v3143_v26 }
 0xbf7   :  { %14034 = vst [vmem:[#allocation87_spill] sm:$0xff] %v11591_v10  ;;  %4729 = vrot.lane.b32.xlu1 %v4481_v6, %s7591_s23  ;;  %v14045_v6 = vld [vmem:[#allocation128_spill] sm:$0xff] }
 0xbf8   :  { %v2779_v4 = vmul.f32 %v2395_v30, %v2395_v30  ;;  %v14052_v30 = vld [vmem:[#allocation159_spill] sm:$0xff]  ;;  %vm3995_vm6 = vweird.f32 %v11728_v38 }
 0xbfb   :  { %4757 = vrot.lane.b32.xlu2 %v4495_v52, %s7591_s23  ;;  %v5585_v52 = vmul.f32 %v11511_v45, %v14045_v6  ;;  %v14053_v6 = vld [vmem:[#allocation14_spill] sm:$0xff] }
 0xbfe   :  { %7321 = vset.pattern.permute.xlu0 %v13567_v57  ;;  %v5906_v33 = vpop.permute.xlu0 %5905 }
 0xbff   :  { %v6245_v56 = vadd.f32 %v5906_v33, %v5573_v36  ;;  %v6246_v2 = vadd.f32 %v5906_v33, %v5574_v12  ;;  %5003 = vperm.xlu0 %7321, %v14037_v46   ;;  %v2780_v12 = vmul.f32 %v2588_v18, %v2588_v18  ;;  %v2101_v46 = vadd.f32 %v10942_v17, %v10921_v20  ;;  %v11662_v18 = vpop.xlane.xlu2 %2105 }
 0xc01   :  { %6437 = vst [vmem:[%s13035_s3 + $0x2e0] sm:$0xff] %v6245_v56  ;;  %v3060_v45 = vadd.f32 %v2780_v12, %v2779_v4  ;;  %v3140_v4 = vmul.f32 0.0051020407, %v11207_v50  ;;  %v14057_v12 = vld [vmem:[#allocation52_spill] sm:$0xff]  ;;  %v14060_v50 = vld [vmem:[#allocation53_spill] sm:$0xff] }
 0xc02   :  { %6438 = vst [vmem:[%s13035_s3 + $0x2e8] sm:$0xff] %v6246_v2  ;;  %v14047_v2 = vld [vmem:[#allocation145_spill] sm:$0xff] }
 0xc06   :  { %v11609_v9 = vpop.permute.xlu0 %4785 }
 0xc07   :  { %14038 = vst [vmem:[#allocation114_spill] sm:$0xff] %v11609_v9  ;;  %5028 = vperm.xlu0 %7321, %v14039_v43   ;;  %v11668_v40 = vpop.xlane.xlu2 %3025 }
 0xc0e   :  { %v5921_v53 = vpop.permute.xlu0 %5920  ;;  %v11645_v43 = vpop.xlane.xlu1 %2093 }
 0xc0f   :  { %v6251_v15 = vadd.f32 %v5921_v53, %v5579_v22  ;;  %v6252_v49 = vadd.f32 %v5921_v53, %v5580_v1  ;;  %5043 = vperm.xlu0 %7321, %v14042_v28   ;;  %v14049_v22 = vld [vmem:[#allocation17_spill] sm:$0xff]  ;;  %v14050_v1 = vld [vmem:[#allocation11_spill] sm:$0xff] }
 0xc11   :  { %6443 = vst [vmem:[%s13035_s3 + $0x310] sm:$0xff] %v6251_v15  ;;  %v14051_v15 = vld [vmem:[#allocation135_spill] sm:$0xff] }
 0xc12   :  { %6444 = vst [vmem:[%s13035_s3 + $0x318] sm:$0xff] %v6252_v49 }
 0xc16   :  { %v11626_v24 = vpop.permute.xlu0 %4791 }
 0xc17   :  { %14043 = vst [vmem:[#allocation115_spill] sm:$0xff] %v11626_v24  ;;  %5058 = vperm.xlu0 %7321, %v14044_v29  }
 0xc1e   :  { %v5936_v36 = vpop.permute.xlu0 %5935 }
 0xc1f   :  { %v6257_v33 = vadd.f32 %v5936_v36, %v5585_v52  ;;  %v6258_v56 = vadd.f32 %v5936_v36, %v5586_v59  ;;  %5073 = vperm.xlu0 %7321, %v14047_v2   ;;  %v14054_v52 = vld [vmem:[#allocation134_spill] sm:$0xff]  ;;  %v11671_v36 = vpop.permute.xlu2 %5303  ;;  %v3332_v2 = vadd.f32 0.001, %v3140_v4 }
 0xc20   :  { %v14055_v59 = vld [vmem:[#allocation26_spill] sm:$0xff]  ;;  %14056 = vst [vmem:[#allocation105_spill] sm:$0xff] %v11671_v36 }
 0xc21   :  { %6449 = vst [vmem:[%s13035_s3 + $0x340] sm:$0xff] %v6257_v33  ;;  %2102 = vadd.xlane.f32.xlu1 %v2101_v46  ;;  %v11676_v46 = vmul.f32 0.0051020407, %v11026_v47  ;;  %vm3965_vm3 = vweird.f32 %v3332_v2 }
 0xc22   :  { %6450 = vst [vmem:[%s13035_s3 + $0x348] sm:$0xff] %v6258_v56 }
 0xc24   :  { %3061 = vadd.xlane.f32.xlu2 %v3060_v45  ;;  %v14058_v45 = vld [vmem:[#allocation116_spill] sm:$0xff] }
 0xc26   :  { %v11650_v16 = vpop.permute.xlu0 %4797  ;;  %v5279_v51 = vpop.permute.xlu1 %5278 }
 0xc27   :  { %14048 = vst [vmem:[#allocation174_spill] sm:$0xff] %v11650_v16  ;;  %5088 = vperm.xlu0 %7321, %v14049_v22   ;;  %v5591_v53 = vmul.f32 %v5279_v51, %v14050_v1  ;;  %v5592_v49 = vmul.f32 %v5279_v51, %v14051_v15  ;;  %v2370_v22 = vsub.f32 %v14058_v45, %v11676_v46  ;;  %v14059_v51 = vld [vmem:[#allocation180_spill] sm:$0xff] }
 0xc28   :  { %v2369_v1 = vsub.f32 %v14060_v50, %v11676_v46 }
 0xc2e   :  { %v5951_v28 = vpop.permute.xlu0 %5950 }
 0xc2f   :  { %v6263_v62 = vadd.f32 %v5951_v28, %v5591_v53  ;;  %v6264_v29 = vadd.f32 %v5951_v28, %v5592_v49  ;;  %5103 = vperm.xlu0 %7321, %v14052_v30   ;;  %v2562_v53 = vsel %vm2216_vm1, %v2370_v22, 0.0 }
 0xc31   :  { %6455 = vst [vmem:[%s13035_s3 + $0x370] sm:$0xff] %v6263_v62  ;;  %v2753_v62 = vmul.f32 %v2369_v1, %v2369_v1 }
 0xc32   :  { %6456 = vst [vmem:[%s13035_s3 + $0x378] sm:$0xff] %v6264_v29  ;;  %v2754_v29 = vmul.f32 %v2562_v53, %v2562_v53 }
 0xc37   :  { %5118 = vperm.xlu0 %7321, %v14053_v6   ;;  %v14061_v6 = vld [vmem:[#allocation44_spill] sm:$0xff] }
 0xc3a   :  { %5293 = vperm.xlu1 %7298, %v11196_v32   ;;  %v11678_v32 = vpop.permute.xlu2 %4739 }
 0xc3c   :  { %5363 = vperm.xlu2 %7297, %v11256_v44  }
 0xc3f   :  { %5133 = vperm.xlu0 %7321, %v14054_v52  }
 0xc42   :  { %v11687_v49 = vpop.xlane.xlu2 %2114 }
 0xc47   :  { %5148 = vperm.xlu0 %7321, %v14055_v59  }
 0xc4a   :  { %v11697_v1 = vpop.xlane.xlu2 %3034 }
 0xc4f   :  { %5163 = vperm.xlu0 %7321, %v14057_v12   ;;  %v3021_v12 = vadd.f32 %v2754_v29, %v2753_v62 }
 0xc51   :  { %v3014_v33 = vpop.xlane.xlu1 %3013 }
 0xc52   :  { %v3154_v56 = vmul.f32 0.0051020407, %v3014_v33 }
 0xc54   :  { %v3346_v44 = vadd.f32 0.001, %v3154_v56 }
 0xc56   :  { %7473 = vrsqrt.f32 %v3346_v44  ;;  %vm4105_vm14 = vweird.f32 %v3346_v44 }
 0xc57   :  { %7475 = vrsqrt.f32 %v3332_v2  ;;  %5178 = vperm.xlu0 %7321, %v14059_v51   ;;  %v11695_v51 = vld [vmem:[%s13034_s2 + $0x248] sm:$0xff] }
 0xc58   :  { %7477 = vrsqrt.f32 %v11728_v38 }
 0xc5c   :  { %v7474_v15 = vpop.eup %7473 }
 0xc5d   :  { %v7476_v47 = vpop.eup %7475  ;;  %v4100_v28 = vmul.f32 %v7474_v15, %v3346_v44  ;;  %vm4106_vm13 = vweird.f32 %v7474_v15 }
 0xc5e   :  { %v3960_v52 = vmul.f32 %v7476_v47, %v3332_v2  ;;  %vm4107_vm15 = vmor %vm4105_vm14, %vm4106_vm13  ;;  %vm3966_vm2 = vweird.f32 %v7476_v47 }
 0xc5f   :  { %v4101_v30 = vmul.f32 %v7474_v15, %v4100_v28  ;;  %5193 = vperm.xlu0 %7321, %v14061_v6   ;;  %v14063_v28 = vld [vmem:[#allocation137_spill] sm:$0xff]  ;;  %vm3967_vm4 = vmor %vm3965_vm3, %vm3966_vm2 }
 0xc60   :  { %v11690_v59 = vpop.permute.xlu0 %4803  ;;  %v3961_v56 = vmul.f32 %v7476_v47, %v3960_v52  ;;  %v14064_v52 = vld [vmem:[#allocation57_spill] sm:$0xff] }
 0xc61   :  { %14062 = vst [vmem:[#allocation106_spill] sm:$0xff] %v11690_v59  ;;  %v4102_v4 = vmul.f32 0.5, %v4101_v30 }
 0xc62   :  { %v3962_v6 = vmul.f32 0.5, %v3961_v56 }
 0xc63   :  { %v4103_v33 = vsub.f32 1.5, %v4102_v4 }
 0xc64   :  { %3022 = vadd.xlane.f32.xlu1 %v3021_v12  ;;  %v3963_v29 = vsub.f32 1.5, %v3962_v6  ;;  %v11709_v12 = vpop.permute.xlu2 %5318 }
 0xc65   :  { %v4104_v22 = vmul.f32 %v7474_v15, %v4103_v33  ;;  %14065 = vst [vmem:[#allocation76_spill] sm:$0xff] %v11709_v12  ;;  %v14066_v33 = vld [vmem:[#allocation2_spill] sm:$0xff]  ;;  %v14082_v12 = vld [vmem:[#allocation31_spill] sm:$0xff] }
 0xc66   :  { %v3964_v4 = vmul.f32 %v7476_v47, %v3963_v29  ;;  %v3236_v29 = vld [vmem:[%s13034_s2 + $0x1d8] sm:$0xff] }
 0xc67   :  { %v4108_v53 = vsel %vm4107_vm15, %v7474_v15, %v4104_v22  ;;  %5208 = vperm.xlu0 %7321, %v14063_v28   ;;  %v14067_v22 = vld [vmem:[#allocation3_spill] sm:$0xff] }
 0xc68   :  { %v11700_v30 = vpop.permute.xlu0 %5965  ;;  %v11703_v62 = vmul.f32 %v4108_v53, %v11695_v51  ;;  %v3968_v53 = vsel %vm3967_vm4, %v7476_v47, %v3964_v4  ;;  %v14069_v4 = vld [vmem:[#allocation12_spill] sm:$0xff] }
 0xc69   :  { %v11726_v2 = vmul.f32 %v3968_v53, %v3236_v29 }
 0xc6a   :  { %v4498_v44 = vmul.f32 %v11703_v62, %v11520_v3  ;;  %v14068_v3 = vld [vmem:[#allocation144_spill] sm:$0xff] }
 0xc6c   :  { %4763 = vrot.lane.b32.xlu2 %v4498_v44, %s7591_s23 }
 0xc6f   :  { %5223 = vperm.xlu0 %7321, %v14064_v52   ;;  %v11730_v52 = vpop.permute.xlu2 %4745 }
 0xc71   :  { %v5004_v15 = vpop.permute.xlu0 %5003 }
 0xc72   :  { %v5481_v56 = vmul.f32 %v5004_v15, %v14066_v33  ;;  %v5482_v28 = vmul.f32 %v5004_v15, %v14067_v22  ;;  %v14070_v33 = vld [vmem:[#allocation13_spill] sm:$0xff]  ;;  %v3146_v22 = vmul.f32 0.0051020407, %v11343_v25 }
 0xc74   :  { %v6153_v6 = vadd.f32 %v14068_v3, %v5481_v56  ;;  %v6154_v44 = vadd.f32 %v14068_v3, %v5482_v28  ;;  %v14071_v28 = vld [vmem:[#allocation136_spill] sm:$0xff]  ;;  %v11744_v26 = vadd.f32 0.001, %v3146_v22  ;;  %v11759_v22 = vmul.f32 0.0051020407, %v11662_v18 }
 0xc75   :  { %v4484_v3 = vmul.f32 %v11726_v2, %v14071_v28  ;;  %v14075_v28 = vld [vmem:[#allocation77_spill] sm:$0xff] }
 0xc76   :  { %6345 = vst [vmem:[%s13035_s3] sm:$0xff] %v6153_v6  ;;  %v14072_v6 = vld [vmem:[#allocation6_spill] sm:$0xff]  ;;  %7479 = vrsqrt.f32 %v11744_v26  ;;  %v2402_v18 = vsub.f32 %v10964_v42, %v11759_v22  ;;  %vm4025_vm8 = vweird.f32 %v11744_v26 }
 0xc77   :  { %6346 = vst [vmem:[%s13035_s3 + $0x8] sm:$0xff] %v6154_v44  ;;  %5238 = vperm.xlu0 %7321, %v11077_v21   ;;  %v11750_v44 = vpop.eup %7477  ;;  %v11752_v29 = vpop.xlane.xlu2 %3043 }
 0xc78   :  { %v2594_v39 = vsel %vm2216_vm1, %v2402_v18, 0.0  ;;  %vm3996_vm5 = vweird.f32 %v11750_v44 }
 0xc79   :  { %v5029_v47 = vpop.permute.xlu0 %5028  ;;  %vm3997_vm7 = vmor %vm3995_vm6, %vm3996_vm5 }
 0xc7a   :  { %v5491_v15 = vmul.f32 %v5029_v47, %v14069_v4  ;;  %v5492_v56 = vmul.f32 %v5029_v47, %v14070_v33  ;;  %v14073_v47 = vld [vmem:[#allocation18_spill] sm:$0xff] }
 0xc7c   :  { %v6163_v21 = vadd.f32 %v14072_v6, %v5491_v15  ;;  %v6164_v53 = vadd.f32 %v14072_v6, %v5492_v56  ;;  %v14074_v15 = vld [vmem:[#allocation19_spill] sm:$0xff]  ;;  %v3149_v56 = vmul.f32 0.0051020407, %v11421_v0  ;;  %v3990_v6 = vmul.f32 %v11750_v44, %v11728_v38  ;;  %v14084_v38 = vld [vmem:[#allocation36_spill] sm:$0xff] }
 0xc7d   :  { %4735 = vrot.lane.b32.xlu1 %v4484_v3, %s7591_s23 }
 0xc7e   :  { %6355 = vst [vmem:[%s13035_s3 + $0x50] sm:$0xff] %v6163_v21  ;;  %v11772_v0 = vadd.f32 0.001, %v3149_v56  ;;  %v11776_v21 = vpop.eup %7479  ;;  %v14080_v56 = vld [vmem:[#allocation172_spill] sm:$0xff] }
 0xc7f   :  { %6356 = vst [vmem:[%s13035_s3 + $0x58] sm:$0xff] %v6164_v53  ;;  %5253 = vperm.xlu0 %7321, %v11226_v58   ;;  %v3991_v53 = vmul.f32 %v11750_v44, %v3990_v6  ;;  %vm4026_vm0 = vweird.f32 %v11776_v21 }
 0xc80   :  { %7481 = vrsqrt.f32 %v11772_v0  ;;  %vm4027_vm9 = vmor %vm4025_vm8, %vm4026_vm0  ;;  %vm4055_vm11 = vweird.f32 %v11772_v0 }
 0xc81   :  { %v5044_v25 = vpop.permute.xlu0 %5043  ;;  %v3992_v6 = vmul.f32 0.5, %v3991_v53 }
 0xc82   :  { %v5497_v4 = vmul.f32 %v5044_v25, %v14073_v47  ;;  %v5498_v33 = vmul.f32 %v5044_v25, %v14074_v15  ;;  %v14076_v47 = vld [vmem:[#allocation24_spill] sm:$0xff]  ;;  %v14077_v15 = vld [vmem:[#allocation25_spill] sm:$0xff] }
 0xc84   :  { %v6169_v3 = vadd.f32 %v14075_v28, %v5497_v4  ;;  %v6170_v58 = vadd.f32 %v14075_v28, %v5498_v33  ;;  %v14078_v28 = vld [vmem:[#allocation58_spill] sm:$0xff] }
 0xc86   :  { %6361 = vst [vmem:[%s13035_s3 + $0x80] sm:$0xff] %v6169_v3  ;;  %v2401_v3 = vsub.f32 %v14078_v28, %v11759_v22  ;;  %v11803_v28 = vpop.eup %7481 }
 0xc87   :  { %6362 = vst [vmem:[%s13035_s3 + $0x88] sm:$0xff] %v6170_v58  ;;  %5268 = vperm.xlu0 %7321, %v11393_v7   ;;  %v11784_v7 = vpop.permute.xlu2 %5333  ;;  %vm4056_vm10 = vweird.f32 %v11803_v28 }
 0xc88   :  { %14079 = vst [vmem:[#allocation97_spill] sm:$0xff] %v11784_v7  ;;  %vm4057_vm12 = vmor %vm4055_vm11, %vm4056_vm10 }
 0xc89   :  { %v5059_v25 = vpop.permute.xlu0 %5058 }
 0xc8a   :  { %v5503_v4 = vmul.f32 %v5059_v25, %v14076_v47  ;;  %v5504_v33 = vmul.f32 %v5059_v25, %v14077_v15  ;;  %v4020_v47 = vmul.f32 %v11776_v21, %v11744_v26  ;;  %v3152_v25 = vmul.f32 0.0051020407, %v11481_v54  ;;  %v14081_v54 = vld [vmem:[#allocation30_spill] sm:$0xff] }
 0xc8b   :  { %v2786_v15 = vmul.f32 %v2594_v39, %v2594_v39 }
 0xc8c   :  { %v6175_v58 = vadd.f32 %v14080_v56, %v5503_v4  ;;  %v6176_v42 = vadd.f32 %v14080_v56, %v5504_v33  ;;  %v2785_v4 = vmul.f32 %v2401_v3, %v2401_v3  ;;  %v3993_v33 = vsub.f32 1.5, %v3992_v6 }
 0xc8d   :  { %v4021_v18 = vmul.f32 %v11776_v21, %v4020_v47  ;;  %v11801_v53 = vadd.f32 0.001, %v3152_v25  ;;  %v4050_v25 = vmul.f32 %v11803_v28, %v11772_v0 }
 0xc8e   :  { %6367 = vst [vmem:[%s13035_s3 + $0xb0] sm:$0xff] %v6175_v58  ;;  %v3069_v36 = vadd.f32 %v2786_v15, %v2785_v4  ;;  %v3994_v6 = vmul.f32 %v11750_v44, %v3993_v33  ;;  %v3239_v4 = vld [vmem:[%s13034_s2 + $0x1f0] sm:$0xff] }
 0xc8f   :  { %6368 = vst [vmem:[%s13035_s3 + $0xb8] sm:$0xff] %v6176_v42  ;;  %5283 = vperm.xlu0 %7321, %v11577_v35   ;;  %v3155_v42 = vmul.f32 0.0051020407, %v11541_v5  ;;  %v14083_v35 = vld [vmem:[#allocation149_spill] sm:$0xff]  ;;  %v4022_v47 = vmul.f32 0.5, %v4021_v18  ;;  %7483 = vrsqrt.f32 %v11801_v53  ;;  %vm4085_vm14 = vweird.f32 %v11801_v53 }
 0xc90   :  { %v3998_v15 = vsel %vm3997_vm7, %v11750_v44, %v3994_v6  ;;  %v14085_v18 = vld [vmem:[#allocation37_spill] sm:$0xff]  ;;  %v3158_v6 = vmul.f32 0.0051020407, %v11668_v40 }
 0xc91   :  { %v5074_v56 = vpop.permute.xlu0 %5073  ;;  %v11825_v5 = vadd.f32 0.001, %v3155_v42  ;;  %v14086_v42 = vld [vmem:[#allocation107_spill] sm:$0xff] }
 0xc92   :  { %v5509_v7 = vmul.f32 %v5074_v56, %v14081_v54  ;;  %v5510_v58 = vmul.f32 %v5074_v56, %v14082_v12  ;;  %v11815_v54 = vpop.permute.xlu2 %4751  ;;  %v4023_v12 = vsub.f32 1.5, %v4022_v47  ;;  %v11858_v40 = vadd.f32 0.001, %v3158_v6 }
 0xc93   :  { %7485 = vrsqrt.f32 %v11825_v5  ;;  %vm4115_vm3 = vweird.f32 %v11825_v5 }
 0xc94   :  { %v6181_v3 = vadd.f32 %v14083_v35, %v5509_v7  ;;  %v6182_v39 = vadd.f32 %v14083_v35, %v5510_v58  ;;  %v4024_v47 = vmul.f32 %v11776_v21, %v4023_v12  ;;  %7487 = vrsqrt.f32 %v11858_v40 }
 0xc95   :  { %3070 = vadd.xlane.f32.xlu2 %v3069_v36  ;;  %v4051_v36 = vmul.f32 %v11803_v28, %v4050_v25  ;;  %v11834_v58 = vpop.eup %7483  ;;  %vm4145_vm6 = vweird.f32 %v11858_v40 }
 0xc96   :  { %6373 = vst [vmem:[%s13035_s3 + $0xe0] sm:$0xff] %v6181_v3  ;;  %v4080_v25 = vmul.f32 %v11834_v58, %v11801_v53  ;;  %vm4086_vm13 = vweird.f32 %v11834_v58 }
 0xc97   :  { %6374 = vst [vmem:[%s13035_s3 + $0xe8] sm:$0xff] %v6182_v39  ;;  %5298 = vperm.xlu0 %7321, %v11726_v2   ;;  %v11837_v2 = vpop.permute.xlu1 %4729  ;;  %v11841_v39 = vmul.f32 %v3998_v15, %v3239_v4  ;;  %v4052_v44 = vmul.f32 0.5, %v4051_v36  ;;  %v3242_v4 = vld [vmem:[%s13034_s2 + $0x208] sm:$0xff]  ;;  %v4028_v15 = vsel %vm4027_vm9, %v11776_v21, %v4024_v47  ;;  %vm11931_vm15 = vmor %vm4085_vm14, %vm4086_vm13 }
 0xc98   :  { %v4081_v26 = vmul.f32 %v11834_v58, %v4080_v25  ;;  %v11876_v21 = vmul.f32 %v4028_v15, %v3242_v4  ;;  %v14093_v15 = vld [vmem:[#allocation48_spill] sm:$0xff] }
 0xc99   :  { %v5089_v7 = vpop.permute.xlu0 %5088  ;;  %v4053_v12 = vsub.f32 1.5, %v4052_v44 }
 0xc9a   :  { %v5515_v33 = vmul.f32 %v5089_v7, %v14084_v38  ;;  %v5516_v56 = vmul.f32 %v5089_v7, %v14085_v18  ;;  %v11848_v7 = vpop.xlane.xlu2 %3052  ;;  %v11864_v38 = vpop.eup %7485 }
 0xc9b   :  { %v4054_v47 = vmul.f32 %v11803_v28, %v4053_v12  ;;  %v4110_v25 = vmul.f32 %v11864_v38, %v11825_v5  ;;  %vm4116_vm2 = vweird.f32 %v11864_v38 }
 0xc9c   :  { %v6187_v35 = vadd.f32 %v14086_v42, %v5515_v33  ;;  %v6188_v3 = vadd.f32 %v14086_v42, %v5516_v56  ;;  %v14087_v33 = vld [vmem:[#allocation42_spill] sm:$0xff]  ;;  %v14088_v56 = vld [vmem:[#allocation43_spill] sm:$0xff]  ;;  %vm11972_vm4 = vmor %vm4115_vm3, %vm4116_vm2 }
 0xc9d   :  { %v4058_v0 = vsel %vm4057_vm12, %v11803_v28, %v4054_v47  ;;  %v14096_v28 = vld [vmem:[#allocation154_spill] sm:$0xff] }
 0xc9e   :  { %6379 = vst [vmem:[%s13035_s3 + $0x110] sm:$0xff] %v6187_v35  ;;  %v14089_v35 = vld [vmem:[#allocation183_spill] sm:$0xff] }
 0xc9f   :  { %6380 = vst [vmem:[%s13035_s3 + $0x118] sm:$0xff] %v6188_v3  ;;  %5313 = vperm.xlu0 %7321, %v11841_v39   ;;  %v14090_v3 = vld [vmem:[#allocation184_spill] sm:$0xff]  ;;  %v11872_v6 = vpop.xlane.xlu1 %2102 }
 0xca0   :  { %v2110_v44 = vadd.f32 %v14090_v3, %v14089_v35 }
 0xca1   :  { %v5104_v36 = vpop.permute.xlu0 %5103 }
 0xca2   :  { %v5521_v18 = vmul.f32 %v5104_v36, %v14087_v33  ;;  %v5522_v42 = vmul.f32 %v5104_v36, %v14088_v56  ;;  %v3161_v36 = vmul.f32 0.0051020407, %v11697_v1  ;;  %v4082_v33 = vmul.f32 0.5, %v4081_v26 }
 0xca3   :  { %v4111_v1 = vmul.f32 %v11864_v38, %v4110_v25 }
 0xca4   :  { %v6193_v59 = vadd.f32 %v14091_v34, %v5521_v18  ;;  %v6194_v16 = vadd.f32 %v14091_v34, %v5522_v42  ;;  %v11893_v34 = vpop.permute.xlu2 %5348  ;;  %v11896_v12 = vadd.f32 0.001, %v3161_v36  ;;  %v14094_v18 = vld [vmem:[#allocation49_spill] sm:$0xff]  ;;  %v11904_v42 = vpop.eup %7487 }
 0xca5   :  { %14092 = vst [vmem:[#allocation8_spill] sm:$0xff] %v11893_v34  ;;  %v14095_v34 = vld [vmem:[#allocation157_spill] sm:$0xff]  ;;  %v4112_v10 = vmul.f32 0.5, %v4111_v1  ;;  %vm4146_vm5 = vweird.f32 %v11904_v42 }
 0xca6   :  { %6385 = vst [vmem:[%s13035_s3 + $0x140] sm:$0xff] %v6193_v59  ;;  %v3245_v59 = vld [vmem:[%s13034_s2 + $0x220] sm:$0xff]  ;;  %7489 = vrsqrt.f32 %v11896_v12  ;;  %vm4147_vm7 = vmor %vm4145_vm6, %vm4146_vm5  ;;  %vm4175_vm8 = vweird.f32 %v11896_v12 }
 0xca7   :  { %6386 = vst [vmem:[%s13035_s3 + $0x148] sm:$0xff] %v6194_v16  ;;  %5328 = vperm.xlu0 %7321, %v11876_v21   ;;  %2111 = vadd.xlane.f32.xlu1 %v2110_v44  ;;  %v4083_v16 = vsub.f32 1.5, %v4082_v33  ;;  %v3164_v44 = vmul.f32 0.0051020407, %v11752_v29  ;;  %v11909_v9 = vmul.f32 %v4058_v0, %v3245_v59  ;;  %v14097_v33 = vld [vmem:[#allocation16_spill] sm:$0xff]  ;;  %v4140_v29 = vmul.f32 %v11904_v42, %v11858_v40 }
 0xca8   :  { %v4113_v59 = vsub.f32 1.5, %v4112_v10  ;;  %v3248_v10 = vld [vmem:[%s13034_s2 + $0x238] sm:$0xff] }
 0xca9   :  { %v5119_v4 = vpop.permute.xlu0 %5118 }
 0xcaa   :  { %v5527_v26 = vmul.f32 %v5119_v4, %v14093_v15  ;;  %v5528_v56 = vmul.f32 %v5119_v4, %v14094_v18  ;;  %v4084_v4 = vmul.f32 %v11834_v58, %v4083_v16  ;;  %v4141_v16 = vmul.f32 %v11904_v42, %v4140_v29  ;;  %v14102_v18 = vld [vmem:[#allocation56_spill] sm:$0xff] }
 0xcac   :  { %v6199_v25 = vadd.f32 %v14095_v34, %v5527_v26  ;;  %v6200_v36 = vadd.f32 %v14095_v34, %v5528_v56  ;;  %v5294_v24 = vpop.permute.xlu1 %5293  ;;  %v11939_v26 = vpop.permute.xlu2 %4757 }
 0xcad   :  { %v5597_v47 = vmul.f32 %v5294_v24, %v14096_v28  ;;  %v5598_v15 = vmul.f32 %v5294_v24, %v14097_v33  ;;  %5378 = vperm.xlu2 %7297, %v14098_v60   ;;  %v11929_v60 = vadd.f32 0.001, %v3164_v44  ;;  %v4088_v44 = vsel %vm11931_vm15, %v11834_v58, %v4084_v4 }
 0xcae   :  { %6391 = vst [vmem:[%s13035_s3 + $0x170] sm:$0xff] %v6199_v25  ;;  %v11952_v25 = vpop.eup %7489  ;;  %v4114_v33 = vmul.f32 %v11864_v38, %v4113_v59  ;;  %v11960_v29 = vmul.f32 %v4088_v44, %v3248_v10  ;;  %v3251_v10 = vld [vmem:[%s13034_s2 + $0x250] sm:$0xff]  ;;  %v14108_v44 = vld [vmem:[#allocation15_spill] sm:$0xff] }
 0xcaf   :  { %6392 = vst [vmem:[%s13035_s3 + $0x178] sm:$0xff] %v6200_v36  ;;  %v6269_v34 = vadd.f32 %v11700_v30, %v5597_v47  ;;  %v6270_v24 = vadd.f32 %v11700_v30, %v5598_v15  ;;  %5343 = vperm.xlu0 %7321, %v11909_v9   ;;  %v14101_v30 = vld [vmem:[#allocation54_spill] sm:$0xff]  ;;  %7491 = vrsqrt.f32 %v11929_v60  ;;  %v14103_v36 = vld [vmem:[#allocation64_spill] sm:$0xff]  ;;  %v3167_v15 = vmul.f32 0.0051020407, %v11848_v7 }
 0xcb0   :  { %v4170_v58 = vmul.f32 %v11952_v25, %v11896_v12  ;;  %v4118_v1 = vsel %vm11972_vm4, %v11864_v38, %v4114_v33  ;;  %vm4176_vm0 = vweird.f32 %v11952_v25  ;;  %vm4205_vm11 = vweird.f32 %v11929_v60 }
 0xcb1   :  { %6461 = vst [vmem:[%s13035_s3 + $0x3a0] sm:$0xff] %v6269_v34  ;;  %v5134_v0 = vpop.permute.xlu0 %5133  ;;  %v4142_v34 = vmul.f32 0.5, %v4141_v16  ;;  %v11976_v4 = vadd.f32 0.001, %v3167_v15  ;;  %v11994_v33 = vmul.f32 %v4118_v1, %v3251_v10  ;;  %v14112_v10 = vld [vmem:[#allocation146_spill] sm:$0xff]  ;;  %vm4177_vm9 = vmor %vm4175_vm8, %vm4176_vm0 }
 0xcb2   :  { %6462 = vst [vmem:[%s13035_s3 + $0x3a8] sm:$0xff] %v6270_v24  ;;  %v5533_v53 = vmul.f32 %v5134_v0, %v14101_v30  ;;  %v5534_v56 = vmul.f32 %v5134_v0, %v14102_v18  ;;  %v4171_v0 = vmul.f32 %v11952_v25, %v4170_v58  ;;  %v14106_v30 = vld [vmem:[#allocation61_spill] sm:$0xff]  ;;  %v14107_v18 = vld [vmem:[#allocation63_spill] sm:$0xff] }
 0xcb3   :  { %v4143_v5 = vsub.f32 1.5, %v4142_v34  ;;  %7493 = vrsqrt.f32 %v11976_v4  ;;  %v14109_v58 = vld [vmem:[#allocation21_spill] sm:$0xff]  ;;  %vm4235_vm14 = vweird.f32 %v11976_v4 }
 0xcb4   :  { %v6205_v28 = vadd.f32 %v14103_v36, %v5533_v53  ;;  %v6206_v47 = vadd.f32 %v14103_v36, %v5534_v56  ;;  %v3062_v16 = vpop.xlane.xlu2 %3061  ;;  %v4172_v34 = vmul.f32 0.5, %v4171_v0  ;;  %v14110_v0 = vld [vmem:[#allocation69_spill] sm:$0xff] }
 0xcb5   :  { %v11981_v59 = vpop.eup %7491  ;;  %v4144_v15 = vmul.f32 %v11904_v42, %v4143_v5 }
 0xcb6   :  { %6397 = vst [vmem:[%s13035_s3 + $0x1a0] sm:$0xff] %v6205_v28  ;;  %v4200_v38 = vmul.f32 %v11981_v59, %v11929_v60  ;;  %v4173_v5 = vsub.f32 1.5, %v4172_v34  ;;  %vm4206_vm10 = vweird.f32 %v11981_v59  ;;  %v3260_v60 = vld [vmem:[%s13034_s2 + $0x298] sm:$0xff] }
 0xcb7   :  { %6398 = vst [vmem:[%s13035_s3 + $0x1a8] sm:$0xff] %v6206_v47  ;;  %5358 = vperm.xlu0 %7321, %v11960_v29   ;;  %v3170_v47 = vmul.f32 0.0051020407, %v3062_v16  ;;  %vm4207_vm12 = vmor %vm4205_vm11, %vm4206_vm10 }
 0xcb8   :  { %v4201_v7 = vmul.f32 %v11981_v59, %v4200_v38 }
 0xcb9   :  { %v5149_v24 = vpop.permute.xlu0 %5148  ;;  %v7494_v40 = vpop.eup %7493 }
 0xcba   :  { %v5539_v53 = vmul.f32 %v5149_v24, %v14106_v30  ;;  %v5540_v56 = vmul.f32 %v5149_v24, %v14107_v18  ;;  %v12008_v24 = vadd.f32 0.001, %v3170_v47  ;;  %v14111_v30 = vld [vmem:[#allocation71_spill] sm:$0xff]  ;;  %v4174_v47 = vmul.f32 %v11952_v25, %v4173_v5  ;;  %v14114_v5 = vld [vmem:[#allocation78_spill] sm:$0xff] }
 0xcbb   :  { %v3254_v18 = vld [vmem:[%s13034_s2 + $0x268] sm:$0xff]  ;;  %v4230_v34 = vmul.f32 %v7494_v40, %v11976_v4  ;;  %vm4236_vm13 = vweird.f32 %v7494_v40 }
 0xcbc   :  { %v6211_v36 = vadd.f32 %v14108_v44, %v5539_v53  ;;  %v6212_v28 = vadd.f32 %v14108_v44, %v5540_v56  ;;  %v4148_v56 = vsel %vm4147_vm7, %v11904_v42, %v4144_v15  ;;  %7495 = vrsqrt.f32 %v12008_v24  ;;  %vm4237_vm15 = vmor %vm4235_vm14, %vm4236_vm13  ;;  %v14119_v4 = vld [vmem:[#allocation59_spill] sm:$0xff] }
 0xcbd   :  { %v12019_v38 = vmul.f32 %v4148_v56, %v3254_v18  ;;  %vm4265_vm3 = vweird.f32 %v12008_v24 }
 0xcbe   :  { %6403 = vst [vmem:[%s13035_s3 + $0x1d0] sm:$0xff] %v6211_v36 }
 0xcbf   :  { %6404 = vst [vmem:[%s13035_s3 + $0x1d8] sm:$0xff] %v6212_v28  ;;  %5373 = vperm.xlu0 %7321, %v11994_v33   ;;  %v4202_v28 = vmul.f32 0.5, %v4201_v7  ;;  %v14113_v7 = vld [vmem:[#allocation79_spill] sm:$0xff] }
 0xcc0   :  { %5308 = vperm.xlu1 %7298, %v14109_v58   ;;  %v4231_v58 = vmul.f32 %v7494_v40, %v4230_v34  ;;  %v14115_v34 = vld [vmem:[#allocation82_spill] sm:$0xff] }
 0xcc1   :  { %v5164_v1 = vpop.permute.xlu0 %5163  ;;  %v4203_v42 = vsub.f32 1.5, %v4202_v28 }
 0xcc2   :  { %v5545_v16 = vmul.f32 %v5164_v1, %v14110_v0  ;;  %v5546_v53 = vmul.f32 %v5164_v1, %v14111_v30  ;;  %v4178_v30 = vsel %vm4177_vm9, %v11952_v25, %v4174_v47 }
 0xcc3   :  { %v4204_v12 = vmul.f32 %v11981_v59, %v4203_v42 }
 0xcc4   :  { %v6217_v44 = vadd.f32 %v14112_v10, %v5545_v16  ;;  %v6218_v36 = vadd.f32 %v14112_v10, %v5546_v53  ;;  %v3257_v16 = vld [vmem:[%s13034_s2 + $0x280] sm:$0xff]  ;;  %v7496_v53 = vpop.eup %7495 }
 0xcc5   :  { %v12042_v10 = vmul.f32 %v4178_v30, %v3257_v16  ;;  %v4208_v25 = vsel %vm4207_vm12, %v11981_v59, %v4204_v12  ;;  %vm4266_vm2 = vweird.f32 %v7496_v53 }
 0xcc6   :  { %6409 = vst [vmem:[%s13035_s3 + $0x200] sm:$0xff] %v6217_v44  ;;  %v4232_v44 = vmul.f32 0.5, %v4231_v58  ;;  %vm4267_vm4 = vmor %vm4265_vm3, %vm4266_vm2 }
 0xcc7   :  { %6410 = vst [vmem:[%s13035_s3 + $0x208] sm:$0xff] %v6218_v36  ;;  %5388 = vperm.xlu0 %7321, %v12019_v38   ;;  %v4260_v36 = vmul.f32 %v7496_v53, %v12008_v24 }
 0xcc8   :  { %v4233_v28 = vsub.f32 1.5, %v4232_v44  ;;  %v3263_v44 = vld [vmem:[%s13034_s2 + $0x2b0] sm:$0xff] }
 0xcc9   :  { %v5179_v15 = vpop.permute.xlu0 %5178  ;;  %v4261_v47 = vmul.f32 %v7496_v53, %v4260_v36 }
 0xcca   :  { %v5551_v1 = vmul.f32 %v5179_v15, %v14113_v7  ;;  %v5552_v0 = vmul.f32 %v5179_v15, %v14114_v5  ;;  %v14116_v15 = vld [vmem:[#allocation83_spill] sm:$0xff]  ;;  %v12061_v5 = vmul.f32 %v4208_v25, %v3260_v60 }
 0xccb   :  { %v4262_v16 = vmul.f32 0.5, %v4261_v47 }
 0xccc   :  { %v6223_v18 = vadd.f32 %v11410_v61, %v5551_v1  ;;  %v6224_v56 = vadd.f32 %v11410_v61, %v5552_v0  ;;  %v4234_v0 = vmul.f32 %v7494_v40, %v4233_v28 }
 0xcce   :  { %6415 = vst [vmem:[%s13035_s3 + $0x230] sm:$0xff] %v6223_v18  ;;  %v4238_v36 = vsel %vm4237_vm15, %v7494_v40, %v4234_v0 }
 0xccf   :  { %6416 = vst [vmem:[%s13035_s3 + $0x238] sm:$0xff] %v6224_v56  ;;  %5403 = vperm.xlu0 %7321, %v12042_v10   ;;  %v4263_v56 = vsub.f32 1.5, %v4262_v16  ;;  %v12079_v28 = vmul.f32 %v4238_v36, %v3263_v44 }
 0xcd1   :  { %v5194_v61 = vpop.permute.xlu0 %5193  ;;  %v4264_v47 = vmul.f32 %v7496_v53, %v4263_v56  ;;  %v12096_v56 = vld [vmem:[%s13034_s2 + $0x260] sm:$0xff] }
 0xcd2   :  { %v5557_v42 = vmul.f32 %v5194_v61, %v14115_v34  ;;  %v5558_v58 = vmul.f32 %v5194_v61, %v14116_v15  ;;  %v14118_v61 = vld [vmem:[#allocation60_spill] sm:$0xff]  ;;  %v3266_v15 = vld [vmem:[%s13034_s2 + $0x2c8] sm:$0xff] }
 0xcd4   :  { %v6229_v7 = vadd.f32 %v11475_v55, %v5557_v42  ;;  %v6230_v1 = vadd.f32 %v11475_v55, %v5558_v58  ;;  %v14117_v55 = vld [vmem:[#allocation178_spill] sm:$0xff]  ;;  %v4268_v58 = vsel %vm4267_vm4, %v7496_v53, %v4264_v47 }
 0xcd5   :  { %v12072_v18 = vmul.f32 0.0051020407, %v14117_v55  ;;  %v12090_v16 = vmul.f32 %v4268_v58, %v3266_v15 }
 0xcd6   :  { %6421 = vst [vmem:[%s13035_s3 + $0x260] sm:$0xff] %v6229_v7 }
 0xcd7   :  { %6422 = vst [vmem:[%s13035_s3 + $0x268] sm:$0xff] %v6230_v1  ;;  %5418 = vperm.xlu0 %7321, %v12061_v5   ;;  %v3023_v59 = vpop.xlane.xlu1 %3022  ;;  %v2376_v25 = vsub.f32 %v14118_v61, %v12072_v18  ;;  %v2375_v34 = vsub.f32 %v14119_v4, %v12072_v18 }
 0xcd8   :  { %v3157_v30 = vmul.f32 0.0051020407, %v3023_v59 }
 0xcd9   :  { %v2568_v42 = vsel %vm2216_vm1, %v2376_v25, 0.0  ;;  %v2759_v7 = vmul.f32 %v2375_v34, %v2375_v34  ;;  %v12104_v25 = vpop.permute.xlu2 %5363 }
 0xcda   :  { %v3349_v12 = vadd.f32 0.001, %v3157_v30  ;;  %v2760_v1 = vmul.f32 %v2568_v42, %v2568_v42  ;;  %14120 = vst [vmem:[#allocation9_spill] sm:$0xff] %v12104_v25 }
 0xcdc   :  { %7497 = vrsqrt.f32 %v3349_v12  ;;  %v3030_v24 = vadd.f32 %v2760_v1, %v2759_v7  ;;  %vm4135_vm6 = vweird.f32 %v3349_v12  ;;  %v14124_v7 = vld [vmem:[#allocation102_spill] sm:$0xff] }
 0xcdf   :  { %5433 = vperm.xlu0 %7321, %v12079_v28  }
 0xce1   :  { %v12106_v47 = vpop.permute.xlu2 %4763 }
 0xce2   :  { %v7498_v40 = vpop.eup %7497 }
 0xce3   :  { %v4130_v60 = vmul.f32 %v7498_v40, %v3349_v12  ;;  %vm4136_vm5 = vweird.f32 %v7498_v40  ;;  %v14121_v12 = vld [vmem:[#allocation152_spill] sm:$0xff] }
 0xce4   :  { %vm4137_vm7 = vmor %vm4135_vm6, %vm4136_vm5  ;;  %v4487_v34 = vmul.f32 %v11841_v39, %v14121_v12  ;;  %v3269_v12 = vld [vmem:[%s13034_s2 + $0x2e0] sm:$0xff] }
 0xce5   :  { %v4131_v0 = vmul.f32 %v7498_v40, %v4130_v60 }
 0xce7   :  { %v4132_v59 = vmul.f32 0.5, %v4131_v0  ;;  %5448 = vperm.xlu0 %7321, %v12090_v16  }
 0xce9   :  { %v4133_v30 = vsub.f32 1.5, %v4132_v59 }
 0xcea   :  { %3031 = vadd.xlane.f32.xlu1 %v3030_v24 }
 0xceb   :  { %v4134_v55 = vmul.f32 %v7498_v40, %v4133_v30 }
 0xced   :  { %v4138_v53 = vsel %vm4137_vm7, %v7498_v40, %v4134_v55  ;;  %v12112_v40 = vmul.f32 0.0051020407, %v11687_v49 }
 0xcee   :  { %v12099_v44 = vmul.f32 %v4138_v53, %v12096_v56 }
 0xcef   :  { %14122 = vst [vmem:[#allocation112_spill] sm:$0xff] %v12112_v40  ;;  %v2407_v1 = vsub.f32 %v14124_v7, %v12112_v40 }
 0xcf0   :  { %v4501_v36 = vmul.f32 %v12099_v44, %v11676_v46  ;;  %v14123_v46 = vld [vmem:[#allocation85_spill] sm:$0xff] }
 0xcf1   :  { %v2408_v60 = vsub.f32 %v14123_v46, %v12112_v40  ;;  %v2791_v24 = vmul.f32 %v2407_v1, %v2407_v1  ;;  %v14126_v1 = vld [vmem:[#allocation187_spill] sm:$0xff] }
 0xcf2   :  { %4769 = vrot.lane.b32.xlu2 %v4501_v36, %s7591_s23 }
 0xcf3   :  { %v2600_v39 = vsel %vm2216_vm1, %v2408_v60, 0.0 }
 0xcf4   :  { %v2792_v30 = vmul.f32 %v2600_v39, %v2600_v39 }
 0xcf6   :  { %v3078_v53 = vadd.f32 %v2792_v30, %v2791_v24 }
 0xd03   :  { %4741 = vrot.lane.b32.xlu1 %v4487_v34, %s7591_s23 }
 0xd08   :  { %v3071_v42 = vpop.xlane.xlu2 %3070 }
 0xd09   :  { %v3173_v15 = vmul.f32 0.0051020407, %v3071_v42 }
 0xd0b   :  { %v3365_v58 = vadd.f32 0.001, %v3173_v15  ;;  %5323 = vperm.xlu1 %7298, %v11395_v23   ;;  %v14125_v15 = vld [vmem:[#allocation72_spill] sm:$0xff] }
 0xd0c   :  { %v12128_v60 = vmul.f32 0.0051020407, %v14125_v15 }
 0xd0d   :  { %7499 = vrsqrt.f32 %v3365_v58  ;;  %vm4295_vm8 = vweird.f32 %v3365_v58 }
 0xd0e   :  { %v2382_v39 = vsub.f32 %v14126_v1, %v12128_v60 }
 0xd10   :  { %v12178_v40 = vpop.permute.xlu2 %5378 }
 0xd11   :  { %14133 = vst [vmem:[#allocation130_spill] sm:$0xff] %v12178_v40 }
 0xd13   :  { %v7500_v0 = vpop.eup %7499 }
 0xd14   :  { %v4290_v59 = vmul.f32 %v7500_v0, %v3365_v58  ;;  %vm4296_vm0 = vweird.f32 %v7500_v0  ;;  %v2574_v58 = vsel %vm2216_vm1, %v2382_v39, 0.0 }
 0xd15   :  { %vm4297_vm9 = vmor %vm4295_vm8, %vm4296_vm0 }
 0xd16   :  { %v4291_v55 = vmul.f32 %v7500_v0, %v4290_v59  ;;  %v14127_v59 = vld [vmem:[#allocation185_spill] sm:$0xff] }
 0xd17   :  { %v2381_v24 = vsub.f32 %v14127_v59, %v12128_v60 }
 0xd18   :  { %v4292_v49 = vmul.f32 0.5, %v4291_v55  ;;  %v2766_v55 = vmul.f32 %v2574_v58, %v2574_v58  ;;  %v12148_v58 = vpop.permute.xlu0 %5208 }
 0xd19   :  { %v2765_v30 = vmul.f32 %v2381_v24, %v2381_v24 }
 0xd1a   :  { %v4293_v36 = vsub.f32 1.5, %v4292_v49  ;;  %v14128_v49 = vmov 1  }
 0xd1b   :  { %3079 = vadd.xlane.f32.xlu2 %v3078_v53  ;;  %v12138_v53 = vpop.permute.xlu1 %4735 }
 0xd1c   :  { %v4294_v23 = vmul.f32 %v7500_v0, %v4293_v36  ;;  %v14129_v36 = vld [vmem:[#allocation51_spill] sm:$0xff] }
 0xd1e   :  { %v4298_v34 = vsel %vm4297_vm9, %v7500_v0, %v4294_v23  ;;  %v3039_v0 = vadd.f32 %v2766_v55, %v2765_v30  ;;  %v4490_v23 = vmul.f32 %v11876_v21, %v14129_v36  ;;  %v12151_v21 = vmul.f32 0.0051020407, %v11509_v27  ;;  %v14131_v27 = vld [vmem:[#allocation191_spill] sm:$0xff] }
 0xd1f   :  { %v12124_v42 = vmul.f32 %v4298_v34, %v3269_v12 }
 0xd20   :  { %v12160_v46 = vpop.permute.xlu0 %5223 }
 0xd21   :  { %5463 = vperm.xlu0 %7321, %v12124_v42  }
 0xd23   :  { %v12142_v12 = vpop.xlane.xlu1 %2111 }
 0xd32   :  { %v12145_v34 = vpop.permute.xlu1 %5308 }
 0xd33   :  { %5393 = vperm.xlu2 %7297, %v11412_v37  }
 0xd35   :  { %3040 = vadd.xlane.f32.xlu1 %v3039_v0 }
 0xd3b   :  { %7299 = vset.pattern.permute.xlu2 %v14128_v49 }
 0xd4e   :  { %4747 = vrot.lane.b32.xlu1 %v4490_v23, %s7591_s23 }
 0xd56   :  { %5338 = vperm.xlu1 %7298, %v11495_v11   ;;  %v12156_v11 = vld [vmem:[%s13034_s2 + $0x278] sm:$0xff] }
 0xd5d   :  { %v3032_v15 = vpop.xlane.xlu1 %3031 }
 0xd5e   :  { %v3160_v39 = vmul.f32 0.0051020407, %v3032_v15  ;;  %v14130_v15 = vld [vmem:[#allocation74_spill] sm:$0xff] }
 0xd60   :  { %v3352_v37 = vadd.f32 0.001, %v3160_v39  ;;  %v2388_v39 = vsub.f32 %v14130_v15, %v12151_v21  ;;  %v12172_v15 = vpop.permute.xlu0 %5238 }
 0xd62   :  { %7501 = vrsqrt.f32 %v3352_v37  ;;  %vm4165_vm11 = vweird.f32 %v3352_v37 }
 0xd68   :  { %v7502_v24 = vpop.eup %7501 }
 0xd69   :  { %v4160_v30 = vmul.f32 %v7502_v24, %v3352_v37  ;;  %vm4166_vm10 = vweird.f32 %v7502_v24 }
 0xd6a   :  { %vm4167_vm12 = vmor %vm4165_vm11, %vm4166_vm10 }
 0xd6b   :  { %v4161_v55 = vmul.f32 %v7502_v24, %v4160_v30 }
 0xd6d   :  { %v4162_v0 = vmul.f32 0.5, %v4161_v55 }
 0xd6f   :  { %v4163_v36 = vsub.f32 1.5, %v4162_v0  ;;  %v2387_v0 = vsub.f32 %v14131_v27, %v12151_v21 }
 0xd71   :  { %v4164_v23 = vmul.f32 %v7502_v24, %v4163_v36  ;;  %v2580_v36 = vsel %vm2216_vm1, %v2388_v39, 0.0  ;;  %v2771_v7 = vmul.f32 %v2387_v0, %v2387_v0  ;;  %v12182_v39 = vpop.permute.xlu0 %5253 }
 0xd72   :  { %v2772_v25 = vmul.f32 %v2580_v36, %v2580_v36 }
 0xd73   :  { %v4168_v30 = vsel %vm4167_vm12, %v7502_v24, %v4164_v23  ;;  %v7550_v24 = vld [vmem:[%s13034_s2 + $0x148] sm:$0xff]  ;;  %v14132_v23 = vld [vmem:[#allocation197_spill] sm:$0xff] }
 0xd74   :  { %v12163_v55 = vmul.f32 %v4168_v30, %v12156_v11  ;;  %v4946_v30 = vsub.f32 %v7550_v24, %v14132_v23  ;;  %v3048_v27 = vadd.f32 %v2772_v25, %v2771_v7  ;;  %v14134_v25 = vld [vmem:[#allocation33_spill] sm:$0xff] }
 0xd75   :  { %v12189_v24 = vpop.permute.xlu1 %4741  ;;  %v4493_v7 = vmul.f32 %v11909_v9, %v14134_v25  ;;  %v12202_v9 = vld [vmem:[%s13034_s2 + $0x2f8] sm:$0xff] }
 0xd76   :  { %v4504_v37 = vmul.f32 %v12163_v55, %v12072_v18  ;;  %v12180_v18 = vpop.permute.xlu2 %4769  ;;  %14136 = vst [vmem:[#allocation129_spill] sm:$0xff] %v12202_v9 }
 0xd78   :  { %4775 = vrot.lane.b32.xlu2 %v4504_v37, %s7591_s23 }
 0xd79   :  { %v12186_v36 = vpop.permute.xlu0 %5268 }
 0xd80   :  { %3049 = vadd.xlane.f32.xlu1 %v3048_v27  ;;  %5880 = vperm.xlu2 %7299, %v4946_v30  }
 0xd81   :  { %v12194_v30 = vpop.permute.xlu0 %5283 }
 0xd82   :  { %14135 = vst [vmem:[#allocation128_spill] sm:$0xff] %v12194_v30 }
 0xd88   :  { %7301 = vset.pattern.permute.xlu2 %v13567_v57 }
 0xd89   :  { %5408 = vperm.xlu2 %7301, %v11432_v14  }
 0xd8e   :  { %v3080_v0 = vpop.xlane.xlu2 %3079 }
 0xd8f   :  { %v3176_v37 = vmul.f32 0.0051020407, %v3080_v0  ;;  %v12196_v0 = vpop.permute.xlu1 %5323 }
 0xd91   :  { %v3368_v1 = vadd.f32 0.001, %v3176_v37  ;;  %7303 = vset.pattern.permute.xlu2 %v14128_v49 }
 0xd93   :  { %7503 = vrsqrt.f32 %v3368_v1  ;;  %vm4325_vm14 = vweird.f32 %v3368_v1 }
 0xd99   :  { %v7504_v27 = vpop.eup %7503  ;;  %4753 = vrot.lane.b32.xlu1 %v4493_v7, %s7591_s23  ;;  %v12204_v7 = vpop.permute.xlu0 %5298 }
 0xd9a   :  { %v4320_v23 = vmul.f32 %v7504_v27, %v3368_v1  ;;  %vm4326_vm13 = vweird.f32 %v7504_v27  ;;  %14137 = vst [vmem:[#allocation145_spill] sm:$0xff] %v12204_v7 }
 0xd9b   :  { %vm4327_vm15 = vmor %vm4325_vm14, %vm4326_vm13 }
 0xd9c   :  { %v4321_v14 = vmul.f32 %v7504_v27, %v4320_v23 }
 0xd9e   :  { %v4322_v40 = vmul.f32 0.5, %v4321_v14 }
 0xda0   :  { %v4323_v59 = vsub.f32 1.5, %v4322_v40 }
 0xda1   :  { %5353 = vperm.xlu1 %7298, %v11589_v31   ;;  %v7551_v31 = vld [vmem:[%s13034_s2 + $0x1e8] sm:$0xff] }
 0xda2   :  { %v4324_v37 = vmul.f32 %v7504_v27, %v4323_v59  ;;  %v4966_v1 = vsub.f32 %v7551_v31, %v11678_v32  ;;  %v12214_v59 = vpop.permute.xlu0 %5313  ;;  %v12224_v32 = vmul.f32 0.0051020407, %v11645_v43 }
 0xda3   :  { %14138 = vst [vmem:[#allocation17_spill] sm:$0xff] %v12214_v59 }
 0xda4   :  { %v4328_v25 = vsel %vm4327_vm15, %v7504_v27, %v4324_v37 }
 0xda5   :  { %v12207_v23 = vmul.f32 %v4328_v25, %v12202_v9  ;;  %v7552_v25 = vld [vmem:[%s13034_s2 + $0x200] sm:$0xff] }
 0xda7   :  { %5478 = vperm.xlu0 %7321, %v12207_v23  }
 0xda8   :  { %v3041_v40 = vpop.xlane.xlu1 %3040 }
 0xda9   :  { %v3163_v14 = vmul.f32 0.0051020407, %v3041_v40  ;;  %v4969_v40 = vsub.f32 %v7552_v25, %v11730_v52  ;;  %v2394_v52 = vsub.f32 %v14015_v8, %v12224_v32 }
 0xdaa   :  { %v12221_v7 = vpop.permute.xlu0 %5328 }
 0xdab   :  { %v3355_v30 = vadd.f32 0.001, %v3163_v14  ;;  %14139 = vst [vmem:[#allocation11_spill] sm:$0xff] %v12221_v7 }
 0xdad   :  { %7505 = vrsqrt.f32 %v3355_v30  ;;  %vm4195_vm3 = vweird.f32 %v3355_v30 }
 0xdaf   :  { %7322 = vset.pattern.permute.xlu0 %v14128_v49 }
 0xdb0   :  { %5980 = vperm.xlu0 %7322, %v4966_v1   ;;  %v12229_v1 = vld [vmem:[%s13034_s2 + $0x290] sm:$0xff] }
 0xdb3   :  { %v7506_v27 = vpop.eup %7505 }
 0xdb4   :  { %v4190_v37 = vmul.f32 %v7506_v27, %v3355_v30  ;;  %vm4196_vm2 = vweird.f32 %v7506_v27  ;;  %v2393_v30 = vsub.f32 %v14014_v41, %v12224_v32 }
 0xdb5   :  { %vm4197_vm4 = vmor %vm4195_vm3, %vm4196_vm2 }
 0xdb6   :  { %v4191_v14 = vmul.f32 %v7506_v27, %v4190_v37  ;;  %v7553_v37 = vld [vmem:[%s13034_s2 + $0x218] sm:$0xff]  ;;  %v2777_v7 = vmul.f32 %v2393_v30, %v2393_v30 }
 0xdb7   :  { %v4972_v43 = vsub.f32 %v7553_v37, %v11815_v54  ;;  %v14140_v37 = vld [vmem:[#allocation90_spill] sm:$0xff] }
 0xdb8   :  { %v4192_v9 = vmul.f32 0.5, %v4191_v14  ;;  %5995 = vperm.xlu0 %7322, %v4969_v40   ;;  %v2586_v14 = vsel %vm2216_vm1, %v2394_v52, 0.0 }
 0xdb9   :  { %v2778_v54 = vmul.f32 %v2586_v14, %v2586_v14 }
 0xdba   :  { %v4193_v31 = vsub.f32 1.5, %v4192_v9 }
 0xdbb   :  { %v3057_v52 = vadd.f32 %v2778_v54, %v2777_v7  ;;  %v14142_v7 = vld [vmem:[#allocation103_spill] sm:$0xff] }
 0xdbc   :  { %v4194_v59 = vmul.f32 %v7506_v27, %v4193_v31  ;;  %v12246_v31 = vpop.permute.xlu0 %5343  ;;  %v5563_v54 = vmul.f32 %v12148_v58, %v14142_v7 }
 0xdbe   :  { %v4198_v25 = vsel %vm4197_vm4, %v7506_v27, %v4194_v59  ;;  %v7554_v59 = vld [vmem:[%s13034_s2 + $0x230] sm:$0xff] }
 0xdbf   :  { %v12238_v9 = vmul.f32 %v4198_v25, %v12229_v1  ;;  %v4975_v27 = vsub.f32 %v7554_v59, %v11939_v26  ;;  %v12257_v25 = vpop.permute.xlu2 %5393  ;;  %v4981_v26 = vsub.f32 %v12096_v56, %v12180_v18 }
 0xdc0   :  { %6010 = vperm.xlu0 %7322, %v4972_v43   ;;  %14141 = vst [vmem:[#allocation135_spill] sm:$0xff] %v12257_v25  ;;  %v12283_v18 = vpop.permute.xlu1 %4747 }
 0xdc1   :  { %v4507_v40 = vmul.f32 %v12238_v9, %v12128_v60  ;;  %v7555_v60 = vld [vmem:[%s13034_s2 + $0x160] sm:$0xff] }
 0xdc2   :  { %v4949_v43 = vsub.f32 %v7555_v60, %v14140_v37 }
 0xdc3   :  { %4781 = vrot.lane.b32.xlu2 %v4507_v40, %s7591_s23  ;;  %v4978_v40 = vsub.f32 %v11695_v51, %v12106_v47 }
 0xdc4   :  { %v12259_v30 = vpop.permute.xlu0 %5358 }
 0xdc8   :  { %6025 = vperm.xlu0 %7322, %v4975_v27   ;;  %v14143_v27 = vld [vmem:[#allocation104_spill] sm:$0xff] }
 0xdc9   :  { %v5564_v60 = vmul.f32 %v12148_v58, %v14143_v27  ;;  %v14144_v58 = vld [vmem:[#allocation91_spill] sm:$0xff] }
 0xdcb   :  { %3058 = vadd.xlane.f32.xlu1 %v3057_v52  ;;  %5895 = vperm.xlu2 %7303, %v4949_v43   ;;  %v4496_v43 = vmul.f32 %v11960_v29, %v14144_v58 }
 0xdcc   :  { %v12267_v59 = vpop.permute.xlu0 %5373 }
 0xdd0   :  { %6040 = vperm.xlu0 %7322, %v4978_v40   ;;  %v12290_v40 = vpop.permute.xlu1 %5338 }
 0xdd2   :  { %v4776_v14 = vpop.permute.xlu2 %4775 }
 0xdd3   :  { %7305 = vset.pattern.permute.xlu2 %v13567_v57 }
 0xdd4   :  { %5423 = vperm.xlu2 %7305, %v11459_v19   ;;  %v4984_v19 = vsub.f32 %v12156_v11, %v4776_v14  ;;  %v12281_v56 = vpop.permute.xlu0 %5388 }
 0xdd8   :  { %6055 = vperm.xlu0 %7322, %v4981_v26  }
 0xdda   :  { %v5881_v37 = vpop.permute.xlu2 %5880 }
 0xddb   :  { %v6235_v51 = vadd.f32 %v5881_v37, %v5563_v54  ;;  %v6236_v47 = vadd.f32 %v5881_v37, %v5564_v60 }
 0xddc   :  { %7307 = vset.pattern.permute.xlu2 %v14128_v49  ;;  %v12288_v52 = vpop.permute.xlu0 %5403 }
 0xddd   :  { %6427 = vst [vmem:[%s13035_s3 + $0x290] sm:$0xff] %v6235_v51  ;;  %v12298_v51 = vmul.f32 0.0051020407, %v11872_v6 }
 0xdde   :  { %6428 = vst [vmem:[%s13035_s3 + $0x298] sm:$0xff] %v6236_v47 }
 0xddf   :  { %v2400_v58 = vsub.f32 %v10942_v17, %v12298_v51  ;;  %v2399_v6 = vsub.f32 %v10921_v20, %v12298_v51 }
 0xde0   :  { %6070 = vperm.xlu0 %7322, %v4984_v19  }
 0xde4   :  { %4759 = vrot.lane.b32.xlu1 %v4496_v43, %s7591_s23  ;;  %v12293_v26 = vpop.permute.xlu0 %5418 }
 0xdec   :  { %5368 = vperm.xlu1 %7298, %v11703_v62   ;;  %v12295_v27 = vpop.permute.xlu0 %5433  ;;  %v12303_v62 = vld [vmem:[%s13034_s2 + $0x2a8] sm:$0xff] }
 0xded   :  { %14145 = vst [vmem:[#allocation159_spill] sm:$0xff] %v12295_v27  ;;  %v14152_v27 = vld [vmem:[#allocation164_spill] sm:$0xff] }
 0xdf3   :  { %v3050_v11 = vpop.xlane.xlu1 %3049 }
 0xdf4   :  { %v3166_v14 = vmul.f32 0.0051020407, %v3050_v11  ;;  %v12307_v43 = vpop.permute.xlu0 %5448 }
 0xdf5   :  { %14146 = vst [vmem:[#allocation14_spill] sm:$0xff] %v12307_v43  ;;  %v12325_v43 = vpop.permute.xlu2 %5408 }
 0xdf6   :  { %v3358_v7 = vadd.f32 0.001, %v3166_v14 }
 0xdf8   :  { %7507 = vrsqrt.f32 %v3358_v7  ;;  %vm4225_vm6 = vweird.f32 %v3358_v7 }
 0xdfe   :  { %v7508_v54 = vpop.eup %7507 }
 0xdff   :  { %v4220_v60 = vmul.f32 %v7508_v54, %v3358_v7  ;;  %vm4226_vm5 = vweird.f32 %v7508_v54 }
 0xe00   :  { %vm4227_vm7 = vmor %vm4225_vm6, %vm4226_vm5 }
 0xe01   :  { %v4221_v37 = vmul.f32 %v7508_v54, %v4220_v60  ;;  %v2592_v60 = vsel %vm2216_vm1, %v2400_v58, 0.0 }
 0xe03   :  { %v4222_v29 = vmul.f32 0.5, %v4221_v37  ;;  %v2783_v37 = vmul.f32 %v2399_v6, %v2399_v6  ;;  %v14150_v6 = vld [vmem:[#allocation156_spill] sm:$0xff] }
 0xe05   :  { %v4223_v47 = vsub.f32 1.5, %v4222_v29  ;;  %v2784_v29 = vmul.f32 %v2592_v60, %v2592_v60  ;;  %v14151_v60 = vld [vmem:[#allocation41_spill] sm:$0xff] }
 0xe07   :  { %v4224_v19 = vmul.f32 %v7508_v54, %v4223_v47  ;;  %v12319_v47 = vpop.permute.xlu0 %5463  ;;  %v3066_v25 = vadd.f32 %v2784_v29, %v2783_v37  ;;  %v5604_v37 = vmul.f32 %v12145_v34, %v14152_v27  ;;  %v14155_v27 = vld [vmem:[#allocation28_spill] sm:$0xff] }
 0xe08   :  { %14147 = vst [vmem:[#allocation134_spill] sm:$0xff] %v12319_v47  ;;  %v5603_v47 = vmul.f32 %v12145_v34, %v14151_v60 }
 0xe09   :  { %v4228_v11 = vsel %vm4227_vm7, %v7508_v54, %v4224_v19  ;;  %v7556_v54 = vld [vmem:[%s13034_s2 + $0x178] sm:$0xff]  ;;  %v14148_v19 = vld [vmem:[#allocation122_spill] sm:$0xff] }
 0xe0a   :  { %v12310_v14 = vmul.f32 %v4228_v11, %v12303_v62  ;;  %v4952_v11 = vsub.f32 %v7556_v54, %v14148_v19  ;;  %v14153_v19 = vld [vmem:[#allocation98_spill] sm:$0xff] }
 0xe0c   :  { %v4510_v7 = vmul.f32 %v12310_v14, %v12151_v21 }
 0xe0e   :  { %4787 = vrot.lane.b32.xlu2 %v4510_v7, %s7591_s23 }
 0xe16   :  { %3067 = vadd.xlane.f32.xlu1 %v3066_v25  ;;  %5910 = vperm.xlu2 %7307, %v4952_v11   ;;  %v5569_v11 = vmul.f32 %v12160_v46, %v14153_v19 }
 0xe19   :  { %v12327_v21 = vpop.permute.xlu0 %5478 }
 0xe1a   :  { %14149 = vst [vmem:[#allocation26_spill] sm:$0xff] %v12327_v21  ;;  %v14154_v21 = vld [vmem:[#allocation99_spill] sm:$0xff] }
 0xe1d   :  { %v4782_v58 = vpop.permute.xlu2 %4781 }
 0xe1e   :  { %v4987_v7 = vsub.f32 %v12229_v1, %v4782_v58  ;;  %7309 = vset.pattern.permute.xlu2 %v13567_v57  ;;  %v5570_v1 = vmul.f32 %v12160_v46, %v14154_v21  ;;  %v5609_v46 = vmul.f32 %v12196_v0, %v14155_v27  ;;  %v14160_v27 = vld [vmem:[#allocation55_spill] sm:$0xff] }
 0xe1f   :  { %5438 = vperm.xlu2 %7309, %v14150_v6  }
 0xe20   :  { %6085 = vperm.xlu0 %7322, %v4987_v7  }
 0xe22   :  { %v5981_v29 = vpop.permute.xlu0 %5980 }
 0xe23   :  { %v6275_v54 = vadd.f32 %v5981_v29, %v5603_v47  ;;  %v6276_v25 = vadd.f32 %v5981_v29, %v5604_v37  ;;  %v14156_v47 = vld [vmem:[#allocation29_spill] sm:$0xff]  ;;  %v12357_v29 = vpop.permute.xlu1 %4753 }
 0xe24   :  { %v5610_v21 = vmul.f32 %v12196_v0, %v14156_v47  ;;  %v14158_v0 = vld [vmem:[#allocation176_spill] sm:$0xff] }
 0xe25   :  { %6467 = vst [vmem:[%s13035_s3 + $0x3d0] sm:$0xff] %v6275_v54  ;;  %v5896_v58 = vpop.permute.xlu2 %5895  ;;  %v14157_v54 = vld [vmem:[#allocation10_spill] sm:$0xff]  ;;  %v5615_v19 = vmul.f32 %v12290_v40, %v14158_v0  ;;  %v14161_v47 = vld [vmem:[#allocation40_spill] sm:$0xff] }
 0xe26   :  { %6468 = vst [vmem:[%s13035_s3 + $0x3d8] sm:$0xff] %v6276_v25  ;;  %v6241_v7 = vadd.f32 %v5896_v58, %v5569_v11  ;;  %v6242_v34 = vadd.f32 %v5896_v58, %v5570_v1  ;;  %v4499_v25 = vmul.f32 %v11994_v33, %v14157_v54  ;;  %v14159_v11 = vld [vmem:[#allocation177_spill] sm:$0xff] }
 0xe27   :  { %7311 = vset.pattern.permute.xlu2 %v14128_v49  ;;  %v5616_v1 = vmul.f32 %v12290_v40, %v14159_v11 }
 0xe28   :  { %6433 = vst [vmem:[%s13035_s3 + $0x2c0] sm:$0xff] %v6241_v7 }
 0xe29   :  { %6434 = vst [vmem:[%s13035_s3 + $0x2c8] sm:$0xff] %v6242_v34 }
 0xe2a   :  { %v5996_v6 = vpop.permute.xlu0 %5995 }
 0xe2b   :  { %v6281_v60 = vadd.f32 %v5996_v6, %v5609_v46  ;;  %v6282_v37 = vadd.f32 %v5996_v6, %v5610_v21  ;;  %v5354_v33 = vpop.permute.xlu1 %5353 }
 0xe2c   :  { %v5621_v46 = vmul.f32 %v5354_v33, %v14160_v27  ;;  %v5622_v21 = vmul.f32 %v5354_v33, %v14161_v47 }
 0xe2d   :  { %6473 = vst [vmem:[%s13035_s3 + $0x400] sm:$0xff] %v6281_v60 }
 0xe2e   :  { %6474 = vst [vmem:[%s13035_s3 + $0x408] sm:$0xff] %v6282_v37 }
 0xe2f   :  { %4765 = vrot.lane.b32.xlu1 %v4499_v25, %s7591_s23 }
 0xe32   :  { %v6011_v58 = vpop.permute.xlu0 %6010 }
 0xe33   :  { %v6287_v7 = vadd.f32 %v6011_v58, %v5615_v19  ;;  %v6288_v34 = vadd.f32 %v6011_v58, %v5616_v1  ;;  %v12388_v1 = vmul.f32 0.0051020407, %v12142_v12 }
 0xe35   :  { %6479 = vst [vmem:[%s13035_s3 + $0x430] sm:$0xff] %v6287_v7  ;;  %v2406_v33 = vsub.f32 %v14090_v3, %v12388_v1  ;;  %v2405_v12 = vsub.f32 %v14089_v35, %v12388_v1 }
 0xe36   :  { %6480 = vst [vmem:[%s13035_s3 + $0x438] sm:$0xff] %v6288_v34  ;;  %v12393_v34 = vld [vmem:[%s13034_s2 + $0x2c0] sm:$0xff] }
 0xe37   :  { %5383 = vperm.xlu1 %7298, %v12099_v44  }
 0xe3a   :  { %v6026_v6 = vpop.permute.xlu0 %6025 }
 0xe3b   :  { %v6293_v40 = vadd.f32 %v6026_v6, %v5621_v46  ;;  %v6294_v60 = vadd.f32 %v6026_v6, %v5622_v21  ;;  %v2598_v6 = vsel %vm2216_vm1, %v2406_v33, 0.0 }
 0xe3d   :  { %6485 = vst [vmem:[%s13035_s3 + $0x460] sm:$0xff] %v6293_v40  ;;  %v2789_v40 = vmul.f32 %v2405_v12, %v2405_v12 }
 0xe3e   :  { %6486 = vst [vmem:[%s13035_s3 + $0x468] sm:$0xff] %v6294_v60  ;;  %v3059_v37 = vpop.xlane.xlu1 %3058  ;;  %v2790_v60 = vmul.f32 %v2598_v6, %v2598_v6  ;;  %v14165_v6 = vld [vmem:[#allocation88_spill] sm:$0xff] }
 0xe3f   :  { %v3169_v54 = vmul.f32 0.0051020407, %v3059_v37 }
 0xe41   :  { %v3361_v25 = vadd.f32 0.001, %v3169_v54  ;;  %v7557_v54 = vld [vmem:[%s13034_s2 + $0x190] sm:$0xff] }
 0xe42   :  { %v6041_v63 = vpop.permute.xlu0 %6040 }
 0xe43   :  { %7509 = vrsqrt.f32 %v3361_v25  ;;  %vm4255_vm8 = vweird.f32 %v3361_v25 }
 0xe49   :  { %v7510_v44 = vpop.eup %7509 }
 0xe4a   :  { %v4250_v0 = vmul.f32 %v7510_v44, %v3361_v25  ;;  %vm4256_vm0 = vweird.f32 %v7510_v44  ;;  %v14162_v25 = vld [vmem:[#allocation192_spill] sm:$0xff] }
 0xe4b   :  { %vm4257_vm9 = vmor %vm4255_vm8, %vm4256_vm0 }
 0xe4c   :  { %v4251_v19 = vmul.f32 %v7510_v44, %v4250_v0  ;;  %v14163_v0 = vld [vmem:[#allocation27_spill] sm:$0xff] }
 0xe4e   :  { %v4252_v11 = vmul.f32 0.5, %v4251_v19 }
 0xe50   :  { %v4253_v58 = vsub.f32 1.5, %v4252_v11  ;;  %v14164_v11 = vld [vmem:[#allocation111_spill] sm:$0xff] }
 0xe52   :  { %v4254_v7 = vmul.f32 %v7510_v44, %v4253_v58 }
 0xe54   :  { %v4258_v27 = vsel %vm4257_vm9, %v7510_v44, %v4254_v7  ;;  %v4955_v44 = vsub.f32 %v7557_v54, %v14162_v25  ;;  %v3075_v7 = vadd.f32 %v2790_v60, %v2789_v40  ;;  %v14166_v40 = vld [vmem:[#allocation117_spill] sm:$0xff] }
 0xe55   :  { %v12398_v46 = vmul.f32 %v4258_v27, %v12393_v34  ;;  %v5575_v60 = vmul.f32 %v12172_v15, %v14166_v40 }
 0xe56   :  { %v12400_v47 = vpop.permute.xlu1 %4759 }
 0xe57   :  { %v4513_v21 = vmul.f32 %v12398_v46, %v12224_v32  ;;  %v12415_v32 = vpop.permute.xlu2 %5423 }
 0xe59   :  { %4793 = vrot.lane.b32.xlu2 %v4513_v21, %s7591_s23 }
 0xe5e   :  { %v5369_v37 = vpop.permute.xlu1 %5368 }
 0xe5f   :  { %v5627_v19 = vmul.f32 %v5369_v37, %v14163_v0  ;;  %v5628_v58 = vmul.f32 %v5369_v37, %v14164_v11  ;;  %v14167_v37 = vld [vmem:[#allocation118_spill] sm:$0xff]  ;;  %v14169_v11 = vld [vmem:[#allocation121_spill] sm:$0xff] }
 0xe60   :  { %v5576_v54 = vmul.f32 %v12172_v15, %v14167_v37  ;;  %v7558_v15 = vld [vmem:[%s13034_s2 + $0x150] sm:$0xff]  ;;  %v12454_v37 = vld [vmem:[%s13034_s2 + $0x2d8] sm:$0xff] }
 0xe61   :  { %v6299_v33 = vadd.f32 %v6041_v63, %v5627_v19  ;;  %v6300_v27 = vadd.f32 %v6041_v63, %v5628_v58  ;;  %3076 = vadd.xlane.f32.xlu1 %v3075_v7  ;;  %5925 = vperm.xlu2 %7311, %v4955_v44   ;;  %v4947_v58 = vsub.f32 %v7558_v15, %v14169_v11  ;;  %v7560_v15 = vld [vmem:[%s13034_s2 + $0x1a8] sm:$0xff] }
 0xe62   :  { %v14172_v11 = vld [vmem:[#allocation195_spill] sm:$0xff] }
 0xe63   :  { %6491 = vst [vmem:[%s13035_s3 + $0x490] sm:$0xff] %v6299_v33 }
 0xe64   :  { %6492 = vst [vmem:[%s13035_s3 + $0x498] sm:$0xff] %v6300_v27  ;;  %v14170_v27 = vld [vmem:[#allocation186_spill] sm:$0xff] }
 0xe68   :  { %v4788_v12 = vpop.permute.xlu2 %4787 }
 0xe69   :  { %v4990_v21 = vsub.f32 %v12303_v62, %v4788_v12  ;;  %7313 = vset.pattern.permute.xlu2 %v13567_v57  ;;  %v14168_v62 = vld [vmem:[#allocation65_spill] sm:$0xff] }
 0xe6a   :  { %5453 = vperm.xlu2 %7313, %v14165_v6   ;;  %v4502_v19 = vmul.f32 %v12019_v38, %v14168_v62  ;;  %v4505_v38 = vmul.f32 %v12042_v10, %v14170_v27 }
 0xe6b   :  { %6100 = vperm.xlu0 %7322, %v4990_v21  }
 0xe70   :  { %v5911_v25 = vpop.permute.xlu2 %5910 }
 0xe71   :  { %v6247_v44 = vadd.f32 %v5911_v25, %v5575_v60  ;;  %v6248_v0 = vadd.f32 %v5911_v25, %v5576_v54 }
 0xe72   :  { %7315 = vset.pattern.permute.xlu2 %v14128_v49 }
 0xe73   :  { %6439 = vst [vmem:[%s13035_s3 + $0x2f0] sm:$0xff] %v6247_v44  ;;  %v7559_v44 = vld [vmem:[%s13034_s2 + $0x168] sm:$0xff] }
 0xe74   :  { %6440 = vst [vmem:[%s13035_s3 + $0x2f8] sm:$0xff] %v6248_v0  ;;  %v14171_v0 = vld [vmem:[#allocation182_spill] sm:$0xff] }
 0xe75   :  { %v4950_v62 = vsub.f32 %v7559_v44, %v14171_v0 }
 0xe7a   :  { %4771 = vrot.lane.b32.xlu1 %v4502_v19, %s7591_s23 }
 0xe82   :  { %5398 = vperm.xlu1 %7298, %v12163_v55  }
 0xe89   :  { %v3068_v7 = vpop.xlane.xlu1 %3067 }
 0xe8a   :  { %v3172_v63 = vmul.f32 0.0051020407, %v3068_v7  ;;  %7300 = vset.pattern.permute.xlu1 %v14128_v49 }
 0xe8b   :  { %5885 = vperm.xlu1 %7300, %v4947_v58   ;;  %v4958_v58 = vsub.f32 %v7560_v15, %v14172_v11 }
 0xe8c   :  { %v3364_v33 = vadd.f32 0.001, %v3172_v63 }
 0xe8e   :  { %7511 = vrsqrt.f32 %v3364_v33  ;;  %vm4285_vm10 = vweird.f32 %v3364_v33 }
 0xe93   :  { %4777 = vrot.lane.b32.xlu1 %v4505_v38, %s7591_s23  ;;  %v12474_v38 = vpop.permute.xlu2 %5438 }
 0xe94   :  { %v7512_v12 = vpop.eup %7511  ;;  %7302 = vset.pattern.permute.xlu1 %v13567_v57 }
 0xe95   :  { %v4280_v55 = vmul.f32 %v7512_v12, %v3364_v33  ;;  %vm4286_vm1 = vweird.f32 %v7512_v12  ;;  %v14173_v33 = vld [vmem:[#allocation46_spill] sm:$0xff] }
 0xe96   :  { %vm4287_vm11 = vmor %vm4285_vm10, %vm4286_vm1  ;;  %v4508_v27 = vmul.f32 %v12061_v5, %v14173_v33  ;;  %v14174_v5 = vld [vmem:[#allocation119_spill] sm:$0xff] }
 0xe97   :  { %v4281_v21 = vmul.f32 %v7512_v12, %v4280_v55 }
 0xe99   :  { %v4282_v6 = vmul.f32 0.5, %v4281_v21  ;;  %v5581_v21 = vmul.f32 %v12182_v39, %v14174_v5 }
 0xe9b   :  { %v4283_v40 = vsub.f32 1.5, %v4282_v6  ;;  %5413 = vperm.xlu1 %7302, %v12238_v9   ;;  %v14175_v6 = vld [vmem:[#allocation120_spill] sm:$0xff] }
 0xe9d   :  { %v4284_v60 = vmul.f32 %v7512_v12, %v4283_v40  ;;  %v5582_v40 = vmul.f32 %v12182_v39, %v14175_v6  ;;  %v7564_v6 = vld [vmem:[%s13034_s2 + $0x1c0] sm:$0xff] }
 0xe9f   :  { %v4288_v10 = vsel %vm4287_vm11, %v7512_v12, %v4284_v60  ;;  %v7561_v60 = vld [vmem:[%s13034_s2 + $0x180] sm:$0xff] }
 0xea0   :  { %v4420_v54 = vmul.f32 %v4288_v10, %v12454_v37  ;;  %v14176_v10 = vld [vmem:[#allocation189_spill] sm:$0xff] }
 0xea1   :  { %v12457_v25 = vpop.permute.xlu1 %4765  ;;  %v4953_v44 = vsub.f32 %v7561_v60, %v14176_v10 }
 0xea2   :  { %v4516_v9 = vmul.f32 %v4420_v54, %v12298_v51  ;;  %v6056_v51 = vpop.permute.xlu0 %6055 }
 0xea3   :  { %7304 = vset.pattern.permute.xlu1 %v14128_v49 }
 0xea4   :  { %4799 = vrot.lane.b32.xlu2 %v4516_v9, %s7591_s23  ;;  %5900 = vperm.xlu1 %7304, %v4950_v62   ;;  %v14178_v9 = vld [vmem:[#allocation160_spill] sm:$0xff] }
 0xea9   :  { %v5384_v19 = vpop.permute.xlu1 %5383 }
 0xeaa   :  { %v5633_v7 = vmul.f32 %v5384_v19, %v14060_v50  ;;  %v5634_v63 = vmul.f32 %v5384_v19, %v14058_v45 }
 0xeac   :  { %v6305_v12 = vadd.f32 %v6056_v51, %v5633_v7  ;;  %v6306_v55 = vadd.f32 %v6056_v51, %v5634_v63  ;;  %5940 = vperm.xlu2 %7315, %v4958_v58   ;;  %4783 = vrot.lane.b32.xlu1 %v4508_v27, %s7591_s23 }
 0xead   :  { %7306 = vset.pattern.permute.xlu1 %v13567_v57 }
 0xeae   :  { %6497 = vst [vmem:[%s13035_s3 + $0x4c0] sm:$0xff] %v6305_v12  ;;  %v12521_v12 = vld [vmem:[%s13034_s2 + $0x2f0] sm:$0xff] }
 0xeaf   :  { %6498 = vst [vmem:[%s13035_s3 + $0x4c8] sm:$0xff] %v6306_v55 }
 0xeb3   :  { %v4794_v45 = vpop.permute.xlu2 %4793 }
 0xeb4   :  { %v4993_v50 = vsub.f32 %v12393_v34, %v4794_v45  ;;  %7317 = vset.pattern.permute.xlu2 %v13567_v57  ;;  %5428 = vperm.xlu1 %7306, %v12310_v14   ;;  %v7562_v14 = vld [vmem:[%s13034_s2 + $0x198] sm:$0xff]  ;;  %v7563_v45 = vld [vmem:[%s13034_s2 + $0x1b0] sm:$0xff] }
 0xeb5   :  { %5468 = vperm.xlu2 %7317, %v11561_v13   ;;  %v14177_v13 = vld [vmem:[#allocation20_spill] sm:$0xff]  ;;  %v4956_v19 = vsub.f32 %v7562_v14, %v14178_v9 }
 0xeb6   :  { %6115 = vperm.xlu0 %7322, %v4993_v50   ;;  %v4511_v39 = vmul.f32 %v12079_v28, %v14177_v13  ;;  %v4514_v28 = vmul.f32 %v12090_v16, %v11624_v48  ;;  %v14179_v50 = vld [vmem:[#allocation84_spill] sm:$0xff]  ;;  %v7565_v13 = vld [vmem:[%s13034_s2 + $0x1d8] sm:$0xff] }
 0xeb7   :  { %v4959_v5 = vsub.f32 %v7563_v45, %v14179_v50  ;;  %v14186_v50 = vld [vmem:[#allocation185_spill] sm:$0xff] }
 0xebb   :  { %v5926_v34 = vpop.permute.xlu2 %5925 }
 0xebc   :  { %v6253_v0 = vadd.f32 %v5926_v34, %v5581_v21  ;;  %v6254_v62 = vadd.f32 %v5926_v34, %v5582_v40  ;;  %7308 = vset.pattern.permute.xlu1 %v14128_v49  ;;  %v4961_v40 = vsub.f32 %v7564_v6, %v11837_v2  ;;  %v14180_v2 = vld [vmem:[#allocation95_spill] sm:$0xff] }
 0xebd   :  { %5915 = vperm.xlu1 %7308, %v4953_v44   ;;  %7319 = vset.pattern.permute.xlu2 %v14128_v49  ;;  %v4517_v44 = vmul.f32 %v12124_v42, %v11759_v22  ;;  %v14181_v22 = vld [vmem:[#allocation179_spill] sm:$0xff] }
 0xebe   :  { %6445 = vst [vmem:[%s13035_s3 + $0x320] sm:$0xff] %v6253_v0 }
 0xebf   :  { %6446 = vst [vmem:[%s13035_s3 + $0x328] sm:$0xff] %v6254_v62 }
 0xec4   :  { %v12541_v34 = vpop.permute.xlu2 %5453 }
 0xec5   :  { %4789 = vrot.lane.b32.xlu1 %v4511_v39, %s7591_s23 }
 0xec6   :  { %7310 = vset.pattern.permute.xlu1 %v13567_v57 }
 0xecd   :  { %5443 = vperm.xlu1 %7310, %v12398_v46  }
 0xed4   :  { %v3077_v15 = vpop.xlane.xlu1 %3076 }
 0xed5   :  { %v3175_v11 = vmul.f32 0.0051020407, %v3077_v15  ;;  %7312 = vset.pattern.permute.xlu1 %v14128_v49 }
 0xed6   :  { %5930 = vperm.xlu1 %7312, %v4956_v19  }
 0xed7   :  { %v3367_v58 = vadd.f32 0.001, %v3175_v11  ;;  %v14183_v11 = vld [vmem:[#allocation142_spill] sm:$0xff] }
 0xed9   :  { %7513 = vrsqrt.f32 %v3367_v58  ;;  %vm4315_vm13 = vweird.f32 %v3367_v58 }
 0xede   :  { %4795 = vrot.lane.b32.xlu1 %v4514_v28, %s7591_s23 }
 0xedf   :  { %v7514_v7 = vpop.eup %7513  ;;  %7314 = vset.pattern.permute.xlu1 %v13567_v57 }
 0xee0   :  { %v4310_v46 = vmul.f32 %v7514_v7, %v3367_v58  ;;  %vm4316_vm12 = vweird.f32 %v7514_v7  ;;  %v14184_v58 = vld [vmem:[#allocation143_spill] sm:$0xff] }
 0xee1   :  { %vm4317_vm14 = vmor %vm4315_vm13, %vm4316_vm12  ;;  %v5588_v28 = vmul.f32 %v12186_v36, %v14184_v58  ;;  %v7574_v58 = vld [vmem:[%s13034_s2 + $0x210] sm:$0xff] }
 0xee2   :  { %v4311_v63 = vmul.f32 %v7514_v7, %v4310_v46 }
 0xee4   :  { %v4312_v33 = vmul.f32 0.5, %v4311_v63  ;;  %v7567_v63 = vld [vmem:[%s13034_s2 + $0x1c8] sm:$0xff] }
 0xee6   :  { %v4313_v27 = vsub.f32 1.5, %v4312_v33  ;;  %5458 = vperm.xlu1 %7314, %v4420_v54   ;;  %v14185_v33 = vld [vmem:[#allocation4_spill] sm:$0xff] }
 0xee8   :  { %v4314_v51 = vmul.f32 %v7514_v7, %v4313_v27  ;;  %v4962_v27 = vsub.f32 %v7567_v63, %v14185_v33  ;;  %v14196_v33 = vld [vmem:[#allocation74_spill] sm:$0xff] }
 0xeea   :  { %v4318_v48 = vsel %vm4317_vm14, %v7514_v7, %v4314_v51 }
 0xeeb   :  { %v4423_v16 = vmul.f32 %v4318_v48, %v12521_v12 }
 0xeec   :  { %v12524_v55 = vpop.permute.xlu1 %4771 }
 0xeed   :  { %v4519_v54 = vmul.f32 %v4423_v16, %v12388_v1  ;;  %v6071_v1 = vpop.permute.xlu0 %6070 }
 0xeee   :  { %7316 = vset.pattern.permute.xlu1 %v14128_v49 }
 0xeef   :  { %4805 = vrot.lane.b32.xlu2 %v4519_v54, %s7591_s23  ;;  %5945 = vperm.xlu1 %7316, %v4959_v5   ;;  %v14187_v54 = vld [vmem:[#allocation187_spill] sm:$0xff] }
 0xef4   :  { %v5399_v21 = vpop.permute.xlu1 %5398 }
 0xef5   :  { %v5639_v60 = vmul.f32 %v5399_v21, %v14119_v4  ;;  %v5640_v10 = vmul.f32 %v5399_v21, %v14118_v61  ;;  %v5565_v61 = vmul.f32 %v14181_v22, %v14180_v2  ;;  %v14182_v4 = vld [vmem:[#allocation96_spill] sm:$0xff] }
 0xef6   :  { %v5566_v42 = vmul.f32 %v14181_v22, %v14182_v4  ;;  %v14188_v21 = vld [vmem:[#allocation112_spill] sm:$0xff]  ;;  %v7570_v22 = vld [vmem:[%s13034_s2 + $0x1e0] sm:$0xff] }
 0xef7   :  { %v6311_v0 = vadd.f32 %v6071_v1, %v5639_v60  ;;  %v6312_v62 = vadd.f32 %v6071_v1, %v5640_v10  ;;  %5955 = vperm.xlu2 %7319, %v4961_v40   ;;  %4801 = vrot.lane.b32.xlu1 %v4517_v44, %s7591_s23  ;;  %v4520_v6 = vmul.f32 %v12207_v23, %v14188_v21  ;;  %v6086_v40 = vpop.permute.xlu0 %6085  ;;  %v14190_v44 = vld [vmem:[#allocation5_spill] sm:$0xff]  ;;  %v14200_v21 = vld [vmem:[#allocation190_spill] sm:$0xff] }
 0xef8   :  { %7318 = vset.pattern.permute.xlu1 %v13567_v57  ;;  %v4964_v57 = vsub.f32 %v7565_v13, %v12138_v53  ;;  %v5587_v53 = vmul.f32 %v12186_v36, %v14183_v11  ;;  %v7568_v36 = vld [vmem:[%s13034_s2 + $0x208] sm:$0xff]  ;;  %v7573_v11 = vld [vmem:[%s13034_s2 + $0x250] sm:$0xff] }
 0xef9   :  { %6503 = vst [vmem:[%s13035_s3 + $0x4f0] sm:$0xff] %v6311_v0  ;;  %v14191_v0 = vld [vmem:[#allocation101_spill] sm:$0xff] }
 0xefa   :  { %6504 = vst [vmem:[%s13035_s3 + $0x4f8] sm:$0xff] %v6312_v62  ;;  %v5572_v23 = vmul.f32 %v14190_v44, %v14191_v0  ;;  %v7569_v62 = vld [vmem:[%s13034_s2 + $0x220] sm:$0xff] }
 0xefb   :  { %v4973_v2 = vsub.f32 %v7569_v62, %v12357_v29  ;;  %v7571_v29 = vld [vmem:[%s13034_s2 + $0x238] sm:$0xff] }
 0xefc   :  { %v7579_v62 = vld [vmem:[%s13034_s2 + $0x298] sm:$0xff] }
 0xefd   :  { %v5886_v39 = vpop.permute.xlu1 %5885 }
 0xefe   :  { %v6237_v14 = vadd.f32 %v5886_v39, %v5565_v61  ;;  %v6238_v9 = vadd.f32 %v5886_v39, %v5566_v42  ;;  %v4800_v19 = vpop.permute.xlu2 %4799  ;;  %v14192_v61 = vld [vmem:[#allocation73_spill] sm:$0xff]  ;;  %v4976_v39 = vsub.f32 %v7571_v29, %v12400_v47  ;;  %v14194_v47 = vld [vmem:[#allocation80_spill] sm:$0xff] }
 0xeff   :  { %v4996_v15 = vsub.f32 %v12454_v37, %v4800_v19  ;;  %5970 = vperm.xlu2 %7319, %v4964_v57   ;;  %5473 = vperm.xlu1 %7318, %v4423_v16   ;;  %v7566_v37 = vld [vmem:[%s13034_s2 + $0x1f0] sm:$0xff]  ;;  %v4965_v4 = vsub.f32 %v7570_v22, %v14192_v61  ;;  %v7580_v22 = vld [vmem:[%s13034_s2 + $0x258] sm:$0xff] }
 0xf00   :  { %6429 = vst [vmem:[%s13035_s3 + $0x2a0] sm:$0xff] %v6237_v14  ;;  %v4967_v7 = vsub.f32 %v7566_v37, %v12189_v24  ;;  %v4970_v24 = vsub.f32 %v7568_v36, %v12283_v18  ;;  %v14189_v18 = vld [vmem:[#allocation100_spill] sm:$0xff]  ;;  %v7572_v14 = vld [vmem:[%s13034_s2 + $0x1f8] sm:$0xff] }
 0xf01   :  { %6430 = vst [vmem:[%s13035_s3 + $0x2a8] sm:$0xff] %v6238_v9  ;;  %6130 = vperm.xlu0 %7322, %v4996_v15   ;;  %v5571_v1 = vmul.f32 %v14190_v44, %v14189_v18  ;;  %v14193_v9 = vld [vmem:[#allocation188_spill] sm:$0xff]  ;;  %v7578_v44 = vld [vmem:[%s13034_s2 + $0x240] sm:$0xff]  ;;  %v14202_v61 = vld [vmem:[#allocation201_spill] sm:$0xff] }
 0xf02   :  { %v4968_v19 = vsub.f32 %v7572_v14, %v14193_v9  ;;  %v7581_v9 = vld [vmem:[%s13034_s2 + $0x2b0] sm:$0xff] }
 0xf05   :  { %v12574_v46 = vpop.permute.xlu1 %4777 }
 0xf06   :  { %v5941_v51 = vpop.permute.xlu2 %5940 }
 0xf07   :  { %v6259_v48 = vadd.f32 %v5941_v51, %v5587_v53  ;;  %v6260_v16 = vadd.f32 %v5941_v51, %v5588_v28  ;;  %5985 = vperm.xlu2 %7319, %v4967_v7   ;;  %7320 = vset.pattern.permute.xlu1 %v14128_v49  ;;  %v4979_v53 = vsub.f32 %v7573_v11, %v12457_v25  ;;  %v14195_v7 = vld [vmem:[#allocation191_spill] sm:$0xff]  ;;  %v6101_v51 = vpop.permute.xlu0 %6100  ;;  %v14204_v11 = vld [vmem:[#allocation124_spill] sm:$0xff] }
 0xf08   :  { %5960 = vperm.xlu1 %7320, %v4962_v27   ;;  %v4971_v28 = vsub.f32 %v7574_v58, %v14194_v47  ;;  %v7575_v25 = vld [vmem:[%s13034_s2 + $0x268] sm:$0xff]  ;;  %v14206_v47 = vld [vmem:[#allocation125_spill] sm:$0xff] }
 0xf09   :  { %6451 = vst [vmem:[%s13035_s3 + $0x350] sm:$0xff] %v6259_v48  ;;  %v4982_v36 = vsub.f32 %v7575_v25, %v12524_v55  ;;  %v7577_v55 = vld [vmem:[%s13034_s2 + $0x280] sm:$0xff] }
 0xf0a   :  { %6452 = vst [vmem:[%s13035_s3 + $0x358] sm:$0xff] %v6260_v16  ;;  %v4985_v18 = vsub.f32 %v7577_v55, %v12574_v46  ;;  %v4980_v46 = vsub.f32 %v7580_v22, %v14202_v61  ;;  %v14208_v25 = vld [vmem:[#allocation62_spill] sm:$0xff]  ;;  %v14212_v55 = vld [vmem:[#allocation23_spill] sm:$0xff]  ;;  %v7586_v61 = vld [vmem:[%s13034_s2 + $0x2b8] sm:$0xff] }
 0xf0d   :  { %v5414_v45 = vpop.permute.xlu1 %5413 }
 0xf0e   :  { %v5645_v5 = vmul.f32 %v5414_v45, %v14186_v50  ;;  %v5646_v49 = vmul.f32 %v5414_v45, %v14187_v54  ;;  %v14198_v45 = vld [vmem:[#allocation199_spill] sm:$0xff] }
 0xf0f   :  { %6000 = vperm.xlu2 %7319, %v4970_v24   ;;  %v14197_v24 = vld [vmem:[#allocation109_spill] sm:$0xff] }
 0xf10   :  { %v6317_v60 = vadd.f32 %v6086_v40, %v5645_v5  ;;  %v6318_v10 = vadd.f32 %v6086_v40, %v5646_v49  ;;  %4807 = vrot.lane.b32.xlu1 %v4520_v6, %s7591_s23  ;;  %v5577_v50 = vmul.f32 %v14198_v45, %v14197_v24  ;;  %v14199_v5 = vld [vmem:[#allocation110_spill] sm:$0xff]  ;;  %v7576_v49 = vld [vmem:[%s13034_s2 + $0x228] sm:$0xff] }
 0xf11   :  { %v5578_v54 = vmul.f32 %v14198_v45, %v14199_v5  ;;  %v4974_v6 = vsub.f32 %v7576_v49, %v14200_v21  ;;  %v14210_v45 = vld [vmem:[#allocation147_spill] sm:$0xff] }
 0xf12   :  { %6509 = vst [vmem:[%s13035_s3 + $0x520] sm:$0xff] %v6317_v60  ;;  %v7584_v5 = vld [vmem:[%s13034_s2 + $0x2c8] sm:$0xff] }
 0xf13   :  { %6510 = vst [vmem:[%s13035_s3 + $0x528] sm:$0xff] %v6318_v10 }
 0xf16   :  { %v5901_v42 = vpop.permute.xlu1 %5900 }
 0xf17   :  { %v6243_v13 = vadd.f32 %v5901_v42, %v5571_v1  ;;  %v6244_v57 = vadd.f32 %v5901_v42, %v5572_v23  ;;  %6015 = vperm.xlu2 %7319, %v4973_v2   ;;  %v14201_v1 = vld [vmem:[#allocation32_spill] sm:$0xff] }
 0xf18   :  { %5975 = vperm.xlu1 %7320, %v4965_v4   ;;  %v4977_v0 = vsub.f32 %v7578_v44, %v14201_v1  ;;  %v14214_v1 = vld [vmem:[#allocation123_spill] sm:$0xff] }
 0xf19   :  { %6435 = vst [vmem:[%s13035_s3 + $0x2d0] sm:$0xff] %v6243_v13 }
 0xf1a   :  { %6436 = vst [vmem:[%s13035_s3 + $0x2d8] sm:$0xff] %v6244_v57  ;;  %v12679_v57 = vpop.permute.xlu2 %5468 }
 0xf1e   :  { %v4784_v15 = vpop.permute.xlu1 %4783 }
 0xf1f   :  { %6030 = vperm.xlu2 %7319, %v4976_v39   ;;  %v4988_v2 = vsub.f32 %v7579_v62, %v4784_v15 }
 0xf20   :  { %5990 = vperm.xlu1 %7320, %v4968_v19  }
 0xf26   :  { %v5429_v37 = vpop.permute.xlu1 %5428 }
 0xf27   :  { %v5651_v63 = vmul.f32 %v5429_v37, %v14195_v7  ;;  %v5652_v27 = vmul.f32 %v5429_v37, %v14196_v33  ;;  %6045 = vperm.xlu2 %7319, %v4979_v53   ;;  %v14205_v53 = vld [vmem:[#allocation81_spill] sm:$0xff] }
 0xf28   :  { %6005 = vperm.xlu1 %7320, %v4971_v28   ;;  %v6116_v29 = vpop.permute.xlu0 %6115  ;;  %v5583_v58 = vmul.f32 %v14205_v53, %v14204_v11  ;;  %v5584_v28 = vmul.f32 %v14205_v53, %v14206_v47 }
 0xf29   :  { %v6323_v48 = vadd.f32 %v6101_v51, %v5651_v63  ;;  %v6324_v16 = vadd.f32 %v6101_v51, %v5652_v27  ;;  %v7583_v51 = vld [vmem:[%s13034_s2 + $0x288] sm:$0xff] }
 0xf2b   :  { %6515 = vst [vmem:[%s13035_s3 + $0x550] sm:$0xff] %v6323_v48  ;;  %v14207_v48 = vld [vmem:[#allocation87_spill] sm:$0xff] }
 0xf2c   :  { %6516 = vst [vmem:[%s13035_s3 + $0x558] sm:$0xff] %v6324_v16  ;;  %v4986_v16 = vsub.f32 %v7583_v51, %v14207_v48  ;;  %v14224_v51 = vld [vmem:[#allocation11_spill] sm:$0xff] }
 0xf2f   :  { %6060 = vperm.xlu2 %7319, %v4982_v36   ;;  %v5916_v40 = vpop.permute.xlu1 %5915  ;;  %v14209_v36 = vld [vmem:[#allocation128_spill] sm:$0xff] }
 0xf30   :  { %v6249_v60 = vadd.f32 %v5916_v40, %v5577_v50  ;;  %v6250_v10 = vadd.f32 %v5916_v40, %v5578_v54  ;;  %6020 = vperm.xlu1 %7320, %v4974_v6   ;;  %v5593_v24 = vmul.f32 %v14209_v36, %v14208_v25  ;;  %v7585_v40 = vld [vmem:[%s13034_s2 + $0x2a0] sm:$0xff] }
 0xf32   :  { %6441 = vst [vmem:[%s13035_s3 + $0x300] sm:$0xff] %v6249_v60  ;;  %v14211_v60 = vld [vmem:[#allocation114_spill] sm:$0xff] }
 0xf33   :  { %6442 = vst [vmem:[%s13035_s3 + $0x308] sm:$0xff] %v6250_v10  ;;  %v4989_v10 = vsub.f32 %v7585_v40, %v14211_v60  ;;  %v14228_v60 = vld [vmem:[#allocation126_spill] sm:$0xff] }
 0xf37   :  { %6075 = vperm.xlu2 %7319, %v4985_v18   ;;  %v4790_v23 = vpop.permute.xlu1 %4789  ;;  %v14213_v18 = vld [vmem:[#allocation145_spill] sm:$0xff] }
 0xf38   :  { %6035 = vperm.xlu1 %7320, %v4977_v0   ;;  %v4991_v19 = vsub.f32 %v7581_v9, %v4790_v23  ;;  %v5599_v44 = vmul.f32 %v14213_v18, %v14212_v55  ;;  %v5600_v0 = vmul.f32 %v14213_v18, %v14214_v1  ;;  %v14219_v9 = vld [vmem:[#allocation127_spill] sm:$0xff] }
 0xf3f   :  { %6090 = vperm.xlu2 %7319, %v4988_v2   ;;  %v5444_v4 = vpop.permute.xlu1 %5443 }
 0xf40   :  { %v5657_v42 = vmul.f32 %v5444_v4, %v14014_v41  ;;  %v5658_v13 = vmul.f32 %v5444_v4, %v14015_v8  ;;  %6050 = vperm.xlu1 %7320, %v4980_v46   ;;  %v7582_v41 = vld [vmem:[%s13034_s2 + $0x270] sm:$0xff]  ;;  %v14203_v8 = vld [vmem:[#allocation86_spill] sm:$0xff]  ;;  %v14215_v46 = vld [vmem:[#allocation115_spill] sm:$0xff] }
 0xf41   :  { %v4983_v15 = vsub.f32 %v7582_v41, %v14203_v8  ;;  %v4992_v4 = vsub.f32 %v7586_v61, %v14215_v46  ;;  %v14221_v8 = vld [vmem:[#allocation108_spill] sm:$0xff]  ;;  %v14231_v46 = vld [vmem:[#allocation150_spill] sm:$0xff] }
 0xf42   :  { %v6329_v39 = vadd.f32 %v6116_v29, %v5657_v42  ;;  %v6330_v14 = vadd.f32 %v6116_v29, %v5658_v13  ;;  %v14216_v42 = vld [vmem:[#allocation139_spill] sm:$0xff]  ;;  %v14217_v13 = vld [vmem:[#allocation200_spill] sm:$0xff] }
 0xf43   :  { %v5589_v29 = vmul.f32 %v14217_v13, %v14216_v42 }
 0xf44   :  { %6521 = vst [vmem:[%s13035_s3 + $0x580] sm:$0xff] %v6329_v39  ;;  %v14218_v39 = vld [vmem:[#allocation140_spill] sm:$0xff] }
 0xf45   :  { %6522 = vst [vmem:[%s13035_s3 + $0x588] sm:$0xff] %v6330_v14  ;;  %v5590_v14 = vmul.f32 %v14217_v13, %v14218_v39  ;;  %v14233_v13 = vld [vmem:[#allocation151_spill] sm:$0xff] }
 0xf47   :  { %6105 = vperm.xlu2 %7319, %v4991_v19   ;;  %v14220_v19 = vld [vmem:[#allocation17_spill] sm:$0xff] }
 0xf48   :  { %v5931_v37 = vpop.permute.xlu1 %5930  ;;  %6065 = vperm.xlu1 %7320, %v4983_v15   ;;  %v5605_v41 = vmul.f32 %v14220_v19, %v14219_v9  ;;  %v5606_v15 = vmul.f32 %v14220_v19, %v14221_v8 }
 0xf49   :  { %v6255_v7 = vadd.f32 %v5931_v37, %v5583_v58  ;;  %v6256_v63 = vadd.f32 %v5931_v37, %v5584_v28  ;;  %v4806_v33 = vpop.permute.xlu2 %4805 }
 0xf4a   :  { %v4999_v27 = vsub.f32 %v12521_v12, %v4806_v33  ;;  %v5594_v12 = vmul.f32 %v14209_v36, %v14210_v45  ;;  %v7588_v45 = vld [vmem:[%s13034_s2 + $0x2e0] sm:$0xff] }
 0xf4b   :  { %6447 = vst [vmem:[%s13035_s3 + $0x330] sm:$0xff] %v6255_v7  ;;  %v7587_v7 = vld [vmem:[%s13034_s2 + $0x2d0] sm:$0xff] }
 0xf4c   :  { %6448 = vst [vmem:[%s13035_s3 + $0x338] sm:$0xff] %v6256_v63  ;;  %6145 = vperm.xlu0 %7322, %v4999_v27   ;;  %v14222_v63 = vld [vmem:[#allocation174_spill] sm:$0xff] }
 0xf4d   :  { %v4995_v33 = vsub.f32 %v7587_v7, %v14222_v63  ;;  %v14223_v27 = vld [vmem:[#allocation138_spill] sm:$0xff]  ;;  %v14236_v7 = vld [vmem:[#allocation129_spill] sm:$0xff] }
 0xf4e   :  { %v5611_v48 = vmul.f32 %v14224_v51, %v14223_v27 }
 0xf50   :  { %v4796_v50 = vpop.permute.xlu1 %4795  ;;  %6080 = vperm.xlu1 %7320, %v4986_v16   ;;  %v14225_v16 = vld [vmem:[#allocation163_spill] sm:$0xff] }
 0xf51   :  { %v4994_v54 = vsub.f32 %v7584_v5, %v4796_v50  ;;  %v5956_v49 = vpop.permute.xlu2 %5955  ;;  %v5612_v25 = vmul.f32 %v14224_v51, %v14225_v16  ;;  %v14238_v51 = vld [vmem:[#allocation92_spill] sm:$0xff]  ;;  %v14240_v16 = vld [vmem:[#allocation105_spill] sm:$0xff] }
 0xf52   :  { %v6265_v21 = vadd.f32 %v5956_v49, %v5593_v24  ;;  %v6266_v6 = vadd.f32 %v5956_v49, %v5594_v12  ;;  %v14226_v49 = vld [vmem:[#allocation106_spill] sm:$0xff] }
 0xf53   :  { %6120 = vperm.xlu2 %7319, %v4994_v54   ;;  %v7589_v54 = vld [vmem:[%s13034_s2 + $0x2e8] sm:$0xff] }
 0xf54   :  { %6457 = vst [vmem:[%s13035_s3 + $0x380] sm:$0xff] %v6265_v21  ;;  %v4998_v21 = vsub.f32 %v7589_v54, %v14226_v49 }
 0xf55   :  { %6458 = vst [vmem:[%s13035_s3 + $0x388] sm:$0xff] %v6266_v6  ;;  %v14227_v6 = vld [vmem:[#allocation94_spill] sm:$0xff] }
 0xf56   :  { %v5617_v40 = vmul.f32 %v12246_v31, %v14227_v6  ;;  %v14243_v6 = vld [vmem:[#allocation39_spill] sm:$0xff] }
 0xf58   :  { %v5459_v23 = vpop.permute.xlu1 %5458  ;;  %6095 = vperm.xlu1 %7320, %v4989_v10   ;;  %v5618_v10 = vmul.f32 %v12246_v31, %v14228_v60  ;;  %v14230_v31 = vld [vmem:[#allocation141_spill] sm:$0xff] }
 0xf59   :  { %v5971_v62 = vpop.permute.xlu2 %5970  ;;  %v5664_v1 = vmul.f32 %v5459_v23, %v10942_v17  ;;  %v14244_v60 = vld [vmem:[#allocation133_spill] sm:$0xff] }
 0xf5a   :  { %v6271_v2 = vadd.f32 %v5971_v62, %v5599_v44  ;;  %v6272_v22 = vadd.f32 %v5971_v62, %v5600_v0  ;;  %v5663_v44 = vmul.f32 %v5459_v23, %v10921_v20  ;;  %v14229_v20 = vld [vmem:[#allocation153_spill] sm:$0xff]  ;;  %v5624_v23 = vmul.f32 %v12259_v30, %v14230_v31  ;;  %v14248_v31 = vld [vmem:[#allocation68_spill] sm:$0xff] }
 0xf5b   :  { %v5623_v17 = vmul.f32 %v12259_v30, %v14229_v20  ;;  %v14234_v30 = vld [vmem:[#allocation47_spill] sm:$0xff] }
 0xf5c   :  { %6463 = vst [vmem:[%s13035_s3 + $0x3b0] sm:$0xff] %v6271_v2 }
 0xf5d   :  { %6464 = vst [vmem:[%s13035_s3 + $0x3b8] sm:$0xff] %v6272_v22 }
 0xf60   :  { %6110 = vperm.xlu1 %7320, %v4992_v4   ;;  %v14232_v4 = vld [vmem:[#allocation171_spill] sm:$0xff] }
 0xf61   :  { %v5946_v11 = vpop.permute.xlu1 %5945  ;;  %v5986_v53 = vpop.permute.xlu2 %5985  ;;  %v5595_v42 = vmul.f32 %v14232_v4, %v14231_v46  ;;  %v14249_v46 = vld [vmem:[#allocation131_spill] sm:$0xff] }
 0xf62   :  { %v6261_v58 = vadd.f32 %v5946_v11, %v5589_v29  ;;  %v6262_v47 = vadd.f32 %v5946_v11, %v5590_v14  ;;  %v6277_v28 = vadd.f32 %v5986_v53, %v5605_v41  ;;  %v6278_v37 = vadd.f32 %v5986_v53, %v5606_v15  ;;  %v14235_v11 = vld [vmem:[#allocation169_spill] sm:$0xff] }
 0xf63   :  { %v5596_v29 = vmul.f32 %v14232_v4, %v14233_v13  ;;  %v5629_v15 = vmul.f32 %v12267_v59, %v14234_v30  ;;  %v5630_v53 = vmul.f32 %v12267_v59, %v14235_v11  ;;  %v5636_v59 = vmul.f32 %v12281_v56, %v14238_v51  ;;  %v14250_v4 = vld [vmem:[#allocation97_spill] sm:$0xff]  ;;  %v14251_v13 = vld [vmem:[#allocation162_spill] sm:$0xff]  ;;  %v14253_v30 = vld [vmem:[#allocation159_spill] sm:$0xff] }
 0xf64   :  { %6453 = vst [vmem:[%s13035_s3 + $0x360] sm:$0xff] %v6261_v58  ;;  %v14254_v11 = vld [vmem:[#allocation193_spill] sm:$0xff] }
 0xf65   :  { %6454 = vst [vmem:[%s13035_s3 + $0x368] sm:$0xff] %v6262_v47 }
 0xf66   :  { %6469 = vst [vmem:[%s13035_s3 + $0x3e0] sm:$0xff] %v6277_v28 }
 0xf67   :  { %6470 = vst [vmem:[%s13035_s3 + $0x3e8] sm:$0xff] %v6278_v37 }
 0xf68   :  { %6125 = vperm.xlu1 %7320, %v4995_v33   ;;  %v14237_v33 = vld [vmem:[#allocation173_spill] sm:$0xff] }
 0xf69   :  { %v4802_v36 = vpop.permute.xlu1 %4801  ;;  %v6001_v24 = vpop.permute.xlu2 %6000  ;;  %v5635_v27 = vmul.f32 %v12281_v56, %v14237_v33  ;;  %v14242_v56 = vld [vmem:[#allocation38_spill] sm:$0xff] }
 0xf6a   :  { %v4997_v12 = vsub.f32 %v7588_v45, %v4802_v36  ;;  %v6283_v50 = vadd.f32 %v6001_v24, %v5611_v48  ;;  %v6284_v5 = vadd.f32 %v6001_v24, %v5612_v25  ;;  %v14239_v48 = vld [vmem:[#allocation70_spill] sm:$0xff]  ;;  %v14241_v36 = vld [vmem:[#allocation155_spill] sm:$0xff] }
 0xf6b   :  { %v5601_v25 = vmul.f32 %v14240_v16, %v14239_v48  ;;  %v5602_v24 = vmul.f32 %v14240_v16, %v14241_v36  ;;  %v14258_v16 = vld [vmem:[#allocation165_spill] sm:$0xff] }
 0xf6c   :  { %6475 = vst [vmem:[%s13035_s3 + $0x410] sm:$0xff] %v6283_v50  ;;  %6135 = vperm.xlu2 %7319, %v4997_v12  }
 0xf6d   :  { %6476 = vst [vmem:[%s13035_s3 + $0x418] sm:$0xff] %v6284_v5 }
 0xf70   :  { %6140 = vperm.xlu1 %7320, %v4998_v21   ;;  %v5641_v21 = vmul.f32 %v12288_v52, %v14242_v56 }
 0xf71   :  { %v12785_v55 = vpop.permute.xlu1 %5473  ;;  %v6016_v18 = vpop.permute.xlu2 %6015 }
 0xf72   :  { %v6289_v0 = vadd.f32 %v6016_v18, %v5617_v40  ;;  %v6290_v62 = vadd.f32 %v6016_v18, %v5618_v10  ;;  %v5642_v40 = vmul.f32 %v12288_v52, %v14243_v6  ;;  %v14245_v10 = vld [vmem:[#allocation76_spill] sm:$0xff]  ;;  %v14247_v52 = vld [vmem:[#allocation67_spill] sm:$0xff] }
 0xf73   :  { %v6131_v2 = vpop.permute.xlu0 %6130  ;;  %v5607_v18 = vmul.f32 %v14245_v10, %v14244_v60 }
 0xf74   :  { %6481 = vst [vmem:[%s13035_s3 + $0x440] sm:$0xff] %v6289_v0  ;;  %v6335_v22 = vadd.f32 %v6131_v2, %v5663_v44  ;;  %v6336_v61 = vadd.f32 %v6131_v2, %v5664_v1  ;;  %v14246_v44 = vld [vmem:[#allocation158_spill] sm:$0xff] }
 0xf75   :  { %6482 = vst [vmem:[%s13035_s3 + $0x448] sm:$0xff] %v6290_v62  ;;  %v5608_v1 = vmul.f32 %v14245_v10, %v14246_v44  ;;  %v14265_v44 = vld [vmem:[#allocation130_spill] sm:$0xff] }
 0xf76   :  { %6527 = vst [vmem:[%s13035_s3 + $0x5b0] sm:$0xff] %v6335_v22 }
 0xf77   :  { %6528 = vst [vmem:[%s13035_s3 + $0x5b8] sm:$0xff] %v6336_v61 }
 0xf79   :  { %v6031_v39 = vpop.permute.xlu2 %6030 }
 0xf7a   :  { %v6295_v14 = vadd.f32 %v6031_v39, %v5623_v17  ;;  %v6296_v9 = vadd.f32 %v6031_v39, %v5624_v23  ;;  %v5961_v19 = vpop.permute.xlu1 %5960  ;;  %v5647_v17 = vmul.f32 %v12293_v26, %v14247_v52  ;;  %v5648_v23 = vmul.f32 %v12293_v26, %v14248_v31  ;;  %v14252_v26 = vld [vmem:[#allocation75_spill] sm:$0xff] }
 0xf7b   :  { %v6267_v41 = vadd.f32 %v5961_v19, %v5595_v42  ;;  %v6268_v8 = vadd.f32 %v5961_v19, %v5596_v29  ;;  %v5613_v42 = vmul.f32 %v14250_v4, %v14249_v46  ;;  %v5614_v29 = vmul.f32 %v14250_v4, %v14251_v13  ;;  %v14268_v52 = vld [vmem:[#allocation135_spill] sm:$0xff] }
 0xf7c   :  { %6487 = vst [vmem:[%s13035_s3 + $0x470] sm:$0xff] %v6295_v14  ;;  %v14269_v31 = vld [vmem:[#allocation175_spill] sm:$0xff]  ;;  %v5669_v13 = vmul.f32 %v12785_v55, %v14089_v35 }
 0xf7d   :  { %6488 = vst [vmem:[%s13035_s3 + $0x478] sm:$0xff] %v6296_v9 }
 0xf7e   :  { %6459 = vst [vmem:[%s13035_s3 + $0x390] sm:$0xff] %v6267_v41 }
 0xf7f   :  { %6460 = vst [vmem:[%s13035_s3 + $0x398] sm:$0xff] %v6268_v8 }
 0xf81   :  { %v6046_v58 = vpop.permute.xlu2 %6045 }
 0xf82   :  { %v6301_v47 = vadd.f32 %v6046_v58, %v5629_v15  ;;  %v6302_v28 = vadd.f32 %v6046_v58, %v5630_v53  ;;  %v4808_v37 = vpop.permute.xlu1 %4807  ;;  %v5653_v15 = vmul.f32 %v14253_v30, %v14252_v26  ;;  %v5654_v53 = vmul.f32 %v14253_v30, %v14254_v11  ;;  %v14255_v58 = vld [vmem:[#allocation34_spill] sm:$0xff] }
 0xf83   :  { %v5000_v63 = vsub.f32 %v14236_v7, %v4808_v37  ;;  %v14257_v37 = vld [vmem:[#allocation35_spill] sm:$0xff]  ;;  %v14272_v30 = vld [vmem:[#allocation58_spill] sm:$0xff] }
 0xf84   :  { %6493 = vst [vmem:[%s13035_s3 + $0x4a0] sm:$0xff] %v6301_v47  ;;  %v14256_v47 = vld [vmem:[#allocation8_spill] sm:$0xff] }
 0xf85   :  { %6494 = vst [vmem:[%s13035_s3 + $0x4a8] sm:$0xff] %v6302_v28  ;;  %6150 = vperm.xlu2 %7319, %v5000_v63   ;;  %v5619_v28 = vmul.f32 %v14256_v47, %v14255_v58  ;;  %v5620_v7 = vmul.f32 %v14256_v47, %v14257_v37  ;;  %v14275_v37 = vld [vmem:[#allocation45_spill] sm:$0xff] }
 0xf89   :  { %v6061_v45 = vpop.permute.xlu2 %6060 }
 0xf8a   :  { %v6307_v12 = vadd.f32 %v6061_v45, %v5635_v27  ;;  %v6308_v50 = vadd.f32 %v6061_v45, %v5636_v59  ;;  %v5976_v5 = vpop.permute.xlu1 %5975 }
 0xf8b   :  { %v6273_v54 = vadd.f32 %v5976_v5, %v5601_v25  ;;  %v6274_v49 = vadd.f32 %v5976_v5, %v5602_v24  ;;  %v14259_v25 = vld [vmem:[#allocation9_spill] sm:$0xff]  ;;  %v14260_v24 = vld [vmem:[#allocation166_spill] sm:$0xff] }
 0xf8c   :  { %6499 = vst [vmem:[%s13035_s3 + $0x4d0] sm:$0xff] %v6307_v12  ;;  %v5625_v36 = vmul.f32 %v14259_v25, %v14258_v16  ;;  %v5626_v45 = vmul.f32 %v14259_v25, %v14260_v24  ;;  %v14278_v16 = vld [vmem:[#allocation50_spill] sm:$0xff] }
 0xf8d   :  { %6500 = vst [vmem:[%s13035_s3 + $0x4d8] sm:$0xff] %v6308_v50  ;;  %v5656_v25 = vmul.f32 %v12474_v38, %v14278_v16 }
 0xf8e   :  { %6465 = vst [vmem:[%s13035_s3 + $0x3c0] sm:$0xff] %v6273_v54  ;;  %v14261_v54 = vld [vmem:[#allocation89_spill] sm:$0xff] }
 0xf8f   :  { %6466 = vst [vmem:[%s13035_s3 + $0x3c8] sm:$0xff] %v6274_v49  ;;  %v14262_v49 = vld [vmem:[#allocation14_spill] sm:$0xff] }
 0xf90   :  { %v5659_v56 = vmul.f32 %v14262_v49, %v14261_v54 }
 0xf91   :  { %v6076_v0 = vpop.permute.xlu2 %6075 }
 0xf92   :  { %v6313_v62 = vadd.f32 %v6076_v0, %v5641_v21  ;;  %v6314_v2 = vadd.f32 %v6076_v0, %v5642_v40  ;;  %v5991_v22 = vpop.permute.xlu1 %5990  ;;  %v14263_v21 = vld [vmem:[#allocation194_spill] sm:$0xff] }
 0xf93   :  { %v6279_v61 = vadd.f32 %v5991_v22, %v5607_v18  ;;  %v6280_v20 = vadd.f32 %v5991_v22, %v5608_v1  ;;  %v5660_v6 = vmul.f32 %v14262_v49, %v14263_v21  ;;  %v14264_v18 = vld [vmem:[#allocation66_spill] sm:$0xff] }
 0xf94   :  { %6505 = vst [vmem:[%s13035_s3 + $0x500] sm:$0xff] %v6313_v62  ;;  %v5631_v1 = vmul.f32 %v14265_v44, %v14264_v18  ;;  %v14266_v0 = vld [vmem:[#allocation170_spill] sm:$0xff] }
 0xf95   :  { %6506 = vst [vmem:[%s13035_s3 + $0x508] sm:$0xff] %v6314_v2  ;;  %v5632_v62 = vmul.f32 %v14265_v44, %v14266_v0  ;;  %v14281_v21 = vld [vmem:[#allocation102_spill] sm:$0xff] }
 0xf96   :  { %6471 = vst [vmem:[%s13035_s3 + $0x3f0] sm:$0xff] %v6279_v61 }
 0xf97   :  { %6472 = vst [vmem:[%s13035_s3 + $0x3f8] sm:$0xff] %v6280_v20  ;;  %v14267_v20 = vld [vmem:[#allocation161_spill] sm:$0xff] }
 0xf99   :  { %v6091_v39 = vpop.permute.xlu2 %6090 }
 0xf9a   :  { %v6319_v14 = vadd.f32 %v6091_v39, %v5647_v17  ;;  %v6320_v9 = vadd.f32 %v6091_v39, %v5648_v23  ;;  %v6006_v19 = vpop.permute.xlu1 %6005  ;;  %v5637_v17 = vmul.f32 %v14268_v52, %v14267_v20  ;;  %v5638_v23 = vmul.f32 %v14268_v52, %v14269_v31 }
 0xf9b   :  { %v6285_v41 = vadd.f32 %v6006_v19, %v5613_v42  ;;  %v6286_v8 = vadd.f32 %v6006_v19, %v5614_v29  ;;  %v5670_v29 = vmul.f32 %v12785_v55, %v14090_v3  ;;  %v14270_v19 = vld [vmem:[#allocation93_spill] sm:$0xff] }
 0xf9c   :  { %6511 = vst [vmem:[%s13035_s3 + $0x530] sm:$0xff] %v6319_v14 }
 0xf9d   :  { %6512 = vst [vmem:[%s13035_s3 + $0x538] sm:$0xff] %v6320_v9 }
 0xf9e   :  { %6477 = vst [vmem:[%s13035_s3 + $0x420] sm:$0xff] %v6285_v41  ;;  %v5643_v41 = vmul.f32 %v12325_v43, %v14270_v19 }
 0xf9f   :  { %6478 = vst [vmem:[%s13035_s3 + $0x428] sm:$0xff] %v6286_v8  ;;  %v14271_v8 = vld [vmem:[#allocation181_spill] sm:$0xff] }
 0xfa0   :  { %v5644_v35 = vmul.f32 %v12325_v43, %v14271_v8 }
 0xfa1   :  { %v6106_v63 = vpop.permute.xlu2 %6105 }
 0xfa2   :  { %v6325_v33 = vadd.f32 %v6106_v63, %v5653_v15  ;;  %v6326_v27 = vadd.f32 %v6106_v63, %v5654_v53  ;;  %v6021_v51 = vpop.permute.xlu1 %6020  ;;  %v14273_v15 = vld [vmem:[#allocation134_spill] sm:$0xff]  ;;  %v14274_v53 = vld [vmem:[#allocation7_spill] sm:$0xff]  ;;  %v14276_v63 = vld [vmem:[#allocation148_spill] sm:$0xff] }
 0xfa3   :  { %v6291_v59 = vadd.f32 %v6021_v51, %v5619_v28  ;;  %v6292_v48 = vadd.f32 %v6021_v51, %v5620_v7  ;;  %v5665_v11 = vmul.f32 %v14273_v15, %v14272_v30  ;;  %v5666_v58 = vmul.f32 %v14273_v15, %v14274_v53 }
 0xfa4   :  { %6517 = vst [vmem:[%s13035_s3 + $0x560] sm:$0xff] %v6325_v33  ;;  %v5649_v7 = vmul.f32 %v12415_v32, %v14275_v37  ;;  %v5650_v33 = vmul.f32 %v12415_v32, %v14276_v63  ;;  %v14277_v32 = vld [vmem:[#allocation168_spill] sm:$0xff] }
 0xfa5   :  { %6518 = vst [vmem:[%s13035_s3 + $0x568] sm:$0xff] %v6326_v27 }
 0xfa6   :  { %6483 = vst [vmem:[%s13035_s3 + $0x450] sm:$0xff] %v6291_v59 }
 0xfa7   :  { %6484 = vst [vmem:[%s13035_s3 + $0x458] sm:$0xff] %v6292_v48  ;;  %v5655_v48 = vmul.f32 %v12474_v38, %v14277_v32 }
 0xfaa   :  { %v6036_v12 = vpop.permute.xlu1 %6035 }
 0xfab   :  { %v6297_v50 = vadd.f32 %v6036_v12, %v5625_v36  ;;  %v6298_v5 = vadd.f32 %v6036_v12, %v5626_v45  ;;  %v14279_v12 = vld [vmem:[#allocation22_spill] sm:$0xff] }
 0xfad   :  { %6489 = vst [vmem:[%s13035_s3 + $0x480] sm:$0xff] %v6297_v50  ;;  %v6121_v40 = vpop.permute.xlu2 %6120  ;;  %v5661_v50 = vmul.f32 %v12541_v34, %v14279_v12 }
 0xfae   :  { %6490 = vst [vmem:[%s13035_s3 + $0x488] sm:$0xff] %v6298_v5  ;;  %v6331_v60 = vadd.f32 %v6121_v40, %v5659_v56  ;;  %v6332_v10 = vadd.f32 %v6121_v40, %v5660_v6  ;;  %v14280_v5 = vld [vmem:[#allocation196_spill] sm:$0xff]  ;;  %v14282_v6 = vld [vmem:[#allocation26_spill] sm:$0xff] }
 0xfaf   :  { %v5662_v54 = vmul.f32 %v12541_v34, %v14280_v5  ;;  %v5671_v40 = vmul.f32 %v14282_v6, %v14281_v21 }
 0xfb0   :  { %6523 = vst [vmem:[%s13035_s3 + $0x590] sm:$0xff] %v6331_v60  ;;  %v14283_v60 = vld [vmem:[#allocation85_spill] sm:$0xff] }
 0xfb1   :  { %6524 = vst [vmem:[%s13035_s3 + $0x598] sm:$0xff] %v6332_v10  ;;  %v5672_v10 = vmul.f32 %v14282_v6, %v14283_v60 }
 0xfb2   :  { %v6051_v2 = vpop.permute.xlu1 %6050 }
 0xfb3   :  { %v6303_v22 = vadd.f32 %v6051_v2, %v5631_v1  ;;  %v6304_v61 = vadd.f32 %v6051_v2, %v5632_v62  ;;  %v14284_v1 = vld [vmem:[#allocation113_spill] sm:$0xff]  ;;  %v14285_v62 = vld [vmem:[#allocation198_spill] sm:$0xff] }
 0xfb4   :  { %v5667_v0 = vmul.f32 %v12679_v57, %v14284_v1  ;;  %v5668_v2 = vmul.f32 %v12679_v57, %v14285_v62 }
 0xfb5   :  { %6495 = vst [vmem:[%s13035_s3 + $0x4b0] sm:$0xff] %v6303_v22 }
 0xfb6   :  { %6496 = vst [vmem:[%s13035_s3 + $0x4b8] sm:$0xff] %v6304_v61 }
 0xfba   :  { %v6066_v46 = vpop.permute.xlu1 %6065 }
 0xfbb   :  { %v6309_v4 = vadd.f32 %v6066_v46, %v5637_v17  ;;  %v6310_v42 = vadd.f32 %v6066_v46, %v5638_v23 }
 0xfbd   :  { %6501 = vst [vmem:[%s13035_s3 + $0x4e0] sm:$0xff] %v6309_v4 }
 0xfbe   :  { %6502 = vst [vmem:[%s13035_s3 + $0x4e8] sm:$0xff] %v6310_v42  ;;  %v6146_v39 = vpop.permute.xlu0 %6145 }
 0xfbf   :  { %v6341_v14 = vadd.f32 %v6146_v39, %v5669_v13  ;;  %v6342_v9 = vadd.f32 %v6146_v39, %v5670_v29 }
 0xfc1   :  { %6533 = vst [vmem:[%s13035_s3 + $0x5e0] sm:$0xff] %v6341_v14 }
 0xfc2   :  { %6534 = vst [vmem:[%s13035_s3 + $0x5e8] sm:$0xff] %v6342_v9  ;;  %v6081_v3 = vpop.permute.xlu1 %6080 }
 0xfc3   :  { %v6315_v55 = vadd.f32 %v6081_v3, %v5643_v41  ;;  %v6316_v26 = vadd.f32 %v6081_v3, %v5644_v35 }
 0xfc5   :  { %6507 = vst [vmem:[%s13035_s3 + $0x510] sm:$0xff] %v6315_v55 }
 0xfc6   :  { %6508 = vst [vmem:[%s13035_s3 + $0x518] sm:$0xff] %v6316_v26  ;;  %v6136_v43 = vpop.permute.xlu2 %6135 }
 0xfc7   :  { %v6337_v47 = vadd.f32 %v6136_v43, %v5665_v11  ;;  %v6338_v28 = vadd.f32 %v6136_v43, %v5666_v58 }
 0xfc9   :  { %6529 = vst [vmem:[%s13035_s3 + $0x5c0] sm:$0xff] %v6337_v47 }
 0xfca   :  { %6530 = vst [vmem:[%s13035_s3 + $0x5c8] sm:$0xff] %v6338_v28  ;;  %v6096_v27 = vpop.permute.xlu1 %6095 }
 0xfcb   :  { %v6321_v51 = vadd.f32 %v6096_v27, %v5649_v7  ;;  %v6322_v59 = vadd.f32 %v6096_v27, %v5650_v33 }
 0xfcd   :  { %6513 = vst [vmem:[%s13035_s3 + $0x540] sm:$0xff] %v6321_v51 }
 0xfce   :  { %6514 = vst [vmem:[%s13035_s3 + $0x548] sm:$0xff] %v6322_v59 }
 0xfd2   :  { %v6111_v36 = vpop.permute.xlu1 %6110 }
 0xfd3   :  { %v6327_v24 = vadd.f32 %v6111_v36, %v5655_v48  ;;  %v6328_v45 = vadd.f32 %v6111_v36, %v5656_v25 }
 0xfd5   :  { %6519 = vst [vmem:[%s13035_s3 + $0x570] sm:$0xff] %v6327_v24 }
 0xfd6   :  { %6520 = vst [vmem:[%s13035_s3 + $0x578] sm:$0xff] %v6328_v45 }
 0xfda   :  { %v6126_v49 = vpop.permute.xlu1 %6125 }
 0xfdb   :  { %v6333_v56 = vadd.f32 %v6126_v49, %v5661_v50  ;;  %v6334_v38 = vadd.f32 %v6126_v49, %v5662_v54 }
 0xfdd   :  { %6525 = vst [vmem:[%s13035_s3 + $0x5a0] sm:$0xff] %v6333_v56 }
 0xfde   :  { %6526 = vst [vmem:[%s13035_s3 + $0x5a8] sm:$0xff] %v6334_v38 }
 0xfdf   :  { %v6151_v18 = vpop.permute.xlu2 %6150 }
 0xfe0   :  { %v6343_v44 = vadd.f32 %v6151_v18, %v5671_v40  ;;  %v6344_v34 = vadd.f32 %v6151_v18, %v5672_v10 }
 0xfe2   :  { %6535 = vst [vmem:[%s13035_s3 + $0x5f0] sm:$0xff] %v6343_v44  ;;  %v6141_v22 = vpop.permute.xlu1 %6140 }
 0xfe3   :  { %6536 = vst [vmem:[%s13035_s3 + $0x5f8] sm:$0xff] %v6344_v34  ;;  %v6339_v61 = vadd.f32 %v6141_v22, %v5667_v0  ;;  %v6340_v20 = vadd.f32 %v6141_v22, %v5668_v2 }
 0xfe5   :  { %6531 = vst [vmem:[%s13035_s3 + $0x5d0] sm:$0xff] %v6339_v61 }
 0xfe6   :  { %6532 = vst [vmem:[%s13035_s3 + $0x5d8] sm:$0xff] %v6340_v20 }

</bundles_post_ra>
